<compile_context>
chip_gen: v7x
topology: tpu7x:2x2x1
jax: 0.10.0
libtpu: 0.0.40
codegen_flags: <defaults>
</compile_context>

<pallas_src>
import functools
import math

import jax
import jax.numpy as jnp
from jax.experimental import pallas as pl
from jax.experimental.pallas import tpu as pltpu

EPS = 1e-5            # nn.BatchNorm2d default eps
NEG_BIG = -1e30       # max-pool padding value (acts like -inf)
VMEM_X_BUDGET = 4 * 1024 * 1024  # per-block activation budget for the conv/pool kernels


def _round_up(a, b):
    return (a + b - 1) // b * b


def _row_tile(m):
    """Row-tile size and padded row count for (M, C) elementwise kernels."""
    tm = 512 if m >= 512 else _round_up(max(m, 1), 8)
    return tm, _round_up(m, tm)


def _pick_batch_block(n, per_image_bytes):
    nb = n
    while nb > 1 and (nb * per_image_bytes > VMEM_X_BUDGET or n % nb != 0):
        nb -= 1
    return max(nb, 1)


def _phase_fold(xp, s):
    """(N, Hp, Wp, C) -> (N, s*s*(Hp//s), Wp//s, C).

    Row-block p = ry*s + rx holds the stride-phase image xp[:, ry::s, rx::s, :],
    so a stride-s conv tap (ky, kx) becomes a plain shifted window of phase
    (ky%s, kx%s) at offset (ky//s, kx//s) — no strided reads inside the kernel.
    """
    if s == 1:
        return xp
    n, hp, wp, c = xp.shape
    x6 = xp.reshape(n, hp // s, s, wp // s, s, c)
    return jnp.transpose(x6, (0, 2, 4, 1, 3, 5)).reshape(n, s * s * (hp // s), wp // s, c)


# ----------------------------- Pallas kernels ------------------------------

def _conv_kernel(x_ref, w_ref, o_ref, *, kh, kw, stride, hph, ho, wo):
    """Fused im2col conv: kh*kw shifted-window bf16 dots, f32 accumulation."""
    nb, _, _, cb = o_ref.shape
    cin = w_ref.shape[1]
    s = stride
    acc = jnp.zeros((nb * ho * wo, cb), jnp.float32)
    for ky in range(kh):
        for kx in range(kw):
            t = ky * kw + kx
            p = (ky % s) * s + (kx % s)
            dy, dx = ky // s, kx // s
            xt = x_ref[:, p * hph + dy:p * hph + dy + ho, dx:dx + wo, :]
            acc += jnp.dot(xt.reshape(nb * ho * wo, cin), w_ref[t],
                           preferred_element_type=jnp.float32)
    o_ref[...] = acc.reshape(nb, ho, wo, cb).astype(o_ref.dtype)


def _bn_stats_kernel(x_ref, sum_ref, ssq_ref):
    """Pass 1: global per-channel sum / sum-of-squares (accumulated over the grid)."""
    @pl.when(pl.program_id(0) == 0)
    def _():
        sum_ref[...] = jnp.zeros_like(sum_ref)
        ssq_ref[...] = jnp.zeros_like(ssq_ref)
    x = x_ref[...].astype(jnp.float32)
    sum_ref[...] += jnp.sum(x, axis=0, keepdims=True)
    ssq_ref[...] += jnp.sum(x * x, axis=0, keepdims=True)


def _bn_scale_shift(sum_v, ssq_v, g_v, b_v, m):
    inv_m = 1.0 / m
    mean = sum_v * inv_m
    var = jnp.maximum(ssq_v * inv_m - mean * mean, 0.0)
    scale = g_v * jax.lax.rsqrt(var + EPS)
    shift = b_v - mean * scale
    return scale, shift


def _bn_apply_kernel(x_ref, sum_ref, ssq_ref, g_ref, b_ref, o_ref, *, m, relu):
    """Pass 2: normalize (+ ReLU)."""
    scale, shift = _bn_scale_shift(sum_ref[...], ssq_ref[...], g_ref[...], b_ref[...], m)
    y = x_ref[...].astype(jnp.float32) * scale + shift
    if relu:
        y = jnp.maximum(y, 0.0)
    o_ref[...] = y.astype(o_ref.dtype)


def _bn_apply_add_kernel(x_ref, sum_ref, ssq_ref, g_ref, b_ref, r_ref, o_ref, *, m):
    """Pass 2 fused epilogue: relu(bn3(x)) then relu(. + shortcut)."""
    scale, shift = _bn_scale_shift(sum_ref[...], ssq_ref[...], g_ref[...], b_ref[...], m)
    y = jnp.maximum(x_ref[...].astype(jnp.float32) * scale + shift, 0.0)
    y = jnp.maximum(y + r_ref[...].astype(jnp.float32), 0.0)
    o_ref[...] = y.astype(o_ref.dtype)


def _add_relu_kernel(a_ref, b_ref, o_ref):
    y = a_ref[...].astype(jnp.float32) + b_ref[...].astype(jnp.float32)
    o_ref[...] = jnp.maximum(y, 0.0).astype(o_ref.dtype)


def _maxpool_kernel(x_ref, o_ref, *, kh, kw, stride, hph, ho, wo):
    s = stride
    out = None
    for ky in range(kh):
        for kx in range(kw):
            p = (ky % s) * s + (kx % s)
            dy, dx = ky // s, kx // s
            win = x_ref[:, p * hph + dy:p * hph + dy + ho, dx:dx + wo, :]
            out = win if out is None else jnp.maximum(out, win)
    o_ref[...] = out


# ------------------------------ layer wrappers ------------------------------

@functools.partial(jax.jit, static_argnames=("kh", "kw", "stride", "pad"))
def conv2d(x, wm, *, kh, kw, stride, pad):
    """x: NHWC bf16.  wm: (kh*kw, Cin, Cout) bf16.  Bias omitted (cancelled by BN)."""
    s = stride
    if kh == 1 and kw == 1 and s > 1:          # 1x1 strided conv == strided slice + 1x1
        x = x[:, ::s, ::s, :]
        s = 1
    n, h, w, cin = x.shape
    cout = wm.shape[2]
    ho = (h + 2 * pad - kh) // s + 1
    wo = (w + 2 * pad - kw) // s + 1

    # Zero-pad spatially; extend to a multiple of the stride for the phase split.
    hp = _round_up(h + 2 * pad, s)
    wp = _round_up(w + 2 * pad, s)
    xp = jnp.pad(x, ((0, 0), (pad, hp - h - pad), (pad, wp - w - pad), (0, 0)))
    xph = _phase_fold(xp, s)
    hph, wph = hp // s, wp // s

    cb = 256 if (cout > 256 and cout % 256 == 0) else cout   # lane-dense Cout tiling
    per_image = s * s * hph * wph * cin * 2                   # bf16 bytes per image
    nb = _pick_batch_block(n, per_image)

    return pl.pallas_call(
        functools.partial(_conv_kernel, kh=kh, kw=kw, stride=s, hph=hph, ho=ho, wo=wo),
        out_shape=jax.ShapeDtypeStruct((n, ho, wo, cout), jnp.bfloat16),
        grid=(n // nb, cout // cb),
        in_specs=[
            pl.BlockSpec((nb, s * s * hph, wph, cin), lambda i, j: (i, 0, 0, 0)),
            pl.BlockSpec((kh * kw, cin, cb), lambda i, j: (0, 0, j)),
        ],
        out_specs=pl.BlockSpec((nb, ho, wo, cb), lambda i, j: (i, 0, 0, j)),
        compiler_params=pltpu.CompilerParams(
            dimension_semantics=("parallel", "parallel")),
    )(xph, wm)


def _bn_stats(x2p, tm):
    mp, c = x2p.shape
    return pl.pallas_call(
        _bn_stats_kernel,
        out_shape=(jax.ShapeDtypeStruct((1, c), jnp.float32),
                   jax.ShapeDtypeStruct((1, c), jnp.float32)),
        grid=(mp // tm,),
        in_specs=[pl.BlockSpec((tm, c), lambda i: (i, 0))],
        out_specs=(pl.BlockSpec((1, c), lambda i: (0, 0)),
                   pl.BlockSpec((1, c), lambda i: (0, 0))),
        compiler_params=pltpu.CompilerParams(dimension_semantics=("arbitrary",)),
    )(x2p)


@functools.partial(jax.jit, static_argnames=("relu",))
def batchnorm(x, gamma, beta, *, relu):
    """Training-mode BatchNorm2d forward (biased batch statistics), optional ReLU."""
    n, h, w, c = x.shape
    m = n * h * w
    tm, mp = _row_tile(m)
    x2p = jnp.pad(x.reshape(m, c), ((0, mp - m), (0, 0)))
    s_, q_ = _bn_stats(x2p, tm)
    y2p = pl.pallas_call(
        functools.partial(_bn_apply_kernel, m=m, relu=relu),
        out_shape=jax.ShapeDtypeStruct((mp, c), jnp.bfloat16),
        grid=(mp // tm,),
        in_specs=[
            pl.BlockSpec((tm, c), lambda i: (i, 0)),
            pl.BlockSpec((1, c), lambda i: (0, 0)),
            pl.BlockSpec((1, c), lambda i: (0, 0)),
            pl.BlockSpec((1, c), lambda i: (0, 0)),
            pl.BlockSpec((1, c), lambda i: (0, 0)),
        ],
        out_specs=pl.BlockSpec((tm, c), lambda i: (i, 0)),
        compiler_params=pltpu.CompilerParams(dimension_semantics=("parallel",)),
    )(x2p, s_, q_, gamma.reshape(1, c), beta.reshape(1, c))
    return y2p[:m].reshape(n, h, w, c)


@jax.jit
def batchnorm_add_relu(x, gamma, beta, shortcut):
    """Fused epilogue for identity/equal-shape blocks: relu(relu(bn3(x)) + shortcut)."""
    n, h, w, c = x.shape
    m = n * h * w
    tm, mp = _row_tile(m)
    x2p = jnp.pad(x.reshape(m, c), ((0, mp - m), (0, 0)))
    r2p = jnp.pad(shortcut.reshape(m, c), ((0, mp - m), (0, 0)))
    s_, q_ = _bn_stats(x2p, tm)
    y2p = pl.pallas_call(
        functools.partial(_bn_apply_add_kernel, m=m),
        out_shape=jax.ShapeDtypeStruct((mp, c), jnp.bfloat16),
        grid=(mp // tm,),
        in_specs=[
            pl.BlockSpec((tm, c), lambda i: (i, 0)),
            pl.BlockSpec((1, c), lambda i: (0, 0)),
            pl.BlockSpec((1, c), lambda i: (0, 0)),
            pl.BlockSpec((1, c), lambda i: (0, 0)),
            pl.BlockSpec((1, c), lambda i: (0, 0)),
            pl.BlockSpec((tm, c), lambda i: (i, 0)),
        ],
        out_specs=pl.BlockSpec((tm, c), lambda i: (i, 0)),
        compiler_params=pltpu.CompilerParams(dimension_semantics=("parallel",)),
    )(x2p, s_, q_, gamma.reshape(1, c), beta.reshape(1, c), r2p)
    return y2p[:m].reshape(n, h, w, c)


@jax.jit
def add_relu(a, b):
    """Fallback residual add for stride-2 blocks where PyTorch broadcasting applies."""
    shape = jnp.broadcast_shapes(a.shape, b.shape)
    a = jnp.broadcast_to(a, shape)
    b = jnp.broadcast_to(b, shape)
    c = shape[-1]
    m = math.prod(shape[:-1])
    tm, mp = _row_tile(m)
    a2 = jnp.pad(a.reshape(m, c), ((0, mp - m), (0, 0)))
    b2 = jnp.pad(b.reshape(m, c), ((0, mp - m), (0, 0)))
    y = pl.pallas_call(
        _add_relu_kernel,
        out_shape=jax.ShapeDtypeStruct((mp, c), jnp.bfloat16),
        grid=(mp // tm,),
        in_specs=[pl.BlockSpec((tm, c), lambda i: (i, 0)),
                  pl.BlockSpec((tm, c), lambda i: (i, 0))],
        out_specs=pl.BlockSpec((tm, c), lambda i: (i, 0)),
        compiler_params=pltpu.CompilerParams(dimension_semantics=("parallel",)),
    )(a2, b2)
    return y[:m].reshape(shape)


@jax.jit
def maxpool_3x3_s2_p1(x):
    """nn.MaxPool2d(kernel_size=3, stride=2, padding=1); padding behaves like -inf."""
    kh = kw = 3
    s, pad = 2, 1
    n, h, w, c = x.shape
    ho = (h + 2 * pad - kh) // s + 1
    wo = (w + 2 * pad - kw) // s + 1
    hp = _round_up(h + 2 * pad, s)
    wp = _round_up(w + 2 * pad, s)
    xp = jnp.pad(x, ((0, 0), (pad, hp - h - pad), (pad, wp - w - pad), (0, 0)),
                 constant_values=NEG_BIG)
    xph = _phase_fold(xp, s)
    hph, wph = hp // s, wp // s
    per_image = s * s * hph * wph * c * 2
    nb = _pick_batch_block(n, per_image)
    return pl.pallas_call(
        functools.partial(_maxpool_kernel, kh=kh, kw=kw, stride=s, hph=hph, ho=ho, wo=wo),
        out_shape=jax.ShapeDtypeStruct((n, ho, wo, c), x.dtype),
        grid=(n // nb,),
        in_specs=[pl.BlockSpec((nb, s * s * hph, wph, c), lambda i: (i, 0, 0, 0))],
        out_specs=pl.BlockSpec((nb, ho, wo, c), lambda i: (i, 0, 0, 0)),
        compiler_params=pltpu.CompilerParams(dimension_semantics=("parallel",)),
    )(xph)


# ------------------------------ parameters ---------------------------------

def init_params(key, architecture="ResNet50"):
    assert architecture in ("ResNet50", "ResNet101")
    layers = {"ResNet50": [3, 4, 6, 3], "ResNet101": [3, 4, 23, 3]}[architecture]
    planes_list = [64, 128, 256, 512]
    strides = [1, 2, 2, 2]
    keys = iter(jax.random.split(key, 512))

    def conv_init(cin, cout, kh, kw):
        fan_in = cin * kh * kw
        wmat = jax.random.normal(next(keys), (kh * kw, cin, cout), jnp.float32)
        wmat = wmat / math.sqrt(fan_in)
        # Stored once in bf16, already in the (taps, Cin, Cout) layout the MXU kernel wants.
        # Conv biases are omitted: training-mode BN's mean subtraction cancels them exactly.
        return {"w": wmat.astype(jnp.bfloat16)}

    def bn_init(c):
        return {"gamma": jnp.ones((c,), jnp.float32),
                "beta": jnp.zeros((c,), jnp.float32)}

    stem = {"conv": conv_init(3, 64, 7, 7), "bn": bn_init(64)}

    inplanes = 64
    stages = []
    for planes, nblocks, stride in zip(planes_list, layers, strides):
        blocks = []
        for bi in range(nblocks):
            s = stride if bi == 0 else 1
            blk = {
                "conv1": conv_init(inplanes, planes, 1, 1),
                "bn1": bn_init(planes),
                "conv2": conv_init(planes, planes, 3, 3),
                "bn2": bn_init(planes),
                "conv3": conv_init(planes, planes * 4, 1, 1),
                "bn3": bn_init(planes * 4),
                "stride": s,
            }
            if bi == 0 and (s != 1 or inplanes != planes * 4):
                blk["downsample"] = {"conv": conv_init(inplanes, planes * 4, 1, 1),
                                     "bn": bn_init(planes * 4)}
            blocks.append(blk)
            inplanes = planes * 4
        stages.append(blocks)
    return {"stem": stem, "stages": stages}


# ------------------------------- forward -----------------------------------

def bottleneck_forward(x, blk):
    s = blk["stride"]
    if "downsample" in blk:
        ds = blk["downsample"]
        shortcut = conv2d(x, ds["conv"]["w"], kh=1, kw=1, stride=s, pad=0)
        shortcut = batchnorm(shortcut, ds["bn"]["gamma"], ds["bn"]["beta"], relu=False)
    else:
        shortcut = x
    y = conv2d(x, blk["conv1"]["w"], kh=1, kw=1, stride=s, pad=0)
    y = batchnorm(y, blk["bn1"]["gamma"], blk["bn1"]["beta"], relu=True)
    y = conv2d(y, blk["conv2"]["w"], kh=3, kw=3, stride=s, pad=1)  # stride on conv2 too: faithful
    y = batchnorm(y, blk["bn2"]["gamma"], blk["bn2"]["beta"], relu=True)
    y = conv2d(y, blk["conv3"]["w"], kh=1, kw=1, stride=1, pad=0)
    if y.shape == shortcut.shape:
        # Fused: relu(bn3) + residual add + final relu in one tiled kernel.
        return batchnorm_add_relu(y, blk["bn3"]["gamma"], blk["bn3"]["beta"], shortcut)
    # Stride-2 blocks: main path collapsed spatially; PyTorch-style broadcast add.
    y = batchnorm(y, blk["bn3"]["gamma"], blk["bn3"]["beta"], relu=True)
    return add_relu(y, shortcut)


def resnet_forward(params, x_nchw):
    x = jnp.transpose(x_nchw, (0, 2, 3, 1)).astype(jnp.bfloat16)  # NCHW -> NHWC, bf16 storage
    stem = params["stem"]
    x = conv2d(x, stem["conv"]["w"], kh=7, kw=7, stride=2, pad=3)
    x = batchnorm(x, stem["bn"]["gamma"], stem["bn"]["beta"], relu=True)
    x = maxpool_3x3_s2_p1(x)
    for blocks in params["stages"]:
        for blk in blocks:
            x = bottleneck_forward(x, blk)
    return jnp.transpose(x, (0, 3, 1, 2)).astype(jnp.float32)  # NHWC -> NCHW


# --------------------------------- main -------------------------------------

if __name__ == "__main__":
    key = jax.random.PRNGKey(0)
    pkey, xkey = jax.random.split(key)
    params = init_params(pkey, "ResNet50")
    x = jax.random.normal(xkey, (2, 3, 16, 16), jnp.float32)  # NCHW, like PyTorch
    out = resnet_forward(params, x)
    out = jax.block_until_ready(out)
    assert out.shape == (2, 2048, 1, 1), out.shape
    assert bool(jnp.all(jnp.isfinite(out)))
    print("KERNEL_OK")
</pallas_src>

<mosaic_0001>
module attributes {stable_mosaic.version = 11 : i64} {
  func.func @_conv_kernel(%arg0: i32, %arg1: i32, %arg2: memref<2x44x11x3xbf16, #tpu.memory_space<vmem>>, %arg3: memref<49x3x64xbf16, #tpu.memory_space<vmem>>, %arg4: memref<2x8x8x64xbf16, #tpu.memory_space<vmem>>) attributes {dimension_semantics = [#tpu.dimension_semantics<parallel>, #tpu.dimension_semantics<parallel>], iteration_bounds = array<i64: 1, 1>, scalar_prefetch = 0 : i64, scratch_operands = 0 : i64, tpu.core_type = #tpu.core_type<tc>, window_params = [{transform_indices = @transform_0, window_bounds = array<i64: 2, 44, 11, 3>}, {transform_indices = @transform_1, window_bounds = array<i64: 49, 3, 64>}, {transform_indices = @transform_2, window_bounds = array<i64: 2, 8, 8, 64>}]} {
    %cst = arith.constant 0.000000e+00 : f32
    %0 = vector.broadcast %cst : f32 to vector<128x64xf32>
    %c0 = arith.constant 0 : index
    %c0_0 = arith.constant 0 : index
    %c0_1 = arith.constant 0 : index
    %c0_2 = arith.constant 0 : index
    %1 = vector.load %arg2[%c0, %c0_0, %c0_1, %c0_2] : memref<2x44x11x3xbf16, #tpu.memory_space<vmem>>, vector<2x8x8x3xbf16>
    %2 = vector.shape_cast %1 : vector<2x8x8x3xbf16> to vector<128x3xbf16>
    %c0_3 = arith.constant 0 : index
    %c0_4 = arith.constant 0 : index
    %c0_5 = arith.constant 0 : index
    %3 = vector.load %arg3[%c0_3, %c0_4, %c0_5] : memref<49x3x64xbf16, #tpu.memory_space<vmem>>, vector<1x3x64xbf16>
    %4 = vector.shape_cast %3 : vector<1x3x64xbf16> to vector<3x64xbf16>
    %cst_6 = arith.constant dense<0.000000e+00> : vector<128x64xf32>
    %5 = tpu.matmul %2, %4, %cst_6 {dimension_numbers = #tpu.dot_dimension_numbers<[1], [0], [0], [1], [0, 0, 1, 1], [], []>} : vector<128x3xbf16>, vector<3x64xbf16>, vector<128x64xf32> -> vector<128x64xf32>
    %6 = arith.addf %0, %5 : vector<128x64xf32>
    %c0_7 = arith.constant 0 : index
    %c11 = arith.constant 11 : index
    %c0_8 = arith.constant 0 : index
    %c0_9 = arith.constant 0 : index
    %7 = vector.load %arg2[%c0_7, %c11, %c0_8, %c0_9] : memref<2x44x11x3xbf16, #tpu.memory_space<vmem>>, vector<2x8x8x3xbf16>
    %8 = vector.shape_cast %7 : vector<2x8x8x3xbf16> to vector<128x3xbf16>
    %c1 = arith.constant 1 : index
    %c0_10 = arith.constant 0 : index
    %c0_11 = arith.constant 0 : index
    %9 = vector.load %arg3[%c1, %c0_10, %c0_11] : memref<49x3x64xbf16, #tpu.memory_space<vmem>>, vector<1x3x64xbf16>
    %10 = vector.shape_cast %9 : vector<1x3x64xbf16> to vector<3x64xbf16>
    %cst_12 = arith.constant dense<0.000000e+00> : vector<128x64xf32>
    %11 = tpu.matmul %8, %10, %cst_12 {dimension_numbers = #tpu.dot_dimension_numbers<[1], [0], [0], [1], [0, 0, 1, 1], [], []>} : vector<128x3xbf16>, vector<3x64xbf16>, vector<128x64xf32> -> vector<128x64xf32>
    %12 = arith.addf %6, %11 : vector<128x64xf32>
    %c0_13 = arith.constant 0 : index
    %c0_14 = arith.constant 0 : index
    %c1_15 = arith.constant 1 : index
    %c0_16 = arith.constant 0 : index
    %13 = vector.load %arg2[%c0_13, %c0_14, %c1_15, %c0_16] : memref<2x44x11x3xbf16, #tpu.memory_space<vmem>>, vector<2x8x8x3xbf16>
    %14 = vector.shape_cast %13 : vector<2x8x8x3xbf16> to vector<128x3xbf16>
    %c2 = arith.constant 2 : index
    %c0_17 = arith.constant 0 : index
    %c0_18 = arith.constant 0 : index
    %15 = vector.load %arg3[%c2, %c0_17, %c0_18] : memref<49x3x64xbf16, #tpu.memory_space<vmem>>, vector<1x3x64xbf16>
    %16 = vector.shape_cast %15 : vector<1x3x64xbf16> to vector<3x64xbf16>
    %cst_19 = arith.constant dense<0.000000e+00> : vector<128x64xf32>
    %17 = tpu.matmul %14, %16, %cst_19 {dimension_numbers = #tpu.dot_dimension_numbers<[1], [0], [0], [1], [0, 0, 1, 1], [], []>} : vector<128x3xbf16>, vector<3x64xbf16>, vector<128x64xf32> -> vector<128x64xf32>
    %18 = arith.addf %12, %17 : vector<128x64xf32>
    %c0_20 = arith.constant 0 : index
    %c11_21 = arith.constant 11 : index
    %c1_22 = arith.constant 1 : index
    %c0_23 = arith.constant 0 : index
    %19 = vector.load %arg2[%c0_20, %c11_21, %c1_22, %c0_23] : memref<2x44x11x3xbf16, #tpu.memory_space<vmem>>, vector<2x8x8x3xbf16>
    %20 = vector.shape_cast %19 : vector<2x8x8x3xbf16> to vector<128x3xbf16>
    %c3 = arith.constant 3 : index
    %c0_24 = arith.constant 0 : index
    %c0_25 = arith.constant 0 : index
    %21 = vector.load %arg3[%c3, %c0_24, %c0_25] : memref<49x3x64xbf16, #tpu.memory_space<vmem>>, vector<1x3x64xbf16>
    %22 = vector.shape_cast %21 : vector<1x3x64xbf16> to vector<3x64xbf16>
    %cst_26 = arith.constant dense<0.000000e+00> : vector<128x64xf32>
    %23 = tpu.matmul %20, %22, %cst_26 {dimension_numbers = #tpu.dot_dimension_numbers<[1], [0], [0], [1], [0, 0, 1, 1], [], []>} : vector<128x3xbf16>, vector<3x64xbf16>, vector<128x64xf32> -> vector<128x64xf32>
    %24 = arith.addf %18, %23 : vector<128x64xf32>
    %c0_27 = arith.constant 0 : index
    %c0_28 = arith.constant 0 : index
    %c2_29 = arith.constant 2 : index
    %c0_30 = arith.constant 0 : index
    %25 = vector.load %arg2[%c0_27, %c0_28, %c2_29, %c0_30] : memref<2x44x11x3xbf16, #tpu.memory_space<vmem>>, vector<2x8x8x3xbf16>
    %26 = vector.shape_cast %25 : vector<2x8x8x3xbf16> to vector<128x3xbf16>
    %c4 = arith.constant 4 : index
    %c0_31 = arith.constant 0 : index
    %c0_32 = arith.constant 0 : index
    %27 = vector.load %arg3[%c4, %c0_31, %c0_32] : memref<49x3x64xbf16, #tpu.memory_space<vmem>>, vector<1x3x64xbf16>
    %28 = vector.shape_cast %27 : vector<1x3x64xbf16> to vector<3x64xbf16>
    %cst_33 = arith.constant dense<0.000000e+00> : vector<128x64xf32>
    %29 = tpu.matmul %26, %28, %cst_33 {dimension_numbers = #tpu.dot_dimension_numbers<[1], [0], [0], [1], [0, 0, 1, 1], [], []>} : vector<128x3xbf16>, vector<3x64xbf16>, vector<128x64xf32> -> vector<128x64xf32>
    %30 = arith.addf %24, %29 : vector<128x64xf32>
    %c0_34 = arith.constant 0 : index
    %c11_35 = arith.constant 11 : index
    %c2_36 = arith.constant 2 : index
    %c0_37 = arith.constant 0 : index
    %31 = vector.load %arg2[%c0_34, %c11_35, %c2_36, %c0_37] : memref<2x44x11x3xbf16, #tpu.memory_space<vmem>>, vector<2x8x8x3xbf16>
    %32 = vector.shape_cast %31 : vector<2x8x8x3xbf16> to vector<128x3xbf16>
    %c5 = arith.constant 5 : index
    %c0_38 = arith.constant 0 : index
    %c0_39 = arith.constant 0 : index
    %33 = vector.load %arg3[%c5, %c0_38, %c0_39] : memref<49x3x64xbf16, #tpu.memory_space<vmem>>, vector<1x3x64xbf16>
    %34 = vector.shape_cast %33 : vector<1x3x64xbf16> to vector<3x64xbf16>
    %cst_40 = arith.constant dense<0.000000e+00> : vector<128x64xf32>
    %35 = tpu.matmul %32, %34, %cst_40 {dimension_numbers = #tpu.dot_dimension_numbers<[1], [0], [0], [1], [0, 0, 1, 1], [], []>} : vector<128x3xbf16>, vector<3x64xbf16>, vector<128x64xf32> -> vector<128x64xf32>
    %36 = arith.addf %30, %35 : vector<128x64xf32>
    %c0_41 = arith.constant 0 : index
    %c0_42 = arith.constant 0 : index
    %c3_43 = arith.constant 3 : index
    %c0_44 = arith.constant 0 : index
    %37 = vector.load %arg2[%c0_41, %c0_42, %c3_43, %c0_44] : memref<2x44x11x3xbf16, #tpu.memory_space<vmem>>, vector<2x8x8x3xbf16>
    %38 = vector.shape_cast %37 : vector<2x8x8x3xbf16> to vector<128x3xbf16>
    %c6 = arith.constant 6 : index
    %c0_45 = arith.constant 0 : index
    %c0_46 = arith.constant 0 : index
    %39 = vector.load %arg3[%c6, %c0_45, %c0_46] : memref<49x3x64xbf16, #tpu.memory_space<vmem>>, vector<1x3x64xbf16>
    %40 = vector.shape_cast %39 : vector<1x3x64xbf16> to vector<3x64xbf16>
    %cst_47 = arith.constant dense<0.000000e+00> : vector<128x64xf32>
    %41 = tpu.matmul %38, %40, %cst_47 {dimension_numbers = #tpu.dot_dimension_numbers<[1], [0], [0], [1], [0, 0, 1, 1], [], []>} : vector<128x3xbf16>, vector<3x64xbf16>, vector<128x64xf32> -> vector<128x64xf32>
    %42 = arith.addf %36, %41 : vector<128x64xf32>
    %c0_48 = arith.constant 0 : index
    %c22 = arith.constant 22 : index
    %c0_49 = arith.constant 0 : index
    %c0_50 = arith.constant 0 : index
    %43 = vector.load %arg2[%c0_48, %c22, %c0_49, %c0_50] : memref<2x44x11x3xbf16, #tpu.memory_space<vmem>>, vector<2x8x8x3xbf16>
    %44 = vector.shape_cast %43 : vector<2x8x8x3xbf16> to vector<128x3xbf16>
    %c7 = arith.constant 7 : index
    %c0_51 = arith.constant 0 : index
    %c0_52 = arith.constant 0 : index
    %45 = vector.load %arg3[%c7, %c0_51, %c0_52] : memref<49x3x64xbf16, #tpu.memory_space<vmem>>, vector<1x3x64xbf16>
    %46 = vector.shape_cast %45 : vector<1x3x64xbf16> to vector<3x64xbf16>
    %cst_53 = arith.constant dense<0.000000e+00> : vector<128x64xf32>
    %47 = tpu.matmul %44, %46, %cst_53 {dimension_numbers = #tpu.dot_dimension_numbers<[1], [0], [0], [1], [0, 0, 1, 1], [], []>} : vector<128x3xbf16>, vector<3x64xbf16>, vector<128x64xf32> -> vector<128x64xf32>
    %48 = arith.addf %42, %47 : vector<128x64xf32>
    %c0_54 = arith.constant 0 : index
    %c33 = arith.constant 33 : index
    %c0_55 = arith.constant 0 : index
    %c0_56 = arith.constant 0 : index
    %49 = vector.load %arg2[%c0_54, %c33, %c0_55, %c0_56] : memref<2x44x11x3xbf16, #tpu.memory_space<vmem>>, vector<2x8x8x3xbf16>
    %50 = vector.shape_cast %49 : vector<2x8x8x3xbf16> to vector<128x3xbf16>
    %c8 = arith.constant 8 : index
    %c0_57 = arith.constant 0 : index
    %c0_58 = arith.constant 0 : index
    %51 = vector.load %arg3[%c8, %c0_57, %c0_58] : memref<49x3x64xbf16, #tpu.memory_space<vmem>>, vector<1x3x64xbf16>
    %52 = vector.shape_cast %51 : vector<1x3x64xbf16> to vector<3x64xbf16>
    %cst_59 = arith.constant dense<0.000000e+00> : vector<128x64xf32>
    %53 = tpu.matmul %50, %52, %cst_59 {dimension_numbers = #tpu.dot_dimension_numbers<[1], [0], [0], [1], [0, 0, 1, 1], [], []>} : vector<128x3xbf16>, vector<3x64xbf16>, vector<128x64xf32> -> vector<128x64xf32>
    %54 = arith.addf %48, %53 : vector<128x64xf32>
    %c0_60 = arith.constant 0 : index
    %c22_61 = arith.constant 22 : index
    %c1_62 = arith.constant 1 : index
    %c0_63 = arith.constant 0 : index
    %55 = vector.load %arg2[%c0_60, %c22_61, %c1_62, %c0_63] : memref<2x44x11x3xbf16, #tpu.memory_space<vmem>>, vector<2x8x8x3xbf16>
    %56 = vector.shape_cast %55 : vector<2x8x8x3xbf16> to vector<128x3xbf16>
    %c9 = arith.constant 9 : index
    %c0_64 = arith.constant 0 : index
    %c0_65 = arith.constant 0 : index
    %57 = vector.load %arg3[%c9, %c0_64, %c0_65] : memref<49x3x64xbf16, #tpu.memory_space<vmem>>, vector<1x3x64xbf16>
    %58 = vector.shape_cast %57 : vector<1x3x64xbf16> to vector<3x64xbf16>
    %cst_66 = arith.constant dense<0.000000e+00> : vector<128x64xf32>
    %59 = tpu.matmul %56, %58, %cst_66 {dimension_numbers = #tpu.dot_dimension_numbers<[1], [0], [0], [1], [0, 0, 1, 1], [], []>} : vector<128x3xbf16>, vector<3x64xbf16>, vector<128x64xf32> -> vector<128x64xf32>
    %60 = arith.addf %54, %59 : vector<128x64xf32>
    %c0_67 = arith.constant 0 : index
    %c33_68 = arith.constant 33 : index
    %c1_69 = arith.constant 1 : index
    %c0_70 = arith.constant 0 : index
    %61 = vector.load %arg2[%c0_67, %c33_68, %c1_69, %c0_70] : memref<2x44x11x3xbf16, #tpu.memory_space<vmem>>, vector<2x8x8x3xbf16>
    %62 = vector.shape_cast %61 : vector<2x8x8x3xbf16> to vector<128x3xbf16>
    %c10 = arith.constant 10 : index
    %c0_71 = arith.constant 0 : index
    %c0_72 = arith.constant 0 : index
    %63 = vector.load %arg3[%c10, %c0_71, %c0_72] : memref<49x3x64xbf16, #tpu.memory_space<vmem>>, vector<1x3x64xbf16>
    %64 = vector.shape_cast %63 : vector<1x3x64xbf16> to vector<3x64xbf16>
    %cst_73 = arith.constant dense<0.000000e+00> : vector<128x64xf32>
    %65 = tpu.matmul %62, %64, %cst_73 {dimension_numbers = #tpu.dot_dimension_numbers<[1], [0], [0], [1], [0, 0, 1, 1], [], []>} : vector<128x3xbf16>, vector<3x64xbf16>, vector<128x64xf32> -> vector<128x64xf32>
    %66 = arith.addf %60, %65 : vector<128x64xf32>
    %c0_74 = arith.constant 0 : index
    %c22_75 = arith.constant 22 : index
    %c2_76 = arith.constant 2 : index
    %c0_77 = arith.constant 0 : index
    %67 = vector.load %arg2[%c0_74, %c22_75, %c2_76, %c0_77] : memref<2x44x11x3xbf16, #tpu.memory_space<vmem>>, vector<2x8x8x3xbf16>
    %68 = vector.shape_cast %67 : vector<2x8x8x3xbf16> to vector<128x3xbf16>
    %c11_78 = arith.constant 11 : index
    %c0_79 = arith.constant 0 : index
    %c0_80 = arith.constant 0 : index
    %69 = vector.load %arg3[%c11_78, %c0_79, %c0_80] : memref<49x3x64xbf16, #tpu.memory_space<vmem>>, vector<1x3x64xbf16>
    %70 = vector.shape_cast %69 : vector<1x3x64xbf16> to vector<3x64xbf16>
    %cst_81 = arith.constant dense<0.000000e+00> : vector<128x64xf32>
    %71 = tpu.matmul %68, %70, %cst_81 {dimension_numbers = #tpu.dot_dimension_numbers<[1], [0], [0], [1], [0, 0, 1, 1], [], []>} : vector<128x3xbf16>, vector<3x64xbf16>, vector<128x64xf32> -> vector<128x64xf32>
    %72 = arith.addf %66, %71 : vector<128x64xf32>
    %c0_82 = arith.constant 0 : index
    %c33_83 = arith.constant 33 : index
    %c2_84 = arith.constant 2 : index
    %c0_85 = arith.constant 0 : index
    %73 = vector.load %arg2[%c0_82, %c33_83, %c2_84, %c0_85] : memref<2x44x11x3xbf16, #tpu.memory_space<vmem>>, vector<2x8x8x3xbf16>
    %74 = vector.shape_cast %73 : vector<2x8x8x3xbf16> to vector<128x3xbf16>
    %c12 = arith.constant 12 : index
    %c0_86 = arith.constant 0 : index
    %c0_87 = arith.constant 0 : index
    %75 = vector.load %arg3[%c12, %c0_86, %c0_87] : memref<49x3x64xbf16, #tpu.memory_space<vmem>>, vector<1x3x64xbf16>
    %76 = vector.shape_cast %75 : vector<1x3x64xbf16> to vector<3x64xbf16>
    %cst_88 = arith.constant dense<0.000000e+00> : vector<128x64xf32>
    %77 = tpu.matmul %74, %76, %cst_88 {dimension_numbers = #tpu.dot_dimension_numbers<[1], [0], [0], [1], [0, 0, 1, 1], [], []>} : vector<128x3xbf16>, vector<3x64xbf16>, vector<128x64xf32> -> vector<128x64xf32>
    %78 = arith.addf %72, %77 : vector<128x64xf32>
    %c0_89 = arith.constant 0 : index
    %c22_90 = arith.constant 22 : index
    %c3_91 = arith.constant 3 : index
    %c0_92 = arith.constant 0 : index
    %79 = vector.load %arg2[%c0_89, %c22_90, %c3_91, %c0_92] : memref<2x44x11x3xbf16, #tpu.memory_space<vmem>>, vector<2x8x8x3xbf16>
    %80 = vector.shape_cast %79 : vector<2x8x8x3xbf16> to vector<128x3xbf16>
    %c13 = arith.constant 13 : index
    %c0_93 = arith.constant 0 : index
    %c0_94 = arith.constant 0 : index
    %81 = vector.load %arg3[%c13, %c0_93, %c0_94] : memref<49x3x64xbf16, #tpu.memory_space<vmem>>, vector<1x3x64xbf16>
    %82 = vector.shape_cast %81 : vector<1x3x64xbf16> to vector<3x64xbf16>
    %cst_95 = arith.constant dense<0.000000e+00> : vector<128x64xf32>
    %83 = tpu.matmul %80, %82, %cst_95 {dimension_numbers = #tpu.dot_dimension_numbers<[1], [0], [0], [1], [0, 0, 1, 1], [], []>} : vector<128x3xbf16>, vector<3x64xbf16>, vector<128x64xf32> -> vector<128x64xf32>
    %84 = arith.addf %78, %83 : vector<128x64xf32>
    %c0_96 = arith.constant 0 : index
    %c1_97 = arith.constant 1 : index
    %c0_98 = arith.constant 0 : index
    %c0_99 = arith.constant 0 : index
    %85 = vector.load %arg2[%c0_96, %c1_97, %c0_98, %c0_99] : memref<2x44x11x3xbf16, #tpu.memory_space<vmem>>, vector<2x8x8x3xbf16>
    %86 = vector.shape_cast %85 : vector<2x8x8x3xbf16> to vector<128x3xbf16>
    %c14 = arith.constant 14 : index
    %c0_100 = arith.constant 0 : index
    %c0_101 = arith.constant 0 : index
    %87 = vector.load %arg3[%c14, %c0_100, %c0_101] : memref<49x3x64xbf16, #tpu.memory_space<vmem>>, vector<1x3x64xbf16>
    %88 = vector.shape_cast %87 : vector<1x3x64xbf16> to vector<3x64xbf16>
    %cst_102 = arith.constant dense<0.000000e+00> : vector<128x64xf32>
    %89 = tpu.matmul %86, %88, %cst_102 {dimension_numbers = #tpu.dot_dimension_numbers<[1], [0], [0], [1], [0, 0, 1, 1], [], []>} : vector<128x3xbf16>, vector<3x64xbf16>, vector<128x64xf32> -> vector<128x64xf32>
    %90 = arith.addf %84, %89 : vector<128x64xf32>
    %c0_103 = arith.constant 0 : index
    %c12_104 = arith.constant 12 : index
    %c0_105 = arith.constant 0 : index
    %c0_106 = arith.constant 0 : index
    %91 = vector.load %arg2[%c0_103, %c12_104, %c0_105, %c0_106] : memref<2x44x11x3xbf16, #tpu.memory_space<vmem>>, vector<2x8x8x3xbf16>
    %92 = vector.shape_cast %91 : vector<2x8x8x3xbf16> to vector<128x3xbf16>
    %c15 = arith.constant 15 : index
    %c0_107 = arith.constant 0 : index
    %c0_108 = arith.constant 0 : index
    %93 = vector.load %arg3[%c15, %c0_107, %c0_108] : memref<49x3x64xbf16, #tpu.memory_space<vmem>>, vector<1x3x64xbf16>
    %94 = vector.shape_cast %93 : vector<1x3x64xbf16> to vector<3x64xbf16>
    %cst_109 = arith.constant dense<0.000000e+00> : vector<128x64xf32>
    %95 = tpu.matmul %92, %94, %cst_109 {dimension_numbers = #tpu.dot_dimension_numbers<[1], [0], [0], [1], [0, 0, 1, 1], [], []>} : vector<128x3xbf16>, vector<3x64xbf16>, vector<128x64xf32> -> vector<128x64xf32>
    %96 = arith.addf %90, %95 : vector<128x64xf32>
    %c0_110 = arith.constant 0 : index
    %c1_111 = arith.constant 1 : index
    %c1_112 = arith.constant 1 : index
    %c0_113 = arith.constant 0 : index
    %97 = vector.load %arg2[%c0_110, %c1_111, %c1_112, %c0_113] : memref<2x44x11x3xbf16, #tpu.memory_space<vmem>>, vector<2x8x8x3xbf16>
    %98 = vector.shape_cast %97 : vector<2x8x8x3xbf16> to vector<128x3xbf16>
    %c16 = arith.constant 16 : index
    %c0_114 = arith.constant 0 : index
    %c0_115 = arith.constant 0 : index
    %99 = vector.load %arg3[%c16, %c0_114, %c0_115] : memref<49x3x64xbf16, #tpu.memory_space<vmem>>, vector<1x3x64xbf16>
    %100 = vector.shape_cast %99 : vector<1x3x64xbf16> to vector<3x64xbf16>
    %cst_116 = arith.constant dense<0.000000e+00> : vector<128x64xf32>
    %101 = tpu.matmul %98, %100, %cst_116 {dimension_numbers = #tpu.dot_dimension_numbers<[1], [0], [0], [1], [0, 0, 1, 1], [], []>} : vector<128x3xbf16>, vector<3x64xbf16>, vector<128x64xf32> -> vector<128x64xf32>
    %102 = arith.addf %96, %101 : vector<128x64xf32>
    %c0_117 = arith.constant 0 : index
    %c12_118 = arith.constant 12 : index
    %c1_119 = arith.constant 1 : index
    %c0_120 = arith.constant 0 : index
    %103 = vector.load %arg2[%c0_117, %c12_118, %c1_119, %c0_120] : memref<2x44x11x3xbf16, #tpu.memory_space<vmem>>, vector<2x8x8x3xbf16>
    %104 = vector.shape_cast %103 : vector<2x8x8x3xbf16> to vector<128x3xbf16>
    %c17 = arith.constant 17 : index
    %c0_121 = arith.constant 0 : index
    %c0_122 = arith.constant 0 : index
    %105 = vector.load %arg3[%c17, %c0_121, %c0_122] : memref<49x3x64xbf16, #tpu.memory_space<vmem>>, vector<1x3x64xbf16>
    %106 = vector.shape_cast %105 : vector<1x3x64xbf16> to vector<3x64xbf16>
    %cst_123 = arith.constant dense<0.000000e+00> : vector<128x64xf32>
    %107 = tpu.matmul %104, %106, %cst_123 {dimension_numbers = #tpu.dot_dimension_numbers<[1], [0], [0], [1], [0, 0, 1, 1], [], []>} : vector<128x3xbf16>, vector<3x64xbf16>, vector<128x64xf32> -> vector<128x64xf32>
    %108 = arith.addf %102, %107 : vector<128x64xf32>
    %c0_124 = arith.constant 0 : index
    %c1_125 = arith.constant 1 : index
    %c2_126 = arith.constant 2 : index
    %c0_127 = arith.constant 0 : index
    %109 = vector.load %arg2[%c0_124, %c1_125, %c2_126, %c0_127] : memref<2x44x11x3xbf16, #tpu.memory_space<vmem>>, vector<2x8x8x3xbf16>
    %110 = vector.shape_cast %109 : vector<2x8x8x3xbf16> to vector<128x3xbf16>
    %c18 = arith.constant 18 : index
    %c0_128 = arith.constant 0 : index
    %c0_129 = arith.constant 0 : index
    %111 = vector.load %arg3[%c18, %c0_128, %c0_129] : memref<49x3x64xbf16, #tpu.memory_space<vmem>>, vector<1x3x64xbf16>
    %112 = vector.shape_cast %111 : vector<1x3x64xbf16> to vector<3x64xbf16>
    %cst_130 = arith.constant dense<0.000000e+00> : vector<128x64xf32>
    %113 = tpu.matmul %110, %112, %cst_130 {dimension_numbers = #tpu.dot_dimension_numbers<[1], [0], [0], [1], [0, 0, 1, 1], [], []>} : vector<128x3xbf16>, vector<3x64xbf16>, vector<128x64xf32> -> vector<128x64xf32>
    %114 = arith.addf %108, %113 : vector<128x64xf32>
    %c0_131 = arith.constant 0 : index
    %c12_132 = arith.constant 12 : index
    %c2_133 = arith.constant 2 : index
    %c0_134 = arith.constant 0 : index
    %115 = vector.load %arg2[%c0_131, %c12_132, %c2_133, %c0_134] : memref<2x44x11x3xbf16, #tpu.memory_space<vmem>>, vector<2x8x8x3xbf16>
    %116 = vector.shape_cast %115 : vector<2x8x8x3xbf16> to vector<128x3xbf16>
    %c19 = arith.constant 19 : index
    %c0_135 = arith.constant 0 : index
    %c0_136 = arith.constant 0 : index
    %117 = vector.load %arg3[%c19, %c0_135, %c0_136] : memref<49x3x64xbf16, #tpu.memory_space<vmem>>, vector<1x3x64xbf16>
    %118 = vector.shape_cast %117 : vector<1x3x64xbf16> to vector<3x64xbf16>
    %cst_137 = arith.constant dense<0.000000e+00> : vector<128x64xf32>
    %119 = tpu.matmul %116, %118, %cst_137 {dimension_numbers = #tpu.dot_dimension_numbers<[1], [0], [0], [1], [0, 0, 1, 1], [], []>} : vector<128x3xbf16>, vector<3x64xbf16>, vector<128x64xf32> -> vector<128x64xf32>
    %120 = arith.addf %114, %119 : vector<128x64xf32>
    %c0_138 = arith.constant 0 : index
    %c1_139 = arith.constant 1 : index
    %c3_140 = arith.constant 3 : index
    %c0_141 = arith.constant 0 : index
    %121 = vector.load %arg2[%c0_138, %c1_139, %c3_140, %c0_141] : memref<2x44x11x3xbf16, #tpu.memory_space<vmem>>, vector<2x8x8x3xbf16>
    %122 = vector.shape_cast %121 : vector<2x8x8x3xbf16> to vector<128x3xbf16>
    %c20 = arith.constant 20 : index
    %c0_142 = arith.constant 0 : index
    %c0_143 = arith.constant 0 : index
    %123 = vector.load %arg3[%c20, %c0_142, %c0_143] : memref<49x3x64xbf16, #tpu.memory_space<vmem>>, vector<1x3x64xbf16>
    %124 = vector.shape_cast %123 : vector<1x3x64xbf16> to vector<3x64xbf16>
    %cst_144 = arith.constant dense<0.000000e+00> : vector<128x64xf32>
    %125 = tpu.matmul %122, %124, %cst_144 {dimension_numbers = #tpu.dot_dimension_numbers<[1], [0], [0], [1], [0, 0, 1, 1], [], []>} : vector<128x3xbf16>, vector<3x64xbf16>, vector<128x64xf32> -> vector<128x64xf32>
    %126 = arith.addf %120, %125 : vector<128x64xf32>
    %c0_145 = arith.constant 0 : index
    %c23 = arith.constant 23 : index
    %c0_146 = arith.constant 0 : index
    %c0_147 = arith.constant 0 : index
    %127 = vector.load %arg2[%c0_145, %c23, %c0_146, %c0_147] : memref<2x44x11x3xbf16, #tpu.memory_space<vmem>>, vector<2x8x8x3xbf16>
    %128 = vector.shape_cast %127 : vector<2x8x8x3xbf16> to vector<128x3xbf16>
    %c21 = arith.constant 21 : index
    %c0_148 = arith.constant 0 : index
    %c0_149 = arith.constant 0 : index
    %129 = vector.load %arg3[%c21, %c0_148, %c0_149] : memref<49x3x64xbf16, #tpu.memory_space<vmem>>, vector<1x3x64xbf16>
    %130 = vector.shape_cast %129 : vector<1x3x64xbf16> to vector<3x64xbf16>
    %cst_150 = arith.constant dense<0.000000e+00> : vector<128x64xf32>
    %131 = tpu.matmul %128, %130, %cst_150 {dimension_numbers = #tpu.dot_dimension_numbers<[1], [0], [0], [1], [0, 0, 1, 1], [], []>} : vector<128x3xbf16>, vector<3x64xbf16>, vector<128x64xf32> -> vector<128x64xf32>
    %132 = arith.addf %126, %131 : vector<128x64xf32>
    %c0_151 = arith.constant 0 : index
    %c34 = arith.constant 34 : index
    %c0_152 = arith.constant 0 : index
    %c0_153 = arith.constant 0 : index
    %133 = vector.load %arg2[%c0_151, %c34, %c0_152, %c0_153] : memref<2x44x11x3xbf16, #tpu.memory_space<vmem>>, vector<2x8x8x3xbf16>
    %134 = vector.shape_cast %133 : vector<2x8x8x3xbf16> to vector<128x3xbf16>
    %c22_154 = arith.constant 22 : index
    %c0_155 = arith.constant 0 : index
    %c0_156 = arith.constant 0 : index
    %135 = vector.load %arg3[%c22_154, %c0_155, %c0_156] : memref<49x3x64xbf16, #tpu.memory_space<vmem>>, vector<1x3x64xbf16>
    %136 = vector.shape_cast %135 : vector<1x3x64xbf16> to vector<3x64xbf16>
    %cst_157 = arith.constant dense<0.000000e+00> : vector<128x64xf32>
    %137 = tpu.matmul %134, %136, %cst_157 {dimension_numbers = #tpu.dot_dimension_numbers<[1], [0], [0], [1], [0, 0, 1, 1], [], []>} : vector<128x3xbf16>, vector<3x64xbf16>, vector<128x64xf32> -> vector<128x64xf32>
    %138 = arith.addf %132, %137 : vector<128x64xf32>
    %c0_158 = arith.constant 0 : index
    %c23_159 = arith.constant 23 : index
    %c1_160 = arith.constant 1 : index
    %c0_161 = arith.constant 0 : index
    %139 = vector.load %arg2[%c0_158, %c23_159, %c1_160, %c0_161] : memref<2x44x11x3xbf16, #tpu.memory_space<vmem>>, vector<2x8x8x3xbf16>
    %140 = vector.shape_cast %139 : vector<2x8x8x3xbf16> to vector<128x3xbf16>
    %c23_162 = arith.constant 23 : index
    %c0_163 = arith.constant 0 : index
    %c0_164 = arith.constant 0 : index
    %141 = vector.load %arg3[%c23_162, %c0_163, %c0_164] : memref<49x3x64xbf16, #tpu.memory_space<vmem>>, vector<1x3x64xbf16>
    %142 = vector.shape_cast %141 : vector<1x3x64xbf16> to vector<3x64xbf16>
    %cst_165 = arith.constant dense<0.000000e+00> : vector<128x64xf32>
    %143 = tpu.matmul %140, %142, %cst_165 {dimension_numbers = #tpu.dot_dimension_numbers<[1], [0], [0], [1], [0, 0, 1, 1], [], []>} : vector<128x3xbf16>, vector<3x64xbf16>, vector<128x64xf32> -> vector<128x64xf32>
    %144 = arith.addf %138, %143 : vector<128x64xf32>
    %c0_166 = arith.constant 0 : index
    %c34_167 = arith.constant 34 : index
    %c1_168 = arith.constant 1 : index
    %c0_169 = arith.constant 0 : index
    %145 = vector.load %arg2[%c0_166, %c34_167, %c1_168, %c0_169] : memref<2x44x11x3xbf16, #tpu.memory_space<vmem>>, vector<2x8x8x3xbf16>
    %146 = vector.shape_cast %145 : vector<2x8x8x3xbf16> to vector<128x3xbf16>
    %c24 = arith.constant 24 : index
    %c0_170 = arith.constant 0 : index
    %c0_171 = arith.constant 0 : index
    %147 = vector.load %arg3[%c24, %c0_170, %c0_171] : memref<49x3x64xbf16, #tpu.memory_space<vmem>>, vector<1x3x64xbf16>
    %148 = vector.shape_cast %147 : vector<1x3x64xbf16> to vector<3x64xbf16>
    %cst_172 = arith.constant dense<0.000000e+00> : vector<128x64xf32>
    %149 = tpu.matmul %146, %148, %cst_172 {dimension_numbers = #tpu.dot_dimension_numbers<[1], [0], [0], [1], [0, 0, 1, 1], [], []>} : vector<128x3xbf16>, vector<3x64xbf16>, vector<128x64xf32> -> vector<128x64xf32>
    %150 = arith.addf %144, %149 : vector<128x64xf32>
    %c0_173 = arith.constant 0 : index
    %c23_174 = arith.constant 23 : index
    %c2_175 = arith.constant 2 : index
    %c0_176 = arith.constant 0 : index
    %151 = vector.load %arg2[%c0_173, %c23_174, %c2_175, %c0_176] : memref<2x44x11x3xbf16, #tpu.memory_space<vmem>>, vector<2x8x8x3xbf16>
    %152 = vector.shape_cast %151 : vector<2x8x8x3xbf16> to vector<128x3xbf16>
    %c25 = arith.constant 25 : index
    %c0_177 = arith.constant 0 : index
    %c0_178 = arith.constant 0 : index
    %153 = vector.load %arg3[%c25, %c0_177, %c0_178] : memref<49x3x64xbf16, #tpu.memory_space<vmem>>, vector<1x3x64xbf16>
    %154 = vector.shape_cast %153 : vector<1x3x64xbf16> to vector<3x64xbf16>
    %cst_179 = arith.constant dense<0.000000e+00> : vector<128x64xf32>
    %155 = tpu.matmul %152, %154, %cst_179 {dimension_numbers = #tpu.dot_dimension_numbers<[1], [0], [0], [1], [0, 0, 1, 1], [], []>} : vector<128x3xbf16>, vector<3x64xbf16>, vector<128x64xf32> -> vector<128x64xf32>
    %156 = arith.addf %150, %155 : vector<128x64xf32>
    %c0_180 = arith.constant 0 : index
    %c34_181 = arith.constant 34 : index
    %c2_182 = arith.constant 2 : index
    %c0_183 = arith.constant 0 : index
    %157 = vector.load %arg2[%c0_180, %c34_181, %c2_182, %c0_183] : memref<2x44x11x3xbf16, #tpu.memory_space<vmem>>, vector<2x8x8x3xbf16>
    %158 = vector.shape_cast %157 : vector<2x8x8x3xbf16> to vector<128x3xbf16>
    %c26 = arith.constant 26 : index
    %c0_184 = arith.constant 0 : index
    %c0_185 = arith.constant 0 : index
    %159 = vector.load %arg3[%c26, %c0_184, %c0_185] : memref<49x3x64xbf16, #tpu.memory_space<vmem>>, vector<1x3x64xbf16>
    %160 = vector.shape_cast %159 : vector<1x3x64xbf16> to vector<3x64xbf16>
    %cst_186 = arith.constant dense<0.000000e+00> : vector<128x64xf32>
    %161 = tpu.matmul %158, %160, %cst_186 {dimension_numbers = #tpu.dot_dimension_numbers<[1], [0], [0], [1], [0, 0, 1, 1], [], []>} : vector<128x3xbf16>, vector<3x64xbf16>, vector<128x64xf32> -> vector<128x64xf32>
    %162 = arith.addf %156, %161 : vector<128x64xf32>
    %c0_187 = arith.constant 0 : index
    %c23_188 = arith.constant 23 : index
    %c3_189 = arith.constant 3 : index
    %c0_190 = arith.constant 0 : index
    %163 = vector.load %arg2[%c0_187, %c23_188, %c3_189, %c0_190] : memref<2x44x11x3xbf16, #tpu.memory_space<vmem>>, vector<2x8x8x3xbf16>
    %164 = vector.shape_cast %163 : vector<2x8x8x3xbf16> to vector<128x3xbf16>
    %c27 = arith.constant 27 : index
    %c0_191 = arith.constant 0 : index
    %c0_192 = arith.constant 0 : index
    %165 = vector.load %arg3[%c27, %c0_191, %c0_192] : memref<49x3x64xbf16, #tpu.memory_space<vmem>>, vector<1x3x64xbf16>
    %166 = vector.shape_cast %165 : vector<1x3x64xbf16> to vector<3x64xbf16>
    %cst_193 = arith.constant dense<0.000000e+00> : vector<128x64xf32>
    %167 = tpu.matmul %164, %166, %cst_193 {dimension_numbers = #tpu.dot_dimension_numbers<[1], [0], [0], [1], [0, 0, 1, 1], [], []>} : vector<128x3xbf16>, vector<3x64xbf16>, vector<128x64xf32> -> vector<128x64xf32>
    %168 = arith.addf %162, %167 : vector<128x64xf32>
    %c0_194 = arith.constant 0 : index
    %c2_195 = arith.constant 2 : index
    %c0_196 = arith.constant 0 : index
    %c0_197 = arith.constant 0 : index
    %169 = vector.load %arg2[%c0_194, %c2_195, %c0_196, %c0_197] : memref<2x44x11x3xbf16, #tpu.memory_space<vmem>>, vector<2x8x8x3xbf16>
    %170 = vector.shape_cast %169 : vector<2x8x8x3xbf16> to vector<128x3xbf16>
    %c28 = arith.constant 28 : index
    %c0_198 = arith.constant 0 : index
    %c0_199 = arith.constant 0 : index
    %171 = vector.load %arg3[%c28, %c0_198, %c0_199] : memref<49x3x64xbf16, #tpu.memory_space<vmem>>, vector<1x3x64xbf16>
    %172 = vector.shape_cast %171 : vector<1x3x64xbf16> to vector<3x64xbf16>
    %cst_200 = arith.constant dense<0.000000e+00> : vector<128x64xf32>
    %173 = tpu.matmul %170, %172, %cst_200 {dimension_numbers = #tpu.dot_dimension_numbers<[1], [0], [0], [1], [0, 0, 1, 1], [], []>} : vector<128x3xbf16>, vector<3x64xbf16>, vector<128x64xf32> -> vector<128x64xf32>
    %174 = arith.addf %168, %173 : vector<128x64xf32>
    %c0_201 = arith.constant 0 : index
    %c13_202 = arith.constant 13 : index
    %c0_203 = arith.constant 0 : index
    %c0_204 = arith.constant 0 : index
    %175 = vector.load %arg2[%c0_201, %c13_202, %c0_203, %c0_204] : memref<2x44x11x3xbf16, #tpu.memory_space<vmem>>, vector<2x8x8x3xbf16>
    %176 = vector.shape_cast %175 : vector<2x8x8x3xbf16> to vector<128x3xbf16>
    %c29 = arith.constant 29 : index
    %c0_205 = arith.constant 0 : index
    %c0_206 = arith.constant 0 : index
    %177 = vector.load %arg3[%c29, %c0_205, %c0_206] : memref<49x3x64xbf16, #tpu.memory_space<vmem>>, vector<1x3x64xbf16>
    %178 = vector.shape_cast %177 : vector<1x3x64xbf16> to vector<3x64xbf16>
    %cst_207 = arith.constant dense<0.000000e+00> : vector<128x64xf32>
    %179 = tpu.matmul %176, %178, %cst_207 {dimension_numbers = #tpu.dot_dimension_numbers<[1], [0], [0], [1], [0, 0, 1, 1], [], []>} : vector<128x3xbf16>, vector<3x64xbf16>, vector<128x64xf32> -> vector<128x64xf32>
    %180 = arith.addf %174, %179 : vector<128x64xf32>
    %c0_208 = arith.constant 0 : index
    %c2_209 = arith.constant 2 : index
    %c1_210 = arith.constant 1 : index
    %c0_211 = arith.constant 0 : index
    %181 = vector.load %arg2[%c0_208, %c2_209, %c1_210, %c0_211] : memref<2x44x11x3xbf16, #tpu.memory_space<vmem>>, vector<2x8x8x3xbf16>
    %182 = vector.shape_cast %181 : vector<2x8x8x3xbf16> to vector<128x3xbf16>
    %c30 = arith.constant 30 : index
    %c0_212 = arith.constant 0 : index
    %c0_213 = arith.constant 0 : index
    %183 = vector.load %arg3[%c30, %c0_212, %c0_213] : memref<49x3x64xbf16, #tpu.memory_space<vmem>>, vector<1x3x64xbf16>
    %184 = vector.shape_cast %183 : vector<1x3x64xbf16> to vector<3x64xbf16>
    %cst_214 = arith.constant dense<0.000000e+00> : vector<128x64xf32>
    %185 = tpu.matmul %182, %184, %cst_214 {dimension_numbers = #tpu.dot_dimension_numbers<[1], [0], [0], [1], [0, 0, 1, 1], [], []>} : vector<128x3xbf16>, vector<3x64xbf16>, vector<128x64xf32> -> vector<128x64xf32>
    %186 = arith.addf %180, %185 : vector<128x64xf32>
    %c0_215 = arith.constant 0 : index
    %c13_216 = arith.constant 13 : index
    %c1_217 = arith.constant 1 : index
    %c0_218 = arith.constant 0 : index
    %187 = vector.load %arg2[%c0_215, %c13_216, %c1_217, %c0_218] : memref<2x44x11x3xbf16, #tpu.memory_space<vmem>>, vector<2x8x8x3xbf16>
    %188 = vector.shape_cast %187 : vector<2x8x8x3xbf16> to vector<128x3xbf16>
    %c31 = arith.constant 31 : index
    %c0_219 = arith.constant 0 : index
    %c0_220 = arith.constant 0 : index
    %189 = vector.load %arg3[%c31, %c0_219, %c0_220] : memref<49x3x64xbf16, #tpu.memory_space<vmem>>, vector<1x3x64xbf16>
    %190 = vector.shape_cast %189 : vector<1x3x64xbf16> to vector<3x64xbf16>
    %cst_221 = arith.constant dense<0.000000e+00> : vector<128x64xf32>
    %191 = tpu.matmul %188, %190, %cst_221 {dimension_numbers = #tpu.dot_dimension_numbers<[1], [0], [0], [1], [0, 0, 1, 1], [], []>} : vector<128x3xbf16>, vector<3x64xbf16>, vector<128x64xf32> -> vector<128x64xf32>
    %192 = arith.addf %186, %191 : vector<128x64xf32>
    %c0_222 = arith.constant 0 : index
    %c2_223 = arith.constant 2 : index
    %c2_224 = arith.constant 2 : index
    %c0_225 = arith.constant 0 : index
    %193 = vector.load %arg2[%c0_222, %c2_223, %c2_224, %c0_225] : memref<2x44x11x3xbf16, #tpu.memory_space<vmem>>, vector<2x8x8x3xbf16>
    %194 = vector.shape_cast %193 : vector<2x8x8x3xbf16> to vector<128x3xbf16>
    %c32 = arith.constant 32 : index
    %c0_226 = arith.constant 0 : index
    %c0_227 = arith.constant 0 : index
    %195 = vector.load %arg3[%c32, %c0_226, %c0_227] : memref<49x3x64xbf16, #tpu.memory_space<vmem>>, vector<1x3x64xbf16>
    %196 = vector.shape_cast %195 : vector<1x3x64xbf16> to vector<3x64xbf16>
    %cst_228 = arith.constant dense<0.000000e+00> : vector<128x64xf32>
    %197 = tpu.matmul %194, %196, %cst_228 {dimension_numbers = #tpu.dot_dimension_numbers<[1], [0], [0], [1], [0, 0, 1, 1], [], []>} : vector<128x3xbf16>, vector<3x64xbf16>, vector<128x64xf32> -> vector<128x64xf32>
    %198 = arith.addf %192, %197 : vector<128x64xf32>
    %c0_229 = arith.constant 0 : index
    %c13_230 = arith.constant 13 : index
    %c2_231 = arith.constant 2 : index
    %c0_232 = arith.constant 0 : index
    %199 = vector.load %arg2[%c0_229, %c13_230, %c2_231, %c0_232] : memref<2x44x11x3xbf16, #tpu.memory_space<vmem>>, vector<2x8x8x3xbf16>
    %200 = vector.shape_cast %199 : vector<2x8x8x3xbf16> to vector<128x3xbf16>
    %c33_233 = arith.constant 33 : index
    %c0_234 = arith.constant 0 : index
    %c0_235 = arith.constant 0 : index
    %201 = vector.load %arg3[%c33_233, %c0_234, %c0_235] : memref<49x3x64xbf16, #tpu.memory_space<vmem>>, vector<1x3x64xbf16>
    %202 = vector.shape_cast %201 : vector<1x3x64xbf16> to vector<3x64xbf16>
    %cst_236 = arith.constant dense<0.000000e+00> : vector<128x64xf32>
    %203 = tpu.matmul %200, %202, %cst_236 {dimension_numbers = #tpu.dot_dimension_numbers<[1], [0], [0], [1], [0, 0, 1, 1], [], []>} : vector<128x3xbf16>, vector<3x64xbf16>, vector<128x64xf32> -> vector<128x64xf32>
    %204 = arith.addf %198, %203 : vector<128x64xf32>
    %c0_237 = arith.constant 0 : index
    %c2_238 = arith.constant 2 : index
    %c3_239 = arith.constant 3 : index
    %c0_240 = arith.constant 0 : index
    %205 = vector.load %arg2[%c0_237, %c2_238, %c3_239, %c0_240] : memref<2x44x11x3xbf16, #tpu.memory_space<vmem>>, vector<2x8x8x3xbf16>
    %206 = vector.shape_cast %205 : vector<2x8x8x3xbf16> to vector<128x3xbf16>
    %c34_241 = arith.constant 34 : index
    %c0_242 = arith.constant 0 : index
    %c0_243 = arith.constant 0 : index
    %207 = vector.load %arg3[%c34_241, %c0_242, %c0_243] : memref<49x3x64xbf16, #tpu.memory_space<vmem>>, vector<1x3x64xbf16>
    %208 = vector.shape_cast %207 : vector<1x3x64xbf16> to vector<3x64xbf16>
    %cst_244 = arith.constant dense<0.000000e+00> : vector<128x64xf32>
    %209 = tpu.matmul %206, %208, %cst_244 {dimension_numbers = #tpu.dot_dimension_numbers<[1], [0], [0], [1], [0, 0, 1, 1], [], []>} : vector<128x3xbf16>, vector<3x64xbf16>, vector<128x64xf32> -> vector<128x64xf32>
    %210 = arith.addf %204, %209 : vector<128x64xf32>
    %c0_245 = arith.constant 0 : index
    %c24_246 = arith.constant 24 : index
    %c0_247 = arith.constant 0 : index
    %c0_248 = arith.constant 0 : index
    %211 = vector.load %arg2[%c0_245, %c24_246, %c0_247, %c0_248] : memref<2x44x11x3xbf16, #tpu.memory_space<vmem>>, vector<2x8x8x3xbf16>
    %212 = vector.shape_cast %211 : vector<2x8x8x3xbf16> to vector<128x3xbf16>
    %c35 = arith.constant 35 : index
    %c0_249 = arith.constant 0 : index
    %c0_250 = arith.constant 0 : index
    %213 = vector.load %arg3[%c35, %c0_249, %c0_250] : memref<49x3x64xbf16, #tpu.memory_space<vmem>>, vector<1x3x64xbf16>
    %214 = vector.shape_cast %213 : vector<1x3x64xbf16> to vector<3x64xbf16>
    %cst_251 = arith.constant dense<0.000000e+00> : vector<128x64xf32>
    %215 = tpu.matmul %212, %214, %cst_251 {dimension_numbers = #tpu.dot_dimension_numbers<[1], [0], [0], [1], [0, 0, 1, 1], [], []>} : vector<128x3xbf16>, vector<3x64xbf16>, vector<128x64xf32> -> vector<128x64xf32>
    %216 = arith.addf %210, %215 : vector<128x64xf32>
    %c0_252 = arith.constant 0 : index
    %c35_253 = arith.constant 35 : index
    %c0_254 = arith.constant 0 : index
    %c0_255 = arith.constant 0 : index
    %217 = vector.load %arg2[%c0_252, %c35_253, %c0_254, %c0_255] : memref<2x44x11x3xbf16, #tpu.memory_space<vmem>>, vector<2x8x8x3xbf16>
    %218 = vector.shape_cast %217 : vector<2x8x8x3xbf16> to vector<128x3xbf16>
    %c36 = arith.constant 36 : index
    %c0_256 = arith.constant 0 : index
    %c0_257 = arith.constant 0 : index
    %219 = vector.load %arg3[%c36, %c0_256, %c0_257] : memref<49x3x64xbf16, #tpu.memory_space<vmem>>, vector<1x3x64xbf16>
    %220 = vector.shape_cast %219 : vector<1x3x64xbf16> to vector<3x64xbf16>
    %cst_258 = arith.constant dense<0.000000e+00> : vector<128x64xf32>
    %221 = tpu.matmul %218, %220, %cst_258 {dimension_numbers = #tpu.dot_dimension_numbers<[1], [0], [0], [1], [0, 0, 1, 1], [], []>} : vector<128x3xbf16>, vector<3x64xbf16>, vector<128x64xf32> -> vector<128x64xf32>
    %222 = arith.addf %216, %221 : vector<128x64xf32>
    %c0_259 = arith.constant 0 : index
    %c24_260 = arith.constant 24 : index
    %c1_261 = arith.constant 1 : index
    %c0_262 = arith.constant 0 : index
    %223 = vector.load %arg2[%c0_259, %c24_260, %c1_261, %c0_262] : memref<2x44x11x3xbf16, #tpu.memory_space<vmem>>, vector<2x8x8x3xbf16>
    %224 = vector.shape_cast %223 : vector<2x8x8x3xbf16> to vector<128x3xbf16>
    %c37 = arith.constant 37 : index
    %c0_263 = arith.constant 0 : index
    %c0_264 = arith.constant 0 : index
    %225 = vector.load %arg3[%c37, %c0_263, %c0_264] : memref<49x3x64xbf16, #tpu.memory_space<vmem>>, vector<1x3x64xbf16>
    %226 = vector.shape_cast %225 : vector<1x3x64xbf16> to vector<3x64xbf16>
    %cst_265 = arith.constant dense<0.000000e+00> : vector<128x64xf32>
    %227 = tpu.matmul %224, %226, %cst_265 {dimension_numbers = #tpu.dot_dimension_numbers<[1], [0], [0], [1], [0, 0, 1, 1], [], []>} : vector<128x3xbf16>, vector<3x64xbf16>, vector<128x64xf32> -> vector<128x64xf32>
    %228 = arith.addf %222, %227 : vector<128x64xf32>
    %c0_266 = arith.constant 0 : index
    %c35_267 = arith.constant 35 : index
    %c1_268 = arith.constant 1 : index
    %c0_269 = arith.constant 0 : index
    %229 = vector.load %arg2[%c0_266, %c35_267, %c1_268, %c0_269] : memref<2x44x11x3xbf16, #tpu.memory_space<vmem>>, vector<2x8x8x3xbf16>
    %230 = vector.shape_cast %229 : vector<2x8x8x3xbf16> to vector<128x3xbf16>
    %c38 = arith.constant 38 : index
    %c0_270 = arith.constant 0 : index
    %c0_271 = arith.constant 0 : index
    %231 = vector.load %arg3[%c38, %c0_270, %c0_271] : memref<49x3x64xbf16, #tpu.memory_space<vmem>>, vector<1x3x64xbf16>
    %232 = vector.shape_cast %231 : vector<1x3x64xbf16> to vector<3x64xbf16>
    %cst_272 = arith.constant dense<0.000000e+00> : vector<128x64xf32>
    %233 = tpu.matmul %230, %232, %cst_272 {dimension_numbers = #tpu.dot_dimension_numbers<[1], [0], [0], [1], [0, 0, 1, 1], [], []>} : vector<128x3xbf16>, vector<3x64xbf16>, vector<128x64xf32> -> vector<128x64xf32>
    %234 = arith.addf %228, %233 : vector<128x64xf32>
    %c0_273 = arith.constant 0 : index
    %c24_274 = arith.constant 24 : index
    %c2_275 = arith.constant 2 : index
    %c0_276 = arith.constant 0 : index
    %235 = vector.load %arg2[%c0_273, %c24_274, %c2_275, %c0_276] : memref<2x44x11x3xbf16, #tpu.memory_space<vmem>>, vector<2x8x8x3xbf16>
    %236 = vector.shape_cast %235 : vector<2x8x8x3xbf16> to vector<128x3xbf16>
    %c39 = arith.constant 39 : index
    %c0_277 = arith.constant 0 : index
    %c0_278 = arith.constant 0 : index
    %237 = vector.load %arg3[%c39, %c0_277, %c0_278] : memref<49x3x64xbf16, #tpu.memory_space<vmem>>, vector<1x3x64xbf16>
    %238 = vector.shape_cast %237 : vector<1x3x64xbf16> to vector<3x64xbf16>
    %cst_279 = arith.constant dense<0.000000e+00> : vector<128x64xf32>
    %239 = tpu.matmul %236, %238, %cst_279 {dimension_numbers = #tpu.dot_dimension_numbers<[1], [0], [0], [1], [0, 0, 1, 1], [], []>} : vector<128x3xbf16>, vector<3x64xbf16>, vector<128x64xf32> -> vector<128x64xf32>
    %240 = arith.addf %234, %239 : vector<128x64xf32>
    %c0_280 = arith.constant 0 : index
    %c35_281 = arith.constant 35 : index
    %c2_282 = arith.constant 2 : index
    %c0_283 = arith.constant 0 : index
    %241 = vector.load %arg2[%c0_280, %c35_281, %c2_282, %c0_283] : memref<2x44x11x3xbf16, #tpu.memory_space<vmem>>, vector<2x8x8x3xbf16>
    %242 = vector.shape_cast %241 : vector<2x8x8x3xbf16> to vector<128x3xbf16>
    %c40 = arith.constant 40 : index
    %c0_284 = arith.constant 0 : index
    %c0_285 = arith.constant 0 : index
    %243 = vector.load %arg3[%c40, %c0_284, %c0_285] : memref<49x3x64xbf16, #tpu.memory_space<vmem>>, vector<1x3x64xbf16>
    %244 = vector.shape_cast %243 : vector<1x3x64xbf16> to vector<3x64xbf16>
    %cst_286 = arith.constant dense<0.000000e+00> : vector<128x64xf32>
    %245 = tpu.matmul %242, %244, %cst_286 {dimension_numbers = #tpu.dot_dimension_numbers<[1], [0], [0], [1], [0, 0, 1, 1], [], []>} : vector<128x3xbf16>, vector<3x64xbf16>, vector<128x64xf32> -> vector<128x64xf32>
    %246 = arith.addf %240, %245 : vector<128x64xf32>
    %c0_287 = arith.constant 0 : index
    %c24_288 = arith.constant 24 : index
    %c3_289 = arith.constant 3 : index
    %c0_290 = arith.constant 0 : index
    %247 = vector.load %arg2[%c0_287, %c24_288, %c3_289, %c0_290] : memref<2x44x11x3xbf16, #tpu.memory_space<vmem>>, vector<2x8x8x3xbf16>
    %248 = vector.shape_cast %247 : vector<2x8x8x3xbf16> to vector<128x3xbf16>
    %c41 = arith.constant 41 : index
    %c0_291 = arith.constant 0 : index
    %c0_292 = arith.constant 0 : index
    %249 = vector.load %arg3[%c41, %c0_291, %c0_292] : memref<49x3x64xbf16, #tpu.memory_space<vmem>>, vector<1x3x64xbf16>
    %250 = vector.shape_cast %249 : vector<1x3x64xbf16> to vector<3x64xbf16>
    %cst_293 = arith.constant dense<0.000000e+00> : vector<128x64xf32>
    %251 = tpu.matmul %248, %250, %cst_293 {dimension_numbers = #tpu.dot_dimension_numbers<[1], [0], [0], [1], [0, 0, 1, 1], [], []>} : vector<128x3xbf16>, vector<3x64xbf16>, vector<128x64xf32> -> vector<128x64xf32>
    %252 = arith.addf %246, %251 : vector<128x64xf32>
    %c0_294 = arith.constant 0 : index
    %c3_295 = arith.constant 3 : index
    %c0_296 = arith.constant 0 : index
    %c0_297 = arith.constant 0 : index
    %253 = vector.load %arg2[%c0_294, %c3_295, %c0_296, %c0_297] : memref<2x44x11x3xbf16, #tpu.memory_space<vmem>>, vector<2x8x8x3xbf16>
    %254 = vector.shape_cast %253 : vector<2x8x8x3xbf16> to vector<128x3xbf16>
    %c42 = arith.constant 42 : index
    %c0_298 = arith.constant 0 : index
    %c0_299 = arith.constant 0 : index
    %255 = vector.load %arg3[%c42, %c0_298, %c0_299] : memref<49x3x64xbf16, #tpu.memory_space<vmem>>, vector<1x3x64xbf16>
    %256 = vector.shape_cast %255 : vector<1x3x64xbf16> to vector<3x64xbf16>
    %cst_300 = arith.constant dense<0.000000e+00> : vector<128x64xf32>
    %257 = tpu.matmul %254, %256, %cst_300 {dimension_numbers = #tpu.dot_dimension_numbers<[1], [0], [0], [1], [0, 0, 1, 1], [], []>} : vector<128x3xbf16>, vector<3x64xbf16>, vector<128x64xf32> -> vector<128x64xf32>
    %258 = arith.addf %252, %257 : vector<128x64xf32>
    %c0_301 = arith.constant 0 : index
    %c14_302 = arith.constant 14 : index
    %c0_303 = arith.constant 0 : index
    %c0_304 = arith.constant 0 : index
    %259 = vector.load %arg2[%c0_301, %c14_302, %c0_303, %c0_304] : memref<2x44x11x3xbf16, #tpu.memory_space<vmem>>, vector<2x8x8x3xbf16>
    %260 = vector.shape_cast %259 : vector<2x8x8x3xbf16> to vector<128x3xbf16>
    %c43 = arith.constant 43 : index
    %c0_305 = arith.constant 0 : index
    %c0_306 = arith.constant 0 : index
    %261 = vector.load %arg3[%c43, %c0_305, %c0_306] : memref<49x3x64xbf16, #tpu.memory_space<vmem>>, vector<1x3x64xbf16>
    %262 = vector.shape_cast %261 : vector<1x3x64xbf16> to vector<3x64xbf16>
    %cst_307 = arith.constant dense<0.000000e+00> : vector<128x64xf32>
    %263 = tpu.matmul %260, %262, %cst_307 {dimension_numbers = #tpu.dot_dimension_numbers<[1], [0], [0], [1], [0, 0, 1, 1], [], []>} : vector<128x3xbf16>, vector<3x64xbf16>, vector<128x64xf32> -> vector<128x64xf32>
    %264 = arith.addf %258, %263 : vector<128x64xf32>
    %c0_308 = arith.constant 0 : index
    %c3_309 = arith.constant 3 : index
    %c1_310 = arith.constant 1 : index
    %c0_311 = arith.constant 0 : index
    %265 = vector.load %arg2[%c0_308, %c3_309, %c1_310, %c0_311] : memref<2x44x11x3xbf16, #tpu.memory_space<vmem>>, vector<2x8x8x3xbf16>
    %266 = vector.shape_cast %265 : vector<2x8x8x3xbf16> to vector<128x3xbf16>
    %c44 = arith.constant 44 : index
    %c0_312 = arith.constant 0 : index
    %c0_313 = arith.constant 0 : index
    %267 = vector.load %arg3[%c44, %c0_312, %c0_313] : memref<49x3x64xbf16, #tpu.memory_space<vmem>>, vector<1x3x64xbf16>
    %268 = vector.shape_cast %267 : vector<1x3x64xbf16> to vector<3x64xbf16>
    %cst_314 = arith.constant dense<0.000000e+00> : vector<128x64xf32>
    %269 = tpu.matmul %266, %268, %cst_314 {dimension_numbers = #tpu.dot_dimension_numbers<[1], [0], [0], [1], [0, 0, 1, 1], [], []>} : vector<128x3xbf16>, vector<3x64xbf16>, vector<128x64xf32> -> vector<128x64xf32>
    %270 = arith.addf %264, %269 : vector<128x64xf32>
    %c0_315 = arith.constant 0 : index
    %c14_316 = arith.constant 14 : index
    %c1_317 = arith.constant 1 : index
    %c0_318 = arith.constant 0 : index
    %271 = vector.load %arg2[%c0_315, %c14_316, %c1_317, %c0_318] : memref<2x44x11x3xbf16, #tpu.memory_space<vmem>>, vector<2x8x8x3xbf16>
    %272 = vector.shape_cast %271 : vector<2x8x8x3xbf16> to vector<128x3xbf16>
    %c45 = arith.constant 45 : index
    %c0_319 = arith.constant 0 : index
    %c0_320 = arith.constant 0 : index
    %273 = vector.load %arg3[%c45, %c0_319, %c0_320] : memref<49x3x64xbf16, #tpu.memory_space<vmem>>, vector<1x3x64xbf16>
    %274 = vector.shape_cast %273 : vector<1x3x64xbf16> to vector<3x64xbf16>
    %cst_321 = arith.constant dense<0.000000e+00> : vector<128x64xf32>
    %275 = tpu.matmul %272, %274, %cst_321 {dimension_numbers = #tpu.dot_dimension_numbers<[1], [0], [0], [1], [0, 0, 1, 1], [], []>} : vector<128x3xbf16>, vector<3x64xbf16>, vector<128x64xf32> -> vector<128x64xf32>
    %276 = arith.addf %270, %275 : vector<128x64xf32>
    %c0_322 = arith.constant 0 : index
    %c3_323 = arith.constant 3 : index
    %c2_324 = arith.constant 2 : index
    %c0_325 = arith.constant 0 : index
    %277 = vector.load %arg2[%c0_322, %c3_323, %c2_324, %c0_325] : memref<2x44x11x3xbf16, #tpu.memory_space<vmem>>, vector<2x8x8x3xbf16>
    %278 = vector.shape_cast %277 : vector<2x8x8x3xbf16> to vector<128x3xbf16>
    %c46 = arith.constant 46 : index
    %c0_326 = arith.constant 0 : index
    %c0_327 = arith.constant 0 : index
    %279 = vector.load %arg3[%c46, %c0_326, %c0_327] : memref<49x3x64xbf16, #tpu.memory_space<vmem>>, vector<1x3x64xbf16>
    %280 = vector.shape_cast %279 : vector<1x3x64xbf16> to vector<3x64xbf16>
    %cst_328 = arith.constant dense<0.000000e+00> : vector<128x64xf32>
    %281 = tpu.matmul %278, %280, %cst_328 {dimension_numbers = #tpu.dot_dimension_numbers<[1], [0], [0], [1], [0, 0, 1, 1], [], []>} : vector<128x3xbf16>, vector<3x64xbf16>, vector<128x64xf32> -> vector<128x64xf32>
    %282 = arith.addf %276, %281 : vector<128x64xf32>
    %c0_329 = arith.constant 0 : index
    %c14_330 = arith.constant 14 : index
    %c2_331 = arith.constant 2 : index
    %c0_332 = arith.constant 0 : index
    %283 = vector.load %arg2[%c0_329, %c14_330, %c2_331, %c0_332] : memref<2x44x11x3xbf16, #tpu.memory_space<vmem>>, vector<2x8x8x3xbf16>
    %284 = vector.shape_cast %283 : vector<2x8x8x3xbf16> to vector<128x3xbf16>
    %c47 = arith.constant 47 : index
    %c0_333 = arith.constant 0 : index
    %c0_334 = arith.constant 0 : index
    %285 = vector.load %arg3[%c47, %c0_333, %c0_334] : memref<49x3x64xbf16, #tpu.memory_space<vmem>>, vector<1x3x64xbf16>
    %286 = vector.shape_cast %285 : vector<1x3x64xbf16> to vector<3x64xbf16>
    %cst_335 = arith.constant dense<0.000000e+00> : vector<128x64xf32>
    %287 = tpu.matmul %284, %286, %cst_335 {dimension_numbers = #tpu.dot_dimension_numbers<[1], [0], [0], [1], [0, 0, 1, 1], [], []>} : vector<128x3xbf16>, vector<3x64xbf16>, vector<128x64xf32> -> vector<128x64xf32>
    %288 = arith.addf %282, %287 : vector<128x64xf32>
    %c0_336 = arith.constant 0 : index
    %c3_337 = arith.constant 3 : index
    %c3_338 = arith.constant 3 : index
    %c0_339 = arith.constant 0 : index
    %289 = vector.load %arg2[%c0_336, %c3_337, %c3_338, %c0_339] : memref<2x44x11x3xbf16, #tpu.memory_space<vmem>>, vector<2x8x8x3xbf16>
    %290 = vector.shape_cast %289 : vector<2x8x8x3xbf16> to vector<128x3xbf16>
    %c48 = arith.constant 48 : index
    %c0_340 = arith.constant 0 : index
    %c0_341 = arith.constant 0 : index
    %291 = vector.load %arg3[%c48, %c0_340, %c0_341] : memref<49x3x64xbf16, #tpu.memory_space<vmem>>, vector<1x3x64xbf16>
    %292 = vector.shape_cast %291 : vector<1x3x64xbf16> to vector<3x64xbf16>
    %cst_342 = arith.constant dense<0.000000e+00> : vector<128x64xf32>
    %293 = tpu.matmul %290, %292, %cst_342 {dimension_numbers = #tpu.dot_dimension_numbers<[1], [0], [0], [1], [0, 0, 1, 1], [], []>} : vector<128x3xbf16>, vector<3x64xbf16>, vector<128x64xf32> -> vector<128x64xf32>
    %294 = arith.addf %288, %293 : vector<128x64xf32>
    %295 = vector.shape_cast %294 : vector<128x64xf32> to vector<2x8x8x64xf32>
    %296 = arith.truncf %295 : vector<2x8x8x64xf32> to vector<2x8x8x64xbf16>
    %c0_343 = arith.constant 0 : index
    %c0_344 = arith.constant 0 : index
    %c0_345 = arith.constant 0 : index
    %c0_346 = arith.constant 0 : index
    %297 = vector.load %arg4[%c0_343, %c0_344, %c0_345, %c0_346] : memref<2x8x8x64xbf16, #tpu.memory_space<vmem>>, vector<2x8x8x64xbf16>
    tpu.vector_store %arg4[%c0_343, %c0_344, %c0_345, %c0_346], %296 {strides = array<i32>} : memref<2x8x8x64xbf16, #tpu.memory_space<vmem>>, vector<2x8x8x64xbf16>,
    return
  }
  func.func @transform_0(%arg0: i32, %arg1: i32) -> (i32, i32, i32, i32) {
    %c0_i32 = arith.constant 0 : i32
    %c0_i32_0 = arith.constant 0 : i32
    %c0_i32_1 = arith.constant 0 : i32
    %c0_i32_2 = arith.constant 0 : i32
    return %arg0, %c0_i32, %c0_i32_0, %c0_i32_1 : i32, i32, i32, i32
  }
  func.func @transform_1(%arg0: i32, %arg1: i32) -> (i32, i32, i32) {
    %c0_i32 = arith.constant 0 : i32
    %c0_i32_0 = arith.constant 0 : i32
    %c0_i32_1 = arith.constant 0 : i32
    return %c0_i32, %c0_i32_0, %arg1 : i32, i32, i32
  }
  func.func @transform_2(%arg0: i32, %arg1: i32) -> (i32, i32, i32, i32) {
    %c0_i32 = arith.constant 0 : i32
    %c0_i32_0 = arith.constant 0 : i32
    %c0_i32_1 = arith.constant 0 : i32
    return %arg0, %c0_i32, %c0_i32_0, %arg1 : i32, i32, i32, i32
  }
}

</mosaic_0001>

<bundles_post_ra>
// kernel: conv2d.1
= control target key start
LH: loop header
LB: loop body
LE: loop exit
PB: predicated region body
PF: predicated region fallthrough
CT: control target
= control target key end

     0   :  { %vm114_vm0 = vcmask 1040384   ;;  %vm115_vm1 = vcmask 1041408   ;;  %v20283_v1 = vmov 65535   ;;  %vm89_vm2 = vcmask 23552   ;;  %s27109_s0 = inlined_call_operand.vmem [shape: bf16[2,44,11,3], index: 0, kind: input, shape index: {}]   ;;  %s27110_s1 = inlined_call_operand.vmem [shape: bf16[49,3,64], index: 1, kind: input, shape index: {}]   ;;  %s27111_s2 = inlined_call_operand.hbm [shape: bf16[2,8,8,64], index: 2, kind: output, shape index: {}]  }
   0x1   :  { %v15934_v0 = vld [vmem:[%s27110_s1 + $0x2] sm:$0x3]  ;;  %v116_v2 = vsel %vm114_vm0, 4294967295, %v20283_v1  ;;  %v16869_v5 = vld [vmem:[%s27110_s1 + $0x30] sm:$0x3]  ;;  %vm1277_vm6 = vcmask 1042432  }
   0x2   :  { %v20305_v3 = vsel %vm115_vm1, %v116_v2, 0  ;;  %v19999_v4 = vld [vmem:[%s27109_s0 + $0x58] ss:$8 sps:$4 sm:$0xff]   ;;  %v20000_v8 = vld [vmem:[%s27109_s0 + $0x68] ss:$8 sps:$4 sm:$0xff]   ;;  %vm1278_vm7 = vcmask 1046532  }
   0x3   :  { %v119_v6 = vand.u32 %v15934_v0, %v20305_v3  ;;  %v20315_v7 = vand.u32 %v16869_v5, %v20305_v3  ;;  %18345 = vmatprep.mubr.msk.bf16.mxu1 %vm89_vm2, %v19999_v4  ;;  %v29_v9 = vld [vmem:[%s27110_s1] sm:$0x3]  ;;  %vm414_vm3 = vsmask.f32 3328  ;;  %v16837_v11 = vld [vmem:[%s27109_s0 + $0x110] sm:$0xf]  ;;  %vm20439_vm8 = vmor %vm1277_vm6, %vm1278_vm7 }
   0x4   :  { %v283_v10 = vand.u32 %v20305_v3, %v29_v9  ;;  %v20332_v12 = vld [vmem:[%s27109_s0 + $0x114] sm:$0x1]  ;;  %v16839_v13 = vld [vmem:[%s27109_s0 + $0x118] sm:$0xf]  ;;  %v20341_v14 = vld [vmem:[%s27109_s0 + $0x11c] sm:$0x1] }
   0x5   :  { %27114 = vst [vmem:[#allocation5_spill] sm:$0xff] %v20315_v7  ;;  %18343 = vmatprep.subr.bf16.mxu1 %v119_v6  ;;  %18775 = vmatprep.subr.bf16.mxu0 %v20315_v7  ;;  %v7650_v15 = vshrl.u32 %v16837_v11, 16  ;;  %v7653_v16 = vshll.u32 %v16837_v11, 16  ;;  %v7659_v17 = vshll.u32 %v20332_v12, 16  ;;  %v7664_v18 = vshrl.u32 %v16839_v13, 16 }
   0x6   :  { %18344 = vmatpush3.bf16.msra.mxu1 %v119_v6  ;;  %18776 = vmatpush3.bf16.msra.mxu0 %v20315_v7  ;;  %v7667_v19 = vshll.u32 %v16839_v13, 16  ;;  %v7673_v20 = vshll.u32 %v20341_v14, 16  ;;  %v16918_v21 = vld [vmem:[%s27110_s1 + $0x32] sm:$0x3]  ;;  %vm415_vm4 = vsmask.f32 7440 }
   0x7   :  { %18361 = vmatprep.subr.bf16.mxu1 %v283_v10  ;;  %v7652_v22 = vrot.slane %v7650_v15, 4  ;;  %v7655_v23 = vrot.slane %v7653_v16, 5  ;;  %v16841_v24 = vld [vmem:[%s27109_s0 + $0x120] sm:$0xf]  ;;  %v7661_v25 = vrot.slane %v7659_v17, 5  ;;  %v7666_v26 = vrot.slane %v7664_v18, 4  ;;  %vm20370_vm5 = vmor %vm414_vm3, %vm415_vm4 }
   0x8   :  { %v7669_v27 = vrot.slane %v7667_v19, 5  ;;  %v7675_v28 = vrot.slane %v7673_v20, 5  ;;  %v20355_v29 = vld [vmem:[%s27109_s0 + $0x124] sm:$0x1]  ;;  %v20358_v31 = vand.u32 %v16918_v21, %v20305_v3  ;;  %v16843_v32 = vld [vmem:[%s27109_s0 + $0x128] sm:$0xf] }
   0x9   :  { %18346 = vmatmul.mubr.msk.bf16.vlgmr.msra.gmra.mrb[0].mxu1 %vm89_vm2, %v20000_v8  ;;  %v7656_v30 = vor.u32 %v7655_v23, %v7652_v22  ;;  %v20366_v33 = vld [vmem:[%s27109_s0 + $0x12c] sm:$0x1]  ;;  %v7678_v34 = vshrl.u32 %v16841_v24, 16  ;;  %v7681_v35 = vshll.u32 %v16841_v24, 16  ;;  %v7687_v38 = vshll.u32 %v20355_v29, 16 }
   0xa   :  { %18362 = vmatpush3.bf16.msra.mxu1 %v283_v10  ;;  %v7670_v37 = vor.u32 %v7669_v27, %v7666_v26  ;;  %v7692_v39 = vshrl.u32 %v16843_v32, 16  ;;  %v7695_v40 = vshll.u32 %v16843_v32, 16  ;;  %18793 = vmatprep.subr.bf16.mxu0 %v20358_v31  ;;  %v7701_v44 = vshll.u32 %v20366_v33, 16  ;;  %v20001_v48 = vld [vmem:[%s27109_s0 + $0x78] ss:$8 sps:$4 sm:$0xff]  }
   0xb   :  { %v7657_v41 = vrot.slane %v7656_v30, 4  ;;  %v7680_v42 = vrot.slane %v7678_v34, 4  ;;  %v7683_v43 = vrot.slane %v7681_v35, 5  ;;  %v8367_v50 = vrot.slane %v20332_v12, 5  ;;  %18349 = vmatprep.mubr.msk.bf16.mxu1 %vm89_vm2, %v20001_v48  ;;  %v20002_v57 = vld [vmem:[%s27109_s0 + $0x88] ss:$8 sps:$4 sm:$0xff]  }
   0xc   :  { %v7671_v45 = vrot.slane %v7670_v37, 4  ;;  %v7694_v46 = vrot.slane %v7692_v39, 4  ;;  %v7697_v47 = vrot.slane %v7695_v40, 5  ;;  %v7689_v52 = vrot.slane %v7687_v38, 5  ;;  %v16845_v58 = vld [vmem:[%s27109_s0 + $0x130] sm:$0xf] }
   0xd   :  { %v7662_v49 = vsel %vm20370_vm5, %v7657_v41, %v7661_v25  ;;  %v7684_v51 = vor.u32 %v7683_v43, %v7680_v42  ;;  %v8371_v54 = vrot.slane %v20341_v14, 5  ;;  %v7703_v56 = vrot.slane %v7701_v44, 5  ;;  %v20396_v61 = vld [vmem:[%s27109_s0 + $0x134] sm:$0x1]  ;;  %v16847_v62 = vld [vmem:[%s27109_s0 + $0x138] sm:$0xf] }
   0xe   :  { %v7676_v53 = vsel %vm20370_vm5, %v7671_v45, %v7675_v28  ;;  %v7698_v55 = vor.u32 %v7697_v47, %v7694_v46  ;;  %v7706_v63 = vshrl.u32 %v16845_v58, 16  ;;  %v20405_v1 = vld [vmem:[%s27109_s0 + $0x13c] sm:$0x1]  ;;  %v7709_v2 = vshll.u32 %v16845_v58, 16  ;;  %v16849_v11 = vld [vmem:[%s27109_s0 + $0x140] sm:$0xf] }
   0xf   :  { %v16870_v59 = vcombine.low %v7662_v49, %v7676_v53  ;;  %v7685_v60 = vrot.slane %v7684_v51, 4  ;;  %v7715_v4 = vshll.u32 %v20396_v61, 16  ;;  %v7720_v5 = vshrl.u32 %v16847_v62, 16  ;;  %v20420_v18 = vld [vmem:[%s27109_s0 + $0x144] sm:$0x1] }
  0x10   :  { %v7699_v0 = vrot.slane %v7698_v55, 4  ;;  %v7708_v8 = vrot.slane %v7706_v63, 4  ;;  %v7723_v9 = vshll.u32 %v16847_v62, 16  ;;  %v7729_v10 = vshll.u32 %v20405_v1, 16  ;;  %v16851_v22 = vld [vmem:[%s27109_s0 + $0x148] sm:$0xf] }
  0x11   :  { %18350 = vmatmul.mubr.msk.bf16.gmra.mrb[4].mxu1 %vm89_vm2, %v20002_v57  ;;  %18777 = vmatprep.mubr.msk.bf16.mxu0 %vm89_vm2, %v16870_v59  ;;  %v7690_v6 = vsel %vm20370_vm5, %v7685_v60, %v7689_v52  ;;  %v7711_v15 = vrot.slane %v7709_v2, 5  ;;  %v7717_v16 = vrot.slane %v7715_v4, 5  ;;  %v7722_v17 = vrot.slane %v7720_v5, 4  ;;  %v20428_v23 = vld [vmem:[%s27109_s0 + $0x14c] sm:$0x1] }
  0x12   :  { %v7704_v13 = vsel %vm20370_vm5, %v7699_v0, %v7703_v56  ;;  %v7725_v20 = vrot.slane %v7723_v9, 5  ;;  %v7731_v21 = vrot.slane %v7729_v10, 5  ;;  %v7734_v25 = vshrl.u32 %v16849_v11, 16  ;;  %v20003_v40 = vld [vmem:[%s27109_s0 + $0x1b8] ss:$8 sps:$4 sm:$0xff]  }
  0x13   :  { %v16871_v19 = vcombine.low %v7690_v6, %v7704_v13  ;;  %v7712_v24 = vor.u32 %v7711_v15, %v7708_v8  ;;  %v7737_v26 = vshll.u32 %v16849_v11, 16  ;;  %v7743_v27 = vshll.u32 %v20420_v18, 16  ;;  %18353 = vmatprep.mubr.msk.bf16.mxu1 %vm89_vm2, %v20003_v40  ;;  %v20004_v47 = vld [vmem:[%s27109_s0 + $0x1c8] ss:$8 sps:$4 sm:$0xff]   ;;  %v16789_v48 = vld [vmem:[%s27109_s0 + $0xbc] sm:$0x1] }
  0x14   :  { %v7726_v28 = vor.u32 %v7725_v20, %v7722_v17  ;;  %v7748_v30 = vshrl.u32 %v16851_v22, 16  ;;  %v7751_v32 = vshll.u32 %v16851_v22, 16  ;;  %v7757_v34 = vshll.u32 %v20428_v23, 16  ;;  %v16791_v52 = vld [vmem:[%s27109_s0 + $0xc4] sm:$0x1] }
  0x15   :  { %18778 = vmatmul.mubr.msk.bf16.vlgmr.msra.gmra.mrb[0].mxu0 %vm89_vm2, %v16871_v19  ;;  %v7713_v35 = vrot.slane %v7712_v24, 4  ;;  %v7736_v37 = vrot.slane %v7734_v25, 4  ;;  %v7739_v38 = vrot.slane %v7737_v26, 5  ;;  %v7745_v39 = vrot.slane %v7743_v27, 5  ;;  %v20460_v53 = vld [vmem:[%s27109_s0 + $0xb8] sm:$0xe] }
  0x16   :  { %18794 = vmatpush3.bf16.msra.mxu0 %v20358_v31  ;;  %v7727_v41 = vrot.slane %v7726_v28, 4  ;;  %v7750_v42 = vrot.slane %v7748_v30, 4  ;;  %v7753_v43 = vrot.slane %v7751_v32, 5  ;;  %v7759_v44 = vrot.slane %v7757_v34, 5  ;;  %v20465_v55 = vld [vmem:[%s27109_s0 + $0xc0] sm:$0xe] }
  0x17   :  { %v7718_v31 = vsel %vm20370_vm5, %v7713_v35, %v7717_v16  ;;  %v7740_v46 = vor.u32 %v7739_v38, %v7736_v37  ;;  %v16902_v58 = vrot.slane %v20460_v53, 9  ;;  %v8089_v59 = vrot.slane %v16789_v48, 5  ;;  %v16967_v60 = vld [vmem:[%s27110_s1 + $0x34] sm:$0x3]  ;;  %v16793_v4 = vld [vmem:[%s27109_s0 + $0xcc] sm:$0x1] }
  0x18   :  { %v7732_v49 = vsel %vm20370_vm5, %v7727_v41, %v7731_v21  ;;  %v7754_v51 = vor.u32 %v7753_v43, %v7750_v42  ;;  %v16903_v63 = vrot.slane %v20465_v55, 9  ;;  %v8093_v0 = vrot.slane %v16791_v52, 5  ;;  %v16795_v8 = vld [vmem:[%s27109_s0 + $0xd4] sm:$0x1]  ;;  %v20488_v9 = vld [vmem:[%s27109_s0 + $0xc8] sm:$0xe] }
  0x19   :  { %v16872_v56 = vcombine.low %v7718_v31, %v7732_v49  ;;  %v7741_v57 = vrot.slane %v7740_v46, 4  ;;  %18354 = vmatmul.mubr.msk.bf16.gmra.mrb[8].mxu1 %vm89_vm2, %v20004_v47  ;;  %v8480_v2 = vand.u32 %v16967_v60, %v20305_v3  ;;  %v8090_v6 = vsel %vm20439_vm8, %v16902_v58, %v8089_v59  ;;  %v20493_v10 = vld [vmem:[%s27109_s0 + $0xd0] sm:$0xe]  ;;  %v20005_v22 = vld [vmem:[%s27109_s0 + $0x1d8] ss:$8 sps:$4 sm:$0xff]  }
  0x1a   :  { %v7755_v62 = vrot.slane %v7754_v51, 4  ;;  %v8094_v13 = vsel %vm20439_vm8, %v16903_v63, %v8093_v0  ;;  %v16904_v15 = vrot.slane %v20488_v9, 9  ;;  %v8097_v16 = vrot.slane %v16793_v4, 5  ;;  %v20006_v24 = vld [vmem:[%s27109_s0 + $0x1e8] ss:$8 sps:$4 sm:$0xff]   ;;  %18357 = vmatprep.mubr.msk.bf16.mxu1 %vm89_vm2, %v20005_v22 }
  0x1b   :  { %18781 = vmatprep.mubr.msk.bf16.mxu0 %vm89_vm2, %v16872_v56  ;;  %v7746_v5 = vsel %vm20370_vm5, %v7741_v57, %v7745_v39  ;;  %18811 = vmatprep.subr.bf16.mxu0 %v8480_v2  ;;  %v16919_v19 = vcombine.low %v8090_v6, %v8094_v13  ;;  %v16905_v20 = vrot.slane %v20493_v10, 9  ;;  %v8101_v21 = vrot.slane %v16795_v8, 5  ;;  %v16797_v25 = vld [vmem:[%s27109_s0 + $0xdc] sm:$0x1]  ;;  %v16799_v27 = vld [vmem:[%s27109_s0 + $0xe4] sm:$0x1] }
  0x1c   :  { %v7760_v11 = vsel %vm20370_vm5, %v7755_v62, %v7759_v44  ;;  %v8098_v26 = vsel %vm20439_vm8, %v16904_v15, %v8097_v16  ;;  %v20520_v28 = vld [vmem:[%s27109_s0 + $0xd8] sm:$0xe]  ;;  %v20525_v30 = vld [vmem:[%s27109_s0 + $0xe0] sm:$0xe]  ;;  %v8105_v35 = vrot.slane %v16797_v25, 5  ;;  %v8375_v39 = vrot.slane %v20355_v29, 5 }
  0x1d   :  { %v16873_v17 = vcombine.low %v7746_v5, %v7760_v11  ;;  %v8102_v32 = vsel %vm20439_vm8, %v16905_v20, %v8101_v21  ;;  %v16906_v34 = vrot.slane %v20520_v28, 9  ;;  %v16907_v37 = vrot.slane %v20525_v30, 9  ;;  %v16801_v38 = vld [vmem:[%s27109_s0 + $0xec] sm:$0x1]  ;;  %v16803_v41 = vld [vmem:[%s27109_s0 + $0xf4] sm:$0x1] }
  0x1e   :  { %v8109_v40 = vrot.slane %v16799_v27, 5  ;;  %v20543_v42 = vld [vmem:[%s27109_s0 + $0xe8] sm:$0xe]  ;;  %v20550_v44 = vld [vmem:[%s27109_s0 + $0xf0] sm:$0xe]  ;;  %v8113_v46 = vrot.slane %v16801_v38, 5  ;;  %v16920_v47 = vcombine.low %v8098_v26, %v8102_v32 }
  0x1f   :  { %18782 = vmatmul.mubr.msk.bf16.gmra.mrb[4].mxu0 %vm89_vm2, %v16873_v17  ;;  %v8106_v43 = vsel %vm20439_vm8, %v16906_v34, %v8105_v35  ;;  %v16908_v31 = vrot.slane %v20543_v42, 9  ;;  %v16909_v49 = vrot.slane %v20550_v44, 9  ;;  %v8117_v51 = vrot.slane %v16803_v41, 5  ;;  %v20007_v52 = vld [vmem:[%s27109_s0] ss:$8 sps:$4 sm:$0xff]  }
  0x20   :  { %18795 = vmatprep.mubr.msk.bf16.mxu0 %vm89_vm2, %v16919_v19  ;;  %v8110_v48 = vsel %vm20439_vm8, %v16907_v37, %v8109_v40  ;;  %v20008_v57 = vld [vmem:[%s27109_s0 + $0x10] ss:$8 sps:$4 sm:$0xff]   ;;  %v15967_v58 = vld [vmem:[%s27110_s1 + $0x4] sm:$0x3]  ;;  %v16805_v59 = vld [vmem:[%s27109_s0 + $0x21c] sm:$0x1] }
  0x21   :  { %18358 = vmatmul.mubr.msk.bf16.gmra.mrb[12].mxu1 %vm89_vm2, %v20006_v24  ;;  %v16921_v56 = vcombine.low %v8106_v43, %v8110_v48  ;;  %v16807_v60 = vld [vmem:[%s27109_s0 + $0x224] sm:$0x1]  ;;  %v692_v62 = vand.u32 %v15967_v58, %v20305_v3  ;;  %v16894_v63 = vld [vmem:[%s27109_s0 + $0x218] sm:$0xe]  ;;  %v16895_v0 = vld [vmem:[%s27109_s0 + $0x220] sm:$0xe]  ;;  %v8114_v15 = vsel %vm20439_vm8, %v16908_v31, %v8113_v46  ;;  %v8118_v16 = vsel %vm20439_vm8, %v16909_v49, %v8117_v51 }
  0x22   :  { %18363 = vmatprep.mubr.msk.bf16.mxu1 %vm89_vm2, %v20007_v52  ;;  %v8121_v4 = vrot.slane %v16805_v59, 5  ;;  %v8125_v5 = vrot.slane %v16807_v60, 5  ;;  %v16910_v6 = vrot.slane %v16894_v63, 9  ;;  %v16911_v8 = vrot.slane %v16895_v0, 9  ;;  %v16809_v11 = vld [vmem:[%s27109_s0 + $0x22c] sm:$0x1] }
  0x23   :  { %v16811_v13 = vld [vmem:[%s27109_s0 + $0x234] sm:$0x1]  ;;  %v16896_v17 = vld [vmem:[%s27109_s0 + $0x228] sm:$0xe]  ;;  %v16897_v19 = vld [vmem:[%s27109_s0 + $0x230] sm:$0xe]  ;;  %18379 = vmatprep.subr.bf16.mxu1 %v692_v62  ;;  %v16922_v27 = vcombine.low %v8114_v15, %v8118_v16 }
  0x24   :  { %v8129_v20 = vrot.slane %v16809_v11, 5  ;;  %v8133_v21 = vrot.slane %v16811_v13, 5  ;;  %v8126_v22 = vsel %vm20439_vm8, %v16911_v8, %v8125_v5  ;;  %v16912_v24 = vrot.slane %v16896_v17, 9  ;;  %v20009_v26 = vld [vmem:[%s27109_s0 + $0x20] ss:$8 sps:$4 sm:$0xff]  }
  0x25   :  { %v16913_v25 = vrot.slane %v16897_v19, 9  ;;  %v20010_v32 = vld [vmem:[%s27109_s0 + $0x30] ss:$8 sps:$4 sm:$0xff]   ;;  %v16813_v34 = vld [vmem:[%s27109_s0 + $0x23c] sm:$0x1]  ;;  %v8383_v8 = vrot.slane %v20396_v61, 5 }
  0x26   :  { %v16815_v35 = vld [vmem:[%s27109_s0 + $0x244] sm:$0x1]  ;;  %v16898_v38 = vld [vmem:[%s27109_s0 + $0x238] sm:$0xe]  ;;  %v16899_v40 = vld [vmem:[%s27109_s0 + $0x240] sm:$0xe]  ;;  %v8130_v59 = vsel %vm20439_vm8, %v16912_v24, %v8129_v20 }
  0x27   :  { %18796 = vmatmul.mubr.msk.bf16.vlgmr.msra.gmra.mrb[0].mxu0 %vm89_vm2, %v16920_v47  ;;  %v8137_v41 = vrot.slane %v16813_v34, 5  ;;  %v8141_v43 = vrot.slane %v16815_v35, 5  ;;  %v16914_v31 = vrot.slane %v16898_v38, 9  ;;  %v16915_v46 = vrot.slane %v16899_v40, 9  ;;  %v16817_v47 = vld [vmem:[%s27109_s0 + $0x24c] sm:$0x1] }
  0x28   :  { %18812 = vmatpush3.bf16.msra.mxu0 %v8480_v2  ;;  %18799 = vmatprep.mubr.msk.bf16.mxu0 %vm89_vm2, %v16921_v56  ;;  %v8122_v2 = vsel %vm20439_vm8, %v16910_v6, %v8121_v4  ;;  %v16819_v48 = vld [vmem:[%s27109_s0 + $0x254] sm:$0x1]  ;;  %v16900_v49 = vld [vmem:[%s27109_s0 + $0x248] sm:$0xe]  ;;  %v16901_v51 = vld [vmem:[%s27109_s0 + $0x250] sm:$0xe]  ;;  %v8134_v60 = vsel %vm20439_vm8, %v16913_v25, %v8133_v21 }
  0x29   :  { %18364 = vmatmul.mubr.msk.bf16.vlgmr.msra.gmra.mrb[0].mxu1 %vm89_vm2, %v20008_v57  ;;  %v16923_v37 = vcombine.low %v8122_v2, %v8126_v22  ;;  %v8145_v52 = vrot.slane %v16817_v47, 5  ;;  %v8149_v56 = vrot.slane %v16819_v48, 5  ;;  %v16916_v57 = vrot.slane %v16900_v49, 9  ;;  %v20011_v0 = vld [vmem:[%s27109_s0 + $0x160] ss:$8 sps:$4 sm:$0xff]  }
  0x2a   :  { %18380 = vmatpush3.bf16.msra.mxu1 %v692_v62  ;;  %18367 = vmatprep.mubr.msk.bf16.mxu1 %vm89_vm2, %v20009_v26  ;;  %v16917_v58 = vrot.slane %v16901_v51, 9  ;;  %v8138_v62 = vsel %vm20439_vm8, %v16914_v31, %v8137_v41  ;;  %v8142_v63 = vsel %vm20439_vm8, %v16915_v46, %v8141_v43  ;;  %v8379_v4 = vrot.slane %v20366_v33, 5  ;;  %v16935_v5 = vld [vmem:[%s27109_s0 + $0x110] sm:$0xe]  ;;  %v16936_v6 = vld [vmem:[%s27109_s0 + $0x118] sm:$0xe] }
  0x2b   :  { %v16951_v11 = vrot.slane %v16935_v5, 9  ;;  %v16952_v13 = vrot.slane %v16936_v6, 9  ;;  %v17000_v33 = vld [vmem:[%s27110_s1 + $0x36] sm:$0x3]  ;;  %v16937_v15 = vld [vmem:[%s27109_s0 + $0x120] sm:$0xe]  ;;  %v16924_v16 = vcombine.low %v8130_v59, %v8134_v60  ;;  %v16925_v17 = vcombine.low %v8138_v62, %v8142_v63 }
  0x2c   :  { %v20012_v19 = vld [vmem:[%s27109_s0 + $0x170] ss:$8 sps:$4 sm:$0xff]   ;;  %v20666_v61 = vand.u32 %v17000_v33, %v20305_v3  ;;  %v16938_v20 = vld [vmem:[%s27109_s0 + $0x128] sm:$0xe]  ;;  %v16953_v21 = vrot.slane %v16937_v15, 9  ;;  %v20673_v2 = vsel %vm20439_vm8, %v16916_v57, %v8145_v52  ;;  %v8150_v22 = vsel %vm20439_vm8, %v16917_v58, %v8149_v56 }
  0x2d   :  { %v16954_v24 = vrot.slane %v16938_v20, 9  ;;  %v20013_v25 = vld [vmem:[%s27109_s0 + $0x180] ss:$8 sps:$4 sm:$0xff]   ;;  %v8387_v26 = vrot.slane %v20405_v1, 5  ;;  %v8391_v12 = vrot.slane %v20420_v18, 5  ;;  %v16926_v1 = vcombine.low %v20673_v2, %v8150_v22 }
  0x2e   :  { %18829 = vmatprep.subr.bf16.mxu0 %v20666_v61  ;;  %v20698_v34 = vsel %vm20439_vm8, %v16953_v21, %v8375_v39  ;;  %v16939_v14 = vld [vmem:[%s27109_s0 + $0x130] sm:$0xe]  ;;  %v16941_v29 = vld [vmem:[%s27109_s0 + $0x140] sm:$0xe]  ;;  %v16942_v35 = vld [vmem:[%s27109_s0 + $0x148] sm:$0xe] }
  0x2f   :  { %18800 = vmatmul.mubr.msk.bf16.gmra.mrb[4].mxu0 %vm89_vm2, %v16922_v27  ;;  %v20685_v27 = vsel %vm20439_vm8, %v16951_v11, %v8367_v50  ;;  %v20703_v50 = vsel %vm20439_vm8, %v16954_v24, %v8379_v4  ;;  %v16955_v18 = vrot.slane %v16939_v14, 9  ;;  %v16958_v41 = vrot.slane %v16942_v35, 9  ;;  %v382_v31 = vld [vmem:[%s27109_s0] sm:$0xf]  ;;  %v383_v46 = vld [vmem:[%s27109_s0 + $0x4] sm:$0x1] }
  0x30   :  { %18803 = vmatprep.mubr.msk.bf16.mxu0 %vm89_vm2, %v16923_v37  ;;  %v16957_v37 = vrot.slane %v16941_v29, 9  ;;  %v16969_v40 = vcombine.low %v20698_v34, %v20703_v50  ;;  %v8395_v43 = vrot.slane %v20428_v23, 5  ;;  %v384_v49 = vld [vmem:[%s27109_s0 + $0x8] sm:$0xf]  ;;  %v385_v51 = vld [vmem:[%s27109_s0 + $0xc] sm:$0x1] }
  0x31   :  { %18368 = vmatmul.mubr.msk.bf16.gmra.mrb[4].mxu1 %vm89_vm2, %v20010_v32  ;;  %v20691_v32 = vsel %vm20439_vm8, %v16952_v13, %v8371_v54  ;;  %v16940_v54 = vld [vmem:[%s27109_s0 + $0x138] sm:$0xe]  ;;  %v20734_v47 = vsel %vm20439_vm8, %v16955_v18, %v8383_v8  ;;  %v418_v52 = vshrl.u32 %v382_v31, 16  ;;  %v421_v58 = vshll.u32 %v382_v31, 16  ;;  %v386_v60 = vld [vmem:[%s27109_s0 + $0x10] sm:$0xf] }
  0x32   :  { %18371 = vmatprep.mubr.msk.bf16.mxu1 %vm89_vm2, %v20011_v0  ;;  %v16956_v39 = vrot.slane %v16940_v54, 9  ;;  %v16968_v38 = vcombine.low %v20685_v27, %v20691_v32  ;;  %v20742_v23 = vsel %vm20439_vm8, %v16957_v37, %v8391_v12  ;;  %v20755_v57 = vsel %vm20439_vm8, %v16958_v41, %v8395_v43  ;;  %v387_v62 = vld [vmem:[%s27109_s0 + $0x14] sm:$0x1]  ;;  %v20014_v63 = vld [vmem:[%s27109_s0 + $0x190] ss:$8 sps:$4 sm:$0xff]  }
  0x33   :  { %v427_v59 = vshll.u32 %v383_v46, 16  ;;  %v16971_v0 = vcombine.low %v20742_v23, %v20755_v57  ;;  %v420_v4 = vrot.slane %v418_v52, 4  ;;  %v432_v5 = vshrl.u32 %v384_v49, 16  ;;  %v388_v8 = vld [vmem:[%s27109_s0 + $0x18] sm:$0xf] }
  0x34   :  { %v20738_v48 = vsel %vm20439_vm8, %v16956_v39, %v8387_v26  ;;  %v435_v6 = vshll.u32 %v384_v49, 16  ;;  %v423_v11 = vrot.slane %v421_v58, 5  ;;  %v441_v33 = vshll.u32 %v385_v51, 16  ;;  %v389_v15 = vld [vmem:[%s27109_s0 + $0x1c] sm:$0x1] }
  0x35   :  { %v16970_v56 = vcombine.low %v20734_v47, %v20738_v48  ;;  %v429_v13 = vrot.slane %v427_v59, 5  ;;  %v449_v20 = vshll.u32 %v386_v60, 16  ;;  %v455_v21 = vshll.u32 %v387_v62, 16  ;;  %v16016_v2 = vld [vmem:[%s27110_s1 + $0x6] sm:$0x3] }
  0x36   :  { %v424_v22 = vor.u32 %v423_v11, %v420_v4  ;;  %v443_v24 = vrot.slane %v441_v33, 5  ;;  %v460_v26 = vshrl.u32 %v388_v8, 16  ;;  %v16854_v27 = vld [vmem:[%s27109_s0 + $0x274] sm:$0x1]  ;;  %v463_v54 = vshll.u32 %v388_v8, 16 }
  0x37   :  { %18804 = vmatmul.mubr.msk.bf16.gmra.mrb[8].mxu0 %vm89_vm2, %v16924_v16  ;;  %v446_v16 = vshrl.u32 %v386_v60, 16  ;;  %v451_v12 = vrot.slane %v449_v20, 5  ;;  %v457_v14 = vrot.slane %v455_v21, 5  ;;  %v16856_v29 = vld [vmem:[%s27109_s0 + $0x27c] sm:$0x1]  ;;  %v469_v35 = vshll.u32 %v389_v15, 16 }
  0x38   :  { %18807 = vmatprep.mubr.msk.bf16.mxu0 %vm89_vm2, %v16925_v17  ;;  %v434_v17 = vrot.slane %v432_v5, 4  ;;  %v425_v18 = vrot.slane %v424_v22, 4  ;;  %v462_v39 = vrot.slane %v460_v26, 4  ;;  %v1114_v37 = vand.u32 %v16016_v2, %v20305_v3  ;;  %v16943_v41 = vld [vmem:[%s27109_s0 + $0x270] sm:$0xe] }
  0x39   :  { %18372 = vmatmul.mubr.msk.bf16.gmra.mrb[8].mxu1 %vm89_vm2, %v20012_v19  ;;  %v437_v19 = vrot.slane %v435_v6, 5  ;;  %v465_v31 = vrot.slane %v463_v54, 5  ;;  %v16944_v46 = vld [vmem:[%s27109_s0 + $0x278] sm:$0xe]  ;;  %v16959_v49 = vrot.slane %v16943_v41, 9  ;;  %v471_v51 = vrot.slane %v469_v35, 5 }
  0x3a   :  { %18375 = vmatprep.mubr.msk.bf16.mxu1 %vm89_vm2, %v20013_v25  ;;  %v448_v25 = vrot.slane %v446_v16, 4  ;;  %18397 = vmatprep.subr.bf16.mxu1 %v1114_v37  ;;  %v8399_v52 = vrot.slane %v16854_v27, 5  ;;  %v16960_v58 = vrot.slane %v16944_v46, 9  ;;  %v16858_v59 = vld [vmem:[%s27109_s0 + $0x284] sm:$0x1]  ;;  %v8403_v4 = vrot.slane %v16856_v29, 5 }
  0x3b   :  { %v438_v32 = vor.u32 %v437_v19, %v434_v17  ;;  %v16860_v5 = vld [vmem:[%s27109_s0 + $0x28c] sm:$0x1]  ;;  %v16945_v6 = vld [vmem:[%s27109_s0 + $0x280] sm:$0xe]  ;;  %v16946_v15 = vld [vmem:[%s27109_s0 + $0x288] sm:$0xe] }
  0x3c   :  { %v452_v43 = vor.u32 %v451_v12, %v448_v25  ;;  %v20808_v11 = vsel %vm20439_vm8, %v16959_v49, %v8399_v52  ;;  %v7813_v33 = vshll.u32 %v16860_v5, 16  ;;  %v390_v16 = vld [vmem:[%s27109_s0 + $0x20] sm:$0xf]  ;;  %v20820_v20 = vsel %vm20439_vm8, %v16960_v58, %v8403_v4  ;;  %v391_v2 = vld [vmem:[%s27109_s0 + $0x24] sm:$0x1] }
  0x3d   :  { %v16961_v21 = vrot.slane %v16945_v6, 9  ;;  %v16972_v22 = vcombine.low %v20808_v11, %v20820_v20  ;;  %v8407_v26 = vrot.slane %v16858_v59, 5  ;;  %v392_v27 = vld [vmem:[%s27109_s0 + $0x28] sm:$0xf]  ;;  %v16962_v12 = vrot.slane %v16946_v15, 9 }
  0x3e   :  { %v453_v62 = vrot.slane %v452_v43, 4  ;;  %v20830_v25 = vrot.slane %v7813_v33, 5  ;;  %v393_v54 = vld [vmem:[%s27109_s0 + $0x2c] sm:$0x1]  ;;  %v474_v29 = vshrl.u32 %v390_v16, 16  ;;  %v491_v35 = vshll.u32 %v392_v27, 16 }
  0x3f   :  { %18808 = vmatmul.mubr.msk.bf16.gmra.mrb[12].mxu0 %vm89_vm2, %v16926_v1  ;;  %v439_v1 = vrot.slane %v438_v32, 4  ;;  %v20851_v50 = vsel %vm20439_vm8, %v16961_v21, %v8407_v26  ;;  %v396_v41 = vld [vmem:[%s27109_s0 + $0x38] sm:$0xf]  ;;  %v497_v46 = vshll.u32 %v393_v54, 16  ;;  %v397_v49 = vld [vmem:[%s27109_s0 + $0x3c] sm:$0x1] }
  0x40   :  { %18813 = vmatprep.mubr.msk.bf16.mxu0 %vm89_vm2, %v16968_v38  ;;  %v430_v38 = vsel %vm20370_vm5, %v425_v18, %v429_v13  ;;  %v7799_v13 = vshll.u32 %v16858_v59, 16  ;;  %v458_v17 = vsel %vm20370_vm5, %v453_v62, %v457_v14  ;;  %27120 = vst [vmem:[#allocation7_spill] sm:$0xff] %v20830_v25  ;;  %v8411_v14 = vrot.slane %v16860_v5, 5  ;;  %v16862_v59 = vld [vmem:[%s27109_s0 + $0x294] sm:$0x1] }
  0x41   :  { %18376 = vmatmul.mubr.msk.bf16.gmra.mrb[12].mxu1 %vm89_vm2, %v20014_v63  ;;  %v444_v60 = vsel %vm20370_vm5, %v439_v1, %v443_v24  ;;  %v466_v63 = vor.u32 %v465_v31, %v462_v39  ;;  %v483_v18 = vshll.u32 %v391_v2, 16  ;;  %v394_v39 = vld [vmem:[%s27109_s0 + $0x30] sm:$0xf]  ;;  %v476_v48 = vrot.slane %v474_v29, 4  ;;  %v16864_v5 = vld [vmem:[%s27109_s0 + $0x29c] sm:$0x1] }
  0x42   :  { %v15968_v8 = vcombine.low %v430_v38, %v444_v60  ;;  %v20828_v24 = vrot.slane %v7799_v13, 5  ;;  %v20861_v47 = vsel %vm20439_vm8, %v16962_v12, %v8411_v14  ;;  %v502_v52 = vshrl.u32 %v394_v39, 16  ;;  %v16948_v33 = vld [vmem:[%s27109_s0 + $0x298] sm:$0xe]  ;;  %v16866_v20 = vld [vmem:[%s27109_s0 + $0x2a4] sm:$0x1] }
  0x43   :  { %v467_v19 = vrot.slane %v466_v63, 4  ;;  %v16973_v1 = vcombine.low %v20851_v50, %v20861_v47  ;;  %v485_v31 = vrot.slane %v483_v18, 5  ;;  %v505_v58 = vshll.u32 %v394_v39, 16  ;;  %v16949_v23 = vld [vmem:[%s27109_s0 + $0x2a0] sm:$0xe] }
  0x44   :  { %18381 = vmatprep.mubr.msk.bf16.mxu1 %vm89_vm2, %v15968_v8  ;;  %27119 = vst [vmem:[#allocation6_spill] sm:$0xff] %v20828_v24  ;;  %v499_v62 = vrot.slane %v497_v46, 5  ;;  %v516_v4 = vshrl.u32 %v396_v41, 16  ;;  %v504_v8 = vrot.slane %v502_v52, 4  ;;  %v519_v13 = vshll.u32 %v396_v41, 16 }
  0x45   :  { %v472_v32 = vsel %vm20370_vm5, %v467_v19, %v471_v51  ;;  %v493_v51 = vrot.slane %v491_v35, 5  ;;  %v507_v11 = vrot.slane %v505_v58, 5  ;;  %v525_v19 = vshll.u32 %v397_v49, 16  ;;  %v398_v18 = vld [vmem:[%s27109_s0 + $0x160] sm:$0xf] }
  0x46   :  { %v15969_v34 = vcombine.low %v458_v17, %v472_v32  ;;  %v518_v17 = vrot.slane %v516_v4, 4  ;;  %v521_v26 = vrot.slane %v519_v13, 5  ;;  %v16868_v32 = vld [vmem:[%s27109_s0 + $0x2ac] sm:$0x1]  ;;  %v8415_v54 = vrot.slane %v16862_v59, 5 }
  0x47   :  { %18814 = vmatmul.mubr.msk.bf16.vlgmr.msra.gmra.mrb[0].mxu0 %vm89_vm2, %v16969_v40  ;;  %v477_v40 = vshll.u32 %v390_v16, 16  ;;  %v508_v2 = vor.u32 %v507_v11, %v504_v8  ;;  %v527_v14 = vrot.slane %v525_v19, 5  ;;  %v16964_v29 = vrot.slane %v16948_v33, 9  ;;  %v399_v35 = vld [vmem:[%s27109_s0 + $0x164] sm:$0x1] }
  0x48   :  { %18830 = vmatpush3.bf16.msra.mxu0 %v20666_v61  ;;  %18817 = vmatprep.mubr.msk.bf16.mxu0 %vm89_vm2, %v16970_v56  ;;  %v395_v61 = vld [vmem:[%s27109_s0 + $0x34] sm:$0x1]  ;;  %v488_v56 = vshrl.u32 %v392_v27, 16  ;;  %v400_v41 = vld [vmem:[%s27109_s0 + $0x168] sm:$0xf]  ;;  %v8427_v52 = vrot.slane %v16868_v32, 5 }
  0x49   :  { %18382 = vmatmul.mubr.msk.bf16.vlgmr.msra.gmra.mrb[0].mxu1 %vm89_vm2, %v15969_v34  ;;  %v479_v43 = vrot.slane %v477_v40, 5  ;;  %v511_v63 = vshll.u32 %v395_v61, 16  ;;  %v522_v34 = vor.u32 %v521_v26, %v518_v17  ;;  %v8419_v40 = vrot.slane %v16864_v5, 5  ;;  %v401_v58 = vld [vmem:[%s27109_s0 + $0x16c] sm:$0x1] }
  0x4a   :  { %18398 = vmatpush3.bf16.msra.mxu1 %v1114_v37  ;;  %v490_v38 = vrot.slane %v488_v56, 4  ;;  %v16947_v37 = vld [vmem:[%s27109_s0 + $0x290] sm:$0xe]  ;;  %v8423_v56 = vrot.slane %v16866_v20, 5  ;;  %v530_v59 = vshrl.u32 %v398_v18, 16  ;;  %v544_v4 = vshrl.u32 %v400_v41, 16 }
  0x4b   :  { %v480_v60 = vor.u32 %v479_v43, %v476_v48  ;;  %v513_v16 = vrot.slane %v511_v63, 5  ;;  %v16963_v27 = vrot.slane %v16947_v37, 9  ;;  %v16965_v48 = vrot.slane %v16949_v23, 9  ;;  %v402_v5 = vld [vmem:[%s27109_s0 + $0x170] sm:$0xf] }
  0x4c   :  { %v494_v6 = vor.u32 %v493_v51, %v490_v38  ;;  %v8420_v46 = vsel %vm20439_vm8, %v16964_v29, %v8419_v40  ;;  %v539_v63 = vshll.u32 %v399_v35, 16  ;;  %v532_v8 = vrot.slane %v530_v59, 4  ;;  %v403_v13 = vld [vmem:[%s27109_s0 + $0x174] sm:$0x1]  ;;  %v404_v33 = vld [vmem:[%s27109_s0 + $0x178] sm:$0xf] }
  0x4d   :  { %v481_v15 = vrot.slane %v480_v60, 4  ;;  %v8416_v61 = vsel %vm20439_vm8, %v16963_v27, %v8415_v54  ;;  %v8424_v51 = vsel %vm20439_vm8, %v16965_v48, %v8423_v56  ;;  %v547_v11 = vshll.u32 %v400_v41, 16  ;;  %v405_v50 = vld [vmem:[%s27109_s0 + $0x17c] sm:$0x1] }
  0x4e   :  { %v495_v21 = vrot.slane %v494_v6, 4  ;;  %v16974_v38 = vcombine.low %v8416_v61, %v8420_v46  ;;  %v541_v17 = vrot.slane %v539_v63, 5  ;;  %v546_v19 = vrot.slane %v544_v4, 4  ;;  %v16984_v40 = vld [vmem:[%s27109_s0 + $0xbc] sm:$0x3] }
  0x4f   :  { %18818 = vmatmul.mubr.msk.bf16.gmra.mrb[4].mxu0 %vm89_vm2, %v16971_v0  ;;  %v486_v12 = vsel %vm20370_vm5, %v481_v15, %v485_v31  ;;  %v509_v0 = vrot.slane %v508_v2, 4  ;;  %v523_v31 = vrot.slane %v522_v34, 4  ;;  %v549_v20 = vrot.slane %v547_v11, 5  ;;  %v16985_v46 = vld [vmem:[%s27109_s0 + $0xc4] sm:$0x3] }
  0x50   :  { %18821 = vmatprep.mubr.msk.bf16.mxu0 %vm89_vm2, %v16972_v22  ;;  %v500_v57 = vsel %vm20370_vm5, %v495_v21, %v499_v62  ;;  %v16950_v22 = vld [vmem:[%s27109_s0 + $0x2a8] sm:$0xe]  ;;  %v533_v62 = vshll.u32 %v398_v18, 16  ;;  %v553_v21 = vshll.u32 %v401_v58, 16  ;;  %v558_v2 = vshrl.u32 %v402_v5, 16 }
  0x51   :  { %v15970_v39 = vcombine.low %v486_v12, %v500_v57  ;;  %v514_v43 = vsel %vm20370_vm5, %v509_v0, %v513_v16  ;;  %v16966_v49 = vrot.slane %v16950_v22, 9  ;;  %v528_v60 = vsel %vm20370_vm5, %v523_v31, %v527_v14  ;;  %v17033_v63 = vld [vmem:[%s27110_s1 + $0x38] sm:$0x3] }
  0x52   :  { %v15971_v37 = vcombine.low %v514_v43, %v528_v60  ;;  %v535_v16 = vrot.slane %v533_v62, 5  ;;  %v561_v26 = vshll.u32 %v402_v5, 16  ;;  %vm1804_vm9 = vsmask.f32 2304 }
  0x53   :  { %18385 = vmatprep.mubr.msk.bf16.mxu1 %vm89_vm2, %v15970_v39  ;;  %v8428_v6 = vsel %vm20439_vm8, %v16966_v49, %v8427_v52  ;;  %v567_v47 = vshll.u32 %v403_v13, 16  ;;  %v575_v32 = vshll.u32 %v404_v33, 16  ;;  %v550_v12 = vor.u32 %v549_v20, %v546_v19 }
  0x54   :  { %v16975_v15 = vcombine.low %v8424_v51, %v8428_v6  ;;  %18386 = vmatmul.mubr.msk.bf16.gmra.mrb[4].mxu1 %vm89_vm2, %v15971_v37  ;;  %v536_v27 = vor.u32 %v535_v16, %v532_v8  ;;  %v555_v14 = vrot.slane %v553_v21, 5  ;;  %v560_v54 = vrot.slane %v558_v2, 4 }
  0x55   :  { %v563_v29 = vrot.slane %v561_v26, 5  ;;  %v569_v57 = vrot.slane %v567_v47, 5  ;;  %v577_v34 = vrot.slane %v575_v32, 5  ;;  %v551_v22 = vrot.slane %v550_v12, 4  ;;  %v16987_v47 = vld [vmem:[%s27109_s0 + $0xd4] sm:$0x3] }
  0x56   :  { %v537_v23 = vrot.slane %v536_v27, 4  ;;  %v581_v39 = vshll.u32 %v405_v50, 16  ;;  %vm1805_vm10 = vsmask.f32 6416  ;;  %v8612_v56 = vshrl.u32 %v20460_v53, 16 }
  0x57   :  { %18822 = vmatmul.mubr.msk.bf16.gmra.mrb[8].mxu0 %vm89_vm2, %v16973_v1  ;;  %v572_v1 = vshrl.u32 %v404_v33, 16  ;;  %v564_v18 = vor.u32 %v563_v29, %v560_v54  ;;  %v8615_v35 = vshll.u32 %v20460_v53, 16  ;;  %v556_v41 = vsel %vm20370_vm5, %v551_v22, %v555_v14  ;;  %vm20976_vm11 = vmor %vm1804_vm9, %vm1805_vm10 }
  0x58   :  { %18825 = vmatprep.mubr.msk.bf16.mxu0 %vm89_vm2, %v16974_v38  ;;  %v542_v61 = vsel %vm20370_vm5, %v537_v23, %v541_v17  ;;  %v583_v31 = vrot.slane %v581_v39, 5  ;;  %v8621_v49 = vshrl.u32 %v16984_v40, 16  ;;  %v8614_v52 = vrot.slane %v8612_v56, 5 }
  0x59   :  { %v574_v0 = vrot.slane %v572_v1, 4  ;;  %v565_v43 = vrot.slane %v564_v18, 4  ;;  %v15972_v38 = vcombine.low %v542_v61, %v556_v41  ;;  %v8617_v58 = vrot.slane %v8615_v35, 6  ;;  %v408_v41 = vld [vmem:[%s27109_s0 + $0x188] sm:$0xf] }
  0x5a   :  { %v8623_v53 = vrot.slane %v8621_v49, 5  ;;  %v8624_v60 = vshll.u32 %v16984_v40, 16  ;;  %v8630_v62 = vshrl.u32 %v20465_v55, 16  ;;  %v8633_v37 = vshll.u32 %v20465_v55, 16 }
  0x5b   :  { %v578_v48 = vor.u32 %v577_v34, %v574_v0  ;;  %v570_v59 = vsel %vm20370_vm5, %v565_v43, %v569_v57  ;;  %18389 = vmatprep.mubr.msk.bf16.mxu1 %vm89_vm2, %v15972_v38  ;;  %v8618_v5 = vor.u32 %v8617_v58, %v8614_v52  ;;  %v8639_v6 = vshrl.u32 %v16985_v46, 16 }
  0x5c   :  { %v8626_v11 = vrot.slane %v8624_v60, 6  ;;  %v8632_v13 = vrot.slane %v8630_v62, 5  ;;  %v8642_v33 = vshll.u32 %v16985_v46, 16  ;;  %v8635_v19 = vrot.slane %v8633_v37, 6  ;;  %v410_v60 = vld [vmem:[%s27109_s0 + $0x190] sm:$0xf] }
  0x5d   :  { %v579_v51 = vrot.slane %v578_v48, 4  ;;  %v8619_v17 = vrot.slane %v8618_v5, 4  ;;  %v8641_v20 = vrot.slane %v8639_v6, 5  ;;  %v20981_v55 = vand.u32 %v17033_v63, %v20305_v3  ;;  %v407_v48 = vld [vmem:[%s27109_s0 + $0x184] sm:$0x1] }
  0x5e   :  { %v8627_v21 = vor.u32 %v8626_v11, %v8623_v53  ;;  %v8644_v2 = vrot.slane %v8642_v33, 6  ;;  %v8648_v26 = vshrl.u32 %v20488_v9, 16  ;;  %v8651_v27 = vshll.u32 %v20488_v9, 16  ;;  %v406_v9 = vld [vmem:[%s27109_s0 + $0x180] sm:$0xf] }
  0x5f   :  { %18826 = vmatmul.mubr.msk.bf16.gmra.mrb[12].mxu0 %vm89_vm2, %v16975_v15  ;;  %v584_v4 = vsel %vm20370_vm5, %v579_v51, %v583_v31  ;;  %v16986_v15 = vld [vmem:[%s27109_s0 + $0xcc] sm:$0x3]  ;;  %v8636_v50 = vor.u32 %v8635_v19, %v8632_v13  ;;  %18847 = vmatprep.subr.bf16.mxu0 %v20981_v55  ;;  %v8666_v12 = vshrl.u32 %v20493_v10, 16  ;;  %v8669_v18 = vshll.u32 %v20493_v10, 16  ;;  %v411_v37 = vld [vmem:[%s27109_s0 + $0x194] sm:$0x1] }
  0x60   :  { %v15973_v8 = vcombine.low %v570_v59, %v584_v4  ;;  %v8657_v1 = vshrl.u32 %v16986_v15, 16  ;;  %v8660_v32 = vshll.u32 %v16986_v15, 16  ;;  %v8628_v14 = vsel %vm20976_vm11, %v8619_v17, %v8627_v21  ;;  %v409_v51 = vld [vmem:[%s27109_s0 + $0x18c] sm:$0x1]  ;;  %v412_v33 = vld [vmem:[%s27109_s0 + $0x198] sm:$0xf] }
  0x61   :  { %v8645_v54 = vor.u32 %v8644_v2, %v8641_v20  ;;  %v8650_v29 = vrot.slane %v8648_v26, 5  ;;  %v8653_v23 = vrot.slane %v8651_v27, 6  ;;  %v8637_v57 = vrot.slane %v8636_v50, 4  ;;  %v413_v26 = vld [vmem:[%s27109_s0 + $0x19c] sm:$0x1] }
  0x62   :  { %18390 = vmatmul.mubr.msk.bf16.gmra.mrb[8].mxu1 %vm89_vm2, %v15973_v8  ;;  %v8659_v0 = vrot.slane %v8657_v1, 5  ;;  %v8662_v34 = vrot.slane %v8660_v32, 6  ;;  %v8668_v40 = vrot.slane %v8666_v12, 5  ;;  %v8675_v39 = vshrl.u32 %v16987_v47, 16 }
  0x63   :  { %v8654_v22 = vor.u32 %v8653_v23, %v8650_v29  ;;  %v8678_v61 = vshll.u32 %v16987_v47, 16  ;;  %v8646_v56 = vsel %vm20976_vm11, %v8637_v57, %v8645_v54  ;;  %v586_v43 = vshrl.u32 %v406_v9, 16 }
  0x64   :  { %v8663_v35 = vor.u32 %v8662_v34, %v8659_v0  ;;  %v589_v31 = vshll.u32 %v406_v9, 16  ;;  %v17001_v46 = vcombine.low %v8628_v14, %v8646_v56  ;;  %v8671_v38 = vrot.slane %v8669_v18, 6  ;;  %v16988_v14 = vld [vmem:[%s27109_s0 + $0xdc] sm:$0x3] }
  0x65   :  { %v8655_v49 = vrot.slane %v8654_v22, 4  ;;  %v8677_v10 = vrot.slane %v8675_v39, 5  ;;  %v8680_v52 = vrot.slane %v8678_v61, 6  ;;  %v588_v58 = vrot.slane %v586_v43, 4 }
  0x66   :  { %v591_v59 = vrot.slane %v589_v31, 5  ;;  %v595_v53 = vshll.u32 %v407_v48, 16  ;;  %18831 = vmatprep.mubr.msk.bf16.mxu0 %vm89_vm2, %v17001_v46  ;;  %v8672_v63 = vor.u32 %v8671_v38, %v8668_v40  ;;  %v600_v4 = vshrl.u32 %v408_v41, 16 }
  0x67   :  { %v8664_v62 = vsel %vm20976_vm11, %v8655_v49, %v8663_v35  ;;  %v603_v5 = vshll.u32 %v408_v41, 16  ;;  %v8681_v6 = vor.u32 %v8680_v52, %v8677_v10  ;;  %v609_v13 = vshll.u32 %v409_v51, 16  ;;  %v16989_v41 = vld [vmem:[%s27109_s0 + $0xe4] sm:$0x3] }
  0x68   :  { %v592_v8 = vor.u32 %v591_v59, %v588_v58  ;;  %v597_v11 = vrot.slane %v595_v53, 5  ;;  %v8673_v15 = vrot.slane %v8672_v63, 4  ;;  %v602_v17 = vrot.slane %v600_v4, 4 }
  0x69   :  { %v605_v19 = vrot.slane %v603_v5, 5  ;;  %v614_v20 = vshrl.u32 %v410_v60, 16  ;;  %v611_v2 = vrot.slane %v609_v13, 5  ;;  %v617_v27 = vshll.u32 %v410_v60, 16  ;;  %v16990_v60 = vld [vmem:[%s27109_s0 + $0xec] sm:$0x3] }
  0x6a   :  { %v593_v21 = vrot.slane %v592_v8, 4  ;;  %v623_v50 = vshll.u32 %v411_v37, 16  ;;  %v8682_v47 = vsel %vm20976_vm11, %v8673_v15, %v8681_v6  ;;  %v628_v12 = vshrl.u32 %v412_v33, 16 }
  0x6b   :  { %v606_v1 = vor.u32 %v605_v19, %v602_v17  ;;  %v616_v32 = vrot.slane %v614_v20, 4  ;;  %v17002_v54 = vcombine.low %v8664_v62, %v8682_v47  ;;  %v619_v23 = vrot.slane %v617_v27, 5 }
  0x6c   :  { %v598_v29 = vsel %vm20370_vm5, %v593_v21, %v597_v11  ;;  %v625_v9 = vrot.slane %v623_v50, 5  ;;  %v630_v0 = vrot.slane %v628_v12, 4  ;;  %v631_v34 = vshll.u32 %v412_v33, 16 }
  0x6d   :  { %v607_v57 = vrot.slane %v606_v1, 4  ;;  %v637_v40 = vshll.u32 %v413_v26, 16  ;;  %18832 = vmatmul.mubr.msk.bf16.vlgmr.msra.gmra.mrb[0].mxu0 %vm89_vm2, %v17002_v54  ;;  %v620_v22 = vor.u32 %v619_v23, %v616_v32  ;;  %v8684_v18 = vshrl.u32 %v20520_v28, 16  ;;  %v15984_v26 = vld [vmem:[%s27109_s0 + $0x58] sm:$0xf] }
  0x6e   :  { %v8687_v39 = vshll.u32 %v20520_v28, 16  ;;  %v8693_v61 = vshrl.u32 %v16988_v14, 16  ;;  %18848 = vmatpush3.bf16.msra.mxu0 %v20981_v55  ;;  %v633_v56 = vrot.slane %v631_v34, 5  ;;  %v8696_v43 = vshll.u32 %v16988_v14, 16  ;;  %v21062_v32 = vld [vmem:[%s27109_s0 + $0x5c] sm:$0x1] }
  0x6f   :  { %v612_v48 = vsel %vm20370_vm5, %v607_v57, %v611_v2  ;;  %v639_v35 = vrot.slane %v637_v40, 5  ;;  %v621_v46 = vrot.slane %v620_v22, 4  ;;  %v8686_v49 = vrot.slane %v8684_v18, 5 }
  0x70   :  { %v15974_v31 = vcombine.low %v598_v29, %v612_v48  ;;  %v8689_v38 = vrot.slane %v8687_v39, 6  ;;  %v634_v10 = vor.u32 %v633_v56, %v630_v0  ;;  %v8695_v51 = vrot.slane %v8693_v61, 5  ;;  %v15986_v29 = vld [vmem:[%s27109_s0 + $0x60] sm:$0xf]  ;;  %v21075_v39 = vld [vmem:[%s27109_s0 + $0x64] sm:$0x1] }
  0x71   :  { %v8698_v28 = vrot.slane %v8696_v43, 6  ;;  %v8702_v52 = vshrl.u32 %v20525_v30, 16  ;;  %v626_v55 = vsel %vm20370_vm5, %v621_v46, %v625_v9  ;;  %v8705_v59 = vshll.u32 %v20525_v30, 16  ;;  %v16991_v30 = vld [vmem:[%s27109_s0 + $0xf4] sm:$0x3] }
  0x72   :  { %18393 = vmatprep.mubr.msk.bf16.mxu1 %vm89_vm2, %v15974_v31  ;;  %v8690_v58 = vor.u32 %v8689_v38, %v8686_v49  ;;  %v8711_v53 = vshrl.u32 %v16989_v41, 16  ;;  %v635_v62 = vrot.slane %v634_v10, 4  ;;  %v8714_v5 = vshll.u32 %v16989_v41, 16 }
  0x73   :  { %v8699_v63 = vor.u32 %v8698_v28, %v8695_v51  ;;  %v8704_v4 = vrot.slane %v8702_v52, 5  ;;  %v8707_v6 = vrot.slane %v8705_v59, 6  ;;  %v8720_v11 = vshrl.u32 %v20543_v42, 16  ;;  %v21087_v28 = vld [vmem:[%s27109_s0 + $0x6c] sm:$0x1] }
  0x74   :  { %v8691_v37 = vrot.slane %v8690_v58, 4  ;;  %v8713_v8 = vrot.slane %v8711_v53, 5  ;;  %v640_v13 = vsel %vm20370_vm5, %v635_v62, %v639_v35  ;;  %v8716_v33 = vrot.slane %v8714_v5, 6  ;;  %v15988_v35 = vld [vmem:[%s27109_s0 + $0x68] sm:$0xf] }
  0x75   :  { %v8723_v15 = vshll.u32 %v20543_v42, 16  ;;  %v8729_v17 = vshrl.u32 %v16990_v60, 16  ;;  %v15975_v19 = vcombine.low %v626_v55, %v640_v13  ;;  %v8708_v21 = vor.u32 %v8707_v6, %v8704_v4  ;;  %v15990_v62 = vld [vmem:[%s27109_s0 + $0x70] sm:$0xf]  ;;  %v16049_v13 = vld [vmem:[%s27110_s1 + $0x8] sm:$0x3] }
  0x76   :  { %v8700_v20 = vsel %vm20976_vm11, %v8691_v37, %v8699_v63  ;;  %v8722_v2 = vrot.slane %v8720_v11, 5  ;;  %v8717_v27 = vor.u32 %v8716_v33, %v8713_v8  ;;  %v8732_v1 = vshll.u32 %v16990_v60, 16  ;;  %v21098_v8 = vld [vmem:[%s27109_s0 + $0x74] sm:$0x1] }
  0x77   :  { %v8725_v50 = vrot.slane %v8723_v15, 6  ;;  %v8731_v47 = vrot.slane %v8729_v17, 5  ;;  %18394 = vmatmul.mubr.msk.bf16.gmra.mrb[12].mxu1 %vm89_vm2, %v15975_v19  ;;  %v8709_v42 = vrot.slane %v8708_v21, 4  ;;  %v8738_v12 = vshrl.u32 %v20550_v44, 16 }
  0x78   :  { %v8741_v14 = vshll.u32 %v20550_v44, 16  ;;  %v8747_v54 = vshrl.u32 %v16991_v30, 16  ;;  %v8734_v9 = vrot.slane %v8732_v1, 6  ;;  %v8750_v57 = vshll.u32 %v16991_v30, 16 }
  0x79   :  { %v8726_v23 = vor.u32 %v8725_v50, %v8722_v2  ;;  %v840_v0 = vshrl.u32 %v15984_v26, 16  ;;  %v8718_v34 = vsel %vm20976_vm11, %v8709_v42, %v8717_v27  ;;  %v8740_v40 = vrot.slane %v8738_v12, 5 }
  0x7a   :  { %v8743_v22 = vrot.slane %v8741_v14, 6  ;;  %v8749_v18 = vrot.slane %v8747_v54, 5  ;;  %v17003_v44 = vcombine.low %v8700_v20, %v8718_v34  ;;  %v8735_v48 = vor.u32 %v8734_v9, %v8731_v47  ;;  %v16993_v54 = vld [vmem:[%s27109_s0 + $0x224] sm:$0x3] }
  0x7b   :  { %v8727_v61 = vrot.slane %v8726_v23, 4  ;;  %v8752_v56 = vrot.slane %v8750_v57, 6  ;;  %v842_v43 = vrot.slane %v840_v0, 4  ;;  %v843_v31 = vshll.u32 %v15984_v26, 16  ;;  %v16992_v26 = vld [vmem:[%s27109_s0 + $0x21c] sm:$0x3] }
  0x7c   :  { %v8744_v41 = vor.u32 %v8743_v22, %v8740_v40  ;;  %v849_v46 = vshll.u32 %v21062_v32, 16  ;;  %18835 = vmatprep.mubr.msk.bf16.mxu0 %vm89_vm2, %v17003_v44  ;;  %v854_v10 = vshrl.u32 %v15986_v29, 16  ;;  %v857_v51 = vshll.u32 %v15986_v29, 16  ;;  %v20111_v29 = vld [vmem:[%s27109_s0 + $0x218] sm:$0xe] }
  0x7d   :  { %v8736_v49 = vsel %vm20976_vm11, %v8727_v61, %v8735_v48  ;;  %v8753_v38 = vor.u32 %v8752_v56, %v8749_v18  ;;  %v845_v55 = vrot.slane %v843_v31, 5  ;;  %v863_v59 = vshll.u32 %v21075_v39, 16 }
  0x7e   :  { %v8745_v52 = vrot.slane %v8744_v41, 4  ;;  %v851_v58 = vrot.slane %v849_v46, 5  ;;  %v856_v53 = vrot.slane %v854_v10, 4  ;;  %v859_v60 = vrot.slane %v857_v51, 5 }
  0x7f   :  { %v868_v63 = vshrl.u32 %v15988_v35, 16  ;;  %v871_v4 = vshll.u32 %v15988_v35, 16  ;;  %v846_v37 = vor.u32 %v845_v55, %v842_v43  ;;  %v865_v6 = vrot.slane %v863_v59, 5  ;;  %v20112_v35 = vld [vmem:[%s27109_s0 + $0x220] sm:$0xe] }
  0x80   :  { %v8754_v5 = vsel %vm20976_vm11, %v8745_v52, %v8753_v38  ;;  %v877_v11 = vshll.u32 %v21087_v28, 16  ;;  %v860_v30 = vor.u32 %v859_v60, %v856_v53  ;;  %v882_v21 = vshrl.u32 %v15990_v62, 16  ;;  %v16994_v55 = vld [vmem:[%s27109_s0 + $0x22c] sm:$0x3]  ;;  %v20113_v60 = vld [vmem:[%s27109_s0 + $0x228] sm:$0xe] }
  0x81   :  { %v17004_v33 = vcombine.low %v8736_v49, %v8754_v5  ;;  %v870_v15 = vrot.slane %v868_v63, 4  ;;  %v873_v17 = vrot.slane %v871_v4, 5  ;;  %v847_v19 = vrot.slane %v846_v37, 4 }
  0x82   :  { %v879_v20 = vrot.slane %v877_v11, 5  ;;  %v885_v2 = vshll.u32 %v15990_v62, 16  ;;  %v861_v27 = vrot.slane %v860_v30, 4  ;;  %v891_v47 = vshll.u32 %v21098_v8, 16 }
  0x83   :  { %18836 = vmatmul.mubr.msk.bf16.gmra.mrb[4].mxu0 %vm89_vm2, %v17004_v33  ;;  %v874_v50 = vor.u32 %v873_v17, %v870_v15  ;;  %v1395_v1 = vand.u32 %v16049_v13, %v20305_v3  ;;  %v852_v42 = vsel %vm20370_vm5, %v847_v19, %v851_v58  ;;  %v884_v12 = vrot.slane %v882_v21, 4 }
  0x84   :  { %v887_v14 = vrot.slane %v885_v2, 5  ;;  %v8756_v23 = vshrl.u32 %v20111_v29, 16  ;;  %v866_v9 = vsel %vm20370_vm5, %v861_v27, %v865_v6  ;;  %v893_v0 = vrot.slane %v891_v47, 5  ;;  %v16995_v6 = vld [vmem:[%s27109_s0 + $0x234] sm:$0x3] }
  0x85   :  { %v875_v57 = vrot.slane %v874_v50, 4  ;;  %18415 = vmatprep.subr.bf16.mxu1 %v1395_v1  ;;  %v8759_v34 = vshll.u32 %v20111_v29, 16  ;;  %v16017_v40 = vcombine.low %v852_v42, %v866_v9  ;;  %v8765_v44 = vshrl.u32 %v16992_v26, 16  ;;  %v15992_v2 = vld [vmem:[%s27109_s0 + $0x78] sm:$0xf] }
  0x86   :  { %v888_v22 = vor.u32 %v887_v14, %v884_v12  ;;  %v8758_v18 = vrot.slane %v8756_v23, 5  ;;  %v8768_v56 = vshll.u32 %v16992_v26, 16  ;;  %v8774_v41 = vshrl.u32 %v20112_v35, 16 }
  0x87   :  { %v880_v61 = vsel %vm20370_vm5, %v875_v57, %v879_v20  ;;  %v8761_v48 = vrot.slane %v8759_v34, 6  ;;  %18399 = vmatprep.mubr.msk.bf16.mxu1 %vm89_vm2, %v16017_v40  ;;  %v8767_v31 = vrot.slane %v8765_v44, 5  ;;  %v8777_v46 = vshll.u32 %v20112_v35, 16  ;;  %v20114_v20 = vld [vmem:[%s27109_s0 + $0x230] sm:$0xe] }
  0x88   :  { %v889_v43 = vrot.slane %v888_v22, 4  ;;  %v8783_v49 = vshrl.u32 %v16993_v54, 16  ;;  %v8770_v10 = vrot.slane %v8768_v56, 6  ;;  %v8776_v51 = vrot.slane %v8774_v41, 5  ;;  %v21151_v57 = vld [vmem:[%s27109_s0 + $0x7c] sm:$0x1] }
  0x89   :  { %v8762_v38 = vor.u32 %v8761_v48, %v8758_v18  ;;  %v8786_v52 = vshll.u32 %v16993_v54, 16  ;;  %v8779_v59 = vrot.slane %v8777_v46, 6  ;;  %v8792_v62 = vshrl.u32 %v20113_v60, 16  ;;  %v21159_v44 = vld [vmem:[%s27109_s0 + $0x84] sm:$0x1] }
  0x8a   :  { %v894_v58 = vsel %vm20370_vm5, %v889_v43, %v893_v0  ;;  %v8785_v53 = vrot.slane %v8783_v49, 5  ;;  %v8771_v5 = vor.u32 %v8770_v10, %v8767_v31  ;;  %v8795_v33 = vshll.u32 %v20113_v60, 16  ;;  %v21167_v43 = vld [vmem:[%s27109_s0 + $0x8c] sm:$0x1] }
  0x8b   :  { %v16018_v63 = vcombine.low %v880_v61, %v894_v58  ;;  %v8763_v4 = vrot.slane %v8762_v38, 4  ;;  %v8788_v37 = vrot.slane %v8786_v52, 6  ;;  %v8780_v11 = vor.u32 %v8779_v59, %v8776_v51  ;;  %v15996_v61 = vld [vmem:[%s27109_s0 + $0x88] sm:$0xf]  ;;  %v15998_v58 = vld [vmem:[%s27109_s0 + $0x90] sm:$0xf] }
  0x8c   :  { %v8794_v13 = vrot.slane %v8792_v62, 5  ;;  %v8801_v30 = vshrl.u32 %v16994_v55, 16  ;;  %v8804_v19 = vshll.u32 %v16994_v55, 16  ;;  %v8810_v21 = vshrl.u32 %v20114_v20, 16 }
  0x8d   :  { %18400 = vmatmul.mubr.msk.bf16.vlgmr.msra.gmra.mrb[0].mxu1 %vm89_vm2, %v16018_v63  ;;  %v8772_v15 = vsel %vm20976_vm11, %v8763_v4, %v8771_v5  ;;  %v8789_v17 = vor.u32 %v8788_v37, %v8785_v53  ;;  %v8781_v26 = vrot.slane %v8780_v11, 4  ;;  %v8797_v27 = vrot.slane %v8795_v33, 6  ;;  %v21182_v37 = vld [vmem:[%s27109_s0 + $0x94] sm:$0x1] }
  0x8e   :  { %18416 = vmatpush3.bf16.msra.mxu1 %v1395_v1  ;;  %v8803_v50 = vrot.slane %v8801_v30, 5  ;;  %v8813_v47 = vshll.u32 %v20114_v20, 16  ;;  %v8806_v42 = vrot.slane %v8804_v19, 6  ;;  %v8812_v12 = vrot.slane %v8810_v21, 5  ;;  %v15994_v1 = vld [vmem:[%s27109_s0 + $0x80] sm:$0xf] }
  0x8f   :  { %v8819_v14 = vshrl.u32 %v16995_v6, 16  ;;  %v8822_v54 = vshll.u32 %v16995_v6, 16  ;;  %v8790_v29 = vsel %vm20976_vm11, %v8781_v26, %v8789_v17  ;;  %v8798_v23 = vor.u32 %v8797_v27, %v8794_v13  ;;  %v16996_v27 = vld [vmem:[%s27109_s0 + $0x23c] sm:$0x3] }
  0x90   :  { %v8815_v9 = vrot.slane %v8813_v47, 6  ;;  %v896_v0 = vshrl.u32 %v15992_v2, 16  ;;  %v17005_v34 = vcombine.low %v8772_v15, %v8790_v29  ;;  %v8807_v40 = vor.u32 %v8806_v42, %v8803_v50  ;;  %v20115_v50 = vld [vmem:[%s27109_s0 + $0x238] sm:$0xe] }
  0x91   :  { %v8821_v22 = vrot.slane %v8819_v14, 5  ;;  %v8824_v18 = vrot.slane %v8822_v54, 6  ;;  %v8799_v48 = vrot.slane %v8798_v23, 4  ;;  %v899_v41 = vshll.u32 %v15992_v2, 16 }
  0x92   :  { %v8816_v56 = vor.u32 %v8815_v9, %v8812_v12  ;;  %v898_v35 = vrot.slane %v896_v0, 4  ;;  %18839 = vmatprep.mubr.msk.bf16.mxu0 %vm89_vm2, %v17005_v34  ;;  %v905_v46 = vshll.u32 %v21151_v57, 16  ;;  %v910_v49 = vshrl.u32 %v15994_v1, 16  ;;  %v16997_v9 = vld [vmem:[%s27109_s0 + $0x244] sm:$0x3] }
  0x93   :  { %v8825_v31 = vor.u32 %v8824_v18, %v8821_v22  ;;  %v913_v38 = vshll.u32 %v15994_v1, 16  ;;  %v8808_v10 = vsel %vm20976_vm11, %v8799_v48, %v8807_v40  ;;  %v901_v52 = vrot.slane %v899_v41, 5 }
  0x94   :  { %v8817_v51 = vrot.slane %v8816_v56, 4  ;;  %v919_v55 = vshll.u32 %v21159_v44, 16  ;;  %v907_v59 = vrot.slane %v905_v46, 5  ;;  %v912_v53 = vrot.slane %v910_v49, 4  ;;  %v20116_v56 = vld [vmem:[%s27109_s0 + $0x240] sm:$0xe] }
  0x95   :  { %v915_v60 = vrot.slane %v913_v38, 5  ;;  %v924_v62 = vshrl.u32 %v15996_v61, 16  ;;  %v902_v4 = vor.u32 %v901_v52, %v898_v35  ;;  %v927_v6 = vshll.u32 %v15996_v61, 16 }
  0x96   :  { %v8826_v63 = vsel %vm20976_vm11, %v8817_v51, %v8825_v31  ;;  %v921_v5 = vrot.slane %v919_v55, 5  ;;  %v933_v30 = vshll.u32 %v21167_v43, 16  ;;  %v938_v19 = vshrl.u32 %v15998_v58, 16 }
  0x97   :  { %v17006_v11 = vcombine.low %v8808_v10, %v8826_v63  ;;  %v916_v13 = vor.u32 %v915_v60, %v912_v53  ;;  %v926_v33 = vrot.slane %v924_v62, 4  ;;  %v903_v15 = vrot.slane %v902_v4, 4  ;;  %v20117_v62 = vld [vmem:[%s27109_s0 + $0x248] sm:$0xe] }
  0x98   :  { %v929_v17 = vrot.slane %v927_v6, 5  ;;  %v941_v20 = vshll.u32 %v15998_v58, 16  ;;  %v935_v2 = vrot.slane %v933_v30, 5  ;;  %v947_v26 = vshll.u32 %v21182_v37, 16  ;;  %v16998_v58 = vld [vmem:[%s27109_s0 + $0x24c] sm:$0x3] }
  0x99   :  { %18840 = vmatmul.mubr.msk.bf16.gmra.mrb[8].mxu0 %vm89_vm2, %v17006_v11  ;;  %v917_v21 = vrot.slane %v916_v13, 4  ;;  %v8828_v47 = vshrl.u32 %v20115_v50, 16  ;;  %v908_v42 = vsel %vm20370_vm5, %v903_v15, %v907_v59  ;;  %v940_v14 = vrot.slane %v938_v19, 4  ;;  %v16999_v13 = vld [vmem:[%s27109_s0 + $0x254] sm:$0x3] }
  0x9a   :  { %v930_v12 = vor.u32 %v929_v17, %v926_v33  ;;  %v943_v54 = vrot.slane %v941_v20, 5  ;;  %v949_v23 = vrot.slane %v947_v26, 5  ;;  %v8831_v0 = vshll.u32 %v20115_v50, 16  ;;  %v16000_v33 = vld [vmem:[%s27109_s0 + $0x1b8] sm:$0xf] }
  0x9b   :  { %v922_v29 = vsel %vm20370_vm5, %v917_v21, %v921_v5  ;;  %v8830_v1 = vrot.slane %v8828_v47, 5  ;;  %v8837_v18 = vshrl.u32 %v16996_v27, 16  ;;  %v8840_v48 = vshll.u32 %v16996_v27, 16  ;;  %v20118_v26 = vld [vmem:[%s27109_s0 + $0x250] sm:$0xe] }
  0x9c   :  { %v16019_v34 = vcombine.low %v908_v42, %v922_v29  ;;  %v931_v40 = vrot.slane %v930_v12, 4  ;;  %v944_v22 = vor.u32 %v943_v54, %v940_v14  ;;  %v8833_v61 = vrot.slane %v8831_v0, 6  ;;  %v21229_v14 = vld [vmem:[%s27109_s0 + $0x1bc] sm:$0x1] }
  0x9d   :  { %v8846_v35 = vshrl.u32 %v20116_v56, 16  ;;  %v8849_v41 = vshll.u32 %v20116_v56, 16  ;;  %v8839_v49 = vrot.slane %v8837_v18, 5  ;;  %v8855_v38 = vshrl.u32 %v16997_v9, 16 }
  0x9e   :  { %18403 = vmatprep.mubr.msk.bf16.mxu1 %vm89_vm2, %v16019_v34  ;;  %v936_v31 = vsel %vm20370_vm5, %v931_v40, %v935_v2  ;;  %v945_v46 = vrot.slane %v944_v22, 4  ;;  %v8834_v10 = vor.u32 %v8833_v61, %v8830_v1  ;;  %v8842_v51 = vrot.slane %v8840_v48, 6  ;;  %v16002_v40 = vld [vmem:[%s27109_s0 + $0x1c0] sm:$0xf] }
  0x9f   :  { %v8848_v52 = vrot.slane %v8846_v35, 5  ;;  %v8851_v55 = vrot.slane %v8849_v41, 6  ;;  %v8857_v53 = vrot.slane %v8855_v38, 5  ;;  %v8858_v60 = vshll.u32 %v16997_v9, 16  ;;  %v21239_v35 = vld [vmem:[%s27109_s0 + $0x1c4] sm:$0x1] }
  0xa0   :  { %v950_v59 = vsel %vm20370_vm5, %v945_v46, %v949_v23  ;;  %v8864_v63 = vshrl.u32 %v20117_v62, 16  ;;  %v8835_v5 = vrot.slane %v8834_v10, 4  ;;  %v8843_v6 = vor.u32 %v8842_v51, %v8839_v49  ;;  %v16004_v41 = vld [vmem:[%s27109_s0 + $0x1c8] sm:$0xf]  ;;  %v21247_v10 = vld [vmem:[%s27109_s0 + $0x1cc] sm:$0x1] }
  0xa1   :  { %v16020_v4 = vcombine.low %v936_v31, %v950_v59  ;;  %v8852_v11 = vor.u32 %v8851_v55, %v8848_v52  ;;  %v8860_v30 = vrot.slane %v8858_v60, 6  ;;  %v8867_v17 = vshll.u32 %v20117_v62, 16  ;;  %v16006_v59 = vld [vmem:[%s27109_s0 + $0x1d0] sm:$0xf] }
  0xa2   :  { %v8866_v15 = vrot.slane %v8864_v63, 5  ;;  %v8873_v19 = vshrl.u32 %v16998_v58, 16  ;;  %v8844_v20 = vsel %vm20976_vm11, %v8835_v5, %v8843_v6  ;;  %v8876_v2 = vshll.u32 %v16998_v58, 16  ;;  %v20015_v5 = vld [vmem:[%s27109_s0 + $0x10] ss:$8 sps:$4 sm:$0xff]  }
  0xa3   :  { %18404 = vmatmul.mubr.msk.bf16.gmra.mrb[4].mxu1 %vm89_vm2, %v16020_v4  ;;  %v8853_v21 = vrot.slane %v8852_v11, 4  ;;  %v8882_v27 = vshrl.u32 %v20118_v26, 16  ;;  %v8861_v50 = vor.u32 %v8860_v30, %v8857_v53  ;;  %v8869_v47 = vrot.slane %v8867_v17, 6  ;;  %v21260_v4 = vld [vmem:[%s27109_s0 + $0x1d4] sm:$0x1] }
  0xa4   :  { %v8875_v42 = vrot.slane %v8873_v19, 5  ;;  %v8885_v12 = vshll.u32 %v20118_v26, 16  ;;  %v8878_v54 = vrot.slane %v8876_v2, 6  ;;  %v8891_v23 = vshrl.u32 %v16999_v13, 16  ;;  %v17066_v6 = vld [vmem:[%s27110_s1 + $0x3a] sm:$0x3] }
  0xa5   :  { %v8884_v29 = vrot.slane %v8882_v27, 5  ;;  %v8894_v9 = vshll.u32 %v16999_v13, 16  ;;  %v8862_v1 = vsel %vm20976_vm11, %v8853_v21, %v8861_v50  ;;  %v8870_v0 = vor.u32 %v8869_v47, %v8866_v15  ;;  %v16008_v21 = vld [vmem:[%s27109_s0 + $0x1d8] sm:$0xf] }
  0xa6   :  { %v8887_v34 = vrot.slane %v8885_v12, 6  ;;  %v952_v22 = vshrl.u32 %v16000_v33, 16  ;;  %v17007_v18 = vcombine.low %v8844_v20, %v8862_v1  ;;  %v8879_v61 = vor.u32 %v8878_v54, %v8875_v42 }
  0xa7   :  { %v8893_v48 = vrot.slane %v8891_v23, 5  ;;  %v8896_v56 = vrot.slane %v8894_v9, 6  ;;  %v8871_v31 = vrot.slane %v8870_v0, 4  ;;  %v955_v38 = vshll.u32 %v16000_v33, 16 }
  0xa8   :  { %v8888_v46 = vor.u32 %v8887_v34, %v8884_v29  ;;  %v954_v49 = vrot.slane %v952_v22, 4  ;;  %18843 = vmatprep.mubr.msk.bf16.mxu0 %vm89_vm2, %v17007_v18  ;;  %v961_v52 = vshll.u32 %v21229_v14, 16  ;;  %v966_v55 = vshrl.u32 %v16002_v40, 16  ;;  %v21277_v29 = vld [vmem:[%s27109_s0 + $0x1dc] sm:$0x1] }
  0xa9   :  { %v8897_v51 = vor.u32 %v8896_v56, %v8893_v48  ;;  %v969_v58 = vshll.u32 %v16002_v40, 16  ;;  %v8880_v53 = vsel %vm20976_vm11, %v8871_v31, %v8879_v61  ;;  %v957_v62 = vrot.slane %v955_v38, 5  ;;  %v16010_v34 = vld [vmem:[%s27109_s0 + $0x1e0] sm:$0xf]  ;;  %v21291_v48 = vld [vmem:[%s27109_s0 + $0x1e4] sm:$0x1] }
  0xaa   :  { %v8889_v60 = vrot.slane %v8888_v46, 4  ;;  %v975_v63 = vshll.u32 %v21239_v35, 16  ;;  %v963_v11 = vrot.slane %v961_v52, 5  ;;  %v968_v13 = vrot.slane %v966_v55, 4  ;;  %v16012_v56 = vld [vmem:[%s27109_s0 + $0x1e8] sm:$0xf] }
  0xab   :  { %v971_v33 = vrot.slane %v969_v58, 5  ;;  %v980_v30 = vshrl.u32 %v16004_v41, 16  ;;  %v958_v17 = vor.u32 %v957_v62, %v954_v49  ;;  %v983_v20 = vshll.u32 %v16004_v41, 16  ;;  %v20016_v46 = vld [vmem:[%s27109_s0 + $0x20] ss:$8 sps:$4 sm:$0xff]  }
  0xac   :  { %v8898_v15 = vsel %vm20976_vm11, %v8889_v60, %v8897_v51  ;;  %v977_v19 = vrot.slane %v975_v63, 5  ;;  %v989_v50 = vshll.u32 %v21247_v10, 16  ;;  %v994_v12 = vshrl.u32 %v16006_v59, 16  ;;  %v21304_v51 = vld [vmem:[%s27109_s0 + $0x1ec] sm:$0x1] }
  0xad   :  { %v17008_v2 = vcombine.low %v8880_v53, %v8898_v15  ;;  %v972_v26 = vor.u32 %v971_v33, %v968_v13  ;;  %v982_v27 = vrot.slane %v980_v30, 4  ;;  %v959_v47 = vrot.slane %v958_v17, 4  ;;  %v21320_v15 = vld [vmem:[%s27109_s0 + $0x1f4] sm:$0x1] }
  0xae   :  { %v985_v42 = vrot.slane %v983_v20, 5  ;;  %v997_v54 = vshll.u32 %v16006_v59, 16  ;;  %v991_v9 = vrot.slane %v989_v50, 5  ;;  %v1003_v1 = vshll.u32 %v21260_v4, 16 }
  0xaf   :  { %18844 = vmatmul.mubr.msk.bf16.gmra.mrb[12].mxu0 %vm89_vm2, %v17008_v2  ;;  %v973_v23 = vrot.slane %v972_v26, 4  ;;  %v9348_v0 = vand.u32 %v17066_v6, %v20305_v3  ;;  %v964_v40 = vsel %vm20370_vm5, %v959_v47, %v963_v11  ;;  %v996_v18 = vrot.slane %v994_v12, 4  ;;  %v20017_v6 = vld [vmem:[%s27109_s0 + $0x30] ss:$8 sps:$4 sm:$0xff]   ;;  %v21328_v47 = vld [vmem:[%s27109_s0] sm:$0xe] }
  0xb0   :  { %v986_v22 = vor.u32 %v985_v42, %v982_v27  ;;  %v999_v61 = vrot.slane %v997_v54, 5  ;;  %18849 = vmatprep.mubr.msk.bf16.mxu0 %vm89_vm2, %v20015_v5  ;;  %v1005_v31 = vrot.slane %v1003_v1, 5  ;;  %v1008_v49 = vshrl.u32 %v16008_v21, 16  ;;  %v16014_v5 = vld [vmem:[%s27109_s0 + $0x1f0] sm:$0xf] }
  0xb1   :  { %v978_v41 = vsel %vm20370_vm5, %v973_v23, %v977_v19  ;;  %18865 = vmatprep.subr.bf16.mxu0 %v9348_v0  ;;  %v1011_v38 = vshll.u32 %v16008_v21, 16  ;;  %v1017_v59 = vshll.u32 %v21277_v29, 16  ;;  %v1022_v62 = vshrl.u32 %v16010_v34, 16 }
  0xb2   :  { %v16021_v52 = vcombine.low %v964_v40, %v978_v41  ;;  %v987_v55 = vrot.slane %v986_v22, 4  ;;  %v1000_v58 = vor.u32 %v999_v61, %v996_v18  ;;  %v1010_v53 = vrot.slane %v1008_v49, 4  ;;  %v21335_v22 = vld [vmem:[%s27109_s0 + $0x8] sm:$0xe] }
  0xb3   :  { %v1013_v60 = vrot.slane %v1011_v38, 5  ;;  %v1025_v63 = vshll.u32 %v16010_v34, 16  ;;  %v1019_v33 = vrot.slane %v1017_v59, 5  ;;  %v1031_v30 = vshll.u32 %v21291_v48, 16 }
  0xb4   :  { %18407 = vmatprep.mubr.msk.bf16.mxu1 %vm89_vm2, %v16021_v52  ;;  %v992_v11 = vsel %vm20370_vm5, %v987_v55, %v991_v9  ;;  %v1001_v13 = vrot.slane %v1000_v58, 4  ;;  %v1024_v19 = vrot.slane %v1022_v62, 4  ;;  %v1036_v21 = vshrl.u32 %v16012_v56, 16  ;;  %v20119_v52 = vld [vmem:[%s27109_s0 + $0x4] sm:$0x1] }
  0xb5   :  { %v1014_v17 = vor.u32 %v1013_v60, %v1010_v53  ;;  %v1027_v20 = vrot.slane %v1025_v63, 5  ;;  %v1033_v26 = vrot.slane %v1031_v30, 5  ;;  %v1039_v27 = vshll.u32 %v16012_v56, 16  ;;  %v21356_v58 = vld [vmem:[%s27109_s0 + $0x18] sm:$0xe] }
  0xb6   :  { %v1006_v2 = vsel %vm20370_vm5, %v1001_v13, %v1005_v31  ;;  %v1045_v50 = vshll.u32 %v21304_v51, 16  ;;  %v1038_v23 = vrot.slane %v1036_v21, 4  ;;  %v1050_v34 = vshrl.u32 %v16014_v5, 16  ;;  %v21348_v31 = vld [vmem:[%s27109_s0 + $0x10] sm:$0xe] }
  0xb7   :  { %v16022_v42 = vcombine.low %v992_v11, %v1006_v2  ;;  %18850 = vmatmul.mubr.msk.bf16.vlgmr.msra.gmra.mrb[0].mxu0 %vm89_vm2, %v20016_v46  ;;  %v1015_v12 = vrot.slane %v1014_v17, 4  ;;  %v1028_v54 = vor.u32 %v1027_v20, %v1024_v19  ;;  %v1041_v9 = vrot.slane %v1039_v27, 5  ;;  %v20120_v62 = vld [vmem:[%s27109_s0 + $0xc] sm:$0x1]  ;;  %v20019_v30 = vld [vmem:[%s27109_s0 + $0x170] ss:$8 sps:$4 sm:$0xff]  }
  0xb8   :  { %18866 = vmatpush3.bf16.msra.mxu0 %v9348_v0  ;;  %v1047_v1 = vrot.slane %v1045_v50, 5  ;;  %v1053_v40 = vshll.u32 %v16014_v5, 16  ;;  %18853 = vmatprep.mubr.msk.bf16.mxu0 %vm89_vm2, %v20017_v6  ;;  %v1059_v56 = vshll.u32 %v21320_v15, 16  ;;  %v20018_v0 = vld [vmem:[%s27109_s0 + $0x40] ss:$8 sps:$4 sm:$0xff]   ;;  %v16033_v41 = vrot.slane %v21328_v47, 9 }
  0xb9   :  { %18408 = vmatmul.mubr.msk.bf16.gmra.mrb[8].mxu1 %vm89_vm2, %v16022_v42  ;;  %v1020_v18 = vsel %vm20370_vm5, %v1015_v12, %v1019_v33  ;;  %v1029_v61 = vrot.slane %v1028_v54, 4  ;;  %v1042_v46 = vor.u32 %v1041_v9, %v1038_v23  ;;  %v1052_v49 = vrot.slane %v1050_v34, 4  ;;  %v16098_v5 = vld [vmem:[%s27110_s1 + $0xa] sm:$0x3]  ;;  %v21375_v17 = vld [vmem:[%s27109_s0 + $0x20] sm:$0xe] }
  0xba   :  { %v1055_v38 = vrot.slane %v1053_v40, 5  ;;  %v1282_v55 = vrot.slane %v20119_v52, 5  ;;  %v1061_v53 = vrot.slane %v1059_v56, 5  ;;  %v16034_v60 = vrot.slane %v21335_v22, 9  ;;  %v20121_v21 = vld [vmem:[%s27109_s0 + $0x14] sm:$0x1] }
  0xbb   :  { %v1034_v59 = vsel %vm20370_vm5, %v1029_v61, %v1033_v26  ;;  %v1286_v63 = vrot.slane %v20120_v62, 5  ;;  %v1043_v11 = vrot.slane %v1042_v46, 4  ;;  %v16035_v20 = vrot.slane %v21348_v31, 9  ;;  %v21387_v27 = vld [vmem:[%s27109_s0 + $0x28] sm:$0xe] }
  0xbc   :  { %v16023_v6 = vcombine.low %v1020_v18, %v1034_v59  ;;  %v1056_v13 = vor.u32 %v1055_v38, %v1052_v49  ;;  %v1283_v33 = vsel %vm20439_vm8, %v16033_v41, %v1282_v55  ;;  %v1290_v2 = vrot.slane %v20121_v21, 5  ;;  %v20122_v54 = vld [vmem:[%s27109_s0 + $0x1c] sm:$0x1]  ;;  %v21398_v9 = vld [vmem:[%s27109_s0 + $0x30] sm:$0xe] }
  0xbd   :  { %v1287_v19 = vsel %vm20439_vm8, %v16034_v60, %v1286_v63  ;;  %v16036_v26 = vrot.slane %v21356_v58, 9  ;;  %v1048_v50 = vsel %vm20370_vm5, %v1043_v11, %v1047_v1  ;;  %v1294_v23 = vrot.slane %v20122_v54, 5  ;;  %v20123_v18 = vld [vmem:[%s27109_s0 + $0x24] sm:$0x1]  ;;  %v21415_v56 = vld [vmem:[%s27109_s0 + $0x38] sm:$0xe] }
  0xbe   :  { %18411 = vmatprep.mubr.msk.bf16.mxu1 %vm89_vm2, %v16023_v6  ;;  %v1057_v42 = vrot.slane %v1056_v13, 4  ;;  %v16050_v12 = vcombine.low %v1283_v33, %v1287_v19  ;;  %v21403_v34 = vsel %vm20439_vm8, %v16035_v20, %v1290_v2  ;;  %v21406_v1 = vand.u32 %v16098_v5, %v20305_v3  ;;  %v20124_v49 = vld [vmem:[%s27109_s0 + $0x2c] sm:$0x1]  ;;  %v21431_v52 = vld [vmem:[%s27109_s0 + $0x160] sm:$0xe] }
  0xbf   :  { %18854 = vmatmul.mubr.msk.bf16.gmra.mrb[4].mxu0 %vm89_vm2, %v20018_v0  ;;  %v16037_v40 = vrot.slane %v21375_v17, 9  ;;  %v1298_v61 = vrot.slane %v20123_v18, 5  ;;  %v21421_v41 = vsel %vm20439_vm8, %v16036_v26, %v1294_v23  ;;  %v16038_v46 = vrot.slane %v21387_v27, 9  ;;  %v21436_v55 = vld [vmem:[%s27109_s0 + $0x168] sm:$0xe] }
  0xc0   :  { %v1062_v0 = vsel %vm20370_vm5, %v1057_v42, %v1061_v53  ;;  %18857 = vmatprep.mubr.msk.bf16.mxu0 %vm89_vm2, %v20019_v30  ;;  %v1302_v38 = vrot.slane %v20124_v49, 5  ;;  %v16051_v53 = vcombine.low %v21403_v34, %v21421_v41  ;;  %18433 = vmatprep.subr.bf16.mxu1 %v21406_v1  ;;  %v20020_v60 = vld [vmem:[%s27109_s0 + $0x180] ss:$8 sps:$4 sm:$0xff]   ;;  %v16039_v63 = vrot.slane %v21398_v9, 9  ;;  %v1239_v5 = vld [vmem:[%s27109_s0 + $0x170] sm:$0xe] }
  0xc1   :  { %v16024_v59 = vcombine.low %v1048_v50, %v1062_v0  ;;  %v21446_v62 = vsel %vm20439_vm8, %v16037_v40, %v1298_v61  ;;  %v1240_v6 = vld [vmem:[%s27109_s0 + $0x178] sm:$0xe]  ;;  %v20125_v13 = vld [vmem:[%s27109_s0 + $0x34] sm:$0x1]  ;;  %v16040_v30 = vrot.slane %v21415_v56, 9  ;;  %v16041_v26 = vrot.slane %v21431_v52, 9 }
  0xc2   :  { %v21457_v11 = vsel %vm20439_vm8, %v16038_v46, %v1302_v38  ;;  %v1306_v33 = vrot.slane %v20125_v13, 5  ;;  %v20126_v19 = vld [vmem:[%s27109_s0 + $0x3c] sm:$0x1]  ;;  %v20127_v50 = vld [vmem:[%s27109_s0 + $0x164] sm:$0x1]  ;;  %v16042_v54 = vrot.slane %v21436_v55, 9 }
  0xc3   :  { %v1310_v20 = vrot.slane %v20126_v19, 5  ;;  %v17115_v21 = vld [vmem:[%s27110_s1 + $0x3c] sm:$0x3]  ;;  %18412 = vmatmul.mubr.msk.bf16.gmra.mrb[12].mxu1 %vm89_vm2, %v16024_v59  ;;  %v16052_v2 = vcombine.low %v21446_v62, %v21457_v11  ;;  %v1314_v42 = vrot.slane %v20127_v50, 5  ;;  %v1241_v23 = vld [vmem:[%s27109_s0 + $0x180] sm:$0xe] }
  0xc4   :  { %18417 = vmatprep.mubr.msk.bf16.mxu1 %vm89_vm2, %v16050_v12  ;;  %v21483_v40 = vsel %vm20439_vm8, %v16039_v63, %v1306_v33  ;;  %v20021_v61 = vld [vmem:[%s27109_s0 + $0x190] ss:$8 sps:$4 sm:$0xff]   ;;  %v20128_v0 = vld [vmem:[%s27109_s0 + $0x16c] sm:$0x1]  ;;  %v16043_v49 = vrot.slane %v1239_v5, 9  ;;  %v16044_v33 = vrot.slane %v1240_v6, 9 }
  0xc5   :  { %v21487_v18 = vsel %vm20439_vm8, %v16040_v30, %v1310_v20  ;;  %v1318_v46 = vrot.slane %v20128_v0, 5  ;;  %v1242_v12 = vld [vmem:[%s27109_s0 + $0x188] sm:$0xe]  ;;  %v21502_v59 = vsel %vm20439_vm8, %v16041_v26, %v1314_v42  ;;  %v20129_v63 = vld [vmem:[%s27109_s0 + $0x174] sm:$0x1]  ;;  %v21518_v26 = vand.u32 %v17115_v21, %v20305_v3 }
  0xc6   :  { %v1322_v13 = vrot.slane %v20129_v63, 5  ;;  %v1243_v5 = vld [vmem:[%s27109_s0 + $0x190] sm:$0xe]  ;;  %v20130_v19 = vld [vmem:[%s27109_s0 + $0x17c] sm:$0x1]  ;;  %v16045_v50 = vrot.slane %v1241_v23, 9 }
  0xc7   :  { %v21512_v30 = vsel %vm20439_vm8, %v16042_v54, %v1318_v46  ;;  %v1326_v20 = vrot.slane %v20130_v19, 5  ;;  %v1244_v6 = vld [vmem:[%s27109_s0 + $0x198] sm:$0xe]  ;;  %18858 = vmatmul.mubr.msk.bf16.gmra.mrb[8].mxu0 %vm89_vm2, %v20020_v60  ;;  %v20131_v0 = vld [vmem:[%s27109_s0 + $0x184] sm:$0x1]  ;;  %v16046_v46 = vrot.slane %v1242_v12, 9  ;;  %18883 = vmatprep.subr.bf16.mxu0 %v21518_v26 }
  0xc8   :  { %v21528_v54 = vsel %vm20439_vm8, %v16043_v49, %v1322_v13  ;;  %v1330_v21 = vrot.slane %v20131_v0, 5  ;;  %v16066_v23 = vld [vmem:[%s27109_s0 + $0x58] sm:$0xe]  ;;  %18861 = vmatprep.mubr.msk.bf16.mxu0 %vm89_vm2, %v20021_v61  ;;  %v20132_v49 = vld [vmem:[%s27109_s0 + $0x18c] sm:$0x1]  ;;  %v16047_v13 = vrot.slane %v1243_v5, 9 }
  0xc9   :  { %v21539_v60 = vsel %vm20439_vm8, %v16044_v33, %v1326_v20  ;;  %v1334_v63 = vrot.slane %v20132_v49, 5  ;;  %v20133_v12 = vld [vmem:[%s27109_s0 + $0x194] sm:$0x1]  ;;  %v16067_v61 = vld [vmem:[%s27109_s0 + $0x60] sm:$0xe]  ;;  %v16048_v5 = vrot.slane %v1244_v6, 9 }
  0xca   :  { %v1338_v19 = vrot.slane %v20133_v12, 5  ;;  %v20022_v33 = vld [vmem:[%s27109_s0 + $0x1a0] ss:$8 sps:$4 sm:$0xff]   ;;  %v21558_v0 = vsel %vm20439_vm8, %v16045_v50, %v1330_v21  ;;  %v20134_v49 = vld [vmem:[%s27109_s0 + $0x19c] sm:$0x1]  ;;  %v16082_v50 = vrot.slane %v16066_v23, 9 }
  0xcb   :  { %v1342_v12 = vrot.slane %v20134_v49, 5  ;;  %v16068_v42 = vld [vmem:[%s27109_s0 + $0x68] sm:$0xe]  ;;  %v21568_v38 = vsel %vm20439_vm8, %v16046_v46, %v1334_v63  ;;  %v1560_v6 = vrot.slane %v21062_v32, 5  ;;  %v16069_v21 = vld [vmem:[%s27109_s0 + $0x70] sm:$0xe]  ;;  %18418 = vmatmul.mubr.msk.bf16.vlgmr.msra.gmra.mrb[0].mxu1 %vm89_vm2, %v16051_v53 }
  0xcc   :  { %v21572_v20 = vsel %vm20439_vm8, %v16047_v13, %v1338_v19  ;;  %v16115_v49 = vld [vmem:[%s27110_s1 + $0xc] sm:$0x3]  ;;  %v20023_v46 = vld [vmem:[%s27109_s0 + $0x68] ss:$8 sps:$4 sm:$0xff]   ;;  %v16056_v32 = vcombine.low %v21558_v0, %v21568_v38  ;;  %v16083_v63 = vrot.slane %v16067_v61, 9  ;;  %v1564_v13 = vrot.slane %v21075_v39, 5  ;;  %18434 = vmatpush3.bf16.msra.mxu1 %v21406_v1  ;;  %18421 = vmatprep.mubr.msk.bf16.mxu1 %vm89_vm2, %v16052_v2 }
  0xcd   :  { %v21592_v23 = vsel %vm20439_vm8, %v16048_v5, %v1342_v12  ;;  %v16070_v34 = vld [vmem:[%s27109_s0 + $0x78] sm:$0xe]  ;;  %v21607_v53 = vsel %vm20439_vm8, %v16082_v50, %v1560_v6  ;;  %v16084_v19 = vrot.slane %v16068_v42, 9  ;;  %v1568_v39 = vrot.slane %v21087_v28, 5  ;;  %v16071_v61 = vld [vmem:[%s27109_s0 + $0x80] sm:$0xe] }
  0xce   :  { %v16072_v1 = vld [vmem:[%s27109_s0 + $0x88] sm:$0xe]  ;;  %v21618_v62 = vsel %vm20439_vm8, %v16083_v63, %v1564_v13  ;;  %v16085_v11 = vrot.slane %v16069_v21, 9  ;;  %v1572_v2 = vrot.slane %v21098_v8, 5  ;;  %v21622_v5 = vand.u32 %v16115_v49, %v20305_v3  ;;  %v16073_v28 = vld [vmem:[%s27109_s0 + $0x90] sm:$0xe] }
  0xcf   :  { %v21631_v12 = vsel %vm20439_vm8, %v16084_v19, %v1568_v39  ;;  %v16086_v50 = vrot.slane %v16070_v34, 9  ;;  %v1576_v6 = vrot.slane %v21151_v57, 5  ;;  %v16074_v8 = vld [vmem:[%s27109_s0 + $0x1b8] sm:$0xe]  ;;  %18862 = vmatmul.mubr.msk.bf16.gmra.mrb[12].mxu0 %vm89_vm2, %v20022_v33  ;;  %v16087_v49 = vrot.slane %v16071_v61, 9 }
  0xd0   :  { %v21640_v21 = vsel %vm20439_vm8, %v16085_v11, %v1572_v2  ;;  %18451 = vmatprep.subr.bf16.mxu1 %v21622_v5  ;;  %v1580_v63 = vrot.slane %v21159_v44, 5  ;;  %v16088_v13 = vrot.slane %v16072_v1, 9  ;;  %v16075_v57 = vld [vmem:[%s27109_s0 + $0x1c0] sm:$0xe]  ;;  %18867 = vmatprep.mubr.msk.bf16.mxu0 %vm89_vm2, %v20023_v46  ;;  %v1584_v19 = vrot.slane %v21167_v43, 5 }
  0xd1   :  { %v21652_v33 = vsel %vm20439_vm8, %v16086_v50, %v1576_v6  ;;  %v16089_v39 = vrot.slane %v16073_v28, 9  ;;  %v16076_v44 = vld [vmem:[%s27109_s0 + $0x1c8] sm:$0xe]  ;;  %v1588_v46 = vrot.slane %v21182_v37, 5  ;;  %v16090_v1 = vrot.slane %v16074_v8, 9 }
  0xd2   :  { %v21660_v61 = vsel %vm20439_vm8, %v16087_v49, %v1580_v63  ;;  %v1592_v11 = vrot.slane %v21229_v14, 5  ;;  %v16077_v2 = vld [vmem:[%s27109_s0 + $0x1d0] sm:$0xe]  ;;  %v20024_v43 = vld [vmem:[%s27109_s0 + $0x78] ss:$8 sps:$4 sm:$0xff]   ;;  %v21674_v50 = vsel %vm20439_vm8, %v16088_v13, %v1584_v19  ;;  %v16091_v6 = vrot.slane %v16075_v57, 9 }
  0xd3   :  { %v1596_v37 = vrot.slane %v21239_v35, 5  ;;  %v17083_v14 = vld [vmem:[%s27109_s0 + $0x10] sm:$0xf]  ;;  %v27123_v8 = vcombine.low %v21483_v40, %v21487_v18  ;;  %v21686_v49 = vsel %vm20439_vm8, %v16089_v39, %v1588_v46  ;;  %v16092_v13 = vrot.slane %v16076_v44, 9  ;;  %v17084_v57 = vld [vmem:[%s27109_s0 + $0x14] sm:$0x1] }
  0xd4   :  { %v21690_v63 = vsel %vm20439_vm8, %v16090_v1, %v1592_v11  ;;  %v1600_v35 = vrot.slane %v21247_v10, 5  ;;  %v17085_v40 = vld [vmem:[%s27109_s0 + $0x18] sm:$0xf]  ;;  %v27124_v18 = vcombine.low %v21502_v59, %v21512_v30  ;;  %v20025_v19 = vld [vmem:[%s27109_s0 + $0x88] ss:$8 sps:$4 sm:$0xff]   ;;  %v16093_v44 = vrot.slane %v16077_v2, 9 }
  0xd5   :  { %18422 = vmatmul.mubr.msk.bf16.gmra.mrb[4].mxu1 %vm89_vm2, %v27123_v8  ;;  %v21710_v39 = vsel %vm20439_vm8, %v16091_v6, %v1596_v37  ;;  %v1604_v46 = vrot.slane %v21260_v4, 5  ;;  %v17086_v59 = vld [vmem:[%s27109_s0 + $0x1c] sm:$0x1]  ;;  %v9496_v11 = vshrl.u32 %v17083_v14, 16  ;;  %v9499_v8 = vshll.u32 %v17083_v14, 16 }
  0xd6   :  { %18425 = vmatprep.mubr.msk.bf16.mxu1 %vm89_vm2, %v27124_v18  ;;  %v21720_v1 = vsel %vm20439_vm8, %v16092_v13, %v1600_v35  ;;  %v17164_v6 = vld [vmem:[%s27110_s1 + $0x3e] sm:$0x3]  ;;  %v17087_v4 = vld [vmem:[%s27109_s0 + $0x20] sm:$0xf]  ;;  %v9505_v37 = vshll.u32 %v17084_v57, 16  ;;  %v9510_v18 = vshrl.u32 %v17085_v40, 16 }
  0xd7   :  { %v21730_v2 = vsel %vm20439_vm8, %v16093_v44, %v1604_v46  ;;  %v9513_v30 = vshll.u32 %v17085_v40, 16  ;;  %v17088_v13 = vld [vmem:[%s27109_s0 + $0x24] sm:$0x1]  ;;  %18868 = vmatmul.mubr.msk.bf16.vlgmr.msra.gmra.mrb[0].mxu0 %vm89_vm2, %v20024_v43  ;;  %v9498_v35 = vrot.slane %v9496_v11, 4  ;;  %v9501_v10 = vrot.slane %v9499_v8, 5 }
  0xd8   :  { %v9519_v28 = vshll.u32 %v17086_v59, 16  ;;  %v17089_v44 = vld [vmem:[%s27109_s0 + $0x28] sm:$0xf]  ;;  %18884 = vmatpush3.bf16.msra.mxu0 %v21518_v26  ;;  %18871 = vmatprep.mubr.msk.bf16.mxu0 %vm89_vm2, %v20025_v19  ;;  %v9507_v57 = vrot.slane %v9505_v37, 5  ;;  %v9512_v40 = vrot.slane %v9510_v18, 4  ;;  %v21744_v34 = vand.u32 %v17164_v6, %v20305_v3 }
  0xd9   :  { %v9515_v46 = vrot.slane %v9513_v30, 5  ;;  %v17090_v43 = vld [vmem:[%s27109_s0 + $0x2c] sm:$0x1]  ;;  %v20026_v59 = vld [vmem:[%s27109_s0 + $0x98] ss:$8 sps:$4 sm:$0xff]   ;;  %v9502_v11 = vor.u32 %v9501_v10, %v9498_v35  ;;  %v9524_v14 = vshrl.u32 %v17087_v4, 16  ;;  %v27125_v10 = vcombine.low %v21528_v54, %v21539_v60 }
  0xda   :  { %v9521_v8 = vrot.slane %v9519_v28, 5  ;;  %v9527_v26 = vshll.u32 %v17087_v4, 16  ;;  %v20027_v19 = vld [vmem:[%s27109_s0 + $0x1c8] ss:$8 sps:$4 sm:$0xff]   ;;  %18901 = vmatprep.subr.bf16.mxu0 %v21744_v34  ;;  %v9533_v6 = vshll.u32 %v17088_v13, 16  ;;  %v9538_v37 = vshrl.u32 %v17089_v44, 16 }
  0xdb   :  { %v9516_v30 = vor.u32 %v9515_v46, %v9512_v40  ;;  %v9541_v18 = vshll.u32 %v17089_v44, 16  ;;  %v16078_v42 = vld [vmem:[%s27109_s0 + $0x1d8] sm:$0xe]  ;;  %v9503_v28 = vrot.slane %v9502_v11, 4  ;;  %v9526_v4 = vrot.slane %v9524_v14, 4 }
  0xdc   :  { %v9529_v35 = vrot.slane %v9527_v26, 5  ;;  %v9547_v41 = vshll.u32 %v17090_v43, 16  ;;  %v16079_v40 = vld [vmem:[%s27109_s0 + $0x1e0] sm:$0xe]  ;;  %v9535_v44 = vrot.slane %v9533_v6, 5  ;;  %v9540_v46 = vrot.slane %v9538_v37, 4 }
  0xdd   :  { %18426 = vmatmul.mubr.msk.bf16.gmra.mrb[8].mxu1 %vm89_vm2, %v27125_v10  ;;  %v9517_v13 = vrot.slane %v9516_v30, 4  ;;  %v9543_v25 = vrot.slane %v9541_v18, 5  ;;  %v16080_v54 = vld [vmem:[%s27109_s0 + $0x1e8] sm:$0xe]  ;;  %v9508_v60 = vsel %vm20370_vm5, %v9503_v28, %v9507_v57  ;;  %v16094_v11 = vrot.slane %v16078_v42, 9 }
  0xde   :  { %18429 = vmatprep.mubr.msk.bf16.mxu1 %vm89_vm2, %v16056_v32  ;;  %v9530_v14 = vor.u32 %v9529_v35, %v9526_v4  ;;  %v9549_v43 = vrot.slane %v9547_v41, 5  ;;  %v16081_v38 = vld [vmem:[%s27109_s0 + $0x1f0] sm:$0xe]  ;;  %v1608_v26 = vrot.slane %v21277_v29, 5  ;;  %v16095_v30 = vrot.slane %v16079_v40, 9 }
  0xdf   :  { %v9522_v0 = vsel %vm20370_vm5, %v9517_v13, %v9521_v8  ;;  %v9544_v32 = vor.u32 %v9543_v25, %v9540_v46  ;;  %v17091_v6 = vld [vmem:[%s27109_s0 + $0x30] sm:$0xf]  ;;  %18872 = vmatmul.mubr.msk.bf16.gmra.mrb[4].mxu0 %vm89_vm2, %v20026_v59  ;;  %v1612_v42 = vrot.slane %v21291_v48, 5  ;;  %v16096_v37 = vrot.slane %v16080_v54, 9  ;;  %v17092_v59 = vld [vmem:[%s27109_s0 + $0x34] sm:$0x1] }
  0xe0   :  { %v21785_v57 = vcombine.low %v9508_v60, %v9522_v0  ;;  %v9531_v41 = vrot.slane %v9530_v14, 4  ;;  %18875 = vmatprep.mubr.msk.bf16.mxu0 %vm89_vm2, %v20027_v19  ;;  %v21791_v25 = vsel %vm20439_vm8, %v16094_v11, %v1608_v26  ;;  %v1616_v29 = vrot.slane %v21304_v51, 5  ;;  %v20028_v10 = vld [vmem:[%s27109_s0 + $0x1d8] ss:$8 sps:$4 sm:$0xff]   ;;  %v20029_v60 = vld [vmem:[%s27109_s0 + $0x1e8] ss:$8 sps:$4 sm:$0xff]  }
  0xe1   :  { %v9545_v18 = vrot.slane %v9544_v32, 4  ;;  %v16097_v8 = vrot.slane %v16081_v38, 9  ;;  %v21804_v19 = vsel %vm20439_vm8, %v16095_v30, %v1612_v42  ;;  %v1620_v28 = vrot.slane %v21320_v15, 5  ;;  %v17093_v51 = vld [vmem:[%s27109_s0 + $0x38] sm:$0xf] }
  0xe2   :  { %v9536_v48 = vsel %vm20370_vm5, %v9531_v41, %v9535_v44  ;;  %v9552_v4 = vshrl.u32 %v17091_v6, 16  ;;  %v16105_v40 = vcombine.low %v21791_v25, %v21804_v19  ;;  %v21816_v13 = vsel %vm20439_vm8, %v16096_v37, %v1616_v29  ;;  %v17094_v44 = vld [vmem:[%s27109_s0 + $0x3c] sm:$0x1]  ;;  %v17095_v46 = vld [vmem:[%s27109_s0 + $0x40] sm:$0xf] }
  0xe3   :  { %v9550_v35 = vsel %vm20370_vm5, %v9545_v18, %v9549_v43  ;;  %v9555_v15 = vshll.u32 %v17091_v6, 16  ;;  %v27126_v54 = vcombine.low %v21572_v20, %v21592_v23  ;;  %v21835_v43 = vsel %vm20439_vm8, %v16097_v8, %v1620_v28  ;;  %v17096_v0 = vld [vmem:[%s27109_s0 + $0x44] sm:$0x1]  ;;  %v17097_v6 = vld [vmem:[%s27109_s0 + $0x48] sm:$0xf] }
  0xe4   :  { %v21831_v14 = vcombine.low %v9536_v48, %v9550_v35  ;;  %v9554_v11 = vrot.slane %v9552_v4, 4  ;;  %v9561_v38 = vshll.u32 %v17092_v59, 16  ;;  %v27127_v20 = vcombine.low %v21607_v53, %v21618_v62  ;;  %v17098_v53 = vld [vmem:[%s27109_s0 + $0x4c] sm:$0x1]  ;;  %v1788_v35 = vld [vmem:[%s27109_s0 + $0x4] sm:$0x3] }
  0xe5   :  { %18430 = vmatmul.mubr.msk.bf16.gmra.mrb[12].mxu1 %vm89_vm2, %v27126_v54  ;;  %v16106_v23 = vcombine.low %v21816_v13, %v21835_v43  ;;  %v9557_v32 = vrot.slane %v9555_v15, 5  ;;  %v9566_v26 = vshrl.u32 %v17093_v51, 16  ;;  %v9569_v30 = vshll.u32 %v17093_v51, 16  ;;  %v1792_v25 = vld [vmem:[%s27109_s0 + $0x24] sm:$0x3] }
  0xe6   :  { %18435 = vmatprep.mubr.msk.bf16.mxu1 %vm89_vm2, %v27127_v20  ;;  %v9563_v41 = vrot.slane %v9561_v38, 5  ;;  %v9575_v42 = vshll.u32 %v17094_v44, 16  ;;  %v9580_v37 = vshrl.u32 %v17095_v46, 16  ;;  %v9583_v18 = vshll.u32 %v17095_v46, 16 }
  0xe7   :  { %v9558_v29 = vor.u32 %v9557_v32, %v9554_v11  ;;  %v9568_v8 = vrot.slane %v9566_v26, 4  ;;  %v9571_v59 = vrot.slane %v9569_v30, 5  ;;  %v9589_v62 = vshll.u32 %v17096_v0, 16  ;;  %18876 = vmatmul.mubr.msk.bf16.gmra.mrb[8].mxu0 %vm89_vm2, %v20028_v10  ;;  %v20030_v10 = vld [vmem:[%s27109_s0 + $0x1f8] ss:$8 sps:$4 sm:$0xff]  }
  0xe8   :  { %v9577_v48 = vrot.slane %v9575_v42, 5  ;;  %v9582_v28 = vrot.slane %v9580_v37, 4  ;;  %v9585_v51 = vrot.slane %v9583_v18, 5  ;;  %v9594_v4 = vshrl.u32 %v17097_v6, 16  ;;  %18879 = vmatprep.mubr.msk.bf16.mxu0 %vm89_vm2, %v20029_v60 }
  0xe9   :  { %v9559_v44 = vrot.slane %v9558_v29, 4  ;;  %v9572_v15 = vor.u32 %v9571_v59, %v9568_v8  ;;  %v9591_v46 = vrot.slane %v9589_v62, 5  ;;  %v9597_v54 = vshll.u32 %v17097_v6, 16 }
  0xea   :  { %v9586_v11 = vor.u32 %v9585_v51, %v9582_v28  ;;  %v9596_v38 = vrot.slane %v9594_v4, 4  ;;  %v9603_v20 = vshll.u32 %v17098_v53, 16  ;;  %v1808_v0 = vshrl.u32 %v21328_v47, 16 }
  0xeb   :  { %v9564_v32 = vsel %vm20370_vm5, %v9559_v44, %v9563_v41  ;;  %v9573_v26 = vrot.slane %v9572_v15, 4  ;;  %v9599_v30 = vrot.slane %v9597_v54, 5  ;;  %v1811_v60 = vshll.u32 %v21328_v47, 16 }
  0xec   :  { %v27128_v42 = vcombine.low %v21631_v12, %v21640_v21  ;;  %v9587_v6 = vrot.slane %v9586_v11, 4  ;;  %v9605_v37 = vrot.slane %v9603_v20, 5  ;;  %v1810_v18 = vrot.slane %v1808_v0, 5  ;;  %v1789_v12 = vld [vmem:[%s27109_s0 + $0xc] sm:$0x3] }
  0xed   :  { %v1817_v29 = vshrl.u32 %v1788_v35, 16  ;;  %v27129_v8 = vcombine.low %v21652_v33, %v21660_v61  ;;  %v9578_v41 = vsel %vm20370_vm5, %v9573_v26, %v9577_v48  ;;  %v9600_v47 = vor.u32 %v9599_v30, %v9596_v38 }
  0xee   :  { %18436 = vmatmul.mubr.msk.bf16.vlgmr.msra.gmra.mrb[0].mxu1 %vm89_vm2, %v27128_v42  ;;  %v1813_v21 = vrot.slane %v1811_v60, 6  ;;  %v1820_v59 = vshll.u32 %v1788_v35, 16  ;;  %v17118_v53 = vcombine.low %v9564_v32, %v9578_v41  ;;  %v9592_v62 = vsel %vm20370_vm5, %v9587_v6, %v9591_v46  ;;  %v1790_v35 = vld [vmem:[%s27109_s0 + $0x14] sm:$0x3]  ;;  %v1791_v32 = vld [vmem:[%s27109_s0 + $0x1c] sm:$0x3] }
  0xef   :  { %18452 = vmatpush3.bf16.msra.mxu1 %v21622_v5  ;;  %18439 = vmatprep.mubr.msk.bf16.mxu1 %vm89_vm2, %v27129_v8  ;;  %v1819_v5 = vrot.slane %v1817_v29, 5  ;;  %v1826_v28 = vshrl.u32 %v21335_v22, 16  ;;  %v9601_v33 = vrot.slane %v9600_v47, 4  ;;  %v1829_v4 = vshll.u32 %v21335_v22, 16  ;;  %v16148_v6 = vld [vmem:[%s27110_s1 + $0xe] sm:$0x3] }
  0xf0   :  { %v1814_v61 = vor.u32 %v1813_v21, %v1810_v18  ;;  %v1822_v51 = vrot.slane %v1820_v59, 6  ;;  %18880 = vmatmul.mubr.msk.bf16.gmra.mrb[12].mxu0 %vm89_vm2, %v20030_v10  ;;  %v1835_v44 = vshrl.u32 %v1789_v12, 16  ;;  %v1838_v15 = vshll.u32 %v1789_v12, 16  ;;  %v17100_v47 = vld [vmem:[%s27109_s0 + $0x174] sm:$0x1] }
  0xf1   :  { %v1828_v48 = vrot.slane %v1826_v28, 5  ;;  %v1844_v54 = vshrl.u32 %v21348_v31, 16  ;;  %18885 = vmatprep.mubr.msk.bf16.mxu0 %vm89_vm2, %v21785_v57  ;;  %v9606_v46 = vsel %vm20370_vm5, %v9601_v33, %v9605_v37  ;;  %v1831_v22 = vrot.slane %v1829_v4, 6  ;;  %v17101_v33 = vld [vmem:[%s27109_s0 + $0x178] sm:$0xf] }
  0xf2   :  { %v1815_v11 = vrot.slane %v1814_v61, 4  ;;  %v1823_v38 = vor.u32 %v1822_v51, %v1819_v5  ;;  %v21891_v20 = vcombine.low %v9592_v62, %v9606_v46  ;;  %v1837_v0 = vrot.slane %v1835_v44, 5 }
  0xf3   :  { %v1840_v10 = vrot.slane %v1838_v15, 6  ;;  %v1846_v26 = vrot.slane %v1844_v54, 5  ;;  %v1832_v57 = vor.u32 %v1831_v22, %v1828_v48  ;;  %v1847_v60 = vshll.u32 %v21348_v31, 16  ;;  %v17099_v31 = vld [vmem:[%s27109_s0 + $0x170] sm:$0xf] }
  0xf4   :  { %v21898_v30 = vsel %vm20976_vm11, %v1815_v11, %v1823_v38  ;;  %v1853_v42 = vshrl.u32 %v1790_v35, 16  ;;  %v27130_v37 = vcombine.low %v21674_v50, %v21686_v49  ;;  %v1856_v29 = vshll.u32 %v1790_v35, 16  ;;  %v17102_v35 = vld [vmem:[%s27109_s0 + $0x17c] sm:$0x1] }
  0xf5   :  { %v1841_v18 = vor.u32 %v1840_v10, %v1837_v0  ;;  %v1862_v8 = vshrl.u32 %v21356_v58, 16  ;;  %v1865_v41 = vshll.u32 %v21356_v58, 16  ;;  %v27131_v12 = vcombine.low %v21690_v63, %v21710_v39 }
  0xf6   :  { %18440 = vmatmul.mubr.msk.bf16.gmra.mrb[4].mxu1 %vm89_vm2, %v27130_v37  ;;  %v1833_v50 = vrot.slane %v1832_v57, 4  ;;  %v1849_v49 = vrot.slane %v1847_v60, 6  ;;  %v1855_v21 = vrot.slane %v1853_v42, 5  ;;  %v1871_v59 = vshrl.u32 %v1791_v32, 16  ;;  %v17105_v42 = vld [vmem:[%s27109_s0 + $0x188] sm:$0xf] }
  0xf7   :  { %18443 = vmatprep.mubr.msk.bf16.mxu1 %vm89_vm2, %v27131_v12  ;;  %v1858_v62 = vrot.slane %v1856_v29, 6  ;;  %v1864_v5 = vrot.slane %v1862_v8, 5  ;;  %v1867_v58 = vrot.slane %v1865_v41, 6  ;;  %v1874_v28 = vshll.u32 %v1791_v32, 16 }
  0xf8   :  { %v21925_v61 = vsel %vm20976_vm11, %v1833_v50, %v1841_v18  ;;  %v1850_v51 = vor.u32 %v1849_v49, %v1846_v26  ;;  %v1873_v63 = vrot.slane %v1871_v59, 5  ;;  %v21928_v39 = vand.u32 %v16148_v6, %v20305_v3  ;;  %18886 = vmatmul.mubr.msk.bf16.vlgmr.msra.gmra.mrb[0].mxu0 %vm89_vm2, %v21831_v14  ;;  %v17103_v14 = vld [vmem:[%s27109_s0 + $0x180] sm:$0xf] }
  0xf9   :  { %v16116_v4 = vcombine.low %v21898_v30, %v21925_v61  ;;  %v1859_v48 = vor.u32 %v1858_v62, %v1855_v21  ;;  %v1868_v44 = vor.u32 %v1867_v58, %v1864_v5  ;;  %v1876_v15 = vrot.slane %v1874_v28, 6  ;;  %18902 = vmatpush3.bf16.msra.mxu0 %v21744_v34  ;;  %18889 = vmatprep.mubr.msk.bf16.mxu0 %vm89_vm2, %v17118_v53  ;;  %v17104_v34 = vld [vmem:[%s27109_s0 + $0x184] sm:$0x1] }
  0xfa   :  { %v1851_v54 = vrot.slane %v1850_v51, 4  ;;  %v9608_v46 = vshrl.u32 %v17099_v31, 16  ;;  %v9611_v11 = vshll.u32 %v17099_v31, 16  ;;  %v9617_v38 = vshll.u32 %v17100_v47, 16  ;;  %18469 = vmatprep.subr.bf16.mxu1 %v21928_v39 }
  0xfb   :  { %v1869_v22 = vrot.slane %v1868_v44, 4  ;;  %v1877_v0 = vor.u32 %v1876_v15, %v1873_v63  ;;  %v9622_v10 = vshrl.u32 %v17101_v33, 16  ;;  %v9625_v32 = vshll.u32 %v17101_v33, 16  ;;  %v1793_v44 = vld [vmem:[%s27109_s0 + $0x2c] sm:$0x3] }
  0xfc   :  { %v21948_v53 = vsel %vm20976_vm11, %v1851_v54, %v1859_v48  ;;  %v9610_v26 = vrot.slane %v9608_v46, 4  ;;  %v9613_v57 = vrot.slane %v9611_v11, 5  ;;  %v9619_v60 = vrot.slane %v9617_v38, 5 }
  0xfd   :  { %v27132_v6 = vcombine.low %v21720_v1, %v21730_v2  ;;  %v21959_v37 = vsel %vm20976_vm11, %v1869_v22, %v1877_v0  ;;  %v9624_v18 = vrot.slane %v9622_v10, 4  ;;  %v9627_v29 = vrot.slane %v9625_v32, 5  ;;  %v17106_v1 = vld [vmem:[%s27109_s0 + $0x18c] sm:$0x1] }
  0xfe   :  { %v9631_v8 = vshll.u32 %v17102_v35, 16  ;;  %v16117_v41 = vcombine.low %v21948_v53, %v21959_v37  ;;  %v9614_v31 = vor.u32 %v9613_v57, %v9610_v26  ;;  %v9636_v2 = vshrl.u32 %v17103_v14, 16  ;;  %v17109_v53 = vld [vmem:[%s27109_s0 + $0x198] sm:$0xf]  ;;  %v22033_v37 = vld [vmem:[%s27109_s0 + $0x19c] sm:$0x1] }
  0xff   :  { %18444 = vmatmul.mubr.msk.bf16.gmra.mrb[8].mxu1 %vm89_vm2, %v27132_v6  ;;  %v9639_v47 = vshll.u32 %v17103_v14, 16  ;;  %v9628_v12 = vor.u32 %v9627_v29, %v9624_v18  ;;  %v9645_v49 = vshll.u32 %v17104_v34, 16  ;;  %v9650_v21 = vshrl.u32 %v17105_v42, 16  ;;  %v1794_v6 = vld [vmem:[%s27109_s0 + $0x34] sm:$0x3] }
 0x100   :  { %18447 = vmatprep.mubr.msk.bf16.mxu1 %vm89_vm2, %v16105_v40  ;;  %v9633_v50 = vrot.slane %v9631_v8, 5  ;;  %v9615_v19 = vrot.slane %v9614_v31, 4  ;;  %v9638_v40 = vrot.slane %v9636_v2, 4  ;;  %v9653_v62 = vshll.u32 %v17105_v42, 16  ;;  %18890 = vmatmul.mubr.msk.bf16.gmra.mrb[4].mxu0 %vm89_vm2, %v21891_v20  ;;  %v1795_v18 = vld [vmem:[%s27109_s0 + $0x3c] sm:$0x3] }
 0x101   :  { %v9641_v59 = vrot.slane %v9639_v47, 5  ;;  %v9629_v5 = vrot.slane %v9628_v12, 4  ;;  %v9647_v58 = vrot.slane %v9645_v49, 5  ;;  %v9652_v28 = vrot.slane %v9650_v21, 4  ;;  %v17107_v49 = vld [vmem:[%s27109_s0 + $0x190] sm:$0xf] }
 0x102   :  { %v9659_v33 = vshll.u32 %v17106_v1, 16  ;;  %v9620_v51 = vsel %vm20370_vm5, %v9615_v19, %v9619_v60  ;;  %v9655_v48 = vrot.slane %v9653_v62, 5  ;;  %v1880_v15 = vshrl.u32 %v21375_v17, 16 }
 0x103   :  { %v9642_v63 = vor.u32 %v9641_v59, %v9638_v40  ;;  %v9634_v35 = vsel %vm20370_vm5, %v9629_v5, %v9633_v50  ;;  %v1883_v20 = vshll.u32 %v21375_v17, 16  ;;  %v1889_v46 = vshrl.u32 %v1792_v25, 16 }
 0x104   :  { %v9661_v54 = vrot.slane %v9659_v33, 5  ;;  %v17120_v11 = vcombine.low %v9620_v51, %v9634_v35  ;;  %v9656_v14 = vor.u32 %v9655_v48, %v9652_v28  ;;  %v1882_v22 = vrot.slane %v1880_v15, 5 }
 0x105   :  { %v9643_v38 = vrot.slane %v9642_v63, 4  ;;  %v1885_v0 = vrot.slane %v1883_v20, 6  ;;  %v1891_v10 = vrot.slane %v1889_v46, 5  ;;  %v1892_v32 = vshll.u32 %v1792_v25, 16  ;;  %v22022_v63 = vld [vmem:[%s27109_s0 + $0x194] sm:$0x1] }
 0x106   :  { %v1898_v34 = vshrl.u32 %v21387_v27, 16  ;;  %18893 = vmatprep.mubr.msk.bf16.mxu0 %vm89_vm2, %v17120_v11  ;;  %v9657_v26 = vrot.slane %v9656_v14, 4  ;;  %v1901_v13 = vshll.u32 %v21387_v27, 16  ;;  %v1907_v43 = vshrl.u32 %v1793_v44, 16 }
 0x107   :  { %18448 = vmatmul.mubr.msk.bf16.gmra.mrb[12].mxu1 %vm89_vm2, %v16106_v23  ;;  %v9648_v17 = vsel %vm20370_vm5, %v9643_v38, %v9647_v58  ;;  %v1886_v23 = vor.u32 %v1885_v0, %v1882_v22  ;;  %v1894_v57 = vrot.slane %v1892_v32, 6  ;;  %v1910_v42 = vshll.u32 %v1793_v44, 16  ;;  %v22041_v22 = vld [vmem:[%s27109_s0 + $0x1a4] sm:$0x1] }
 0x108   :  { %18453 = vmatprep.mubr.msk.bf16.mxu1 %vm89_vm2, %v16116_v4  ;;  %v1900_v60 = vrot.slane %v1898_v34, 5  ;;  %v9662_v30 = vsel %vm20370_vm5, %v9657_v26, %v9661_v54  ;;  %v1903_v61 = vrot.slane %v1901_v13, 6  ;;  %v1909_v4 = vrot.slane %v1907_v43, 5 }
 0x109   :  { %v1916_v27 = vshrl.u32 %v21398_v9, 16  ;;  %v17121_v29 = vcombine.low %v9648_v17, %v9662_v30  ;;  %v1887_v8 = vrot.slane %v1886_v23, 4  ;;  %v1895_v31 = vor.u32 %v1894_v57, %v1891_v10  ;;  %v17113_v17 = vld [vmem:[%s27109_s0 + $0x1a8] sm:$0xf] }
 0x10a   :  { %v1912_v1 = vrot.slane %v1910_v42, 6  ;;  %v1904_v2 = vor.u32 %v1903_v61, %v1900_v60  ;;  %v1919_v12 = vshll.u32 %v21398_v9, 16  ;;  %v1925_v50 = vshrl.u32 %v1794_v6, 16 }
 0x10b   :  { %v1918_v47 = vrot.slane %v1916_v27, 5  ;;  %18894 = vmatmul.mubr.msk.bf16.gmra.mrb[8].mxu0 %vm89_vm2, %v17121_v29  ;;  %v1896_v21 = vsel %vm20976_vm11, %v1887_v8, %v1895_v31  ;;  %v1928_v19 = vshll.u32 %v1794_v6, 16  ;;  %v1934_v40 = vshrl.u32 %v21415_v56, 16 }
 0x10c   :  { %v1913_v25 = vor.u32 %v1912_v1, %v1909_v4  ;;  %v1905_v59 = vrot.slane %v1904_v2, 4  ;;  %v1921_v62 = vrot.slane %v1919_v12, 6  ;;  %v1927_v5 = vrot.slane %v1925_v50, 5 }
 0x10d   :  { %v1937_v58 = vshll.u32 %v21415_v56, 16  ;;  %v1930_v9 = vrot.slane %v1928_v19, 6  ;;  %v1936_v28 = vrot.slane %v1934_v40, 5  ;;  %v1943_v33 = vshrl.u32 %v1795_v18, 16  ;;  %v1796_v19 = vld [vmem:[%s27109_s0 + $0x164] sm:$0x3] }
 0x10e   :  { %v1946_v51 = vshll.u32 %v1795_v18, 16  ;;  %v1914_v48 = vsel %vm20976_vm11, %v1905_v59, %v1913_v25  ;;  %v1922_v56 = vor.u32 %v1921_v62, %v1918_v47  ;;  %v9667_v14 = vshll.u32 %v17107_v49, 16  ;;  %v22056_v18 = vld [vmem:[%s27109_s0 + $0x1ac] sm:$0x1] }
 0x10f   :  { %18454 = vmatmul.mubr.msk.bf16.vlgmr.msra.gmra.mrb[0].mxu1 %vm89_vm2, %v16117_v41  ;;  %v1939_v44 = vrot.slane %v1937_v58, 6  ;;  %v9664_v41 = vshrl.u32 %v17107_v49, 16  ;;  %v16118_v15 = vcombine.low %v1896_v21, %v1914_v48  ;;  %v1931_v35 = vor.u32 %v1930_v9, %v1927_v5 }
 0x110   :  { %18470 = vmatpush3.bf16.msra.mxu1 %v21928_v39  ;;  %v1945_v54 = vrot.slane %v1943_v33, 5  ;;  %v1948_v20 = vrot.slane %v1946_v51, 6  ;;  %v17111_v39 = vld [vmem:[%s27109_s0 + $0x1a0] sm:$0xf]  ;;  %v1923_v46 = vrot.slane %v1922_v56, 4  ;;  %v9673_v10 = vshll.u32 %v22022_v63, 16 }
 0x111   :  { %v1940_v11 = vor.u32 %v1939_v44, %v1936_v28  ;;  %v9666_v38 = vrot.slane %v9664_v41, 4  ;;  %18457 = vmatprep.mubr.msk.bf16.mxu1 %vm89_vm2, %v16118_v15  ;;  %v9678_v32 = vshrl.u32 %v17109_v53, 16  ;;  %v9681_v34 = vshll.u32 %v17109_v53, 16  ;;  %v1797_v33 = vld [vmem:[%s27109_s0 + $0x16c] sm:$0x3] }
 0x112   :  { %v1949_v0 = vor.u32 %v1948_v20, %v1945_v54  ;;  %v1932_v26 = vsel %vm20976_vm11, %v1923_v46, %v1931_v35  ;;  %v9669_v43 = vrot.slane %v9667_v14, 5  ;;  %v9687_v23 = vshll.u32 %v22033_v37, 16 }
 0x113   :  { %v1941_v13 = vrot.slane %v1940_v11, 4  ;;  %v9675_v57 = vrot.slane %v9673_v10, 5  ;;  %v9680_v60 = vrot.slane %v9678_v32, 4  ;;  %v9683_v42 = vrot.slane %v9681_v34, 5  ;;  %v1798_v32 = vld [vmem:[%s27109_s0 + $0x174] sm:$0x3] }
 0x114   :  { %v9692_v6 = vshrl.u32 %v17111_v39, 16  ;;  %v9670_v61 = vor.u32 %v9669_v43, %v9666_v38  ;;  %v9689_v4 = vrot.slane %v9687_v23, 5  ;;  %v9695_v27 = vshll.u32 %v17111_v39, 16 }
 0x115   :  { %v1950_v30 = vsel %vm20976_vm11, %v1941_v13, %v1949_v0  ;;  %v9684_v8 = vor.u32 %v9683_v42, %v9680_v60  ;;  %v9701_v1 = vshll.u32 %v22041_v22, 16  ;;  %v9706_v12 = vshrl.u32 %v17113_v17, 16  ;;  %v1799_v42 = vld [vmem:[%s27109_s0 + $0x17c] sm:$0x3] }
 0x116   :  { %v16119_v29 = vcombine.low %v1932_v26, %v1950_v30  ;;  %v9694_v31 = vrot.slane %v9692_v6, 4  ;;  %v9671_v2 = vrot.slane %v9670_v61, 4  ;;  %v9697_v47 = vrot.slane %v9695_v27, 5  ;;  %v20135_v26 = vld [vmem:[%s27109_s0 + $0x170] sm:$0xe] }
 0x117   :  { %v9709_v50 = vshll.u32 %v17113_v17, 16  ;;  %v9685_v49 = vrot.slane %v9684_v8, 4  ;;  %v9703_v21 = vrot.slane %v9701_v1, 5  ;;  %v9715_v25 = vshll.u32 %v22056_v18, 16 }
 0x118   :  { %18458 = vmatmul.mubr.msk.bf16.gmra.mrb[4].mxu1 %vm89_vm2, %v16119_v29  ;;  %v1952_v40 = vshrl.u32 %v21431_v52, 16  ;;  %v9676_v59 = vsel %vm20370_vm5, %v9671_v2, %v9675_v57  ;;  %v9698_v62 = vor.u32 %v9697_v47, %v9694_v31  ;;  %v9708_v5 = vrot.slane %v9706_v12, 4  ;;  %v20136_v31 = vld [vmem:[%s27109_s0 + $0x178] sm:$0xe]  ;;  %v17132_v2 = vld [vmem:[%s27109_s0 + $0x68] sm:$0xf] }
 0x119   :  { %v9711_v58 = vrot.slane %v9709_v50, 5  ;;  %v9690_v9 = vsel %vm20370_vm5, %v9685_v49, %v9689_v4  ;;  %v9717_v28 = vrot.slane %v9715_v25, 5  ;;  %v1955_v48 = vshll.u32 %v21431_v52, 16 }
 0x11a   :  { %v1954_v51 = vrot.slane %v1952_v40, 5  ;;  %v17122_v56 = vcombine.low %v9676_v59, %v9690_v9  ;;  %v9699_v44 = vrot.slane %v9698_v62, 4  ;;  %v1961_v41 = vshrl.u32 %v1796_v19, 16  ;;  %v17134_v9 = vld [vmem:[%s27109_s0 + $0x70] sm:$0xf] }
 0x11b   :  { %v9712_v53 = vor.u32 %v9711_v58, %v9708_v5  ;;  %v1957_v15 = vrot.slane %v1955_v48, 6  ;;  %v1964_v35 = vshll.u32 %v1796_v19, 16  ;;  %v1970_v54 = vshrl.u32 %v21436_v55, 16 }
 0x11c   :  { %v1973_v20 = vshll.u32 %v21436_v55, 16  ;;  %18897 = vmatprep.mubr.msk.bf16.mxu0 %vm89_vm2, %v17122_v56  ;;  %v9704_v39 = vsel %vm20370_vm5, %v9699_v44, %v9703_v21  ;;  %v1963_v11 = vrot.slane %v1961_v41, 5  ;;  %v1979_v38 = vshrl.u32 %v1797_v33, 16  ;;  %v22101_v21 = vld [vmem:[%s27109_s0 + $0x6c] sm:$0x1] }
 0x11d   :  { %v9713_v46 = vrot.slane %v9712_v53, 4  ;;  %v1958_v14 = vor.u32 %v1957_v15, %v1954_v51  ;;  %v1966_v52 = vrot.slane %v1964_v35, 6  ;;  %v1972_v0 = vrot.slane %v1970_v54, 5  ;;  %v17213_v53 = vld [vmem:[%s27110_s1 + $0x40] sm:$0x3] }
 0x11e   :  { %v1975_v10 = vrot.slane %v1973_v20, 6  ;;  %v1981_v55 = vrot.slane %v1979_v38, 5  ;;  %v1982_v17 = vshll.u32 %v1797_v33, 16  ;;  %v1988_v13 = vshrl.u32 %v20135_v26, 16  ;;  %v17136_v41 = vld [vmem:[%s27109_s0 + $0x78] sm:$0xf] }
 0x11f   :  { %v9718_v34 = vsel %vm20370_vm5, %v9713_v46, %v9717_v28  ;;  %v1959_v23 = vrot.slane %v1958_v14, 4  ;;  %v1967_v57 = vor.u32 %v1966_v52, %v1963_v11  ;;  %v1991_v61 = vshll.u32 %v20135_v26, 16  ;;  %v22111_v28 = vld [vmem:[%s27109_s0 + $0x74] sm:$0x1]  ;;  %v17138_v52 = vld [vmem:[%s27109_s0 + $0x80] sm:$0xf] }
 0x120   :  { %v17123_v43 = vcombine.low %v9704_v39, %v9718_v34  ;;  %v1976_v60 = vor.u32 %v1975_v10, %v1972_v0  ;;  %v1984_v6 = vrot.slane %v1982_v17, 6  ;;  %v1990_v30 = vrot.slane %v1988_v13, 5  ;;  %v22122_v39 = vld [vmem:[%s27109_s0 + $0x7c] sm:$0x1] }
 0x121   :  { %v1997_v4 = vshrl.u32 %v1798_v32, 16  ;;  %v1968_v27 = vsel %vm20976_vm11, %v1959_v23, %v1967_v57  ;;  %v2000_v8 = vshll.u32 %v1798_v32, 16  ;;  %v2006_v1 = vshrl.u32 %v20136_v31, 16 }
 0x122   :  { %18898 = vmatmul.mubr.msk.bf16.gmra.mrb[12].mxu0 %vm89_vm2, %v17123_v43  ;;  %v1977_v29 = vrot.slane %v1976_v60, 4  ;;  %v1985_v47 = vor.u32 %v1984_v6, %v1981_v55  ;;  %v1993_v12 = vrot.slane %v1991_v61, 6  ;;  %v2009_v49 = vshll.u32 %v20136_v31, 16  ;;  %v22140_v60 = vld [vmem:[%s27109_s0 + $0x84] sm:$0x1] }
 0x123   :  { %v1999_v50 = vrot.slane %v1997_v4, 5  ;;  %v2002_v25 = vrot.slane %v2000_v8, 6  ;;  %v2008_v19 = vrot.slane %v2006_v1, 5  ;;  %v2015_v40 = vshrl.u32 %v1799_v42, 16 }
 0x124   :  { %v2018_v59 = vshll.u32 %v1799_v42, 16  ;;  %v1986_v62 = vsel %vm20976_vm11, %v1977_v29, %v1985_v47  ;;  %v1994_v5 = vor.u32 %v1993_v12, %v1990_v30  ;;  %v2011_v58 = vrot.slane %v2009_v49, 6 }
 0x125   :  { %v9918_v33 = vshrl.u32 %v17132_v2, 16  ;;  %v16120_v51 = vcombine.low %v1968_v27, %v1986_v62  ;;  %v2003_v48 = vor.u32 %v2002_v25, %v1999_v50  ;;  %v2017_v56 = vrot.slane %v2015_v40, 5  ;;  %v1800_v50 = vld [vmem:[%s27109_s0 + $0x184] sm:$0x3]  ;;  %v20137_v40 = vld [vmem:[%s27109_s0 + $0x180] sm:$0xe] }
 0x126   :  { %v2020_v44 = vrot.slane %v2018_v59, 6  ;;  %v1995_v15 = vrot.slane %v1994_v5, 4  ;;  %v2012_v35 = vor.u32 %v2011_v58, %v2008_v19  ;;  %v9921_v20 = vshll.u32 %v17132_v2, 16 }
 0x127   :  { %v9920_v54 = vrot.slane %v9918_v33, 4  ;;  %18461 = vmatprep.mubr.msk.bf16.mxu1 %vm89_vm2, %v16120_v51  ;;  %v9927_v11 = vshll.u32 %v22101_v21, 16  ;;  %v9932_v38 = vshrl.u32 %v17134_v9, 16  ;;  %v9935_v14 = vshll.u32 %v17134_v9, 16  ;;  %v1801_v9 = vld [vmem:[%s27109_s0 + $0x18c] sm:$0x3] }
 0x128   :  { %v2021_v46 = vor.u32 %v2020_v44, %v2017_v56  ;;  %v2004_v0 = vsel %vm20976_vm11, %v1995_v15, %v2003_v48  ;;  %v2013_v10 = vrot.slane %v2012_v35, 4  ;;  %v9923_v32 = vrot.slane %v9921_v20, 5  ;;  %v20138_v35 = vld [vmem:[%s27109_s0 + $0x188] sm:$0xe] }
 0x129   :  { %v9941_v34 = vshll.u32 %v22111_v28, 16  ;;  %v9929_v55 = vrot.slane %v9927_v11, 5  ;;  %v9934_v17 = vrot.slane %v9932_v38, 4  ;;  %v9937_v26 = vrot.slane %v9935_v14, 5 }
 0x12a   :  { %v22133_v13 = vand.u32 %v17213_v53, %v20305_v3  ;;  %v2022_v43 = vsel %vm20976_vm11, %v2013_v10, %v2021_v46  ;;  %v9924_v23 = vor.u32 %v9923_v32, %v9920_v54  ;;  %v9946_v42 = vshrl.u32 %v17136_v41, 16  ;;  %v1802_v32 = vld [vmem:[%s27109_s0 + $0x194] sm:$0x3] }
 0x12b   :  { %v9943_v57 = vrot.slane %v9941_v34, 5  ;;  %v16121_v6 = vcombine.low %v2004_v0, %v2022_v43  ;;  %v9938_v30 = vor.u32 %v9937_v26, %v9934_v17  ;;  %v9949_v61 = vshll.u32 %v17136_v41, 16 }
 0x12c   :  { %18919 = vmatprep.subr.bf16.mxu0 %v22133_v13  ;;  %v9955_v4 = vshll.u32 %v22122_v39, 16  ;;  %v9925_v27 = vrot.slane %v9924_v23, 4  ;;  %v9948_v29 = vrot.slane %v9946_v42, 4  ;;  %v9960_v8 = vshrl.u32 %v17138_v52, 16  ;;  %v20139_v42 = vld [vmem:[%s27109_s0 + $0x190] sm:$0xe] }
 0x12d   :  { %v9963_v31 = vshll.u32 %v17138_v52, 16  ;;  %18462 = vmatmul.mubr.msk.bf16.gmra.mrb[8].mxu1 %vm89_vm2, %v16121_v6  ;;  %v9939_v1 = vrot.slane %v9938_v30, 4  ;;  %v9951_v2 = vrot.slane %v9949_v61, 5  ;;  %v9969_v12 = vshll.u32 %v22140_v60, 16 }
 0x12e   :  { %v9957_v47 = vrot.slane %v9955_v4, 5  ;;  %v9930_v49 = vsel %vm20370_vm5, %v9925_v27, %v9929_v55  ;;  %v9962_v25 = vrot.slane %v9960_v8, 4  ;;  %v2024_v59 = vshrl.u32 %v20137_v40, 16  ;;  %v1803_v4 = vld [vmem:[%s27109_s0 + $0x19c] sm:$0x3] }
 0x12f   :  { %v9965_v19 = vrot.slane %v9963_v31, 5  ;;  %v9944_v62 = vsel %vm20370_vm5, %v9939_v1, %v9943_v57  ;;  %v9952_v5 = vor.u32 %v9951_v2, %v9948_v29  ;;  %v9971_v58 = vrot.slane %v9969_v12, 5  ;;  %v20140_v2 = vld [vmem:[%s27109_s0 + $0x198] sm:$0xe]  ;;  %v17140_v12 = vld [vmem:[%s27109_s0 + $0x88] sm:$0xf] }
 0x130   :  { %v2027_v33 = vshll.u32 %v20137_v40, 16  ;;  %v17165_v51 = vcombine.low %v9930_v49, %v9944_v62  ;;  %v2026_v56 = vrot.slane %v2024_v59, 5  ;;  %v2033_v44 = vshrl.u32 %v1800_v50, 16 }
 0x131   :  { %v9966_v48 = vor.u32 %v9965_v19, %v9962_v25  ;;  %v9953_v53 = vrot.slane %v9952_v5, 4  ;;  %v2036_v15 = vshll.u32 %v1800_v50, 16  ;;  %v2042_v54 = vshrl.u32 %v20138_v35, 16 }
 0x132   :  { %v2029_v41 = vrot.slane %v2027_v33, 6  ;;  %18903 = vmatprep.mubr.msk.bf16.mxu0 %vm89_vm2, %v17165_v51  ;;  %v2035_v46 = vrot.slane %v2033_v44, 5  ;;  %v2045_v11 = vshll.u32 %v20138_v35, 16  ;;  %v2051_v38 = vshrl.u32 %v1801_v9, 16  ;;  %v22191_v51 = vld [vmem:[%s27109_s0 + $0x8c] sm:$0x1] }
 0x133   :  { %v9967_v20 = vrot.slane %v9966_v48, 4  ;;  %v9958_v14 = vsel %vm20370_vm5, %v9953_v53, %v9957_v47  ;;  %v2038_v0 = vrot.slane %v2036_v15, 6  ;;  %v2044_v10 = vrot.slane %v2042_v54, 5  ;;  %v22199_v15 = vld [vmem:[%s27109_s0 + $0x94] sm:$0x1] }
 0x134   :  { %v2030_v52 = vor.u32 %v2029_v41, %v2026_v56  ;;  %v2047_v55 = vrot.slane %v2045_v11, 6  ;;  %v2053_v17 = vrot.slane %v2051_v38, 5  ;;  %v2054_v26 = vshll.u32 %v1801_v9, 16 }
 0x135   :  { %v9972_v34 = vsel %vm20370_vm5, %v9967_v20, %v9971_v58  ;;  %v2039_v57 = vor.u32 %v2038_v0, %v2035_v46  ;;  %v2060_v6 = vshrl.u32 %v20139_v42, 16  ;;  %v2063_v27 = vshll.u32 %v20139_v42, 16  ;;  %v17144_v0 = vld [vmem:[%s27109_s0 + $0x98] sm:$0xf] }
 0x136   :  { %v17166_v43 = vcombine.low %v9958_v14, %v9972_v34  ;;  %v2031_v23 = vrot.slane %v2030_v52, 4  ;;  %v2048_v30 = vor.u32 %v2047_v55, %v2044_v10  ;;  %v2056_v61 = vrot.slane %v2054_v26, 6  ;;  %v17146_v26 = vld [vmem:[%s27109_s0 + $0xa0] sm:$0xf] }
 0x137   :  { %v2069_v29 = vshrl.u32 %v1802_v32, 16  ;;  %v2062_v31 = vrot.slane %v2060_v6, 5  ;;  %v2072_v1 = vshll.u32 %v1802_v32, 16  ;;  %v2078_v47 = vshrl.u32 %v20140_v2, 16 }
 0x138   :  { %18904 = vmatmul.mubr.msk.bf16.vlgmr.msra.gmra.mrb[0].mxu0 %vm89_vm2, %v17166_v43  ;;  %v2040_v8 = vsel %vm20976_vm11, %v2031_v23, %v2039_v57  ;;  %v2049_v50 = vrot.slane %v2048_v30, 4  ;;  %v2057_v49 = vor.u32 %v2056_v61, %v2053_v17  ;;  %v2065_v25 = vrot.slane %v2063_v27, 6  ;;  %v22212_v17 = vld [vmem:[%s27109_s0 + $0x9c] sm:$0x1]  ;;  %v22220_v61 = vld [vmem:[%s27109_s0 + $0xa4] sm:$0x1] }
 0x139   :  { %18920 = vmatpush3.bf16.msra.mxu0 %v22133_v13  ;;  %v2071_v19 = vrot.slane %v2069_v29, 5  ;;  %v2074_v40 = vrot.slane %v2072_v1, 6  ;;  %v2080_v59 = vrot.slane %v2078_v47, 5  ;;  %v2081_v62 = vshll.u32 %v20140_v2, 16  ;;  %v17142_v13 = vld [vmem:[%s27109_s0 + $0x90] sm:$0xf] }
 0x13a   :  { %v2087_v5 = vshrl.u32 %v1803_v4, 16  ;;  %v2058_v58 = vsel %vm20976_vm11, %v2049_v50, %v2057_v49  ;;  %v2066_v9 = vor.u32 %v2065_v25, %v2062_v31  ;;  %v2090_v33 = vshll.u32 %v1803_v4, 16  ;;  %v20031_v2 = vld [vmem:[%s27109_s0 + $0xb0] ss:$8 sps:$4 sm:$0xff]  }
 0x13b   :  { %v9974_v48 = vshrl.u32 %v17140_v12, 16  ;;  %v16122_v56 = vcombine.low %v2040_v8, %v2058_v58  ;;  %v2075_v44 = vor.u32 %v2074_v40, %v2071_v19  ;;  %v2083_v53 = vrot.slane %v2081_v62, 6  ;;  %v16181_v47 = vld [vmem:[%s27110_s1 + $0x10] sm:$0x3]  ;;  %v17148_v19 = vld [vmem:[%s27109_s0 + $0x1c8] sm:$0xf] }
 0x13c   :  { %v2089_v41 = vrot.slane %v2087_v5, 5  ;;  %v2067_v35 = vrot.slane %v2066_v9, 4  ;;  %v2092_v54 = vrot.slane %v2090_v33, 6  ;;  %v9977_v46 = vshll.u32 %v17140_v12, 16  ;;  %v22237_v58 = vld [vmem:[%s27109_s0 + $0x1cc] sm:$0x1] }
 0x13d   :  { %v9976_v20 = vrot.slane %v9974_v48, 4  ;;  %18465 = vmatprep.mubr.msk.bf16.mxu1 %vm89_vm2, %v16122_v56  ;;  %v2084_v11 = vor.u32 %v2083_v53, %v2080_v59  ;;  %v9983_v38 = vshll.u32 %v22191_v51, 16  ;;  %v9988_v14 = vshrl.u32 %v17142_v13, 16  ;;  %v17150_v56 = vld [vmem:[%s27109_s0 + $0x1d0] sm:$0xf] }
 0x13e   :  { %v9991_v52 = vshll.u32 %v17142_v13, 16  ;;  %v2076_v10 = vsel %vm20976_vm11, %v2067_v35, %v2075_v44  ;;  %v2093_v32 = vor.u32 %v2092_v54, %v2089_v41  ;;  %v9979_v34 = vrot.slane %v9977_v46, 5  ;;  %v22253_v41 = vld [vmem:[%s27109_s0 + $0x1d4] sm:$0x1] }
 0x13f   :  { %v9997_v55 = vshll.u32 %v22199_v15, 16  ;;  %v2085_v43 = vrot.slane %v2084_v11, 4  ;;  %v9985_v23 = vrot.slane %v9983_v38, 5  ;;  %v9990_v57 = vrot.slane %v9988_v14, 4  ;;  %v20032_v38 = vld [vmem:[%s27109_s0 + $0xc0] ss:$8 sps:$4 sm:$0xff]  }
 0x140   :  { %v9993_v42 = vrot.slane %v9991_v52, 5  ;;  %v9980_v6 = vor.u32 %v9979_v34, %v9976_v20  ;;  %v10002_v4 = vshrl.u32 %v17144_v0, 16  ;;  %v10005_v27 = vshll.u32 %v17144_v0, 16  ;;  %v17152_v52 = vld [vmem:[%s27109_s0 + $0x1d8] sm:$0xf] }
 0x141   :  { %v9999_v30 = vrot.slane %v9997_v55, 5  ;;  %v2094_v29 = vsel %vm20976_vm11, %v2085_v43, %v2093_v32  ;;  %v10011_v31 = vshll.u32 %v22212_v17, 16  ;;  %v10016_v1 = vshrl.u32 %v17146_v26, 16  ;;  %v22265_v55 = vld [vmem:[%s27109_s0 + $0x1dc] sm:$0x1] }
 0x142   :  { %v9994_v8 = vor.u32 %v9993_v42, %v9990_v57  ;;  %v16123_v12 = vcombine.low %v2076_v10, %v2094_v29  ;;  %v9981_v50 = vrot.slane %v9980_v6, 4  ;;  %v10004_v49 = vrot.slane %v10002_v4, 4  ;;  %v17154_v42 = vld [vmem:[%s27109_s0 + $0x1e0] sm:$0xf]  ;;  %v20033_v29 = vld [vmem:[%s27109_s0 + $0xd0] ss:$8 sps:$4 sm:$0xff]  }
 0x143   :  { %v10007_v25 = vrot.slane %v10005_v27, 5  ;;  %v10013_v59 = vrot.slane %v10011_v31, 5  ;;  %v10018_v62 = vrot.slane %v10016_v1, 4  ;;  %v10019_v5 = vshll.u32 %v17146_v26, 16  ;;  %v22280_v1 = vld [vmem:[%s27109_s0 + $0x1e4] sm:$0x1] }
 0x144   :  { %v9995_v40 = vrot.slane %v9994_v8, 4  ;;  %18466 = vmatmul.mubr.msk.bf16.gmra.mrb[12].mxu1 %vm89_vm2, %v16123_v12  ;;  %v9986_v9 = vsel %vm20370_vm5, %v9981_v50, %v9985_v23  ;;  %v10025_v13 = vshll.u32 %v22220_v61, 16  ;;  %v2544_v48 = vand.u32 %v16181_v47, %v20305_v3 }
 0x145   :  { %v10008_v33 = vor.u32 %v10007_v25, %v10004_v49  ;;  %v10021_v53 = vrot.slane %v10019_v5, 5  ;;  %18471 = vmatprep.mubr.msk.bf16.mxu1 %vm89_vm2, %v20031_v2  ;;  %v10030_v35 = vshrl.u32 %v17148_v19, 16  ;;  %v10033_v54 = vshll.u32 %v17148_v19, 16  ;;  %v17156_v19 = vld [vmem:[%s27109_s0 + $0x1e8] sm:$0xf] }
 0x146   :  { %v10000_v44 = vsel %vm20370_vm5, %v9995_v40, %v9999_v30  ;;  %v10027_v11 = vrot.slane %v10025_v13, 5  ;;  %18487 = vmatprep.subr.bf16.mxu1 %v2544_v48  ;;  %v10039_v14 = vshll.u32 %v22237_v58, 16  ;;  %v10044_v34 = vshrl.u32 %v17150_v56, 16 }
 0x147   :  { %v17167_v20 = vcombine.low %v9986_v9, %v10000_v44  ;;  %v10009_v46 = vrot.slane %v10008_v33, 4  ;;  %v10022_v0 = vor.u32 %v10021_v53, %v10018_v62  ;;  %v10032_v10 = vrot.slane %v10030_v35, 4  ;;  %v22292_v9 = vld [vmem:[%s27109_s0 + $0x1ec] sm:$0x1]  ;;  %v17158_v33 = vld [vmem:[%s27109_s0 + $0x1f0] sm:$0xf] }
 0x148   :  { %v10035_v32 = vrot.slane %v10033_v54, 5  ;;  %v10041_v43 = vrot.slane %v10039_v14, 5  ;;  %v10047_v23 = vshll.u32 %v17150_v56, 16  ;;  %v10053_v57 = vshll.u32 %v22253_v41, 16 }
 0x149   :  { %18907 = vmatprep.mubr.msk.bf16.mxu0 %vm89_vm2, %v17167_v20  ;;  %v10014_v26 = vsel %vm20370_vm5, %v10009_v46, %v10013_v59  ;;  %v10023_v6 = vrot.slane %v10022_v0, 4  ;;  %v10046_v4 = vrot.slane %v10044_v34, 4  ;;  %v10058_v27 = vshrl.u32 %v17152_v52, 16  ;;  %v20034_v20 = vld [vmem:[%s27109_s0 + $0xe0] ss:$8 sps:$4 sm:$0xff]  }
 0x14a   :  { %v10036_v30 = vor.u32 %v10035_v32, %v10032_v10  ;;  %v10049_v8 = vrot.slane %v10047_v23, 5  ;;  %v10055_v31 = vrot.slane %v10053_v57, 5  ;;  %v10061_v2 = vshll.u32 %v17152_v52, 16  ;;  %v22308_v46 = vld [vmem:[%s27109_s0 + $0x1f4] sm:$0x1] }
 0x14b   :  { %v10067_v47 = vshll.u32 %v22265_v55, 16  ;;  %v10028_v12 = vsel %vm20370_vm5, %v10023_v6, %v10027_v11  ;;  %v10060_v49 = vrot.slane %v10058_v27, 4  ;;  %v10072_v25 = vshrl.u32 %v17154_v42, 16  ;;  %v17160_v10 = vld [vmem:[%s27109_s0 + $0x1f8] sm:$0xf] }
 0x14c   :  { %v10037_v50 = vrot.slane %v10036_v30, 4  ;;  %v17168_v40 = vcombine.low %v10014_v26, %v10028_v12  ;;  %18472 = vmatmul.mubr.msk.bf16.vlgmr.msra.gmra.mrb[0].mxu1 %vm89_vm2, %v20032_v38  ;;  %v10050_v59 = vor.u32 %v10049_v8, %v10046_v4  ;;  %v10063_v62 = vrot.slane %v10061_v2, 5  ;;  %v22319_v23 = vld [vmem:[%s27109_s0 + $0x1fc] sm:$0x1]  ;;  %v17162_v4 = vld [vmem:[%s27109_s0 + $0x200] sm:$0xf] }
 0x14d   :  { %v10069_v5 = vrot.slane %v10067_v47, 5  ;;  %18488 = vmatpush3.bf16.msra.mxu1 %v2544_v48  ;;  %v10074_v56 = vrot.slane %v10072_v25, 4  ;;  %v10075_v44 = vshll.u32 %v17154_v42, 16  ;;  %v10081_v53 = vshll.u32 %v22280_v1, 16  ;;  %18475 = vmatprep.mubr.msk.bf16.mxu1 %vm89_vm2, %v20033_v29  ;;  %v20035_v27 = vld [vmem:[%s27109_s0 + $0x210] ss:$8 sps:$4 sm:$0xff]  }
 0x14e   :  { %v10042_v13 = vsel %vm20370_vm5, %v10037_v50, %v10041_v43  ;;  %18908 = vmatmul.mubr.msk.bf16.gmra.mrb[4].mxu0 %vm89_vm2, %v17168_v40  ;;  %v10051_v35 = vrot.slane %v10050_v59, 4  ;;  %v10064_v54 = vor.u32 %v10063_v62, %v10060_v49  ;;  %v10086_v48 = vshrl.u32 %v17156_v19, 16  ;;  %v22334_v12 = vld [vmem:[%s27109_s0 + $0x204] sm:$0x1] }
 0x14f   :  { %v10089_v11 = vshll.u32 %v17156_v19, 16  ;;  %v10077_v38 = vrot.slane %v10075_v44, 5  ;;  %v10083_v14 = vrot.slane %v10081_v53, 5  ;;  %v10095_v52 = vshll.u32 %v22292_v9, 16  ;;  %v22351_v53 = vld [vmem:[%s27109_s0 + $0x18] sm:$0xe] }
 0x150   :  { %v10100_v0 = vshrl.u32 %v17158_v33, 16  ;;  %v10056_v32 = vsel %vm20370_vm5, %v10051_v35, %v10055_v31  ;;  %v10065_v34 = vrot.slane %v10064_v54, 4  ;;  %v10088_v26 = vrot.slane %v10086_v48, 4 }
 0x151   :  { %v10091_v43 = vrot.slane %v10089_v11, 5  ;;  %v17169_v57 = vcombine.low %v10042_v13, %v10056_v32  ;;  %v10078_v42 = vor.u32 %v10077_v38, %v10074_v56  ;;  %v10097_v6 = vrot.slane %v10095_v52, 5  ;;  %v20036_v11 = vld [vmem:[%s27109_s0 + $0x220] ss:$8 sps:$4 sm:$0xff]  }
 0x152   :  { %v10102_v30 = vrot.slane %v10100_v0, 4  ;;  %v10070_v29 = vsel %vm20370_vm5, %v10065_v34, %v10069_v5  ;;  %v10103_v31 = vshll.u32 %v17158_v33, 16  ;;  %v10109_v2 = vshll.u32 %v22308_v46, 16  ;;  %v22341_v5 = vld [vmem:[%s27109_s0 + $0x10] sm:$0xe] }
 0x153   :  { %v10092_v8 = vor.u32 %v10091_v43, %v10088_v26  ;;  %18911 = vmatprep.mubr.msk.bf16.mxu0 %vm89_vm2, %v17169_v57  ;;  %v10079_v47 = vrot.slane %v10078_v42, 4  ;;  %v10114_v50 = vshrl.u32 %v17160_v10, 16  ;;  %v10117_v49 = vshll.u32 %v17160_v10, 16  ;;  %v17262_v38 = vld [vmem:[%s27110_s1 + $0x42] sm:$0x3] }
 0x154   :  { %v10123_v25 = vshll.u32 %v22319_v23, 16  ;;  %18476 = vmatmul.mubr.msk.bf16.gmra.mrb[4].mxu1 %vm89_vm2, %v20034_v20  ;;  %v10105_v40 = vrot.slane %v10103_v31, 5  ;;  %v10111_v59 = vrot.slane %v10109_v2, 5  ;;  %v10128_v62 = vshrl.u32 %v17162_v4, 16  ;;  %v22371_v34 = vld [vmem:[%s27109_s0 + $0x28] sm:$0xe] }
 0x155   :  { %v10093_v19 = vrot.slane %v10092_v8, 4  ;;  %v10084_v33 = vsel %vm20370_vm5, %v10079_v47, %v10083_v14  ;;  %v10116_v13 = vrot.slane %v10114_v50, 4  ;;  %v10119_v56 = vrot.slane %v10117_v49, 5  ;;  %18479 = vmatprep.mubr.msk.bf16.mxu1 %vm89_vm2, %v20035_v27  ;;  %v22364_v14 = vld [vmem:[%s27109_s0 + $0x20] sm:$0xe] }
 0x156   :  { %v22345_v44 = vrot.slane %v10123_v25, 5  ;;  %v17170_v35 = vcombine.low %v10070_v29, %v10084_v33  ;;  %v10106_v20 = vor.u32 %v10105_v40, %v10102_v30  ;;  %v10130_v48 = vrot.slane %v10128_v62, 4  ;;  %v20141_v43 = vld [vmem:[%s27109_s0 + $0x14] sm:$0x1]  ;;  %v22390_v2 = vld [vmem:[%s27109_s0 + $0x30] sm:$0xe] }
 0x157   :  { %v10098_v54 = vsel %vm20370_vm5, %v10093_v19, %v10097_v6  ;;  %v10120_v52 = vor.u32 %v10119_v56, %v10116_v13  ;;  %v10131_v0 = vshll.u32 %v17162_v4, 16  ;;  %v10137_v10 = vshll.u32 %v22334_v12, 16  ;;  %v20142_v6 = vld [vmem:[%s27109_s0 + $0x1c] sm:$0x1]  ;;  %v20037_v4 = vld [vmem:[%s27109_s0 + $0x230] ss:$8 sps:$4 sm:$0xff]  }
 0x158   :  { %v17197_v32 = vrot.slane %v22341_v5, 9  ;;  %18912 = vmatmul.mubr.msk.bf16.gmra.mrb[8].mxu0 %vm89_vm2, %v17170_v35  ;;  %v10107_v26 = vrot.slane %v10106_v20, 4  ;;  %v10357_v57 = vrot.slane %v20141_v43, 5  ;;  %v17198_v42 = vrot.slane %v22351_v53, 9  ;;  %v22402_v19 = vld [vmem:[%s27109_s0 + $0x38] sm:$0xe] }
 0x159   :  { %v10361_v30 = vrot.slane %v20142_v6, 5  ;;  %v10121_v27 = vrot.slane %v10120_v52, 4  ;;  %v10133_v29 = vrot.slane %v10131_v0, 5  ;;  %v10139_v8 = vrot.slane %v10137_v10, 5  ;;  %v22411_v13 = vld [vmem:[%s27109_s0 + $0x40] sm:$0xe] }
 0x15a   :  { %v22385_v31 = vand.u32 %v17262_v38, %v20305_v3  ;;  %v10112_v47 = vsel %vm20370_vm5, %v10107_v26, %v10111_v59  ;;  %v10358_v50 = vsel %vm20439_vm8, %v17197_v32, %v10357_v57  ;;  %v17199_v25 = vrot.slane %v22364_v14, 9  ;;  %v20143_v56 = vld [vmem:[%s27109_s0 + $0x24] sm:$0x1]  ;;  %v20146_v10 = vld [vmem:[%s27109_s0 + $0x3c] sm:$0x1] }
 0x15b   :  { %v10362_v49 = vsel %vm20439_vm8, %v17198_v42, %v10361_v30  ;;  %v17171_v40 = vcombine.low %v10098_v54, %v10112_v47  ;;  %v10126_v62 = vsel %vm20370_vm5, %v10121_v27, %v22345_v44  ;;  %v10134_v33 = vor.u32 %v10133_v29, %v10130_v48  ;;  %v20144_v44 = vld [vmem:[%s27109_s0 + $0x2c] sm:$0x1]  ;;  %v22434_v26 = vld [vmem:[%s27109_s0 + $0x48] sm:$0xe]  ;;  %v20147_v6 = vld [vmem:[%s27109_s0 + $0x44] sm:$0x1] }
 0x15c   :  { %v17214_v59 = vcombine.low %v10358_v50, %v10362_v49  ;;  %18937 = vmatprep.subr.bf16.mxu0 %v22385_v31  ;;  %18480 = vmatmul.mubr.msk.bf16.gmra.mrb[8].mxu1 %vm89_vm2, %v20036_v11  ;;  %v10365_v35 = vrot.slane %v20143_v56, 5  ;;  %v17200_v54 = vrot.slane %v22371_v34, 9  ;;  %v10369_v20 = vrot.slane %v20144_v44, 5  ;;  %v20145_v11 = vld [vmem:[%s27109_s0 + $0x34] sm:$0x1] }
 0x15d   :  { %v17201_v48 = vrot.slane %v22390_v2, 9  ;;  %18915 = vmatprep.mubr.msk.bf16.mxu0 %vm89_vm2, %v17171_v40  ;;  %v10135_v38 = vrot.slane %v10134_v33, 4  ;;  %18483 = vmatprep.mubr.msk.bf16.mxu1 %vm89_vm2, %v20037_v4  ;;  %v10373_v52 = vrot.slane %v20145_v11, 5  ;;  %v17202_v0 = vrot.slane %v22402_v19, 9  ;;  %v16230_v4 = vld [vmem:[%s27110_s1 + $0x12] sm:$0x3] }
 0x15e   :  { %v10377_v32 = vrot.slane %v20146_v10, 5  ;;  %v22438_v43 = vsel %vm20439_vm8, %v17199_v25, %v10365_v35  ;;  %v22442_v57 = vsel %vm20439_vm8, %v17200_v54, %v10369_v20  ;;  %v17203_v42 = vrot.slane %v22411_v13, 9  ;;  %v17189_v27 = vld [vmem:[%s27109_s0 + $0x170] sm:$0xe]  ;;  %v20038_v50 = vld [vmem:[%s27109_s0 + $0x240] ss:$8 sps:$4 sm:$0xff]  }
 0x15f   :  { %v10381_v30 = vrot.slane %v20147_v6, 5  ;;  %v10140_v29 = vsel %vm20370_vm5, %v10135_v38, %v10139_v8  ;;  %v22463_v49 = vsel %vm20439_vm8, %v17201_v48, %v10373_v52  ;;  %v17190_v40 = vld [vmem:[%s27109_s0 + $0x178] sm:$0xe]  ;;  %v17191_v8 = vld [vmem:[%s27109_s0 + $0x180] sm:$0xe]  ;;  %v17204_v54 = vrot.slane %v22434_v26, 9 }
 0x160   :  { %v22467_v25 = vsel %vm20439_vm8, %v17202_v0, %v10377_v32  ;;  %v17172_v33 = vcombine.low %v10126_v62, %v10140_v29  ;;  %v20039_v44 = vld [vmem:[%s27109_s0 + $0x108] ss:$8 sps:$4 sm:$0xff]   ;;  %v20148_v62 = vld [vmem:[%s27109_s0 + $0x4c] sm:$0x1]  ;;  %v22492_v38 = vand.u32 %v16230_v4, %v20305_v3  ;;  %v17205_v11 = vrot.slane %v17189_v27, 9 }
 0x161   :  { %v22479_v35 = vsel %vm20439_vm8, %v17203_v42, %v10381_v30  ;;  %v17192_v20 = vld [vmem:[%s27109_s0 + $0x188] sm:$0xe]  ;;  %v10385_v48 = vrot.slane %v20148_v62, 5  ;;  %v20149_v52 = vld [vmem:[%s27109_s0 + $0x174] sm:$0x1]  ;;  %v17206_v32 = vrot.slane %v17190_v40, 9 }
 0x162   :  { %v10389_v0 = vrot.slane %v20149_v52, 5  ;;  %v17193_v10 = vld [vmem:[%s27109_s0 + $0x190] sm:$0xe]  ;;  %18916 = vmatmul.mubr.msk.bf16.gmra.mrb[12].mxu0 %vm89_vm2, %v17172_v33  ;;  %v20150_v42 = vld [vmem:[%s27109_s0 + $0x17c] sm:$0x1]  ;;  %v17207_v30 = vrot.slane %v17191_v8, 9  ;;  %18505 = vmatprep.subr.bf16.mxu1 %v22492_v38 }
 0x163   :  { %v10393_v6 = vrot.slane %v20150_v42, 5  ;;  %v20151_v4 = vld [vmem:[%s27109_s0 + $0x184] sm:$0x1]  ;;  %v17194_v29 = vld [vmem:[%s27109_s0 + $0x198] sm:$0xe]  ;;  %18921 = vmatprep.mubr.msk.bf16.mxu0 %vm89_vm2, %v17214_v59  ;;  %v22513_v40 = vsel %vm20439_vm8, %v17204_v54, %v10385_v48  ;;  %v17208_v33 = vrot.slane %v17192_v20, 9 }
 0x164   :  { %v10397_v27 = vrot.slane %v20151_v4, 5  ;;  %v22518_v8 = vsel %vm20439_vm8, %v17205_v11, %v10389_v0  ;;  %v20152_v62 = vld [vmem:[%s27109_s0 + $0x18c] sm:$0x1]  ;;  %v17195_v59 = vld [vmem:[%s27109_s0 + $0x1a0] sm:$0xe]  ;;  %18484 = vmatmul.mubr.msk.bf16.gmra.mrb[12].mxu1 %vm89_vm2, %v20038_v50  ;;  %v17209_v11 = vrot.slane %v17193_v10, 9 }
 0x165   :  { %v10401_v52 = vrot.slane %v20152_v62, 5  ;;  %v22531_v48 = vsel %vm20439_vm8, %v17206_v32, %v10393_v6  ;;  %v17196_v0 = vld [vmem:[%s27109_s0 + $0x1a8] sm:$0xe]  ;;  %18489 = vmatprep.mubr.msk.bf16.mxu1 %vm89_vm2, %v20039_v44  ;;  %v10405_v6 = vrot.slane %v22022_v63, 5  ;;  %v17210_v10 = vrot.slane %v17194_v29, 9 }
 0x166   :  { %v22535_v20 = vsel %vm20439_vm8, %v17207_v30, %v10397_v27  ;;  %v17230_v50 = vld [vmem:[%s27109_s0 + $0x68] sm:$0xe]  ;;  %v17231_v30 = vld [vmem:[%s27109_s0 + $0x70] sm:$0xe]  ;;  %v17295_v4 = vld [vmem:[%s27110_s1 + $0x44] sm:$0x3] }
 0x167   :  { %v22548_v32 = vsel %vm20439_vm8, %v17208_v33, %v10401_v52  ;;  %v20040_v44 = vld [vmem:[%s27109_s0 + $0x118] ss:$8 sps:$4 sm:$0xff]   ;;  %v10409_v33 = vrot.slane %v22033_v37, 5  ;;  %v17211_v62 = vrot.slane %v17195_v59, 9  ;;  %v10413_v63 = vrot.slane %v22041_v22, 5 }
 0x168   :  { %v17232_v29 = vld [vmem:[%s27109_s0 + $0x78] sm:$0xe]  ;;  %v20041_v52 = vld [vmem:[%s27109_s0 + $0x128] ss:$8 sps:$4 sm:$0xff]   ;;  %v22572_v42 = vsel %vm20439_vm8, %v17209_v11, %v10405_v6  ;;  %v17212_v54 = vrot.slane %v17196_v0, 9  ;;  %v10417_v27 = vrot.slane %v22056_v18, 5 }
 0x169   :  { %v17246_v56 = vrot.slane %v17230_v50, 9  ;;  %v17233_v37 = vld [vmem:[%s27109_s0 + $0x80] sm:$0xe]  ;;  %v22580_v22 = vsel %vm20439_vm8, %v17210_v10, %v10409_v33  ;;  %v22584_v59 = vsel %vm20439_vm8, %v17211_v62, %v10413_v63  ;;  %v10635_v47 = vrot.slane %v22101_v21, 5  ;;  %v17234_v18 = vld [vmem:[%s27109_s0 + $0x88] sm:$0xe] }
 0x16a   :  { %v17247_v11 = vrot.slane %v17231_v30, 9  ;;  %v17235_v0 = vld [vmem:[%s27109_s0 + $0x90] sm:$0xe]  ;;  %v22597_v6 = vsel %vm20439_vm8, %v17212_v54, %v10417_v27  ;;  %v10639_v10 = vrot.slane %v22111_v28, 5  ;;  %v22601_v21 = vand.u32 %v17295_v4, %v20305_v3  ;;  %v17236_v30 = vld [vmem:[%s27109_s0 + $0x98] sm:$0xe] }
 0x16b   :  { %v17237_v33 = vld [vmem:[%s27109_s0 + $0xa0] sm:$0xe]  ;;  %v27133_v62 = vcombine.low %v22438_v43, %v22442_v57  ;;  %v22617_v28 = vsel %vm20439_vm8, %v17246_v56, %v10635_v47  ;;  %v17248_v4 = vrot.slane %v17232_v29, 9  ;;  %v10643_v27 = vrot.slane %v22122_v39, 5  ;;  %v16198_v63 = vld [vmem:[%s27109_s0 + $0xb0] sm:$0xf] }
 0x16c   :  { %v27134_v43 = vcombine.low %v22463_v49, %v22467_v25  ;;  %v22630_v57 = vsel %vm20439_vm8, %v17247_v11, %v10639_v10  ;;  %v17249_v47 = vrot.slane %v17233_v37, 9  ;;  %v10647_v56 = vrot.slane %v22140_v60, 5  ;;  %v16199_v39 = vld [vmem:[%s27109_s0 + $0xb4] sm:$0x1]  ;;  %18490 = vmatmul.mubr.msk.bf16.vlgmr.msra.gmra.mrb[0].mxu1 %vm89_vm2, %v20040_v44 }
 0x16d   :  { %18922 = vmatmul.mubr.msk.bf16.vlgmr.msra.gmra.mrb[0].mxu0 %vm89_vm2, %v27133_v62  ;;  %v17250_v29 = vrot.slane %v17234_v18, 9  ;;  %v22645_v25 = vsel %vm20439_vm8, %v17248_v4, %v10643_v27  ;;  %v10651_v60 = vrot.slane %v22191_v51, 5  ;;  %v17251_v37 = vrot.slane %v17235_v0, 9  ;;  %18506 = vmatpush3.bf16.msra.mxu1 %v22492_v38  ;;  %v20042_v62 = vld [vmem:[%s27109_s0 + $0x138] ss:$8 sps:$4 sm:$0xff]  }
 0x16e   :  { %18938 = vmatpush3.bf16.msra.mxu0 %v22385_v31  ;;  %18925 = vmatprep.mubr.msk.bf16.mxu0 %vm89_vm2, %v27134_v43  ;;  %v16200_v31 = vld [vmem:[%s27109_s0 + $0xb8] sm:$0xf]  ;;  %v22652_v11 = vsel %vm20439_vm8, %v17249_v47, %v10647_v56  ;;  %v10655_v44 = vrot.slane %v22199_v15, 5  ;;  %v17252_v18 = vrot.slane %v17236_v30, 9  ;;  %v10659_v10 = vrot.slane %v22212_v17, 5 }
 0x16f   :  { %18955 = vmatprep.subr.bf16.mxu0 %v22601_v21  ;;  %18493 = vmatprep.mubr.msk.bf16.mxu1 %vm89_vm2, %v20041_v52  ;;  %v22663_v38 = vsel %vm20439_vm8, %v17250_v29, %v10651_v60  ;;  %v17253_v52 = vrot.slane %v17237_v33, 9  ;;  %v10663_v0 = vrot.slane %v22220_v61, 5  ;;  %v20043_v15 = vld [vmem:[%s27109_s0 + $0x268] ss:$8 sps:$4 sm:$0xff]   ;;  %v16201_v4 = vld [vmem:[%s27109_s0 + $0xbc] sm:$0x1]  ;;  %v27136_v54 = vcombine.low %v22518_v8, %v22531_v48 }
 0x170   :  { %v22671_v17 = vsel %vm20439_vm8, %v17251_v37, %v10655_v44  ;;  %v22675_v30 = vsel %vm20439_vm8, %v17252_v18, %v10659_v10  ;;  %v2692_v27 = vshrl.u32 %v16198_v63, 16  ;;  %v2695_v33 = vshll.u32 %v16198_v63, 16  ;;  %v16202_v61 = vld [vmem:[%s27109_s0 + $0xc0] sm:$0xf]  ;;  %v16203_v60 = vld [vmem:[%s27109_s0 + $0xc4] sm:$0x1] }
 0x171   :  { %v22687_v47 = vsel %vm20439_vm8, %v17253_v52, %v10663_v0  ;;  %v2701_v56 = vshll.u32 %v16199_v39, 16  ;;  %v2706_v29 = vshrl.u32 %v16200_v31, 16  ;;  %v16204_v63 = vld [vmem:[%s27109_s0 + $0xc8] sm:$0xf]  ;;  %v2709_v10 = vshll.u32 %v16200_v31, 16 }
 0x172   :  { %v2694_v44 = vrot.slane %v2692_v27, 4  ;;  %v2697_v18 = vrot.slane %v2695_v33, 5  ;;  %v16205_v52 = vld [vmem:[%s27109_s0 + $0xcc] sm:$0x1]  ;;  %v27135_v39 = vcombine.low %v22479_v35, %v22513_v40  ;;  %v2715_v51 = vshll.u32 %v16201_v4, 16 }
 0x173   :  { %v2703_v0 = vrot.slane %v2701_v56, 5  ;;  %v2708_v43 = vrot.slane %v2706_v29, 4  ;;  %v2720_v49 = vshrl.u32 %v16202_v61, 16  ;;  %v2711_v31 = vrot.slane %v2709_v10, 5  ;;  %v16279_v50 = vld [vmem:[%s27110_s1 + $0x14] sm:$0x3] }
 0x174   :  { %v2698_v27 = vor.u32 %v2697_v18, %v2694_v44  ;;  %v2723_v33 = vshll.u32 %v16202_v61, 16  ;;  %v2729_v37 = vshll.u32 %v16203_v60, 16  ;;  %18494 = vmatmul.mubr.msk.bf16.gmra.mrb[4].mxu1 %vm89_vm2, %v20042_v62  ;;  %v2717_v35 = vrot.slane %v2715_v51, 5  ;;  %v17238_v8 = vld [vmem:[%s27109_s0 + $0x1c8] sm:$0xe] }
 0x175   :  { %18926 = vmatmul.mubr.msk.bf16.gmra.mrb[4].mxu0 %vm89_vm2, %v27135_v39  ;;  %v2722_v40 = vrot.slane %v2720_v49, 4  ;;  %v2734_v56 = vshrl.u32 %v16204_v63, 16  ;;  %v2737_v4 = vshll.u32 %v16204_v63, 16  ;;  %18497 = vmatprep.mubr.msk.bf16.mxu1 %vm89_vm2, %v20043_v15  ;;  %v17239_v60 = vld [vmem:[%s27109_s0 + $0x1d0] sm:$0xe]  ;;  %v2743_v63 = vshll.u32 %v16205_v52, 16 }
 0x176   :  { %18929 = vmatprep.mubr.msk.bf16.mxu0 %vm89_vm2, %v27136_v54  ;;  %v2699_v48 = vrot.slane %v2698_v27, 4  ;;  %v2712_v54 = vor.u32 %v2711_v31, %v2708_v43  ;;  %v2725_v61 = vrot.slane %v2723_v33, 5  ;;  %v2731_v29 = vrot.slane %v2729_v37, 5  ;;  %v20044_v49 = vld [vmem:[%s27109_s0 + $0x278] ss:$8 sps:$4 sm:$0xff]  }
 0x177   :  { %v2736_v62 = vrot.slane %v2734_v56, 4  ;;  %v2739_v51 = vrot.slane %v2737_v4, 5  ;;  %v22723_v44 = vand.u32 %v16279_v50, %v20305_v3  ;;  %v17240_v15 = vld [vmem:[%s27109_s0 + $0x1d8] sm:$0xe]  ;;  %v20045_v43 = vld [vmem:[%s27109_s0 + $0x288] ss:$8 sps:$4 sm:$0xff]  }
 0x178   :  { %v2704_v37 = vsel %vm20370_vm5, %v2699_v48, %v2703_v0  ;;  %v2713_v18 = vrot.slane %v2712_v54, 4  ;;  %v2726_v10 = vor.u32 %v2725_v61, %v2722_v40  ;;  %v17254_v39 = vrot.slane %v17238_v8, 9  ;;  %v17241_v52 = vld [vmem:[%s27109_s0 + $0x1e0] sm:$0xe]  ;;  %v16206_v50 = vld [vmem:[%s27109_s0 + $0xd0] sm:$0xf] }
 0x179   :  { %v2740_v27 = vor.u32 %v2739_v51, %v2736_v62  ;;  %v2745_v31 = vrot.slane %v2743_v63, 5  ;;  %18523 = vmatprep.subr.bf16.mxu1 %v22723_v44  ;;  %v10667_v33 = vrot.slane %v22237_v58, 5  ;;  %v17255_v56 = vrot.slane %v17239_v60, 9  ;;  %v16207_v0 = vld [vmem:[%s27109_s0 + $0xd4] sm:$0x1] }
 0x17a   :  { %v2718_v40 = vsel %vm20370_vm5, %v2713_v18, %v2717_v35  ;;  %v2727_v4 = vrot.slane %v2726_v10, 4  ;;  %v10671_v8 = vrot.slane %v22253_v41, 5  ;;  %v17256_v48 = vrot.slane %v17240_v15, 9  ;;  %v16208_v54 = vld [vmem:[%s27109_s0 + $0xd8] sm:$0xf] }
 0x17b   :  { %v27137_v61 = vcombine.low %v22535_v20, %v22548_v32  ;;  %v16231_v58 = vcombine.low %v2704_v37, %v2718_v40  ;;  %v2741_v60 = vrot.slane %v2740_v27, 4  ;;  %v22756_v62 = vsel %vm20439_vm8, %v17254_v39, %v10667_v33  ;;  %v16211_v39 = vld [vmem:[%s27109_s0 + $0xe4] sm:$0x1] }
 0x17c   :  { %v10675_v35 = vrot.slane %v22265_v55, 5  ;;  %v27138_v41 = vcombine.low %v22572_v42, %v22580_v22  ;;  %v2732_v51 = vsel %vm20370_vm5, %v2727_v4, %v2731_v29  ;;  %v22767_v20 = vsel %vm20439_vm8, %v17255_v56, %v10671_v8  ;;  %18498 = vmatmul.mubr.msk.bf16.gmra.mrb[8].mxu1 %vm89_vm2, %v20044_v49  ;;  %v16209_v29 = vld [vmem:[%s27109_s0 + $0xdc] sm:$0x1] }
 0x17d   :  { %18930 = vmatmul.mubr.msk.bf16.gmra.mrb[8].mxu0 %vm89_vm2, %v27137_v61  ;;  %v17257_v32 = vrot.slane %v17241_v52, 9  ;;  %v10679_v63 = vrot.slane %v22280_v1, 5  ;;  %v2746_v55 = vsel %vm20370_vm5, %v2741_v60, %v2745_v31  ;;  %v17267_v42 = vcombine.low %v22756_v62, %v22767_v20  ;;  %v16210_v1 = vld [vmem:[%s27109_s0 + $0xe0] sm:$0xf]  ;;  %18501 = vmatprep.mubr.msk.bf16.mxu1 %vm89_vm2, %v20045_v43  ;;  %v16212_v52 = vld [vmem:[%s27109_s0 + $0xe8] sm:$0xf] }
 0x17e   :  { %18933 = vmatprep.mubr.msk.bf16.mxu0 %vm89_vm2, %v27138_v41  ;;  %v22777_v22 = vsel %vm20439_vm8, %v17256_v48, %v10675_v35  ;;  %v2748_v15 = vshrl.u32 %v16206_v50, 16  ;;  %v22786_v49 = vcombine.low %v2732_v51, %v2746_v55  ;;  %v2751_v18 = vshll.u32 %v16206_v50, 16  ;;  %v20046_v43 = vld [vmem:[%s27109_s0 + $0x298] ss:$8 sps:$4 sm:$0xff]   ;;  %v16213_v50 = vld [vmem:[%s27109_s0 + $0xec] sm:$0x1] }
 0x17f   :  { %v22790_v37 = vsel %vm20439_vm8, %v17257_v32, %v10679_v63  ;;  %v2757_v10 = vshll.u32 %v16207_v0, 16  ;;  %v2762_v33 = vshrl.u32 %v16208_v54, 16  ;;  %v2765_v56 = vshll.u32 %v16208_v54, 16  ;;  %v17242_v48 = vld [vmem:[%s27109_s0 + $0x1e8] sm:$0xe] }
 0x180   :  { %v17268_v27 = vcombine.low %v22777_v22, %v22790_v37  ;;  %v2750_v31 = vrot.slane %v2748_v15, 4  ;;  %v2753_v0 = vrot.slane %v2751_v18, 5  ;;  %v2771_v4 = vshll.u32 %v16209_v29, 16  ;;  %v17243_v54 = vld [vmem:[%s27109_s0 + $0x1f0] sm:$0xe] }
 0x181   :  { %v2759_v40 = vrot.slane %v2757_v10, 5  ;;  %v2776_v8 = vshrl.u32 %v16210_v1, 16  ;;  %v2764_v61 = vrot.slane %v2762_v33, 4  ;;  %v2767_v60 = vrot.slane %v2765_v56, 5 }
 0x182   :  { %v2779_v35 = vshll.u32 %v16210_v1, 16  ;;  %v2785_v41 = vshll.u32 %v16211_v39, 16  ;;  %v2754_v51 = vor.u32 %v2753_v0, %v2750_v31  ;;  %v2773_v32 = vrot.slane %v2771_v4, 5 }
 0x183   :  { %v2778_v63 = vrot.slane %v2776_v8, 4  ;;  %v2790_v55 = vshrl.u32 %v16212_v52, 16  ;;  %v27139_v29 = vcombine.low %v22584_v59, %v22597_v6  ;;  %v2768_v15 = vor.u32 %v2767_v60, %v2764_v61 }
 0x184   :  { %v2781_v18 = vrot.slane %v2779_v35, 5  ;;  %v2787_v10 = vrot.slane %v2785_v41, 5  ;;  %v2793_v33 = vshll.u32 %v16212_v52, 16  ;;  %v27140_v1 = vcombine.low %v22617_v28, %v22630_v57  ;;  %18502 = vmatmul.mubr.msk.bf16.gmra.mrb[12].mxu1 %vm89_vm2, %v20046_v43  ;;  %v17244_v52 = vld [vmem:[%s27109_s0 + $0x1f8] sm:$0xe] }
 0x185   :  { %18934 = vmatmul.mubr.msk.bf16.gmra.mrb[12].mxu0 %vm89_vm2, %v27139_v29  ;;  %v2755_v39 = vrot.slane %v2754_v51, 4  ;;  %v2792_v56 = vrot.slane %v2790_v55, 4  ;;  %v2799_v31 = vshll.u32 %v16213_v50, 16  ;;  %v17258_v0 = vrot.slane %v17242_v48, 9  ;;  %18507 = vmatprep.mubr.msk.bf16.mxu1 %vm89_vm2, %v16231_v58  ;;  %v17245_v43 = vld [vmem:[%s27109_s0 + $0x200] sm:$0xe] }
 0x186   :  { %18939 = vmatprep.mubr.msk.bf16.mxu0 %vm89_vm2, %v27140_v1  ;;  %v2769_v4 = vrot.slane %v2768_v15, 4  ;;  %v2782_v8 = vor.u32 %v2781_v18, %v2778_v63  ;;  %v2795_v59 = vrot.slane %v2793_v33, 5  ;;  %v10683_v6 = vrot.slane %v22292_v9, 5  ;;  %v16214_v58 = vld [vmem:[%s27109_s0 + $0x210] sm:$0xf] }
 0x187   :  { %v2760_v28 = vsel %vm20370_vm5, %v2755_v39, %v2759_v40  ;;  %v2801_v57 = vrot.slane %v2799_v31, 5  ;;  %v17259_v61 = vrot.slane %v17243_v54, 9  ;;  %v10687_v50 = vrot.slane %v22308_v46, 5  ;;  %v16215_v51 = vld [vmem:[%s27109_s0 + $0x214] sm:$0x1] }
 0x188   :  { %v2774_v9 = vsel %vm20370_vm5, %v2769_v4, %v2773_v32  ;;  %v2783_v48 = vrot.slane %v2782_v8, 4  ;;  %v2796_v60 = vor.u32 %v2795_v59, %v2792_v56  ;;  %v22836_v35 = vsel %vm20439_vm8, %v17258_v0, %v10683_v6  ;;  %v16216_v32 = vld [vmem:[%s27109_s0 + $0x218] sm:$0xf]  ;;  %v16218_v18 = vld [vmem:[%s27109_s0 + $0x220] sm:$0xf] }
 0x189   :  { %v16233_v40 = vcombine.low %v2760_v28, %v2774_v9  ;;  %v22843_v46 = vsel %vm20439_vm8, %v17259_v61, %v10687_v50  ;;  %v17260_v41 = vrot.slane %v17244_v52, 9  ;;  %v10691_v54 = vrot.slane %v22319_v23, 5  ;;  %v16217_v23 = vld [vmem:[%s27109_s0 + $0x21c] sm:$0x1]  ;;  %v16219_v56 = vld [vmem:[%s27109_s0 + $0x224] sm:$0x1] }
 0x18a   :  { %v2788_v63 = vsel %vm20370_vm5, %v2783_v48, %v2787_v10  ;;  %v2797_v55 = vrot.slane %v2796_v60, 4  ;;  %v17269_v29 = vcombine.low %v22836_v35, %v22843_v46  ;;  %v17261_v15 = vrot.slane %v17245_v43, 9  ;;  %v16220_v31 = vld [vmem:[%s27109_s0 + $0x228] sm:$0xf]  ;;  %v16221_v60 = vld [vmem:[%s27109_s0 + $0x22c] sm:$0x1] }
 0x18b   :  { %v22864_v33 = vsel %vm20439_vm8, %v17260_v41, %v10691_v54  ;;  %v10695_v1 = vrot.slane %v22334_v12, 5  ;;  %v2804_v10 = vshrl.u32 %v16214_v58, 16  ;;  %v2807_v39 = vshll.u32 %v16214_v58, 16  ;;  %v16223_v35 = vld [vmem:[%s27109_s0 + $0x234] sm:$0x1] }
 0x18c   :  { %v27141_v0 = vcombine.low %v22645_v25, %v22652_v11  ;;  %v2802_v4 = vsel %vm20370_vm5, %v2797_v55, %v2801_v57  ;;  %v2813_v8 = vshll.u32 %v16215_v51, 16  ;;  %v2818_v12 = vshrl.u32 %v16216_v32, 16  ;;  %18508 = vmatmul.mubr.msk.bf16.vlgmr.msra.gmra.mrb[0].mxu1 %vm89_vm2, %v22786_v49  ;;  %v16224_v46 = vld [vmem:[%s27109_s0 + $0x238] sm:$0xf] }
 0x18d   :  { %v2821_v59 = vshll.u32 %v16216_v32, 16  ;;  %v27142_v6 = vcombine.low %v22663_v38, %v22671_v17  ;;  %v16234_v52 = vcombine.low %v2788_v63, %v2802_v4  ;;  %v22886_v28 = vsel %vm20439_vm8, %v17261_v15, %v10695_v1  ;;  %18524 = vmatpush3.bf16.msra.mxu1 %v22723_v44  ;;  %18511 = vmatprep.mubr.msk.bf16.mxu1 %vm89_vm2, %v16233_v40  ;;  %v17279_v44 = vld [vmem:[%s27109_s0 + $0x14] sm:$0x3] }
 0x18e   :  { %18940 = vmatmul.mubr.msk.bf16.vlgmr.msra.gmra.mrb[0].mxu0 %vm89_vm2, %v27141_v0  ;;  %v2806_v25 = vrot.slane %v2804_v10, 4  ;;  %v2809_v11 = vrot.slane %v2807_v39, 5  ;;  %v17270_v57 = vcombine.low %v22864_v33, %v22886_v28  ;;  %v2815_v61 = vrot.slane %v2813_v8, 5  ;;  %v17280_v39 = vld [vmem:[%s27109_s0 + $0x1c] sm:$0x3] }
 0x18f   :  { %18956 = vmatpush3.bf16.msra.mxu0 %v22601_v21  ;;  %18943 = vmatprep.mubr.msk.bf16.mxu0 %vm89_vm2, %v27142_v6  ;;  %v2820_v21 = vrot.slane %v2818_v12, 4  ;;  %v2823_v50 = vrot.slane %v2821_v59, 5  ;;  %v2827_v17 = vshll.u32 %v16217_v23, 16  ;;  %v2832_v43 = vshrl.u32 %v16218_v18, 16  ;;  %v16229_v33 = vld [vmem:[%s27109_s0 + $0x24c] sm:$0x1] }
 0x190   :  { %v2810_v38 = vor.u32 %v2809_v11, %v2806_v25  ;;  %v2835_v9 = vshll.u32 %v16218_v18, 16  ;;  %v2841_v49 = vshll.u32 %v16219_v56, 16  ;;  %v2846_v58 = vshrl.u32 %v16220_v31, 16 }
 0x191   :  { %v2824_v48 = vor.u32 %v2823_v50, %v2820_v21  ;;  %v2849_v41 = vshll.u32 %v16220_v31, 16  ;;  %v2829_v51 = vrot.slane %v2827_v17, 5  ;;  %v2834_v32 = vrot.slane %v2832_v43, 4 }
 0x192   :  { %v2811_v54 = vrot.slane %v2810_v38, 4  ;;  %v2837_v63 = vrot.slane %v2835_v9, 5  ;;  %v2843_v55 = vrot.slane %v2841_v49, 5  ;;  %v2848_v15 = vrot.slane %v2846_v58, 4  ;;  %v17281_v9 = vld [vmem:[%s27109_s0 + $0x24] sm:$0x3] }
 0x193   :  { %v2825_v40 = vrot.slane %v2824_v48, 4  ;;  %v2851_v23 = vrot.slane %v2849_v41, 5  ;;  %v2855_v10 = vshll.u32 %v16221_v60, 16  ;;  %v10880_v56 = vshrl.u32 %v22341_v5, 16 }
 0x194   :  { %v2816_v18 = vsel %vm20370_vm5, %v2811_v54, %v2815_v61  ;;  %v2838_v1 = vor.u32 %v2837_v63, %v2834_v32  ;;  %v27143_v31 = vcombine.low %v22675_v30, %v22687_v47  ;;  %v10883_v8 = vshll.u32 %v22341_v5, 16  ;;  %18512 = vmatmul.mubr.msk.bf16.gmra.mrb[4].mxu1 %vm89_vm2, %v16234_v52  ;;  %v17282_v32 = vld [vmem:[%s27109_s0 + $0x2c] sm:$0x3]  ;;  %v16222_v63 = vld [vmem:[%s27109_s0 + $0x230] sm:$0xf] }
 0x195   :  { %v2830_v0 = vsel %vm20370_vm5, %v2825_v40, %v2829_v51  ;;  %v2852_v4 = vor.u32 %v2851_v23, %v2848_v15  ;;  %v10889_v12 = vshrl.u32 %v17279_v44, 16  ;;  %v2857_v25 = vrot.slane %v2855_v10, 5 }
 0x196   :  { %18944 = vmatmul.mubr.msk.bf16.gmra.mrb[4].mxu0 %vm89_vm2, %v27143_v31  ;;  %v16235_v59 = vcombine.low %v2816_v18, %v2830_v0  ;;  %v2839_v6 = vrot.slane %v2838_v1, 4  ;;  %v10882_v11 = vrot.slane %v10880_v56, 5  ;;  %v10885_v47 = vrot.slane %v10883_v8, 6 }
 0x197   :  { %18947 = vmatprep.mubr.msk.bf16.mxu0 %vm89_vm2, %v17267_v42  ;;  %v2853_v30 = vrot.slane %v2852_v4, 4  ;;  %v10891_v61 = vrot.slane %v10889_v12, 5  ;;  %v10892_v21 = vshll.u32 %v17279_v44, 16  ;;  %v10898_v50 = vshrl.u32 %v22351_v53, 16  ;;  %v17328_v42 = vld [vmem:[%s27110_s1 + $0x46] sm:$0x3] }
 0x198   :  { %18515 = vmatprep.mubr.msk.bf16.mxu1 %vm89_vm2, %v16235_v59  ;;  %v2844_v5 = vsel %vm20370_vm5, %v2839_v6, %v2843_v55  ;;  %v10901_v62 = vshll.u32 %v22351_v53, 16  ;;  %v10907_v20 = vshrl.u32 %v17280_v39, 16  ;;  %v10886_v38 = vor.u32 %v10885_v47, %v10882_v11 }
 0x199   :  { %v2858_v52 = vsel %vm20370_vm5, %v2853_v30, %v2857_v25  ;;  %v10894_v17 = vrot.slane %v10892_v21, 6  ;;  %v10910_v43 = vshll.u32 %v17280_v39, 16  ;;  %v10900_v60 = vrot.slane %v10898_v50, 5  ;;  %v16226_v30 = vld [vmem:[%s27109_s0 + $0x240] sm:$0xf] }
 0x19a   :  { %v16236_v48 = vcombine.low %v2844_v5, %v2858_v52  ;;  %v10903_v49 = vrot.slane %v10901_v62, 6  ;;  %v10909_v58 = vrot.slane %v10907_v20, 5  ;;  %v10887_v53 = vrot.slane %v10886_v38, 4  ;;  %v16227_v50 = vld [vmem:[%s27109_s0 + $0x244] sm:$0x1] }
 0x19b   :  { %v10895_v41 = vor.u32 %v10894_v17, %v10891_v61  ;;  %v10912_v54 = vrot.slane %v10910_v43, 6  ;;  %v22932_v51 = vand.u32 %v17328_v42, %v20305_v3  ;;  %v10916_v40 = vshrl.u32 %v22364_v14, 16  ;;  %v16228_v62 = vld [vmem:[%s27109_s0 + $0x248] sm:$0xf] }
 0x19c   :  { %v10904_v44 = vor.u32 %v10903_v49, %v10900_v60  ;;  %v10919_v55 = vshll.u32 %v22364_v14, 16  ;;  %v10925_v15 = vshrl.u32 %v17281_v9, 16  ;;  %v10928_v1 = vshll.u32 %v17281_v9, 16  ;;  %18516 = vmatmul.mubr.msk.bf16.gmra.mrb[8].mxu1 %vm89_vm2, %v16236_v48 }
 0x19d   :  { %v10896_v23 = vsel %vm20976_vm11, %v10887_v53, %v10895_v41  ;;  %v10913_v18 = vor.u32 %v10912_v54, %v10909_v58  ;;  %18973 = vmatprep.subr.bf16.mxu0 %v22932_v51  ;;  %v10934_v10 = vshrl.u32 %v22371_v34, 16  ;;  %v10918_v39 = vrot.slane %v10916_v40, 5 }
 0x19e   :  { %18948 = vmatmul.mubr.msk.bf16.gmra.mrb[8].mxu0 %vm89_vm2, %v17268_v27  ;;  %v10905_v14 = vrot.slane %v10904_v44, 4  ;;  %v10921_v56 = vrot.slane %v10919_v55, 6  ;;  %v10927_v22 = vrot.slane %v10925_v15, 5  ;;  %v10930_v37 = vrot.slane %v10928_v1, 6  ;;  %v17283_v1 = vld [vmem:[%s27109_s0 + $0x34] sm:$0x3] }
 0x19f   :  { %18951 = vmatprep.mubr.msk.bf16.mxu0 %vm89_vm2, %v17269_v29  ;;  %v10936_v27 = vrot.slane %v10934_v10, 5  ;;  %v10937_v31 = vshll.u32 %v22371_v34, 16  ;;  %v10943_v0 = vshrl.u32 %v17282_v32, 16  ;;  %v10946_v12 = vshll.u32 %v17282_v32, 16  ;;  %v16225_v34 = vld [vmem:[%s27109_s0 + $0x23c] sm:$0x1] }
 0x1a0   :  { %v10914_v4 = vsel %vm20976_vm11, %v10905_v14, %v10913_v18  ;;  %v10922_v8 = vor.u32 %v10921_v56, %v10918_v39  ;;  %v2860_v29 = vshrl.u32 %v16222_v63, 16  ;;  %v10931_v6 = vor.u32 %v10930_v37, %v10927_v22 }
 0x1a1   :  { %v17296_v59 = vcombine.low %v10896_v23, %v10914_v4  ;;  %v10939_v25 = vrot.slane %v10937_v31, 6  ;;  %v10945_v11 = vrot.slane %v10943_v0, 5  ;;  %v10948_v61 = vrot.slane %v10946_v12, 6 }
 0x1a2   :  { %v10923_v47 = vrot.slane %v10922_v8, 4  ;;  %v2862_v21 = vrot.slane %v2860_v29, 4  ;;  %v2863_v5 = vshll.u32 %v16222_v63, 16  ;;  %v2869_v42 = vshll.u32 %v16223_v35, 16  ;;  %v17284_v8 = vld [vmem:[%s27109_s0 + $0x3c] sm:$0x3] }
 0x1a3   :  { %v10940_v20 = vor.u32 %v10939_v25, %v10936_v27  ;;  %v2874_v52 = vshrl.u32 %v16224_v46, 16  ;;  %v2877_v38 = vshll.u32 %v16224_v46, 16  ;;  %v10949_v43 = vor.u32 %v10948_v61, %v10945_v11 }
 0x1a4   :  { %v10932_v17 = vsel %vm20976_vm11, %v10923_v47, %v10931_v6  ;;  %v2865_v9 = vrot.slane %v2863_v5, 5  ;;  %v2883_v48 = vshll.u32 %v16225_v34, 16  ;;  %v2871_v49 = vrot.slane %v2869_v42, 5 }
 0x1a5   :  { %v10941_v60 = vrot.slane %v10940_v20, 4  ;;  %v2876_v58 = vrot.slane %v2874_v52, 4  ;;  %v2879_v53 = vrot.slane %v2877_v38, 5  ;;  %v2888_v32 = vshrl.u32 %v16226_v30, 16 }
 0x1a6   :  { %18952 = vmatmul.mubr.msk.bf16.gmra.mrb[12].mxu0 %vm89_vm2, %v17270_v57  ;;  %v2866_v41 = vor.u32 %v2865_v9, %v2862_v21  ;;  %v2885_v54 = vrot.slane %v2883_v48, 5  ;;  %v2891_v63 = vshll.u32 %v16226_v30, 16  ;;  %v2897_v28 = vshll.u32 %v16227_v50, 16 }
 0x1a7   :  { %18957 = vmatprep.mubr.msk.bf16.mxu0 %vm89_vm2, %v17296_v59  ;;  %v10950_v44 = vsel %vm20976_vm11, %v10941_v60, %v10949_v43  ;;  %v2880_v40 = vor.u32 %v2879_v53, %v2876_v58  ;;  %v2902_v57 = vshrl.u32 %v16228_v62, 16  ;;  %v2890_v23 = vrot.slane %v2888_v32, 4  ;;  %v17286_v58 = vld [vmem:[%s27109_s0 + $0x4c] sm:$0x3] }
 0x1a8   :  { %v17297_v55 = vcombine.low %v10932_v17, %v10950_v44  ;;  %v2867_v15 = vrot.slane %v2866_v41, 4  ;;  %v2893_v18 = vrot.slane %v2891_v63, 5  ;;  %v2899_v14 = vrot.slane %v2897_v28, 5 }
 0x1a9   :  { %v2881_v10 = vrot.slane %v2880_v40, 4  ;;  %v2904_v39 = vrot.slane %v2902_v57, 4  ;;  %v2905_v56 = vshll.u32 %v16228_v62, 16  ;;  %v2911_v27 = vshll.u32 %v16229_v33, 16 }
 0x1aa   :  { %v2872_v22 = vsel %vm20370_vm5, %v2867_v15, %v2871_v49  ;;  %v2894_v37 = vor.u32 %v2893_v18, %v2890_v23  ;;  %v10952_v31 = vshrl.u32 %v22390_v2, 16  ;;  %v10955_v12 = vshll.u32 %v22390_v2, 16 }
 0x1ab   :  { %v2886_v0 = vsel %vm20370_vm5, %v2881_v10, %v2885_v54  ;;  %v2907_v4 = vrot.slane %v2905_v56, 5  ;;  %v10961_v35 = vshrl.u32 %v17283_v1, 16  ;;  %v2913_v59 = vrot.slane %v2911_v27, 5  ;;  %v23030_v56 = vld [vmem:[%s27109_s0 + $0x10c] sm:$0x1] }
 0x1ac   :  { %v16237_v46 = vcombine.low %v2872_v22, %v2886_v0  ;;  %v2895_v29 = vrot.slane %v2894_v37, 4  ;;  %v10954_v6 = vrot.slane %v10952_v31, 5  ;;  %v10957_v11 = vrot.slane %v10955_v12, 6 }
 0x1ad   :  { %v2908_v25 = vor.u32 %v2907_v4, %v2904_v39  ;;  %v10963_v34 = vrot.slane %v10961_v35, 5  ;;  %v10964_v30 = vshll.u32 %v17283_v1, 16  ;;  %v10970_v2 = vshrl.u32 %v22402_v19, 16 }
 0x1ae   :  { %18958 = vmatmul.mubr.msk.bf16.vlgmr.msra.gmra.mrb[0].mxu0 %vm89_vm2, %v17297_v55  ;;  %18519 = vmatprep.mubr.msk.bf16.mxu1 %vm89_vm2, %v16237_v46  ;;  %v2900_v47 = vsel %vm20370_vm5, %v2895_v29, %v2899_v14  ;;  %v10973_v61 = vshll.u32 %v22402_v19, 16  ;;  %v10979_v21 = vshrl.u32 %v17284_v8, 16  ;;  %v10958_v50 = vor.u32 %v10957_v11, %v10954_v6 }
 0x1af   :  { %18974 = vmatpush3.bf16.msra.mxu0 %v22932_v51  ;;  %v2909_v5 = vrot.slane %v2908_v25, 4  ;;  %v10966_v62 = vrot.slane %v10964_v30, 6  ;;  %v10982_v20 = vshll.u32 %v17284_v8, 16  ;;  %v10972_v42 = vrot.slane %v10970_v2, 5  ;;  %v17285_v51 = vld [vmem:[%s27109_s0 + $0x44] sm:$0x3] }
 0x1b0   :  { %v10975_v52 = vrot.slane %v10973_v61, 6  ;;  %v10981_v38 = vrot.slane %v10979_v21, 5  ;;  %v10988_v17 = vshrl.u32 %v22411_v13, 16  ;;  %v10959_v9 = vrot.slane %v10958_v50, 4  ;;  %v23038_v8 = vld [vmem:[%s27109_s0 + $0x114] sm:$0x1] }
 0x1b1   :  { %v2914_v43 = vsel %vm20370_vm5, %v2909_v5, %v2913_v59  ;;  %v10967_v48 = vor.u32 %v10966_v62, %v10963_v34  ;;  %v10984_v19 = vrot.slane %v10982_v20, 6  ;;  %v10991_v41 = vshll.u32 %v22411_v13, 16  ;;  %v16247_v13 = vld [vmem:[%s27109_s0 + $0x108] sm:$0xf]  ;;  %v16251_v25 = vld [vmem:[%s27109_s0 + $0x118] sm:$0xf] }
 0x1b2   :  { %v16238_v60 = vcombine.low %v2900_v47, %v2914_v43  ;;  %v10976_v49 = vor.u32 %v10975_v52, %v10972_v42  ;;  %v10990_v53 = vrot.slane %v10988_v17, 5  ;;  %v10997_v63 = vshrl.u32 %v17285_v51, 16  ;;  %v23050_v2 = vld [vmem:[%s27109_s0 + $0x11c] sm:$0x1]  ;;  %v16253_v62 = vld [vmem:[%s27109_s0 + $0x120] sm:$0xf] }
 0x1b3   :  { %v10968_v54 = vsel %vm20976_vm11, %v10959_v9, %v10967_v48  ;;  %v10985_v32 = vor.u32 %v10984_v19, %v10981_v38  ;;  %v11000_v44 = vshll.u32 %v17285_v51, 16  ;;  %v10993_v33 = vrot.slane %v10991_v41, 6  ;;  %v23061_v52 = vld [vmem:[%s27109_s0 + $0x124] sm:$0x1]  ;;  %v16328_v19 = vld [vmem:[%s27110_s1 + $0x16] sm:$0x3] }
 0x1b4   :  { %18520 = vmatmul.mubr.msk.bf16.gmra.mrb[12].mxu1 %vm89_vm2, %v16238_v60  ;;  %v10977_v40 = vrot.slane %v10976_v49, 4  ;;  %v11006_v28 = vshrl.u32 %v22434_v26, 16  ;;  %v11009_v57 = vshll.u32 %v22434_v26, 16  ;;  %v10999_v55 = vrot.slane %v10997_v63, 5  ;;  %v16249_v26 = vld [vmem:[%s27109_s0 + $0x110] sm:$0xf] }
 0x1b5   :  { %v11002_v15 = vrot.slane %v11000_v44, 6  ;;  %v11015_v23 = vshrl.u32 %v17286_v58, 16  ;;  %v11018_v18 = vshll.u32 %v17286_v58, 16  ;;  %v10994_v10 = vor.u32 %v10993_v33, %v10990_v53  ;;  %v17287_v44 = vld [vmem:[%s27109_s0 + $0x174] sm:$0x3] }
 0x1b6   :  { %v10986_v1 = vsel %vm20976_vm11, %v10977_v40, %v10985_v32  ;;  %v11008_v14 = vrot.slane %v11006_v28, 5  ;;  %v11011_v39 = vrot.slane %v11009_v57, 6  ;;  %v3114_v12 = vshrl.u32 %v16247_v13, 16 }
 0x1b7   :  { %v17298_v22 = vcombine.low %v10968_v54, %v10986_v1  ;;  %v11003_v37 = vor.u32 %v11002_v15, %v10999_v55  ;;  %v11017_v27 = vrot.slane %v11015_v23, 5  ;;  %v11020_v31 = vrot.slane %v11018_v18, 6  ;;  %v20153_v18 = vld [vmem:[%s27109_s0 + $0x170] sm:$0xe] }
 0x1b8   :  { %v10995_v0 = vrot.slane %v10994_v10, 4  ;;  %v11012_v4 = vor.u32 %v11011_v39, %v11008_v14  ;;  %v3117_v35 = vshll.u32 %v16247_v13, 16  ;;  %v3123_v29 = vshll.u32 %v23030_v56, 16  ;;  %v17288_v14 = vld [vmem:[%s27109_s0 + $0x17c] sm:$0x3] }
 0x1b9   :  { %18961 = vmatprep.mubr.msk.bf16.mxu0 %vm89_vm2, %v17298_v22  ;;  %v11021_v46 = vor.u32 %v11020_v31, %v11017_v27  ;;  %v3128_v59 = vshrl.u32 %v16249_v26, 16  ;;  %v3131_v6 = vshll.u32 %v16249_v26, 16  ;;  %v3116_v30 = vrot.slane %v3114_v12, 4  ;;  %v20154_v31 = vld [vmem:[%s27109_s0 + $0x178] sm:$0xe] }
 0x1ba   :  { %v11004_v11 = vsel %vm20976_vm11, %v10995_v0, %v11003_v37  ;;  %v11013_v34 = vrot.slane %v11012_v4, 4  ;;  %v3119_v47 = vrot.slane %v3117_v35, 5  ;;  %v3125_v61 = vrot.slane %v3123_v29, 5 }
 0x1bb   :  { %v3130_v21 = vrot.slane %v3128_v59, 4  ;;  %v3133_v5 = vrot.slane %v3131_v6, 5  ;;  %v3137_v50 = vshll.u32 %v23038_v8, 16  ;;  %v3142_v38 = vshrl.u32 %v16251_v25, 16 }
 0x1bc   :  { %v11022_v20 = vsel %vm20976_vm11, %v11013_v34, %v11021_v46  ;;  %v3120_v42 = vor.u32 %v3119_v47, %v3116_v30  ;;  %v3145_v51 = vshll.u32 %v16251_v25, 16  ;;  %v3151_v48 = vshll.u32 %v23050_v2, 16  ;;  %v17289_v47 = vld [vmem:[%s27109_s0 + $0x184] sm:$0x3] }
 0x1bd   :  { %v17299_v17 = vcombine.low %v11004_v11, %v11022_v20  ;;  %v3134_v43 = vor.u32 %v3133_v5, %v3130_v21  ;;  %v3139_v9 = vrot.slane %v3137_v50, 5  ;;  %v3144_v49 = vrot.slane %v3142_v38, 4 }
 0x1be   :  { %v3121_v60 = vrot.slane %v3120_v42, 4  ;;  %v3147_v58 = vrot.slane %v3145_v51, 5  ;;  %v3156_v53 = vshrl.u32 %v16253_v62, 16  ;;  %v3153_v54 = vrot.slane %v3151_v48, 5 }
 0x1bf   :  { %18962 = vmatmul.mubr.msk.bf16.gmra.mrb[4].mxu0 %vm89_vm2, %v17299_v17  ;;  %v3135_v41 = vrot.slane %v3134_v43, 4  ;;  %v3159_v32 = vshll.u32 %v16253_v62, 16  ;;  %v3165_v63 = vshll.u32 %v23061_v52, 16  ;;  %v3666_v57 = vand.u32 %v16328_v19, %v20305_v3  ;;  %v17290_v43 = vld [vmem:[%s27109_s0 + $0x18c] sm:$0x3] }
 0x1c0   :  { %v3126_v40 = vsel %vm20370_vm5, %v3121_v60, %v3125_v61  ;;  %v3148_v33 = vor.u32 %v3147_v58, %v3144_v49  ;;  %v3158_v28 = vrot.slane %v3156_v53, 4  ;;  %v11024_v13 = vshrl.u32 %v20153_v18, 16  ;;  %v20155_v61 = vld [vmem:[%s27109_s0 + $0x180] sm:$0xe] }
 0x1c1   :  { %v3140_v55 = vsel %vm20370_vm5, %v3135_v41, %v3139_v9  ;;  %v3161_v15 = vrot.slane %v3159_v32, 5  ;;  %v3167_v23 = vrot.slane %v3165_v63, 5  ;;  %18541 = vmatprep.subr.bf16.mxu1 %v3666_v57  ;;  %v11027_v39 = vshll.u32 %v20153_v18, 16  ;;  %v20156_v41 = vld [vmem:[%s27109_s0 + $0x188] sm:$0xe] }
 0x1c2   :  { %v16280_v1 = vcombine.low %v3126_v40, %v3140_v55  ;;  %v3149_v10 = vrot.slane %v3148_v33, 4  ;;  %v11033_v26 = vshrl.u32 %v17287_v44, 16  ;;  %v11026_v37 = vrot.slane %v11024_v13, 5  ;;  %v16255_v32 = vld [vmem:[%s27109_s0 + $0x128] sm:$0xf] }
 0x1c3   :  { %v3162_v22 = vor.u32 %v3161_v15, %v3158_v28  ;;  %v11036_v27 = vshll.u32 %v17287_v44, 16  ;;  %v11042_v0 = vshrl.u32 %v20154_v31, 16  ;;  %v11029_v12 = vrot.slane %v11027_v39, 6  ;;  %v23112_v28 = vld [vmem:[%s27109_s0 + $0x12c] sm:$0x1] }
 0x1c4   :  { %18525 = vmatprep.mubr.msk.bf16.mxu1 %vm89_vm2, %v16280_v1  ;;  %v3154_v4 = vsel %vm20370_vm5, %v3149_v10, %v3153_v54  ;;  %v11035_v35 = vrot.slane %v11033_v26, 5  ;;  %v11045_v46 = vshll.u32 %v20154_v31, 16  ;;  %v11051_v25 = vshrl.u32 %v17288_v14, 16  ;;  %v16257_v13 = vld [vmem:[%s27109_s0 + $0x130] sm:$0xf] }
 0x1c5   :  { %v3163_v29 = vrot.slane %v3162_v22, 4  ;;  %v11038_v59 = vrot.slane %v11036_v27, 6  ;;  %v11044_v6 = vrot.slane %v11042_v0, 5  ;;  %v11030_v11 = vor.u32 %v11029_v12, %v11026_v37  ;;  %v23122_v22 = vld [vmem:[%s27109_s0 + $0x134] sm:$0x1] }
 0x1c6   :  { %v11047_v34 = vrot.slane %v11045_v46, 6  ;;  %v11054_v30 = vshll.u32 %v17288_v14, 16  ;;  %v11060_v21 = vshrl.u32 %v20155_v61, 16  ;;  %v11053_v62 = vrot.slane %v11051_v25, 5  ;;  %v23134_v46 = vld [vmem:[%s27109_s0 + $0x13c] sm:$0x1] }
 0x1c7   :  { %v3168_v5 = vsel %vm20370_vm5, %v3163_v29, %v3167_v23  ;;  %v11039_v50 = vor.u32 %v11038_v59, %v11035_v35  ;;  %v11063_v20 = vshll.u32 %v20155_v61, 16  ;;  %v11031_v38 = vrot.slane %v11030_v11, 4  ;;  %v16259_v35 = vld [vmem:[%s27109_s0 + $0x138] sm:$0xf]  ;;  %v16261_v11 = vld [vmem:[%s27109_s0 + $0x140] sm:$0xf] }
 0x1c8   :  { %v16281_v42 = vcombine.low %v3154_v4, %v3168_v5  ;;  %v11048_v51 = vor.u32 %v11047_v34, %v11044_v6  ;;  %v11056_v17 = vrot.slane %v11054_v30, 6  ;;  %v11062_v9 = vrot.slane %v11060_v21, 5 }
 0x1c9   :  { %v11065_v48 = vrot.slane %v11063_v20, 6  ;;  %v11069_v19 = vshrl.u32 %v17289_v47, 16  ;;  %v11072_v60 = vshll.u32 %v17289_v47, 16  ;;  %v11040_v49 = vsel %vm20976_vm11, %v11031_v38, %v11039_v50  ;;  %v23145_v38 = vld [vmem:[%s27109_s0 + $0x144] sm:$0x1] }
 0x1ca   :  { %18526 = vmatmul.mubr.msk.bf16.vlgmr.msra.gmra.mrb[0].mxu1 %vm89_vm2, %v16281_v42  ;;  %v11049_v58 = vrot.slane %v11048_v51, 4  ;;  %v11057_v53 = vor.u32 %v11056_v17, %v11053_v62  ;;  %v11078_v54 = vshrl.u32 %v20156_v41, 16  ;;  %v11081_v33 = vshll.u32 %v20156_v41, 16 }
 0x1cb   :  { %18542 = vmatpush3.bf16.msra.mxu1 %v3666_v57  ;;  %v11066_v63 = vor.u32 %v11065_v48, %v11062_v9  ;;  %v11071_v44 = vrot.slane %v11069_v19, 5  ;;  %v11074_v40 = vrot.slane %v11072_v60, 6  ;;  %v11087_v23 = vshrl.u32 %v17290_v43, 16  ;;  %v17291_v60 = vld [vmem:[%s27109_s0 + $0x194] sm:$0x3] }
 0x1cc   :  { %v11058_v55 = vsel %vm20976_vm11, %v11049_v58, %v11057_v53  ;;  %v11080_v15 = vrot.slane %v11078_v54, 5  ;;  %v11090_v18 = vshll.u32 %v17290_v43, 16  ;;  %v11083_v14 = vrot.slane %v11081_v33, 6 }
 0x1cd   :  { %v17300_v57 = vcombine.low %v11040_v49, %v11058_v55  ;;  %v11067_v1 = vrot.slane %v11066_v63, 4  ;;  %v11075_v10 = vor.u32 %v11074_v40, %v11071_v44  ;;  %v11089_v39 = vrot.slane %v11087_v23, 5  ;;  %v20157_v44 = vld [vmem:[%s27109_s0 + $0x190] sm:$0xe] }
 0x1ce   :  { %v11092_v26 = vrot.slane %v11090_v18, 6  ;;  %v3170_v37 = vshrl.u32 %v16255_v32, 16  ;;  %v3173_v27 = vshll.u32 %v16255_v32, 16  ;;  %v11084_v0 = vor.u32 %v11083_v14, %v11080_v15 }
 0x1cf   :  { %18965 = vmatprep.mubr.msk.bf16.mxu0 %vm89_vm2, %v17300_v57  ;;  %v11076_v31 = vsel %vm20976_vm11, %v11067_v1, %v11075_v10  ;;  %v3179_v4 = vshll.u32 %v23112_v28, 16  ;;  %v3184_v12 = vshrl.u32 %v16257_v13, 16  ;;  %v3187_v25 = vshll.u32 %v16257_v13, 16  ;;  %v17292_v57 = vld [vmem:[%s27109_s0 + $0x19c] sm:$0x3] }
 0x1d0   :  { %v11093_v29 = vor.u32 %v11092_v26, %v11089_v39  ;;  %v3172_v59 = vrot.slane %v3170_v37, 4  ;;  %v3175_v6 = vrot.slane %v3173_v27, 5  ;;  %v11085_v34 = vrot.slane %v11084_v0, 4  ;;  %v20158_v0 = vld [vmem:[%s27109_s0 + $0x198] sm:$0xe] }
 0x1d1   :  { %v3181_v30 = vrot.slane %v3179_v4, 5  ;;  %v3186_v47 = vrot.slane %v3184_v12, 4  ;;  %v3193_v61 = vshll.u32 %v23122_v22, 16  ;;  %v3189_v5 = vrot.slane %v3187_v25, 5 }
 0x1d2   :  { %v3176_v21 = vor.u32 %v3175_v6, %v3172_v59  ;;  %v3198_v50 = vshrl.u32 %v16259_v35, 16  ;;  %v3201_v62 = vshll.u32 %v16259_v35, 16  ;;  %v11094_v20 = vsel %vm20976_vm11, %v11085_v34, %v11093_v29  ;;  %v17293_v35 = vld [vmem:[%s27109_s0 + $0x1a4] sm:$0x3] }
 0x1d3   :  { %v3195_v42 = vrot.slane %v3193_v61, 5  ;;  %v3207_v51 = vshll.u32 %v23134_v46, 16  ;;  %v3212_v17 = vshrl.u32 %v16261_v11, 16  ;;  %v17301_v43 = vcombine.low %v11076_v31, %v11094_v20  ;;  %v17294_v61 = vld [vmem:[%s27109_s0 + $0x1ac] sm:$0x3] }
 0x1d4   :  { %v3177_v9 = vrot.slane %v3176_v21, 4  ;;  %v3190_v48 = vor.u32 %v3189_v5, %v3186_v47  ;;  %v3200_v19 = vrot.slane %v3198_v50, 4  ;;  %v3203_v49 = vrot.slane %v3201_v62, 5  ;;  %v20159_v62 = vld [vmem:[%s27109_s0 + $0x1a0] sm:$0xe] }
 0x1d5   :  { %v3209_v58 = vrot.slane %v3207_v51, 5  ;;  %v3214_v53 = vrot.slane %v3212_v17, 4  ;;  %v3215_v41 = vshll.u32 %v16261_v11, 16  ;;  %18966 = vmatmul.mubr.msk.bf16.gmra.mrb[8].mxu0 %vm89_vm2, %v17301_v43  ;;  %v3221_v63 = vshll.u32 %v23145_v38, 16 }
 0x1d6   :  { %v3182_v54 = vsel %vm20370_vm5, %v3177_v9, %v3181_v30  ;;  %v3191_v32 = vrot.slane %v3190_v48, 4  ;;  %v11096_v40 = vshrl.u32 %v20157_v44, 16  ;;  %v3204_v33 = vor.u32 %v3203_v49, %v3200_v19 }
 0x1d7   :  { %v3217_v55 = vrot.slane %v3215_v41, 5  ;;  %v11099_v15 = vshll.u32 %v20157_v44, 16  ;;  %v11105_v23 = vshrl.u32 %v17291_v60, 16  ;;  %v3223_v13 = vrot.slane %v3221_v63, 5  ;;  %v20160_v41 = vld [vmem:[%s27109_s0 + $0x1a8] sm:$0xe] }
 0x1d8   :  { %v3196_v18 = vsel %vm20370_vm5, %v3191_v32, %v3195_v42  ;;  %v11098_v1 = vrot.slane %v11096_v40, 5  ;;  %v11108_v10 = vshll.u32 %v17291_v60, 16  ;;  %v3205_v39 = vrot.slane %v3204_v33, 4  ;;  %v16263_v32 = vld [vmem:[%s27109_s0 + $0x268] sm:$0xf] }
 0x1d9   :  { %v16282_v14 = vcombine.low %v3182_v54, %v3196_v18  ;;  %v3218_v26 = vor.u32 %v3217_v55, %v3214_v53  ;;  %v11101_v37 = vrot.slane %v11099_v15, 6  ;;  %v11107_v27 = vrot.slane %v11105_v23, 5  ;;  %v23192_v55 = vld [vmem:[%s27109_s0 + $0x26c] sm:$0x1] }
 0x1da   :  { %v11110_v31 = vrot.slane %v11108_v10, 6  ;;  %v11114_v4 = vshrl.u32 %v20158_v0, 16  ;;  %v11117_v12 = vshll.u32 %v20158_v0, 16  ;;  %v3210_v29 = vsel %vm20370_vm5, %v3205_v39, %v3209_v58 }
 0x1db   :  { %18529 = vmatprep.mubr.msk.bf16.mxu1 %vm89_vm2, %v16282_v14  ;;  %v3219_v59 = vrot.slane %v3218_v26, 4  ;;  %v11102_v6 = vor.u32 %v11101_v37, %v11098_v1  ;;  %v11123_v25 = vshrl.u32 %v17292_v57, 16  ;;  %v11126_v47 = vshll.u32 %v17292_v57, 16  ;;  %v16265_v57 = vld [vmem:[%s27109_s0 + $0x270] sm:$0xf] }
 0x1dc   :  { %v11111_v11 = vor.u32 %v11110_v31, %v11107_v27  ;;  %v11116_v34 = vrot.slane %v11114_v4, 5  ;;  %v11119_v30 = vrot.slane %v11117_v12, 6  ;;  %v11132_v20 = vshrl.u32 %v20159_v62, 16  ;;  %v23202_v26 = vld [vmem:[%s27109_s0 + $0x274] sm:$0x1] }
 0x1dd   :  { %v3224_v21 = vsel %vm20370_vm5, %v3219_v59, %v3223_v13  ;;  %v11103_v5 = vrot.slane %v11102_v6, 4  ;;  %v11125_v50 = vrot.slane %v11123_v25, 5  ;;  %v11128_v17 = vrot.slane %v11126_v47, 6  ;;  %v16267_v37 = vld [vmem:[%s27109_s0 + $0x278] sm:$0xf] }
 0x1de   :  { %v16283_v42 = vcombine.low %v3210_v29, %v3224_v21  ;;  %v11120_v51 = vor.u32 %v11119_v30, %v11116_v34  ;;  %v11135_v43 = vshll.u32 %v20159_v62, 16  ;;  %v11134_v48 = vrot.slane %v11132_v20, 5  ;;  %v23212_v6 = vld [vmem:[%s27109_s0 + $0x27c] sm:$0x1]  ;;  %v16269_v47 = vld [vmem:[%s27109_s0 + $0x280] sm:$0xf] }
 0x1df   :  { %v11112_v9 = vsel %vm20976_vm11, %v11103_v5, %v11111_v11  ;;  %v11141_v19 = vshrl.u32 %v17293_v35, 16  ;;  %v11144_v60 = vshll.u32 %v17293_v35, 16  ;;  %v11129_v58 = vor.u32 %v11128_v17, %v11125_v50  ;;  %v23222_v62 = vld [vmem:[%s27109_s0 + $0x284] sm:$0x1]  ;;  %v20047_v20 = vld [vmem:[%s27109_s0 + $0xc0] ss:$8 sps:$4 sm:$0xff]  }
 0x1e0   :  { %18530 = vmatmul.mubr.msk.bf16.gmra.mrb[4].mxu1 %vm89_vm2, %v16283_v42  ;;  %v11121_v49 = vrot.slane %v11120_v51, 4  ;;  %v11137_v53 = vrot.slane %v11135_v43, 6  ;;  %v11150_v54 = vshrl.u32 %v20160_v41, 16  ;;  %v11153_v40 = vshll.u32 %v20160_v41, 16  ;;  %v17361_v42 = vld [vmem:[%s27110_s1 + $0x48] sm:$0x3] }
 0x1e1   :  { %v11143_v63 = vrot.slane %v11141_v19, 5  ;;  %v11146_v44 = vrot.slane %v11144_v60, 6  ;;  %v11159_v33 = vshrl.u32 %v17294_v61, 16  ;;  %v11162_v13 = vshll.u32 %v17294_v61, 16 }
 0x1e2   :  { %v11130_v15 = vsel %vm20976_vm11, %v11121_v49, %v11129_v58  ;;  %v11138_v23 = vor.u32 %v11137_v53, %v11134_v48  ;;  %v11152_v18 = vrot.slane %v11150_v54, 5  ;;  %v11155_v14 = vrot.slane %v11153_v40, 6  ;;  %v16271_v48 = vld [vmem:[%s27109_s0 + $0x288] sm:$0xf]  ;;  %v23240_v53 = vld [vmem:[%s27109_s0 + $0x28c] sm:$0x1] }
 0x1e3   :  { %v17302_v1 = vcombine.low %v11112_v9, %v11130_v15  ;;  %v11147_v10 = vor.u32 %v11146_v44, %v11143_v63  ;;  %v11161_v39 = vrot.slane %v11159_v33, 5  ;;  %v11164_v31 = vrot.slane %v11162_v13, 6 }
 0x1e4   :  { %v11139_v27 = vrot.slane %v11138_v23, 4  ;;  %v3226_v0 = vshrl.u32 %v16263_v32, 16  ;;  %v3229_v4 = vshll.u32 %v16263_v32, 16  ;;  %v11156_v12 = vor.u32 %v11155_v14, %v11152_v18 }
 0x1e5   :  { %18969 = vmatprep.mubr.msk.bf16.mxu0 %vm89_vm2, %v17302_v1  ;;  %v3235_v35 = vshll.u32 %v23192_v55, 16  ;;  %v3240_v29 = vshrl.u32 %v16265_v57, 16  ;;  %v3243_v59 = vshll.u32 %v16265_v57, 16  ;;  %v11165_v11 = vor.u32 %v11164_v31, %v11161_v39  ;;  %v16273_v1 = vld [vmem:[%s27109_s0 + $0x290] sm:$0xf] }
 0x1e6   :  { %v11148_v25 = vsel %vm20976_vm11, %v11139_v27, %v11147_v10  ;;  %v3228_v34 = vrot.slane %v3226_v0, 4  ;;  %v3231_v30 = vrot.slane %v3229_v4, 5  ;;  %v11157_v61 = vrot.slane %v11156_v12, 4  ;;  %v16275_v10 = vld [vmem:[%s27109_s0 + $0x298] sm:$0xf] }
 0x1e7   :  { %v3237_v21 = vrot.slane %v3235_v35, 5  ;;  %v3242_v5 = vrot.slane %v3240_v29, 4  ;;  %v3245_v50 = vrot.slane %v3243_v59, 5  ;;  %v3249_v17 = vshll.u32 %v23202_v26, 16  ;;  %v20048_v35 = vld [vmem:[%s27109_s0 + $0xd0] ss:$8 sps:$4 sm:$0xff]  }
 0x1e8   :  { %v3232_v51 = vor.u32 %v3231_v30, %v3228_v34  ;;  %v3254_v43 = vshrl.u32 %v16267_v37, 16  ;;  %v3257_v9 = vshll.u32 %v16267_v37, 16  ;;  %v11166_v19 = vsel %vm20976_vm11, %v11157_v61, %v11165_v11  ;;  %v23259_v37 = vld [vmem:[%s27109_s0 + $0x294] sm:$0x1]  ;;  %v16277_v59 = vld [vmem:[%s27109_s0 + $0x2a0] sm:$0xf] }
 0x1e9   :  { %v3246_v60 = vor.u32 %v3245_v50, %v3242_v5  ;;  %v3263_v49 = vshll.u32 %v23212_v6, 16  ;;  %v3268_v58 = vshrl.u32 %v16269_v47, 16  ;;  %v17303_v41 = vcombine.low %v11148_v25, %v11166_v19 }
 0x1ea   :  { %v3233_v54 = vrot.slane %v3232_v51, 4  ;;  %v3251_v32 = vrot.slane %v3249_v17, 5  ;;  %v3256_v63 = vrot.slane %v3254_v43, 4  ;;  %v3259_v40 = vrot.slane %v3257_v9, 5  ;;  %v23283_v43 = vld [vmem:[%s27109_s0 + $0x2a4] sm:$0x1] }
 0x1eb   :  { %v3247_v44 = vrot.slane %v3246_v60, 4  ;;  %v3265_v33 = vrot.slane %v3263_v49, 5  ;;  %v3270_v15 = vrot.slane %v3268_v58, 4  ;;  %18970 = vmatmul.mubr.msk.bf16.gmra.mrb[12].mxu0 %vm89_vm2, %v17303_v41  ;;  %v3271_v18 = vshll.u32 %v16269_v47, 16  ;;  %v23271_v47 = vld [vmem:[%s27109_s0 + $0x29c] sm:$0x1] }
 0x1ec   :  { %v3238_v23 = vsel %vm20370_vm5, %v3233_v54, %v3237_v21  ;;  %v3277_v13 = vshll.u32 %v23222_v62, 16  ;;  %v11616_v57 = vand.u32 %v17361_v42, %v20305_v3  ;;  %v3260_v39 = vor.u32 %v3259_v40, %v3256_v63  ;;  %18975 = vmatprep.mubr.msk.bf16.mxu0 %vm89_vm2, %v20047_v20  ;;  %v20049_v20 = vld [vmem:[%s27109_s0 + $0xe0] ss:$8 sps:$4 sm:$0xff]   ;;  %v23288_v58 = vld [vmem:[%s27109_s0 + $0xb0] sm:$0xe] }
 0x1ed   :  { %v3252_v14 = vsel %vm20370_vm5, %v3247_v44, %v3251_v32  ;;  %v3282_v27 = vshrl.u32 %v16271_v48, 16  ;;  %v3285_v31 = vshll.u32 %v16271_v48, 16  ;;  %v3273_v4 = vrot.slane %v3271_v18, 5  ;;  %v23293_v41 = vld [vmem:[%s27109_s0 + $0xb8] sm:$0xe] }
 0x1ee   :  { %v16284_v0 = vcombine.low %v3238_v23, %v3252_v14  ;;  %v3279_v12 = vrot.slane %v3277_v13, 5  ;;  %18991 = vmatprep.subr.bf16.mxu0 %v11616_v57  ;;  %v3291_v29 = vshll.u32 %v23240_v53, 16  ;;  %v3261_v25 = vrot.slane %v3260_v39, 4  ;;  %v23305_v14 = vld [vmem:[%s27109_s0 + $0xc0] sm:$0xe] }
 0x1ef   :  { %v3284_v11 = vrot.slane %v3282_v27, 4  ;;  %v3287_v34 = vrot.slane %v3285_v31, 5  ;;  %v3296_v30 = vshrl.u32 %v16273_v1, 16  ;;  %v3274_v61 = vor.u32 %v3273_v4, %v3270_v15  ;;  %v23314_v4 = vld [vmem:[%s27109_s0 + $0xc8] sm:$0xe] }
 0x1f0   :  { %18533 = vmatprep.mubr.msk.bf16.mxu1 %vm89_vm2, %v16284_v0  ;;  %v3293_v21 = vrot.slane %v3291_v29, 5  ;;  %v3299_v5 = vshll.u32 %v16273_v1, 16  ;;  %v3305_v50 = vshll.u32 %v23259_v37, 16  ;;  %v3266_v42 = vsel %vm20370_vm5, %v3261_v25, %v3265_v33  ;;  %v20161_v29 = vld [vmem:[%s27109_s0 + $0xb4] sm:$0x1] }
 0x1f1   :  { %v3288_v51 = vor.u32 %v3287_v34, %v3284_v11  ;;  %v3298_v17 = vrot.slane %v3296_v30, 4  ;;  %v3310_v9 = vshrl.u32 %v16275_v10, 16  ;;  %v3275_v48 = vrot.slane %v3274_v61, 4  ;;  %v20162_v11 = vld [vmem:[%s27109_s0 + $0xbc] sm:$0x1] }
 0x1f2   :  { %v3301_v19 = vrot.slane %v3299_v5, 5  ;;  %v3307_v60 = vrot.slane %v3305_v50, 5  ;;  %v3313_v49 = vshll.u32 %v16275_v10, 16  ;;  %v3319_v63 = vshll.u32 %v23271_v47, 16  ;;  %v20051_v30 = vld [vmem:[%s27109_s0 + $0x220] ss:$8 sps:$4 sm:$0xff]  }
 0x1f3   :  { %v3289_v54 = vrot.slane %v3288_v51, 4  ;;  %v3312_v32 = vrot.slane %v3310_v9, 4  ;;  %v3324_v44 = vshrl.u32 %v16277_v59, 16  ;;  %v3280_v40 = vsel %vm20370_vm5, %v3275_v48, %v3279_v12  ;;  %18976 = vmatmul.mubr.msk.bf16.vlgmr.msra.gmra.mrb[0].mxu0 %vm89_vm2, %v20048_v35  ;;  %v16377_v12 = vld [vmem:[%s27110_s1 + $0x18] sm:$0x3] }
 0x1f4   :  { %v3302_v33 = vor.u32 %v3301_v19, %v3298_v17  ;;  %v3315_v15 = vrot.slane %v3313_v49, 5  ;;  %v3327_v23 = vshll.u32 %v16277_v59, 16  ;;  %v16285_v18 = vcombine.low %v3266_v42, %v3280_v40  ;;  %18992 = vmatpush3.bf16.msra.mxu0 %v11616_v57  ;;  %18979 = vmatprep.mubr.msk.bf16.mxu0 %vm89_vm2, %v20049_v20  ;;  %v20050_v57 = vld [vmem:[%s27109_s0 + $0xf0] ss:$8 sps:$4 sm:$0xff]   ;;  %v23351_v19 = vld [vmem:[%s27109_s0 + $0xe0] sm:$0xe] }
 0x1f5   :  { %v3294_v13 = vsel %vm20370_vm5, %v3289_v54, %v3293_v21  ;;  %v3321_v1 = vrot.slane %v3319_v63, 5  ;;  %v3326_v10 = vrot.slane %v3324_v44, 4  ;;  %v3333_v0 = vshll.u32 %v23283_v43, 16  ;;  %v23336_v20 = vld [vmem:[%s27109_s0 + $0xd0] sm:$0xe] }
 0x1f6   :  { %v3303_v39 = vrot.slane %v3302_v33, 4  ;;  %v3316_v27 = vor.u32 %v3315_v15, %v3312_v32  ;;  %v3329_v31 = vrot.slane %v3327_v23, 5  ;;  %18534 = vmatmul.mubr.msk.bf16.gmra.mrb[8].mxu1 %vm89_vm2, %v16285_v18  ;;  %v16312_v35 = vrot.slane %v23288_v58, 9  ;;  %v23341_v42 = vld [vmem:[%s27109_s0 + $0xd8] sm:$0xe] }
 0x1f7   :  { %v3553_v59 = vrot.slane %v20161_v29, 5  ;;  %v16313_v25 = vrot.slane %v23293_v41, 9  ;;  %v3557_v34 = vrot.slane %v20162_v11, 5  ;;  %v3335_v50 = vrot.slane %v3333_v0, 5  ;;  %v20163_v63 = vld [vmem:[%s27109_s0 + $0xc4] sm:$0x1] }
 0x1f8   :  { %v3308_v61 = vsel %vm20370_vm5, %v3303_v39, %v3307_v60  ;;  %v3317_v21 = vrot.slane %v3316_v27, 4  ;;  %v3330_v5 = vor.u32 %v3329_v31, %v3326_v10  ;;  %v16314_v48 = vrot.slane %v23305_v14, 9  ;;  %v23356_v60 = vld [vmem:[%s27109_s0 + $0xe8] sm:$0xe]  ;;  %v16304_v40 = vld [vmem:[%s27109_s0 + $0x210] sm:$0xe] }
 0x1f9   :  { %v16286_v51 = vcombine.low %v3294_v13, %v3308_v61  ;;  %v3554_v17 = vsel %vm20439_vm8, %v16312_v35, %v3553_v59  ;;  %v3558_v9 = vsel %vm20439_vm8, %v16313_v25, %v3557_v34  ;;  %v3561_v44 = vrot.slane %v20163_v63, 5  ;;  %v20164_v15 = vld [vmem:[%s27109_s0 + $0xcc] sm:$0x1]  ;;  %v20165_v39 = vld [vmem:[%s27109_s0 + $0xd4] sm:$0x1] }
 0x1fa   :  { %v3322_v49 = vsel %vm20370_vm5, %v3317_v21, %v3321_v1  ;;  %v3331_v54 = vrot.slane %v3330_v5, 4  ;;  %v16329_v32 = vcombine.low %v3554_v17, %v3558_v9  ;;  %v16315_v33 = vrot.slane %v23314_v4, 9  ;;  %v16305_v0 = vld [vmem:[%s27109_s0 + $0x218] sm:$0xe]  ;;  %v20166_v29 = vld [vmem:[%s27109_s0 + $0xdc] sm:$0x1] }
 0x1fb   :  { %18537 = vmatprep.mubr.msk.bf16.mxu1 %vm89_vm2, %v16286_v51  ;;  %v3565_v23 = vrot.slane %v20164_v15, 5  ;;  %v23372_v18 = vand.u32 %v16377_v12, %v20305_v3  ;;  %v16316_v13 = vrot.slane %v23336_v20, 9  ;;  %18980 = vmatmul.mubr.msk.bf16.gmra.mrb[4].mxu0 %vm89_vm2, %v20050_v57  ;;  %v23380_v10 = vsel %vm20439_vm8, %v16314_v48, %v3561_v44  ;;  %v16306_v12 = vld [vmem:[%s27109_s0 + $0x220] sm:$0xe]  ;;  %v16307_v11 = vld [vmem:[%s27109_s0 + $0x228] sm:$0xe] }
 0x1fc   :  { %v3336_v1 = vsel %vm20370_vm5, %v3331_v54, %v3335_v50  ;;  %v3569_v27 = vrot.slane %v20165_v39, 5  ;;  %v16317_v31 = vrot.slane %v23341_v42, 9  ;;  %18983 = vmatprep.mubr.msk.bf16.mxu0 %vm89_vm2, %v20051_v30  ;;  %v3573_v59 = vrot.slane %v20166_v29, 5  ;;  %v20052_v61 = vld [vmem:[%s27109_s0 + $0x230] ss:$8 sps:$4 sm:$0xff]  }
 0x1fd   :  { %v16287_v57 = vcombine.low %v3322_v49, %v3336_v1  ;;  %v23394_v35 = vsel %vm20439_vm8, %v16315_v33, %v3565_v23  ;;  %18559 = vmatprep.subr.bf16.mxu1 %v23372_v18  ;;  %v16318_v25 = vrot.slane %v23351_v19, 9  ;;  %v20167_v21 = vld [vmem:[%s27109_s0 + $0xe4] sm:$0x1]  ;;  %v16319_v50 = vrot.slane %v23356_v60, 9  ;;  %v17410_v51 = vld [vmem:[%s27110_s1 + $0x4a] sm:$0x3] }
 0x1fe   :  { %v16330_v34 = vcombine.low %v23380_v10, %v23394_v35  ;;  %v23412_v30 = vsel %vm20439_vm8, %v16316_v13, %v3569_v27  ;;  %v3577_v5 = vrot.slane %v20167_v21, 5  ;;  %v16308_v17 = vld [vmem:[%s27109_s0 + $0x230] sm:$0xe]  ;;  %v23427_v9 = vsel %vm20439_vm8, %v16317_v31, %v3573_v59  ;;  %v20168_v48 = vld [vmem:[%s27109_s0 + $0xec] sm:$0x1] }
 0x1ff   :  { %18538 = vmatmul.mubr.msk.bf16.gmra.mrb[12].mxu1 %vm89_vm2, %v16287_v57  ;;  %v3581_v49 = vrot.slane %v20168_v48, 5  ;;  %v20053_v54 = vld [vmem:[%s27109_s0 + $0x240] ss:$8 sps:$4 sm:$0xff]   ;;  %v16320_v63 = vrot.slane %v16304_v40, 9  ;;  %v20169_v44 = vld [vmem:[%s27109_s0 + $0x214] sm:$0x1]  ;;  %v16331_v23 = vcombine.low %v23412_v30, %v23427_v9 }
 0x200   :  { %v3585_v33 = vrot.slane %v20169_v44, 5  ;;  %v16309_v15 = vld [vmem:[%s27109_s0 + $0x238] sm:$0xe]  ;;  %18543 = vmatprep.mubr.msk.bf16.mxu1 %vm89_vm2, %v16329_v32  ;;  %v23446_v13 = vsel %vm20439_vm8, %v16318_v25, %v3577_v5  ;;  %v16321_v1 = vrot.slane %v16305_v0, 9  ;;  %v20170_v40 = vld [vmem:[%s27109_s0 + $0x21c] sm:$0x1] }
 0x201   :  { %v3589_v39 = vrot.slane %v20170_v40, 5  ;;  %v16310_v27 = vld [vmem:[%s27109_s0 + $0x240] sm:$0xe]  ;;  %v16311_v32 = vld [vmem:[%s27109_s0 + $0x248] sm:$0xe]  ;;  %v23459_v31 = vsel %vm20439_vm8, %v16319_v50, %v3581_v49  ;;  %v16322_v57 = vrot.slane %v16306_v12, 9  ;;  %v23487_v49 = vand.u32 %v17410_v51, %v20305_v3 }
 0x202   :  { %v23463_v0 = vsel %vm20439_vm8, %v16320_v63, %v3585_v33  ;;  %v20171_v29 = vld [vmem:[%s27109_s0 + $0x224] sm:$0x1]  ;;  %v16345_v25 = vld [vmem:[%s27109_s0 + $0x108] sm:$0xe]  ;;  %v16332_v30 = vcombine.low %v23446_v13, %v23459_v31  ;;  %v16323_v5 = vrot.slane %v16307_v11, 9  ;;  %v16324_v63 = vrot.slane %v16308_v17, 9 }
 0x203   :  { %v3593_v59 = vrot.slane %v20171_v29, 5  ;;  %v23475_v21 = vsel %vm20439_vm8, %v16321_v1, %v3589_v39  ;;  %v20172_v12 = vld [vmem:[%s27109_s0 + $0x22c] sm:$0x1]  ;;  %v16346_v11 = vld [vmem:[%s27109_s0 + $0x110] sm:$0xe]  ;;  %18984 = vmatmul.mubr.msk.bf16.gmra.mrb[8].mxu0 %vm89_vm2, %v20052_v61  ;;  %v16325_v17 = vrot.slane %v16309_v15, 9  ;;  %19009 = vmatprep.subr.bf16.mxu0 %v23487_v49 }
 0x204   :  { %v3597_v50 = vrot.slane %v20172_v12, 5  ;;  %v16333_v9 = vcombine.low %v23463_v0, %v23475_v21  ;;  %v16347_v44 = vld [vmem:[%s27109_s0 + $0x118] sm:$0xe]  ;;  %v20173_v51 = vld [vmem:[%s27109_s0 + $0x234] sm:$0x1]  ;;  %18987 = vmatprep.mubr.msk.bf16.mxu0 %vm89_vm2, %v20053_v54  ;;  %v16326_v29 = vrot.slane %v16310_v27, 9 }
 0x205   :  { %v23484_v48 = vsel %vm20439_vm8, %v16322_v57, %v3593_v59  ;;  %v3601_v1 = vrot.slane %v20173_v51, 5  ;;  %v20174_v40 = vld [vmem:[%s27109_s0 + $0x23c] sm:$0x1]  ;;  %v16348_v57 = vld [vmem:[%s27109_s0 + $0x120] sm:$0xe]  ;;  %v3875_v0 = vrot.slane %v23222_v62, 5 }
 0x206   :  { %v23498_v33 = vsel %vm20439_vm8, %v16323_v5, %v3597_v50  ;;  %v3605_v39 = vrot.slane %v20174_v40, 5  ;;  %v20175_v15 = vld [vmem:[%s27109_s0 + $0x244] sm:$0x1]  ;;  %v16327_v5 = vrot.slane %v16311_v32, 9  ;;  %v16410_v12 = vld [vmem:[%s27110_s1 + $0x1a] sm:$0x3] }
 0x207   :  { %v16334_v61 = vcombine.low %v23484_v48, %v23498_v33  ;;  %v3609_v59 = vrot.slane %v20175_v15, 5  ;;  %v20054_v54 = vld [vmem:[%s27109_s0 + $0x250] ss:$8 sps:$4 sm:$0xff]   ;;  %v23524_v50 = vsel %vm20439_vm8, %v16324_v63, %v3601_v1  ;;  %v20176_v32 = vld [vmem:[%s27109_s0 + $0x24c] sm:$0x1]  ;;  %v16361_v40 = vrot.slane %v16345_v25, 9  ;;  %18544 = vmatmul.mubr.msk.bf16.vlgmr.msra.gmra.mrb[0].mxu1 %vm89_vm2, %v16330_v34 }
 0x208   :  { %v23528_v27 = vsel %vm20439_vm8, %v16325_v17, %v3605_v39  ;;  %v3613_v51 = vrot.slane %v20176_v32, 5  ;;  %v20055_v63 = vld [vmem:[%s27109_s0 + $0x118] ss:$8 sps:$4 sm:$0xff]   ;;  %v3831_v39 = vrot.slane %v23030_v56, 5  ;;  %v16362_v15 = vrot.slane %v16346_v11, 9  ;;  %18560 = vmatpush3.bf16.msra.mxu1 %v23372_v18  ;;  %18547 = vmatprep.mubr.msk.bf16.mxu1 %vm89_vm2, %v16331_v23 }
 0x209   :  { %v16335_v1 = vcombine.low %v23524_v50, %v23528_v27  ;;  %v23544_v17 = vsel %vm20439_vm8, %v16326_v29, %v3609_v59  ;;  %v16349_v10 = vld [vmem:[%s27109_s0 + $0x128] sm:$0xe]  ;;  %v16350_v35 = vld [vmem:[%s27109_s0 + $0x130] sm:$0xe]  ;;  %v3835_v25 = vrot.slane %v23038_v8, 5  ;;  %v16363_v56 = vrot.slane %v16347_v44, 9 }
 0x20a   :  { %v23557_v34 = vsel %vm20439_vm8, %v16327_v5, %v3613_v51  ;;  %v3839_v11 = vrot.slane %v23050_v2, 5  ;;  %v16351_v29 = vld [vmem:[%s27109_s0 + $0x138] sm:$0xe]  ;;  %v23568_v18 = vsel %vm20439_vm8, %v16361_v40, %v3831_v39  ;;  %v16364_v23 = vrot.slane %v16348_v57, 9  ;;  %v16352_v8 = vld [vmem:[%s27109_s0 + $0x140] sm:$0xe] }
 0x20b   :  { %v3843_v5 = vrot.slane %v23061_v52, 5  ;;  %v16353_v2 = vld [vmem:[%s27109_s0 + $0x268] sm:$0xe]  ;;  %v23579_v44 = vsel %vm20439_vm8, %v16362_v15, %v3835_v25  ;;  %v23586_v57 = vand.u32 %v16410_v12, %v20305_v3  ;;  %v16365_v52 = vrot.slane %v16349_v10, 9  ;;  %v16354_v51 = vld [vmem:[%s27109_s0 + $0x270] sm:$0xe]  ;;  %18988 = vmatmul.mubr.msk.bf16.gmra.mrb[12].mxu0 %vm89_vm2, %v20054_v54 }
 0x20c   :  { %v23583_v32 = vsel %vm20439_vm8, %v16363_v56, %v3839_v11  ;;  %v16355_v40 = vld [vmem:[%s27109_s0 + $0x278] sm:$0xe]  ;;  %v16378_v39 = vcombine.low %v23568_v18, %v23579_v44  ;;  %v3847_v25 = vrot.slane %v23112_v28, 5  ;;  %v16366_v12 = vrot.slane %v16350_v35, 9  ;;  %18993 = vmatprep.mubr.msk.bf16.mxu0 %vm89_vm2, %v20055_v63  ;;  %v17381_v13 = vld [vmem:[%s27109_s0 + $0xcc] sm:$0x1] }
 0x20d   :  { %v23598_v15 = vsel %vm20439_vm8, %v16364_v23, %v3843_v5  ;;  %18577 = vmatprep.subr.bf16.mxu1 %v23586_v57  ;;  %v3851_v56 = vrot.slane %v23122_v22, 5  ;;  %v16367_v11 = vrot.slane %v16351_v29, 9  ;;  %v3855_v59 = vrot.slane %v23134_v46, 5  ;;  %v17378_v23 = vld [vmem:[%s27109_s0 + $0xc0] sm:$0xf] }
 0x20e   :  { %v23613_v28 = vsel %vm20439_vm8, %v16365_v52, %v3847_v25  ;;  %v16368_v54 = vrot.slane %v16352_v8, 9  ;;  %v3859_v35 = vrot.slane %v23145_v38, 5  ;;  %v16369_v5 = vrot.slane %v16353_v2, 9  ;;  %v16356_v22 = vld [vmem:[%s27109_s0 + $0x280] sm:$0xe] }
 0x20f   :  { %v20056_v46 = vld [vmem:[%s27109_s0 + $0x128] ss:$8 sps:$4 sm:$0xff]   ;;  %v23624_v29 = vsel %vm20439_vm8, %v16366_v12, %v3851_v56  ;;  %v23628_v63 = vsel %vm20439_vm8, %v16367_v11, %v3855_v59  ;;  %v3863_v8 = vrot.slane %v23192_v55, 5  ;;  %v16370_v38 = vrot.slane %v16354_v51, 9  ;;  %v17379_v2 = vld [vmem:[%s27109_s0 + $0xc4] sm:$0x1]  ;;  %18548 = vmatmul.mubr.msk.bf16.gmra.mrb[4].mxu1 %vm89_vm2, %v16332_v30 }
 0x210   :  { %v17380_v52 = vld [vmem:[%s27109_s0 + $0xc8] sm:$0xf]  ;;  %v20057_v59 = vld [vmem:[%s27109_s0 + $0x138] ss:$8 sps:$4 sm:$0xff]   ;;  %v23648_v51 = vsel %vm20439_vm8, %v16368_v54, %v3859_v35  ;;  %v3867_v25 = vrot.slane %v23202_v26, 5  ;;  %v16371_v12 = vrot.slane %v16355_v40, 9  ;;  %18551 = vmatprep.mubr.msk.bf16.mxu1 %vm89_vm2, %v16333_v9 }
 0x211   :  { %v23662_v30 = vsel %vm20439_vm8, %v16369_v5, %v3863_v8  ;;  %v3871_v56 = vrot.slane %v23212_v6, 5  ;;  %v16372_v26 = vrot.slane %v16356_v22, 9  ;;  %v17382_v40 = vld [vmem:[%s27109_s0 + $0xd0] sm:$0xf]  ;;  %v11764_v21 = vshrl.u32 %v17378_v23, 16 }
 0x212   :  { %v23670_v11 = vsel %vm20439_vm8, %v16370_v38, %v3867_v25  ;;  %v11767_v9 = vshll.u32 %v17378_v23, 16  ;;  %v17383_v54 = vld [vmem:[%s27109_s0 + $0xd4] sm:$0x1]  ;;  %v11773_v5 = vshll.u32 %v17379_v2, 16  ;;  %v11778_v22 = vshrl.u32 %v17380_v52, 16 }
 0x213   :  { %v23680_v35 = vsel %vm20439_vm8, %v16371_v12, %v3871_v56  ;;  %v17459_v8 = vld [vmem:[%s27110_s1 + $0x4c] sm:$0x3]  ;;  %v17384_v62 = vld [vmem:[%s27109_s0 + $0xd8] sm:$0xf]  ;;  %v23690_v23 = vsel %vm20439_vm8, %v16372_v26, %v3875_v0  ;;  %v11766_v38 = vrot.slane %v11764_v21, 4  ;;  %v11781_v6 = vshll.u32 %v17380_v52, 16  ;;  %18994 = vmatmul.mubr.msk.bf16.vlgmr.msra.gmra.mrb[0].mxu0 %vm89_vm2, %v20056_v46 }
 0x214   :  { %v11769_v25 = vrot.slane %v11767_v9, 5  ;;  %v17385_v2 = vld [vmem:[%s27109_s0 + $0xdc] sm:$0x1]  ;;  %v11775_v56 = vrot.slane %v11773_v5, 5  ;;  %v11780_v31 = vrot.slane %v11778_v22, 4  ;;  %v11787_v55 = vshll.u32 %v17381_v13, 16  ;;  %19010 = vmatpush3.bf16.msra.mxu0 %v23487_v49  ;;  %18997 = vmatprep.mubr.msk.bf16.mxu0 %vm89_vm2, %v20057_v59 }
 0x215   :  { %v16357_v26 = vld [vmem:[%s27109_s0 + $0x288] sm:$0xe]  ;;  %v11783_v0 = vrot.slane %v11781_v6, 5  ;;  %v23704_v21 = vand.u32 %v17459_v8, %v20305_v3  ;;  %v11792_v46 = vshrl.u32 %v17382_v40, 16  ;;  %v16358_v9 = vld [vmem:[%s27109_s0 + $0x290] sm:$0xe] }
 0x216   :  { %v11770_v52 = vor.u32 %v11769_v25, %v11766_v38  ;;  %v20058_v13 = vld [vmem:[%s27109_s0 + $0x148] ss:$8 sps:$4 sm:$0xff]   ;;  %v11789_v5 = vrot.slane %v11787_v55, 5  ;;  %v11795_v22 = vshll.u32 %v17382_v40, 16  ;;  %v11801_v12 = vshll.u32 %v17383_v54, 16 }
 0x217   :  { %v11806_v49 = vshrl.u32 %v17384_v62, 16  ;;  %v16359_v59 = vld [vmem:[%s27109_s0 + $0x298] sm:$0xe]  ;;  %18552 = vmatmul.mubr.msk.bf16.gmra.mrb[8].mxu1 %vm89_vm2, %v16334_v61  ;;  %v11784_v38 = vor.u32 %v11783_v0, %v11780_v31  ;;  %19027 = vmatprep.subr.bf16.mxu0 %v23704_v21  ;;  %v11794_v55 = vrot.slane %v11792_v46, 4  ;;  %v11809_v40 = vshll.u32 %v17384_v62, 16 }
 0x218   :  { %v20059_v6 = vld [vmem:[%s27109_s0 + $0x278] ss:$8 sps:$4 sm:$0xff]   ;;  %v11771_v8 = vrot.slane %v11770_v52, 4  ;;  %18555 = vmatprep.mubr.msk.bf16.mxu1 %vm89_vm2, %v16335_v1  ;;  %v11797_v54 = vrot.slane %v11795_v22, 5  ;;  %v11803_v25 = vrot.slane %v11801_v12, 5  ;;  %v11815_v33 = vshll.u32 %v17385_v2, 16 }
 0x219   :  { %v11808_v48 = vrot.slane %v11806_v49, 4  ;;  %v16360_v61 = vld [vmem:[%s27109_s0 + $0x2a0] sm:$0xe]  ;;  %v11785_v52 = vrot.slane %v11784_v38, 4  ;;  %v11811_v0 = vrot.slane %v11809_v40, 5  ;;  %v16373_v46 = vrot.slane %v16357_v26, 9 }
 0x21a   :  { %v11776_v31 = vsel %vm20370_vm5, %v11771_v8, %v11775_v56  ;;  %v17386_v50 = vld [vmem:[%s27109_s0 + $0xe0] sm:$0xf]  ;;  %v11798_v27 = vor.u32 %v11797_v54, %v11794_v55  ;;  %v11817_v1 = vrot.slane %v11815_v33, 5  ;;  %v3879_v62 = vrot.slane %v23240_v53, 5  ;;  %v17387_v53 = vld [vmem:[%s27109_s0 + $0xe4] sm:$0x1] }
 0x21b   :  { %v16374_v12 = vrot.slane %v16358_v9, 9  ;;  %v11790_v2 = vsel %vm20370_vm5, %v11785_v52, %v11789_v5  ;;  %v11812_v22 = vor.u32 %v11811_v0, %v11808_v48  ;;  %v3883_v49 = vrot.slane %v23259_v37, 5  ;;  %18998 = vmatmul.mubr.msk.bf16.gmra.mrb[4].mxu0 %vm89_vm2, %v20058_v13  ;;  %v17390_v48 = vld [vmem:[%s27109_s0 + $0xf0] sm:$0xf]  ;;  %v17391_v0 = vld [vmem:[%s27109_s0 + $0xf4] sm:$0x1] }
 0x21c   :  { %v16375_v10 = vrot.slane %v16359_v59, 9  ;;  %v23740_v56 = vcombine.low %v11776_v31, %v11790_v2  ;;  %v11799_v26 = vrot.slane %v11798_v27, 4  ;;  %v23744_v8 = vsel %vm20439_vm8, %v16373_v46, %v3879_v62  ;;  %19001 = vmatprep.mubr.msk.bf16.mxu0 %vm89_vm2, %v20059_v6  ;;  %v17388_v59 = vld [vmem:[%s27109_s0 + $0xe8] sm:$0xf] }
 0x21d   :  { %v3887_v38 = vrot.slane %v23271_v47, 5  ;;  %v11813_v9 = vrot.slane %v11812_v22, 4  ;;  %v23753_v37 = vsel %vm20439_vm8, %v16374_v12, %v3883_v49  ;;  %v16376_v13 = vrot.slane %v16360_v61, 9  ;;  %v20060_v47 = vld [vmem:[%s27109_s0 + $0x288] ss:$8 sps:$4 sm:$0xff]  }
 0x21e   :  { %v3891_v5 = vrot.slane %v23283_v43, 5  ;;  %v11804_v55 = vsel %vm20370_vm5, %v11799_v26, %v11803_v25  ;;  %v16384_v6 = vcombine.low %v23744_v8, %v23753_v37  ;;  %v17389_v43 = vld [vmem:[%s27109_s0 + $0xec] sm:$0x1]  ;;  %v11820_v54 = vshrl.u32 %v17386_v50, 16  ;;  %v20061_v25 = vld [vmem:[%s27109_s0 + $0x298] ss:$8 sps:$4 sm:$0xff]  }
 0x21f   :  { %v23768_v40 = vsel %vm20439_vm8, %v16375_v10, %v3887_v38  ;;  %v27144_v33 = vcombine.low %v23544_v17, %v23557_v34  ;;  %v11818_v10 = vsel %vm20370_vm5, %v11813_v9, %v11817_v1  ;;  %v11823_v31 = vshll.u32 %v17386_v50, 16  ;;  %v17392_v17 = vld [vmem:[%s27109_s0 + $0xf8] sm:$0xf]  ;;  %v17393_v1 = vld [vmem:[%s27109_s0 + $0xfc] sm:$0x1] }
 0x220   :  { %v23787_v61 = vsel %vm20439_vm8, %v16376_v13, %v3891_v5  ;;  %v11829_v52 = vshll.u32 %v17387_v53, 16  ;;  %v23799_v34 = vcombine.low %v11804_v55, %v11818_v10  ;;  %v11822_v50 = vrot.slane %v11820_v54, 4 }
 0x221   :  { %18556 = vmatmul.mubr.msk.bf16.gmra.mrb[12].mxu1 %vm89_vm2, %v27144_v33  ;;  %v16385_v46 = vcombine.low %v23768_v40, %v23787_v61  ;;  %v11834_v27 = vshrl.u32 %v17388_v59, 16  ;;  %v11825_v62 = vrot.slane %v11823_v31, 5  ;;  %v11837_v2 = vshll.u32 %v17388_v59, 16 }
 0x222   :  { %18561 = vmatprep.mubr.msk.bf16.mxu1 %vm89_vm2, %v16378_v39  ;;  %v11831_v12 = vrot.slane %v11829_v52, 5  ;;  %v11843_v22 = vshll.u32 %v17389_v43, 16  ;;  %v11848_v26 = vshrl.u32 %v17390_v48, 16  ;;  %v11851_v18 = vshll.u32 %v17390_v48, 16  ;;  %v16394_v39 = vld [vmem:[%s27109_s0 + $0xb4] sm:$0x3] }
 0x223   :  { %v11836_v49 = vrot.slane %v11834_v27, 4  ;;  %v11857_v44 = vshll.u32 %v17391_v0, 16  ;;  %v11826_v38 = vor.u32 %v11825_v62, %v11822_v50  ;;  %v11839_v53 = vrot.slane %v11837_v2, 5  ;;  %19002 = vmatmul.mubr.msk.bf16.gmra.mrb[8].mxu0 %vm89_vm2, %v20060_v47  ;;  %v20062_v47 = vld [vmem:[%s27109_s0 + $0x2a8] ss:$8 sps:$4 sm:$0xff]  }
 0x224   :  { %v11845_v9 = vrot.slane %v11843_v22, 5  ;;  %v11862_v13 = vshrl.u32 %v17392_v17, 16  ;;  %v11850_v5 = vrot.slane %v11848_v26, 4  ;;  %v11853_v55 = vrot.slane %v11851_v18, 5  ;;  %19005 = vmatprep.mubr.msk.bf16.mxu0 %vm89_vm2, %v20061_v25  ;;  %v16395_v2 = vld [vmem:[%s27109_s0 + $0xbc] sm:$0x3] }
 0x225   :  { %v11859_v54 = vrot.slane %v11857_v44, 5  ;;  %v11865_v33 = vshll.u32 %v17392_v17, 16  ;;  %v11827_v59 = vrot.slane %v11826_v38, 4  ;;  %v11840_v43 = vor.u32 %v11839_v53, %v11836_v49  ;;  %v16396_v53 = vld [vmem:[%s27109_s0 + $0xc4] sm:$0x3] }
 0x226   :  { %v11864_v48 = vrot.slane %v11862_v13, 4  ;;  %v11871_v10 = vshll.u32 %v17393_v1, 16  ;;  %v11854_v31 = vor.u32 %v11853_v55, %v11850_v5  ;;  %v4076_v0 = vshrl.u32 %v23288_v58, 16 }
 0x227   :  { %v11867_v52 = vrot.slane %v11865_v33, 5  ;;  %v4079_v50 = vshll.u32 %v23288_v58, 16  ;;  %v27145_v27 = vcombine.low %v23583_v32, %v23598_v15  ;;  %v11832_v25 = vsel %vm20370_vm5, %v11827_v59, %v11831_v12 }
 0x228   :  { %v11841_v17 = vrot.slane %v11840_v43, 4  ;;  %v11873_v1 = vrot.slane %v11871_v10, 5  ;;  %v4085_v62 = vshrl.u32 %v16394_v39, 16  ;;  %v27146_v58 = vcombine.low %v23613_v28, %v23624_v29 }
 0x229   :  { %18562 = vmatmul.mubr.msk.bf16.vlgmr.msra.gmra.mrb[0].mxu1 %vm89_vm2, %v27145_v27  ;;  %v11855_v32 = vrot.slane %v11854_v31, 4  ;;  %v11868_v15 = vor.u32 %v11867_v52, %v11864_v48  ;;  %v4078_v22 = vrot.slane %v4076_v0, 5  ;;  %v4081_v49 = vrot.slane %v4079_v50, 6 }
 0x22a   :  { %18578 = vmatpush3.bf16.msra.mxu1 %v23586_v57  ;;  %18565 = vmatprep.mubr.msk.bf16.mxu1 %vm89_vm2, %v27146_v58  ;;  %v11846_v12 = vsel %vm20370_vm5, %v11841_v17, %v11845_v9  ;;  %v4087_v26 = vrot.slane %v4085_v62, 5  ;;  %v4088_v18 = vshll.u32 %v16394_v39, 16  ;;  %v4094_v57 = vshrl.u32 %v23293_v41, 16  ;;  %v16443_v62 = vld [vmem:[%s27110_s1 + $0x1c] sm:$0x3] }
 0x22b   :  { %v17413_v44 = vcombine.low %v11832_v25, %v11846_v12  ;;  %v11860_v28 = vsel %vm20370_vm5, %v11855_v32, %v11859_v54  ;;  %v11869_v29 = vrot.slane %v11868_v15, 4  ;;  %v4082_v38 = vor.u32 %v4081_v49, %v4078_v22  ;;  %19006 = vmatmul.mubr.msk.bf16.gmra.mrb[12].mxu0 %vm89_vm2, %v20062_v47  ;;  %v17396_v22 = vld [vmem:[%s27109_s0 + $0x228] sm:$0xf] }
 0x22c   :  { %v4090_v13 = vrot.slane %v4088_v18, 6  ;;  %v4096_v5 = vrot.slane %v4094_v57, 5  ;;  %v4097_v55 = vshll.u32 %v23293_v41, 16  ;;  %v4103_v33 = vshrl.u32 %v16395_v2, 16  ;;  %19011 = vmatprep.mubr.msk.bf16.mxu0 %vm89_vm2, %v23740_v56  ;;  %v16397_v41 = vld [vmem:[%s27109_s0 + $0xcc] sm:$0x3] }
 0x22d   :  { %v11874_v39 = vsel %vm20370_vm5, %v11869_v29, %v11873_v1  ;;  %v4083_v9 = vrot.slane %v4082_v38, 4  ;;  %v4106_v59 = vshll.u32 %v16395_v2, 16  ;;  %v4112_v54 = vshrl.u32 %v23305_v14, 16  ;;  %v17395_v2 = vld [vmem:[%s27109_s0 + $0x224] sm:$0x1] }
 0x22e   :  { %v23845_v43 = vcombine.low %v11860_v28, %v11874_v39  ;;  %v4091_v48 = vor.u32 %v4090_v13, %v4087_v26  ;;  %v4099_v10 = vrot.slane %v4097_v55, 6  ;;  %v4105_v31 = vrot.slane %v4103_v33, 5  ;;  %v17397_v39 = vld [vmem:[%s27109_s0 + $0x22c] sm:$0x1] }
 0x22f   :  { %v4108_v52 = vrot.slane %v4106_v59, 6  ;;  %v4114_v0 = vrot.slane %v4112_v54, 5  ;;  %v4115_v50 = vshll.u32 %v23305_v14, 16  ;;  %v4121_v27 = vshrl.u32 %v16396_v53, 16  ;;  %v17394_v14 = vld [vmem:[%s27109_s0 + $0x220] sm:$0xf] }
 0x230   :  { %v27147_v47 = vcombine.low %v23628_v63, %v23648_v51  ;;  %v23857_v56 = vsel %vm20976_vm11, %v4083_v9, %v4091_v48  ;;  %v4100_v25 = vor.u32 %v4099_v10, %v4096_v5  ;;  %v4124_v17 = vshll.u32 %v16396_v53, 16  ;;  %v17398_v48 = vld [vmem:[%s27109_s0 + $0x230] sm:$0xf] }
 0x231   :  { %v4130_v1 = vshrl.u32 %v23314_v4, 16  ;;  %v27148_v63 = vcombine.low %v23662_v30, %v23670_v11  ;;  %v4109_v51 = vor.u32 %v4108_v52, %v4105_v31  ;;  %v4117_v58 = vrot.slane %v4115_v50, 6 }
 0x232   :  { %18566 = vmatmul.mubr.msk.bf16.gmra.mrb[4].mxu1 %vm89_vm2, %v27147_v47  ;;  %v4123_v32 = vrot.slane %v4121_v27, 5  ;;  %v4133_v15 = vshll.u32 %v23314_v4, 16  ;;  %v4101_v49 = vrot.slane %v4100_v25, 4  ;;  %v4126_v12 = vrot.slane %v4124_v17, 6  ;;  %v17401_v25 = vld [vmem:[%s27109_s0 + $0x23c] sm:$0x1] }
 0x233   :  { %18569 = vmatprep.mubr.msk.bf16.mxu1 %vm89_vm2, %v27148_v63  ;;  %v4132_v26 = vrot.slane %v4130_v1, 5  ;;  %v4139_v18 = vshrl.u32 %v16397_v41, 16  ;;  %v4118_v30 = vor.u32 %v4117_v58, %v4114_v0  ;;  %v4142_v57 = vshll.u32 %v16397_v41, 16  ;;  %19012 = vmatmul.mubr.msk.bf16.vlgmr.msra.gmra.mrb[0].mxu0 %vm89_vm2, %v23799_v34  ;;  %v16398_v58 = vld [vmem:[%s27109_s0 + $0xd4] sm:$0x3] }
 0x234   :  { %v4135_v11 = vrot.slane %v4133_v15, 6  ;;  %v23878_v28 = vand.u32 %v16443_v62, %v20305_v3  ;;  %v23882_v4 = vsel %vm20976_vm11, %v4101_v49, %v4109_v51  ;;  %v4127_v29 = vor.u32 %v4126_v12, %v4123_v32  ;;  %19028 = vmatpush3.bf16.msra.mxu0 %v23704_v21  ;;  %19015 = vmatprep.mubr.msk.bf16.mxu0 %vm89_vm2, %v17413_v44  ;;  %v17399_v21 = vld [vmem:[%s27109_s0 + $0x234] sm:$0x1]  ;;  %v17400_v44 = vld [vmem:[%s27109_s0 + $0x238] sm:$0xf] }
 0x235   :  { %v4141_v38 = vrot.slane %v4139_v18, 5  ;;  %v11876_v53 = vshrl.u32 %v17394_v14, 16  ;;  %v16411_v13 = vcombine.low %v23857_v56, %v23882_v4  ;;  %v4119_v5 = vrot.slane %v4118_v30, 4 }
 0x236   :  { %v4136_v55 = vor.u32 %v4135_v11, %v4132_v26  ;;  %v4144_v33 = vrot.slane %v4142_v57, 6  ;;  %18595 = vmatprep.subr.bf16.mxu1 %v23878_v28  ;;  %v11879_v59 = vshll.u32 %v17394_v14, 16  ;;  %v11885_v54 = vshll.u32 %v17395_v2, 16 }
 0x237   :  { %v11878_v9 = vrot.slane %v11876_v53, 4  ;;  %v11890_v34 = vshrl.u32 %v17396_v22, 16  ;;  %v23899_v10 = vsel %vm20976_vm11, %v4119_v5, %v4127_v29  ;;  %v11893_v41 = vshll.u32 %v17396_v22, 16 }
 0x238   :  { %v4137_v31 = vrot.slane %v4136_v55, 4  ;;  %v4145_v52 = vor.u32 %v4144_v33, %v4141_v38  ;;  %v27149_v0 = vcombine.low %v23680_v35, %v23690_v23  ;;  %v11881_v50 = vrot.slane %v11879_v59, 5 }
 0x239   :  { %v11887_v27 = vrot.slane %v11885_v54, 5  ;;  %v11892_v47 = vrot.slane %v11890_v34, 4  ;;  %v11899_v56 = vshll.u32 %v17397_v39, 16  ;;  %v11895_v35 = vrot.slane %v11893_v41, 5 }
 0x23a   :  { %18570 = vmatmul.mubr.msk.bf16.gmra.mrb[8].mxu1 %vm89_vm2, %v27149_v0  ;;  %v23920_v17 = vsel %vm20976_vm11, %v4137_v31, %v4145_v52  ;;  %v11904_v23 = vshrl.u32 %v17398_v48, 16  ;;  %v11907_v1 = vshll.u32 %v17398_v48, 16  ;;  %v11882_v14 = vor.u32 %v11881_v50, %v11878_v9  ;;  %v16400_v52 = vld [vmem:[%s27109_s0 + $0xe4] sm:$0x3] }
 0x23b   :  { %18573 = vmatprep.mubr.msk.bf16.mxu1 %vm89_vm2, %v16384_v6  ;;  %v16412_v62 = vcombine.low %v23899_v10, %v23920_v17  ;;  %v11901_v63 = vrot.slane %v11899_v56, 5  ;;  %v11913_v51 = vshll.u32 %v17399_v21, 16  ;;  %v11896_v8 = vor.u32 %v11895_v35, %v11892_v47  ;;  %19016 = vmatmul.mubr.msk.bf16.gmra.mrb[4].mxu0 %vm89_vm2, %v23845_v43  ;;  %v16399_v43 = vld [vmem:[%s27109_s0 + $0xdc] sm:$0x3]  ;;  %v16401_v35 = vld [vmem:[%s27109_s0 + $0xec] sm:$0x3] }
 0x23c   :  { %v11906_v37 = vrot.slane %v11904_v23, 4  ;;  %v11909_v6 = vrot.slane %v11907_v1, 5  ;;  %v11918_v32 = vshrl.u32 %v17400_v44, 16  ;;  %v11883_v15 = vrot.slane %v11882_v14, 4  ;;  %v17404_v10 = vld [vmem:[%s27109_s0 + $0x248] sm:$0xf] }
 0x23d   :  { %v11915_v2 = vrot.slane %v11913_v51, 5  ;;  %v11921_v22 = vshll.u32 %v17400_v44, 16  ;;  %v11927_v49 = vshll.u32 %v17401_v25, 16  ;;  %v11897_v12 = vrot.slane %v11896_v8, 4 }
 0x23e   :  { %v11910_v26 = vor.u32 %v11909_v6, %v11906_v37  ;;  %v11920_v18 = vrot.slane %v11918_v32, 4  ;;  %v4148_v30 = vshrl.u32 %v23336_v20, 16  ;;  %v11888_v11 = vsel %vm20370_vm5, %v11883_v15, %v11887_v27  ;;  %v17402_v32 = vld [vmem:[%s27109_s0 + $0x240] sm:$0xf] }
 0x23f   :  { %v11923_v57 = vrot.slane %v11921_v22, 5  ;;  %v11929_v4 = vrot.slane %v11927_v49, 5  ;;  %v4151_v29 = vshll.u32 %v23336_v20, 16  ;;  %v11902_v38 = vsel %vm20370_vm5, %v11897_v12, %v11901_v63  ;;  %v23973_v49 = vld [vmem:[%s27109_s0 + $0x244] sm:$0x1] }
 0x240   :  { %v11911_v53 = vrot.slane %v11910_v26, 4  ;;  %v4150_v5 = vrot.slane %v4148_v30, 5  ;;  %v4157_v55 = vshrl.u32 %v16398_v58, 16  ;;  %v17415_v33 = vcombine.low %v11888_v11, %v11902_v38 }
 0x241   :  { %v11924_v39 = vor.u32 %v11923_v57, %v11920_v18  ;;  %v4153_v9 = vrot.slane %v4151_v29, 6  ;;  %v4160_v59 = vshll.u32 %v16398_v58, 16  ;;  %v4166_v34 = vshrl.u32 %v23341_v42, 16 }
 0x242   :  { %18574 = vmatmul.mubr.msk.bf16.gmra.mrb[12].mxu1 %vm89_vm2, %v16385_v46  ;;  %v11916_v20 = vsel %vm20370_vm5, %v11911_v53, %v11915_v2  ;;  %v4159_v54 = vrot.slane %v4157_v55, 5  ;;  %v4169_v48 = vshll.u32 %v23341_v42, 16  ;;  %19019 = vmatprep.mubr.msk.bf16.mxu0 %vm89_vm2, %v17415_v33  ;;  %v4175_v46 = vshrl.u32 %v16399_v43, 16  ;;  %v17406_v33 = vld [vmem:[%s27109_s0 + $0x250] sm:$0xf] }
 0x243   :  { %18579 = vmatprep.mubr.msk.bf16.mxu1 %vm89_vm2, %v16411_v13  ;;  %v11925_v31 = vrot.slane %v11924_v39, 4  ;;  %v4154_v40 = vor.u32 %v4153_v9, %v4150_v5  ;;  %v4162_v61 = vrot.slane %v4160_v59, 6  ;;  %v4168_v41 = vrot.slane %v4166_v34, 5 }
 0x244   :  { %v4171_v13 = vrot.slane %v4169_v48, 6  ;;  %v4178_v21 = vshll.u32 %v16399_v43, 16  ;;  %v4184_v44 = vshrl.u32 %v23351_v19, 16  ;;  %v4177_v27 = vrot.slane %v4175_v46, 5 }
 0x245   :  { %v11930_v0 = vsel %vm20370_vm5, %v11925_v31, %v11929_v4  ;;  %v4155_v50 = vrot.slane %v4154_v40, 4  ;;  %v4163_v42 = vor.u32 %v4162_v61, %v4159_v54  ;;  %v4187_v14 = vshll.u32 %v23351_v19, 16  ;;  %v23994_v54 = vld [vmem:[%s27109_s0 + $0x254] sm:$0x1]  ;;  %v17408_v61 = vld [vmem:[%s27109_s0 + $0x258] sm:$0xf] }
 0x246   :  { %v17416_v47 = vcombine.low %v11916_v20, %v11930_v0  ;;  %v4172_v56 = vor.u32 %v4171_v13, %v4168_v41  ;;  %v4180_v25 = vrot.slane %v4178_v21, 6  ;;  %v4186_v23 = vrot.slane %v4184_v44, 5  ;;  %v24007_v0 = vld [vmem:[%s27109_s0 + $0x25c] sm:$0x1] }
 0x247   :  { %v4164_v1 = vsel %vm20976_vm11, %v4155_v50, %v4163_v42  ;;  %v4193_v63 = vshrl.u32 %v16400_v52, 16  ;;  %v4196_v51 = vshll.u32 %v16400_v52, 16  ;;  %v4202_v37 = vshrl.u32 %v23356_v60, 16 }
 0x248   :  { %19020 = vmatmul.mubr.msk.bf16.gmra.mrb[8].mxu0 %vm89_vm2, %v17416_v47  ;;  %v4173_v58 = vrot.slane %v4172_v56, 4  ;;  %v4181_v8 = vor.u32 %v4180_v25, %v4177_v27  ;;  %v4205_v6 = vshll.u32 %v23356_v60, 16  ;;  %v4189_v19 = vrot.slane %v4187_v14, 6 }
 0x249   :  { %v4195_v15 = vrot.slane %v4193_v63, 5  ;;  %v4198_v2 = vrot.slane %v4196_v51, 6  ;;  %v4211_v22 = vshrl.u32 %v16401_v35, 16  ;;  %v4204_v12 = vrot.slane %v4202_v37, 5  ;;  %v16402_v63 = vld [vmem:[%s27109_s0 + $0x214] sm:$0x3] }
 0x24a   :  { %18580 = vmatmul.mubr.msk.bf16.vlgmr.msra.gmra.mrb[0].mxu1 %vm89_vm2, %v16412_v62  ;;  %v4182_v60 = vsel %vm20976_vm11, %v4173_v58, %v4181_v8  ;;  %v4207_v26 = vrot.slane %v4205_v6, 6  ;;  %v4214_v18 = vshll.u32 %v16401_v35, 16  ;;  %v4190_v62 = vor.u32 %v4189_v19, %v4186_v23  ;;  %v20177_v37 = vld [vmem:[%s27109_s0 + $0x210] sm:$0xe] }
 0x24b   :  { %18596 = vmatpush3.bf16.msra.mxu1 %v23878_v28  ;;  %v16413_v17 = vcombine.low %v4164_v1, %v4182_v60  ;;  %v4199_v30 = vor.u32 %v4198_v2, %v4195_v15  ;;  %v4213_v11 = vrot.slane %v4211_v22, 5  ;;  %v23984_v28 = vld [vmem:[%s27109_s0 + $0x24c] sm:$0x1]  ;;  %v11932_v29 = vshrl.u32 %v17402_v32, 16  ;;  %v16403_v2 = vld [vmem:[%s27109_s0 + $0x21c] sm:$0x3] }
 0x24c   :  { %v4208_v57 = vor.u32 %v4207_v26, %v4204_v12  ;;  %v4216_v4 = vrot.slane %v4214_v18, 6  ;;  %v11935_v38 = vshll.u32 %v17402_v32, 16  ;;  %v4191_v53 = vrot.slane %v4190_v62, 4 }
 0x24d   :  { %18583 = vmatprep.mubr.msk.bf16.mxu1 %vm89_vm2, %v16413_v17  ;;  %v11941_v43 = vshll.u32 %v23973_v49, 16  ;;  %v11946_v5 = vshrl.u32 %v17404_v10, 16  ;;  %v11949_v55 = vshll.u32 %v17404_v10, 16  ;;  %v11934_v59 = vrot.slane %v11932_v29, 4 }
 0x24e   :  { %v4209_v39 = vrot.slane %v4208_v57, 4  ;;  %v4217_v9 = vor.u32 %v4216_v4, %v4213_v11  ;;  %v11937_v20 = vrot.slane %v11935_v38, 5  ;;  %v4200_v34 = vsel %vm20976_vm11, %v4191_v53, %v4199_v30  ;;  %v20178_v57 = vld [vmem:[%s27109_s0 + $0x218] sm:$0xe] }
 0x24f   :  { %v11943_v48 = vrot.slane %v11941_v43, 5  ;;  %v11948_v31 = vrot.slane %v11946_v5, 4  ;;  %v11951_v40 = vrot.slane %v11949_v55, 5  ;;  %v11955_v41 = vshll.u32 %v23984_v28, 16 }
 0x250   :  { %v4218_v46 = vsel %vm20976_vm11, %v4209_v39, %v4217_v9  ;;  %v11938_v52 = vor.u32 %v11937_v20, %v11934_v59  ;;  %v11960_v13 = vshrl.u32 %v17406_v33, 16  ;;  %v11963_v50 = vshll.u32 %v17406_v33, 16  ;;  %v16404_v20 = vld [vmem:[%s27109_s0 + $0x224] sm:$0x3] }
 0x251   :  { %v16414_v21 = vcombine.low %v4200_v34, %v4218_v46  ;;  %v11952_v44 = vor.u32 %v11951_v40, %v11948_v31  ;;  %v11969_v42 = vshll.u32 %v23994_v54, 16  ;;  %v11957_v47 = vrot.slane %v11955_v41, 5  ;;  %v20179_v40 = vld [vmem:[%s27109_s0 + $0x220] sm:$0xe] }
 0x252   :  { %v11939_v27 = vrot.slane %v11938_v52, 4  ;;  %v11962_v56 = vrot.slane %v11960_v13, 4  ;;  %v11974_v25 = vshrl.u32 %v17408_v61, 16  ;;  %v11965_v23 = vrot.slane %v11963_v50, 5  ;;  %v16405_v13 = vld [vmem:[%s27109_s0 + $0x22c] sm:$0x3] }
 0x253   :  { %18584 = vmatmul.mubr.msk.bf16.gmra.mrb[4].mxu1 %vm89_vm2, %v16414_v21  ;;  %v11953_v35 = vrot.slane %v11952_v44, 4  ;;  %v11971_v1 = vrot.slane %v11969_v42, 5  ;;  %v11977_v14 = vshll.u32 %v17408_v61, 16  ;;  %v11983_v8 = vshll.u32 %v24007_v0, 16 }
 0x254   :  { %v11944_v51 = vsel %vm20370_vm5, %v11939_v27, %v11943_v48  ;;  %v11976_v58 = vrot.slane %v11974_v25, 4  ;;  %v4220_v6 = vshrl.u32 %v20177_v37, 16  ;;  %v11966_v19 = vor.u32 %v11965_v23, %v11962_v56 }
 0x255   :  { %v11958_v32 = vsel %vm20370_vm5, %v11953_v35, %v11957_v47  ;;  %v11979_v15 = vrot.slane %v11977_v14, 5  ;;  %v4223_v22 = vshll.u32 %v20177_v37, 16  ;;  %v11985_v12 = vrot.slane %v11983_v8, 5  ;;  %v20180_v35 = vld [vmem:[%s27109_s0 + $0x228] sm:$0xe] }
 0x256   :  { %v17417_v60 = vcombine.low %v11944_v51, %v11958_v32  ;;  %v4222_v26 = vrot.slane %v4220_v6, 5  ;;  %v4229_v18 = vshrl.u32 %v16402_v63, 16  ;;  %v11967_v10 = vrot.slane %v11966_v19, 4  ;;  %v24056_v19 = vld [vmem:[%s27109_s0 + $0x11c] sm:$0x1] }
 0x257   :  { %v11980_v17 = vor.u32 %v11979_v15, %v11976_v58  ;;  %v4225_v62 = vrot.slane %v4223_v22, 6  ;;  %v4232_v30 = vshll.u32 %v16402_v63, 16  ;;  %v4238_v4 = vshrl.u32 %v20178_v57, 16  ;;  %v17427_v58 = vld [vmem:[%s27109_s0 + $0x118] sm:$0xf] }
 0x258   :  { %19023 = vmatprep.mubr.msk.bf16.mxu0 %vm89_vm2, %v17417_v60  ;;  %v4231_v11 = vrot.slane %v4229_v18, 5  ;;  %v4241_v29 = vshll.u32 %v20178_v57, 16  ;;  %v4247_v38 = vshrl.u32 %v16403_v2, 16  ;;  %v11972_v53 = vsel %vm20370_vm5, %v11967_v10, %v11971_v1  ;;  %v17429_v15 = vld [vmem:[%s27109_s0 + $0x120] sm:$0xf] }
 0x259   :  { %v11981_v43 = vrot.slane %v11980_v17, 4  ;;  %v4226_v5 = vor.u32 %v4225_v62, %v4222_v26  ;;  %v4234_v55 = vrot.slane %v4232_v30, 6  ;;  %v4240_v33 = vrot.slane %v4238_v4, 5  ;;  %v17431_v26 = vld [vmem:[%s27109_s0 + $0x128] sm:$0xf] }
 0x25a   :  { %v4243_v39 = vrot.slane %v4241_v29, 6  ;;  %v4249_v9 = vrot.slane %v4247_v38, 5  ;;  %v4250_v59 = vshll.u32 %v16403_v2, 16  ;;  %v4256_v61 = vshrl.u32 %v20179_v40, 16  ;;  %v24067_v17 = vld [vmem:[%s27109_s0 + $0x124] sm:$0x1] }
 0x25b   :  { %v11986_v34 = vsel %vm20370_vm5, %v11981_v43, %v11985_v12  ;;  %v4227_v48 = vrot.slane %v4226_v5, 4  ;;  %v4235_v31 = vor.u32 %v4234_v55, %v4231_v11  ;;  %v4259_v21 = vshll.u32 %v20179_v40, 16  ;;  %v17508_v38 = vld [vmem:[%s27110_s1 + $0x4e] sm:$0x3]  ;;  %v17433_v40 = vld [vmem:[%s27109_s0 + $0x130] sm:$0xf] }
 0x25c   :  { %v17418_v46 = vcombine.low %v11972_v53, %v11986_v34  ;;  %v4244_v52 = vor.u32 %v4243_v39, %v4240_v33  ;;  %v4252_v41 = vrot.slane %v4250_v59, 6  ;;  %v4258_v50 = vrot.slane %v4256_v61, 5  ;;  %v24079_v33 = vld [vmem:[%s27109_s0 + $0x12c] sm:$0x1] }
 0x25d   :  { %v4236_v44 = vsel %vm20976_vm11, %v4227_v48, %v4235_v31  ;;  %v4265_v42 = vshrl.u32 %v16404_v20, 16  ;;  %v4268_v27 = vshll.u32 %v16404_v20, 16  ;;  %v4261_v25 = vrot.slane %v4259_v21, 6 }
 0x25e   :  { %19024 = vmatmul.mubr.msk.bf16.gmra.mrb[12].mxu0 %vm89_vm2, %v17418_v46  ;;  %v4245_v47 = vrot.slane %v4244_v52, 4  ;;  %v4253_v56 = vor.u32 %v4252_v41, %v4249_v9  ;;  %v4274_v23 = vshrl.u32 %v20180_v35, 16  ;;  %v4277_v63 = vshll.u32 %v20180_v35, 16  ;;  %v24093_v41 = vld [vmem:[%s27109_s0 + $0x134] sm:$0x1] }
 0x25f   :  { %v4267_v1 = vrot.slane %v4265_v42, 5  ;;  %v4270_v14 = vrot.slane %v4268_v27, 6  ;;  %v4283_v51 = vshrl.u32 %v16405_v13, 16  ;;  %v4262_v37 = vor.u32 %v4261_v25, %v4258_v50 }
 0x260   :  { %v4254_v8 = vsel %vm20976_vm11, %v4245_v47, %v4253_v56  ;;  %v4276_v6 = vrot.slane %v4274_v23, 5  ;;  %v4286_v32 = vshll.u32 %v16405_v13, 16  ;;  %v4279_v60 = vrot.slane %v4277_v63, 6  ;;  %v16406_v63 = vld [vmem:[%s27109_s0 + $0x234] sm:$0x3] }
 0x261   :  { %v16415_v2 = vcombine.low %v4236_v44, %v4254_v8  ;;  %v4271_v22 = vor.u32 %v4270_v14, %v4267_v1  ;;  %v4285_v12 = vrot.slane %v4283_v51, 5  ;;  %v4263_v18 = vrot.slane %v4262_v37, 4  ;;  %v20181_v51 = vld [vmem:[%s27109_s0 + $0x230] sm:$0xe] }
 0x262   :  { %v4288_v10 = vrot.slane %v4286_v32, 6  ;;  %v12186_v62 = vshrl.u32 %v17427_v58, 16  ;;  %v12189_v30 = vshll.u32 %v17427_v58, 16  ;;  %v4280_v11 = vor.u32 %v4279_v60, %v4276_v6  ;;  %v16407_v32 = vld [vmem:[%s27109_s0 + $0x23c] sm:$0x3] }
 0x263   :  { %18587 = vmatprep.mubr.msk.bf16.mxu1 %vm89_vm2, %v16415_v2  ;;  %v12195_v57 = vshll.u32 %v24056_v19, 16  ;;  %v12200_v4 = vshrl.u32 %v17429_v15, 16  ;;  %v12203_v29 = vshll.u32 %v17429_v15, 16  ;;  %v4272_v53 = vsel %vm20976_vm11, %v4263_v18, %v4271_v22 }
 0x264   :  { %v4289_v43 = vor.u32 %v4288_v10, %v4285_v12  ;;  %v12188_v5 = vrot.slane %v12186_v62, 4  ;;  %v12191_v55 = vrot.slane %v12189_v30, 5  ;;  %v4281_v39 = vrot.slane %v4280_v11, 4  ;;  %v16408_v30 = vld [vmem:[%s27109_s0 + $0x244] sm:$0x3] }
 0x265   :  { %v12197_v9 = vrot.slane %v12195_v57, 5  ;;  %v12202_v59 = vrot.slane %v12200_v4, 4  ;;  %v12205_v20 = vrot.slane %v12203_v29, 5  ;;  %v12209_v48 = vshll.u32 %v24067_v17, 16  ;;  %v20182_v57 = vld [vmem:[%s27109_s0 + $0x238] sm:$0xe] }
 0x266   :  { %v12192_v34 = vor.u32 %v12191_v55, %v12188_v5  ;;  %v24083_v31 = vand.u32 %v17508_v38, %v20305_v3  ;;  %v12214_v61 = vshrl.u32 %v17431_v26, 16  ;;  %v4290_v46 = vsel %vm20976_vm11, %v4281_v39, %v4289_v43 }
 0x267   :  { %v12206_v52 = vor.u32 %v12205_v20, %v12202_v59  ;;  %v12217_v13 = vshll.u32 %v17431_v26, 16  ;;  %v12223_v21 = vshll.u32 %v24079_v33, 16  ;;  %v16416_v44 = vcombine.low %v4272_v53, %v4290_v46  ;;  %v20183_v46 = vld [vmem:[%s27109_s0 + $0x240] sm:$0xe] }
 0x268   :  { %v12193_v50 = vrot.slane %v12192_v34, 4  ;;  %v12211_v42 = vrot.slane %v12209_v48, 5  ;;  %19045 = vmatprep.subr.bf16.mxu0 %v24083_v31  ;;  %v12216_v27 = vrot.slane %v12214_v61, 4  ;;  %v12228_v35 = vshrl.u32 %v17433_v40, 16  ;;  %v16409_v61 = vld [vmem:[%s27109_s0 + $0x24c] sm:$0x3] }
 0x269   :  { %v12207_v47 = vrot.slane %v12206_v52, 4  ;;  %v12219_v56 = vrot.slane %v12217_v13, 5  ;;  %v12225_v25 = vrot.slane %v12223_v21, 5  ;;  %18588 = vmatmul.mubr.msk.bf16.gmra.mrb[8].mxu1 %vm89_vm2, %v16416_v44  ;;  %v12231_v1 = vshll.u32 %v17433_v40, 16 }
 0x26a   :  { %v12198_v23 = vsel %vm20370_vm5, %v12193_v50, %v12197_v9  ;;  %v12237_v14 = vshll.u32 %v24093_v41, 16  ;;  %v4292_v58 = vshrl.u32 %v20181_v51, 16  ;;  %v12230_v6 = vrot.slane %v12228_v35, 4 }
 0x26b   :  { %v12212_v8 = vsel %vm20370_vm5, %v12207_v47, %v12211_v42  ;;  %v12220_v37 = vor.u32 %v12219_v56, %v12216_v27  ;;  %v4295_v15 = vshll.u32 %v20181_v51, 16  ;;  %v12233_v22 = vrot.slane %v12231_v1, 5  ;;  %v20184_v51 = vld [vmem:[%s27109_s0 + $0x248] sm:$0xe] }
 0x26c   :  { %v17460_v2 = vcombine.low %v12198_v23, %v12212_v8  ;;  %v12239_v60 = vrot.slane %v12237_v14, 5  ;;  %v4294_v12 = vrot.slane %v4292_v58, 5  ;;  %v4301_v10 = vshrl.u32 %v16406_v63, 16 }
 0x26d   :  { %v12221_v26 = vrot.slane %v12220_v37, 4  ;;  %v4297_v18 = vrot.slane %v4295_v15, 6  ;;  %v4304_v62 = vshll.u32 %v16406_v63, 16  ;;  %v12234_v11 = vor.u32 %v12233_v22, %v12230_v6  ;;  %v24141_v6 = vld [vmem:[%s27109_s0 + $0x13c] sm:$0x1] }
 0x26e   :  { %19029 = vmatprep.mubr.msk.bf16.mxu0 %vm89_vm2, %v17460_v2  ;;  %v4310_v4 = vshrl.u32 %v20182_v57, 16  ;;  %v4313_v29 = vshll.u32 %v20182_v57, 16  ;;  %v4319_v38 = vshrl.u32 %v16407_v32, 16  ;;  %v4303_v5 = vrot.slane %v4301_v10, 5 }
 0x26f   :  { %v12226_v53 = vsel %vm20370_vm5, %v12221_v26, %v12225_v25  ;;  %v4298_v43 = vor.u32 %v4297_v18, %v4294_v12  ;;  %v4306_v55 = vrot.slane %v4304_v62, 6  ;;  %v12235_v39 = vrot.slane %v12234_v11, 4  ;;  %v17435_v25 = vld [vmem:[%s27109_s0 + $0x138] sm:$0xf]  ;;  %v24152_v62 = vld [vmem:[%s27109_s0 + $0x144] sm:$0x1] }
 0x270   :  { %v4312_v9 = vrot.slane %v4310_v4, 5  ;;  %v4315_v59 = vrot.slane %v4313_v29, 6  ;;  %v4321_v20 = vrot.slane %v4319_v38, 5  ;;  %v4322_v40 = vshll.u32 %v16407_v32, 16  ;;  %v17437_v32 = vld [vmem:[%s27109_s0 + $0x140] sm:$0xf] }
 0x271   :  { %v4299_v34 = vrot.slane %v4298_v43, 4  ;;  %v4307_v48 = vor.u32 %v4306_v55, %v4303_v5  ;;  %v4328_v52 = vshrl.u32 %v20183_v46, 16  ;;  %v12240_v13 = vsel %vm20370_vm5, %v12235_v39, %v12239_v60  ;;  %v24160_v29 = vld [vmem:[%s27109_s0 + $0x14c] sm:$0x1] }
 0x272   :  { %v4316_v21 = vor.u32 %v4315_v59, %v4312_v9  ;;  %v4331_v44 = vshll.u32 %v20183_v46, 16  ;;  %v4337_v50 = vshrl.u32 %v16408_v30, 16  ;;  %v17461_v42 = vcombine.low %v12226_v53, %v12240_v13  ;;  %v24173_v46 = vld [vmem:[%s27109_s0 + $0x154] sm:$0x1] }
 0x273   :  { %v4308_v27 = vsel %vm20976_vm11, %v4299_v34, %v4307_v48  ;;  %v4324_v47 = vrot.slane %v4322_v40, 6  ;;  %v4330_v56 = vrot.slane %v4328_v52, 5  ;;  %v4340_v14 = vshll.u32 %v16408_v30, 16  ;;  %v17439_v30 = vld [vmem:[%s27109_s0 + $0x148] sm:$0xf] }
 0x274   :  { %v4317_v35 = vrot.slane %v4316_v21, 4  ;;  %v4333_v23 = vrot.slane %v4331_v44, 6  ;;  %v4339_v1 = vrot.slane %v4337_v50, 5  ;;  %19030 = vmatmul.mubr.msk.bf16.vlgmr.msra.gmra.mrb[0].mxu0 %vm89_vm2, %v17461_v42  ;;  %v4346_v58 = vshrl.u32 %v20184_v51, 16 }
 0x275   :  { %v4325_v63 = vor.u32 %v4324_v47, %v4321_v20  ;;  %v4349_v8 = vshll.u32 %v20184_v51, 16  ;;  %v4355_v37 = vshrl.u32 %v16409_v61, 16  ;;  %19046 = vmatpush3.bf16.msra.mxu0 %v24083_v31  ;;  %v4342_v2 = vrot.slane %v4340_v14, 6  ;;  %v17441_v20 = vld [vmem:[%s27109_s0 + $0x150] sm:$0xf] }
 0x276   :  { %v4334_v15 = vor.u32 %v4333_v23, %v4330_v56  ;;  %v4358_v22 = vshll.u32 %v16409_v61, 16  ;;  %v12242_v60 = vshrl.u32 %v17435_v25, 16  ;;  %v4348_v26 = vrot.slane %v4346_v58, 5 }
 0x277   :  { %v4326_v12 = vsel %vm20976_vm11, %v4317_v35, %v4325_v63  ;;  %v4351_v18 = vrot.slane %v4349_v8, 6  ;;  %v4357_v10 = vrot.slane %v4355_v37, 5  ;;  %v4343_v57 = vor.u32 %v4342_v2, %v4339_v1 }
 0x278   :  { %v16417_v31 = vcombine.low %v4308_v27, %v4326_v12  ;;  %v4335_v11 = vrot.slane %v4334_v15, 4  ;;  %v4360_v4 = vrot.slane %v4358_v22, 6  ;;  %v12244_v53 = vrot.slane %v12242_v60, 4 }
 0x279   :  { %v4352_v38 = vor.u32 %v4351_v18, %v4348_v26  ;;  %v12245_v43 = vshll.u32 %v17435_v25, 16  ;;  %v12251_v5 = vshll.u32 %v24141_v6, 16  ;;  %v12256_v9 = vshrl.u32 %v17437_v32, 16 }
 0x27a   :  { %18591 = vmatprep.mubr.msk.bf16.mxu1 %vm89_vm2, %v16417_v31  ;;  %v4344_v55 = vsel %vm20976_vm11, %v4335_v11, %v4343_v57  ;;  %v4361_v39 = vor.u32 %v4360_v4, %v4357_v10  ;;  %v12259_v59 = vshll.u32 %v17437_v32, 16  ;;  %v12265_v61 = vshll.u32 %v24152_v62, 16 }
 0x27b   :  { %v4353_v34 = vrot.slane %v4352_v38, 4  ;;  %v12247_v48 = vrot.slane %v12245_v43, 5  ;;  %v12253_v40 = vrot.slane %v12251_v5, 5  ;;  %v12258_v52 = vrot.slane %v12256_v9, 4 }
 0x27c   :  { %v12261_v13 = vrot.slane %v12259_v59, 5  ;;  %v12270_v21 = vshrl.u32 %v17439_v30, 16  ;;  %v12273_v44 = vshll.u32 %v17439_v30, 16 }
 0x27d   :  { %7 = vsyncpa [#allocation3], 0  ;;  %v4362_v50 = vsel %vm20976_vm11, %v4353_v34, %v4361_v39  ;;  %v12248_v42 = vor.u32 %v12247_v48, %v12244_v53  ;;  %v12267_v27 = vrot.slane %v12265_v61, 5  ;;  %v12279_v47 = vshll.u32 %v24160_v29, 16  ;;  %v20063_v56 = vld [vmem:[%s27109_s0 + $0x8] ss:$8 sps:$4 sm:$0xff]  }
 0x27e   :  { %v16476_v25 = vld [vmem:[%s27110_s1 + $0x1e] sm:$0x3]  ;;  %v16418_v35 = vcombine.low %v4344_v55, %v4362_v50  ;;  %v12262_v23 = vor.u32 %v12261_v13, %v12258_v52  ;;  %v12272_v1 = vrot.slane %v12270_v21, 4  ;;  %v12275_v14 = vrot.slane %v12273_v44, 5  ;;  %v17443_v63 = vld [vmem:[%s27109_s0 + $0x278] sm:$0xf] }
 0x27f   :  { %v12249_v51 = vrot.slane %v12248_v42, 4  ;;  %v12281_v58 = vrot.slane %v12279_v47, 5  ;;  %v12284_v8 = vshrl.u32 %v17441_v20, 16  ;;  %v12287_v37 = vshll.u32 %v17441_v20, 16  ;;  %v24193_v60 = vld [vmem:[%s27109_s0 + $0x27c] sm:$0x1] }
 0x280   :  { %18592 = vmatmul.mubr.msk.bf16.gmra.mrb[12].mxu1 %vm89_vm2, %v16418_v35  ;;  %v12263_v32 = vrot.slane %v12262_v23, 4  ;;  %v12276_v15 = vor.u32 %v12275_v14, %v12272_v1  ;;  %v12293_v2 = vshll.u32 %v24173_v46, 16  ;;  %v4812_v22 = vand.u32 %v16476_v25, %v20305_v3  ;;  %v17445_v12 = vld [vmem:[%s27109_s0 + $0x280] sm:$0xf]  ;;  %v17447_v31 = vld [vmem:[%s27109_s0 + $0x288] sm:$0xf] }
 0x281   :  { %v12254_v26 = vsel %vm20370_vm5, %v12249_v51, %v12253_v40  ;;  %v12286_v18 = vrot.slane %v12284_v8, 4  ;;  %v12289_v10 = vrot.slane %v12287_v37, 5  ;;  %18597 = vmatprep.mubr.msk.bf16.mxu1 %vm89_vm2, %v20063_v56  ;;  %v12298_v30 = vshrl.u32 %v17443_v63, 16  ;;  %v24209_v38 = vld [vmem:[%s27109_s0 + $0x284] sm:$0x1] }
 0x282   :  { %v12268_v11 = vsel %vm20370_vm5, %v12263_v32, %v12267_v27  ;;  %v12277_v57 = vrot.slane %v12276_v15, 4  ;;  %v12295_v4 = vrot.slane %v12293_v2, 5  ;;  %18613 = vmatprep.subr.bf16.mxu1 %v4812_v22  ;;  %v12301_v53 = vshll.u32 %v17443_v63, 16  ;;  %v20064_v55 = vld [vmem:[%s27109_s0 + $0x18] ss:$8 sps:$4 sm:$0xff]  }
 0x283   :  { %v17462_v43 = vcombine.low %v12254_v26, %v12268_v11  ;;  %v12290_v5 = vor.u32 %v12289_v10, %v12286_v18  ;;  %v12300_v39 = vrot.slane %v12298_v30, 4  ;;  %v12307_v9 = vshll.u32 %v24193_v60, 16  ;;  %v24220_v40 = vld [vmem:[%s27109_s0 + $0x28c] sm:$0x1]  ;;  %v17449_v61 = vld [vmem:[%s27109_s0 + $0x290] sm:$0xf] }
 0x284   :  { %v12282_v59 = vsel %vm20370_vm5, %v12277_v57, %v12281_v58  ;;  %v12303_v20 = vrot.slane %v12301_v53, 5  ;;  %v12312_v34 = vshrl.u32 %v17445_v12, 16  ;;  %v12315_v48 = vshll.u32 %v17445_v12, 16  ;;  %v20065_v50 = vld [vmem:[%s27109_s0 + $0x28] ss:$8 sps:$4 sm:$0xff]  }
 0x285   :  { %19033 = vmatprep.mubr.msk.bf16.mxu0 %vm89_vm2, %v17462_v43  ;;  %v12291_v52 = vrot.slane %v12290_v5, 4  ;;  %v12309_v13 = vrot.slane %v12307_v9, 5  ;;  %v12321_v21 = vshll.u32 %v24209_v38, 16  ;;  %v12326_v44 = vshrl.u32 %v17447_v31, 16  ;;  %v24233_v56 = vld [vmem:[%s27109_s0 + $0x294] sm:$0x1] }
 0x286   :  { %v12304_v42 = vor.u32 %v12303_v20, %v12300_v39  ;;  %v12314_v27 = vrot.slane %v12312_v34, 4  ;;  %v12317_v47 = vrot.slane %v12315_v48, 5  ;;  %v12329_v25 = vshll.u32 %v17447_v31, 16  ;;  %v17451_v63 = vld [vmem:[%s27109_s0 + $0x298] sm:$0xf] }
 0x287   :  { %v12296_v35 = vsel %vm20370_vm5, %v12291_v52, %v12295_v4  ;;  %v12323_v23 = vrot.slane %v12321_v21, 5  ;;  %v12328_v1 = vrot.slane %v12326_v44, 4  ;;  %v12335_v14 = vshll.u32 %v24220_v40, 16  ;;  %v24247_v26 = vld [vmem:[%s27109_s0 + $0x29c] sm:$0x1] }
 0x288   :  { %v17463_v51 = vcombine.low %v12282_v59, %v12296_v35  ;;  %18598 = vmatmul.mubr.msk.bf16.vlgmr.msra.gmra.mrb[0].mxu1 %vm89_vm2, %v20064_v55  ;;  %v12305_v58 = vrot.slane %v12304_v42, 4  ;;  %v12318_v8 = vor.u32 %v12317_v47, %v12314_v27  ;;  %v12331_v37 = vrot.slane %v12329_v25, 5  ;;  %v17455_v11 = vld [vmem:[%s27109_s0 + $0x2a8] sm:$0xf]  ;;  %v24261_v43 = vld [vmem:[%s27109_s0 + $0x2a4] sm:$0x1] }
 0x289   :  { %18614 = vmatpush3.bf16.msra.mxu1 %v4812_v22  ;;  %v12337_v32 = vrot.slane %v12335_v14, 5  ;;  %v12340_v15 = vshrl.u32 %v17449_v61, 16  ;;  %v12343_v2 = vshll.u32 %v17449_v61, 16  ;;  %v12349_v12 = vshll.u32 %v24233_v56, 16  ;;  %18601 = vmatprep.mubr.msk.bf16.mxu1 %vm89_vm2, %v20065_v50  ;;  %v17453_v22 = vld [vmem:[%s27109_s0 + $0x2a0] sm:$0xf] }
 0x28a   :  { %19034 = vmatmul.mubr.msk.bf16.gmra.mrb[4].mxu0 %vm89_vm2, %v17463_v51  ;;  %v12310_v18 = vsel %vm20370_vm5, %v12305_v58, %v12309_v13  ;;  %v12319_v10 = vrot.slane %v12318_v8, 4  ;;  %v12332_v30 = vor.u32 %v12331_v37, %v12328_v1  ;;  %v12354_v31 = vshrl.u32 %v17451_v63, 16  ;;  %v20066_v9 = vld [vmem:[%s27109_s0 + $0x38] ss:$8 sps:$4 sm:$0xff]   ;;  %v24272_v13 = vld [vmem:[%s27109_s0 + $0x2ac] sm:$0x1] }
 0x28b   :  { %v12342_v57 = vrot.slane %v12340_v15, 4  ;;  %v12345_v4 = vrot.slane %v12343_v2, 5  ;;  %v12351_v53 = vrot.slane %v12349_v12, 5  ;;  %v12357_v5 = vshll.u32 %v17451_v63, 16  ;;  %v20067_v21 = vld [vmem:[%s27109_s0 + $0x168] ss:$8 sps:$4 sm:$0xff]  }
 0x28c   :  { %v12324_v55 = vsel %vm20370_vm5, %v12319_v10, %v12323_v23  ;;  %v12333_v39 = vrot.slane %v12332_v30, 4  ;;  %v12356_v59 = vrot.slane %v12354_v31, 4  ;;  %v12363_v20 = vshll.u32 %v24247_v26, 16  ;;  %v17457_v47 = vld [vmem:[%s27109_s0 + $0x2b0] sm:$0xf] }
 0x28d   :  { %v17464_v34 = vcombine.low %v12310_v18, %v12324_v55  ;;  %v12346_v48 = vor.u32 %v12345_v4, %v12342_v57  ;;  %v12359_v61 = vrot.slane %v12357_v5, 5  ;;  %v12368_v52 = vshrl.u32 %v17453_v22, 16  ;;  %v24288_v51 = vld [vmem:[%s27109_s0 + $0x2b4] sm:$0x1]  ;;  %v24297_v12 = vld [vmem:[%s27109_s0 + $0xc0] sm:$0xe] }
 0x28e   :  { %v12338_v44 = vsel %vm20370_vm5, %v12333_v39, %v12337_v32  ;;  %v12365_v50 = vrot.slane %v12363_v20, 5  ;;  %v12371_v42 = vshll.u32 %v17453_v22, 16  ;;  %v12377_v27 = vshll.u32 %v24261_v43, 16  ;;  %v20068_v31 = vld [vmem:[%s27109_s0 + $0x178] ss:$8 sps:$4 sm:$0xff]  }
 0x28f   :  { %19037 = vmatprep.mubr.msk.bf16.mxu0 %vm89_vm2, %v17464_v34  ;;  %v12347_v25 = vrot.slane %v12346_v48, 4  ;;  %v12360_v35 = vor.u32 %v12359_v61, %v12356_v59  ;;  %v12370_v23 = vrot.slane %v12368_v52, 4  ;;  %v12382_v1 = vshrl.u32 %v17455_v11, 16  ;;  %v17557_v57 = vld [vmem:[%s27110_s1 + $0x50] sm:$0x3] }
 0x290   :  { %18602 = vmatmul.mubr.msk.bf16.gmra.mrb[4].mxu1 %vm89_vm2, %v20066_v9  ;;  %v12373_v14 = vrot.slane %v12371_v42, 5  ;;  %v12379_v63 = vrot.slane %v12377_v27, 5  ;;  %v12385_v58 = vshll.u32 %v17455_v11, 16  ;;  %v12391_v8 = vshll.u32 %v24272_v13, 16  ;;  %v24307_v11 = vld [vmem:[%s27109_s0 + $0xc8] sm:$0xe] }
 0x291   :  { %v12352_v37 = vsel %vm20370_vm5, %v12347_v25, %v12351_v53  ;;  %v12361_v32 = vrot.slane %v12360_v35, 4  ;;  %v12384_v15 = vrot.slane %v12382_v1, 4  ;;  %v12396_v2 = vshrl.u32 %v17457_v47, 16  ;;  %18605 = vmatprep.mubr.msk.bf16.mxu1 %vm89_vm2, %v20067_v21  ;;  %v24318_v39 = vld [vmem:[%s27109_s0 + $0xd0] sm:$0xe] }
 0x292   :  { %v17465_v18 = vcombine.low %v12338_v44, %v12352_v37  ;;  %v12374_v10 = vor.u32 %v12373_v14, %v12370_v23  ;;  %v12387_v30 = vrot.slane %v12385_v58, 5  ;;  %v24299_v22 = vrot.slane %v12391_v8, 5  ;;  %v20185_v34 = vld [vmem:[%s27109_s0 + $0xc4] sm:$0x1]  ;;  %v24328_v61 = vld [vmem:[%s27109_s0 + $0xd8] sm:$0xe] }
 0x293   :  { %v12366_v4 = vsel %vm20370_vm5, %v12361_v32, %v12365_v50  ;;  %v12398_v53 = vrot.slane %v12396_v2, 4  ;;  %v12399_v5 = vshll.u32 %v17457_v47, 16  ;;  %v12405_v55 = vshll.u32 %v24288_v51, 16  ;;  %v20186_v50 = vld [vmem:[%s27109_s0 + $0xcc] sm:$0x1] }
 0x294   :  { %19038 = vmatmul.mubr.msk.bf16.gmra.mrb[8].mxu0 %vm89_vm2, %v17465_v18  ;;  %v12375_v9 = vrot.slane %v12374_v10, 4  ;;  %v12388_v59 = vor.u32 %v12387_v30, %v12384_v15  ;;  %v17492_v20 = vrot.slane %v24297_v12, 9  ;;  %v12625_v48 = vrot.slane %v20185_v34, 5  ;;  %v20069_v27 = vld [vmem:[%s27109_s0 + $0x188] ss:$8 sps:$4 sm:$0xff]  }
 0x295   :  { %v12401_v52 = vrot.slane %v12399_v5, 5  ;;  %v12407_v21 = vrot.slane %v12405_v55, 5  ;;  %v17493_v44 = vrot.slane %v24307_v11, 9  ;;  %v12629_v42 = vrot.slane %v20186_v50, 5  ;;  %v24347_v1 = vld [vmem:[%s27109_s0 + $0xe0] sm:$0xe] }
 0x296   :  { %v12380_v47 = vsel %vm20370_vm5, %v12375_v9, %v12379_v63  ;;  %v12389_v25 = vrot.slane %v12388_v59, 4  ;;  %v12626_v35 = vsel %vm20439_vm8, %v17492_v20, %v12625_v48  ;;  %v24342_v23 = vand.u32 %v17557_v57, %v20305_v3  ;;  %v24355_v63 = vld [vmem:[%s27109_s0 + $0xe8] sm:$0xe]  ;;  %v24360_v32 = vld [vmem:[%s27109_s0 + $0xf0] sm:$0xe] }
 0x297   :  { %v17466_v14 = vcombine.low %v12366_v4, %v12380_v47  ;;  %v12402_v58 = vor.u32 %v12401_v52, %v12398_v53  ;;  %v12630_v8 = vsel %vm20439_vm8, %v17493_v44, %v12629_v42  ;;  %v17494_v37 = vrot.slane %v24318_v39, 9  ;;  %v20187_v18 = vld [vmem:[%s27109_s0 + $0xd4] sm:$0x1]  ;;  %v20188_v4 = vld [vmem:[%s27109_s0 + $0xdc] sm:$0x1] }
 0x298   :  { %v12394_v15 = vsel %vm20370_vm5, %v12389_v25, %v24299_v22  ;;  %18606 = vmatmul.mubr.msk.bf16.gmra.mrb[8].mxu1 %vm89_vm2, %v20068_v31  ;;  %v17509_v2 = vcombine.low %v12626_v35, %v12630_v8  ;;  %19063 = vmatprep.subr.bf16.mxu0 %v24342_v23  ;;  %v12633_v10 = vrot.slane %v20187_v18, 5  ;;  %v17495_v30 = vrot.slane %v24328_v61, 9  ;;  %v20189_v53 = vld [vmem:[%s27109_s0 + $0xe4] sm:$0x1]  ;;  %v24383_v55 = vld [vmem:[%s27109_s0 + $0xf8] sm:$0xe] }
 0x299   :  { %19041 = vmatprep.mubr.msk.bf16.mxu0 %vm89_vm2, %v17466_v14  ;;  %v12403_v57 = vrot.slane %v12402_v58, 4  ;;  %v12637_v22 = vrot.slane %v20188_v4, 5  ;;  %18609 = vmatprep.mubr.msk.bf16.mxu1 %vm89_vm2, %v20069_v27  ;;  %v17496_v31 = vrot.slane %v24347_v1, 9  ;;  %v12641_v5 = vrot.slane %v20189_v53, 5  ;;  %v20070_v59 = vld [vmem:[%s27109_s0 + $0x198] ss:$8 sps:$4 sm:$0xff]  }
 0x29a   :  { %v24387_v9 = vsel %vm20439_vm8, %v17494_v37, %v12633_v10  ;;  %v17497_v20 = vrot.slane %v24355_v63, 9  ;;  %v20190_v34 = vld [vmem:[%s27109_s0 + $0xec] sm:$0x1]  ;;  %v17498_v52 = vrot.slane %v24360_v32, 9  ;;  %v16525_v44 = vld [vmem:[%s27110_s1 + $0x20] sm:$0x3] }
 0x29b   :  { %v12645_v48 = vrot.slane %v20190_v34, 5  ;;  %v12408_v50 = vsel %vm20370_vm5, %v12403_v57, %v12407_v21  ;;  %v24404_v42 = vsel %vm20439_vm8, %v17495_v30, %v12637_v22  ;;  %v24408_v27 = vsel %vm20439_vm8, %v17496_v31, %v12641_v5  ;;  %v20191_v47 = vld [vmem:[%s27109_s0 + $0xf4] sm:$0x1]  ;;  %v24416_v35 = vld [vmem:[%s27109_s0 + $0x220] sm:$0xe] }
 0x29c   :  { %v12649_v25 = vrot.slane %v20191_v47, 5  ;;  %v17485_v21 = vld [vmem:[%s27109_s0 + $0x228] sm:$0xe]  ;;  %v17467_v14 = vcombine.low %v12394_v15, %v12408_v50  ;;  %v17510_v58 = vcombine.low %v24387_v9, %v24404_v42  ;;  %v17499_v37 = vrot.slane %v24383_v55, 9  ;;  %v17486_v18 = vld [vmem:[%s27109_s0 + $0x230] sm:$0xe] }
 0x29d   :  { %v24425_v8 = vsel %vm20439_vm8, %v17497_v20, %v12645_v48  ;;  %v17487_v10 = vld [vmem:[%s27109_s0 + $0x238] sm:$0xe]  ;;  %v20192_v57 = vld [vmem:[%s27109_s0 + $0xfc] sm:$0x1]  ;;  %v20071_v22 = vld [vmem:[%s27109_s0 + $0x60] ss:$8 sps:$4 sm:$0xff]   ;;  %v24447_v31 = vand.u32 %v16525_v44, %v20305_v3 }
 0x29e   :  { %v24438_v30 = vsel %vm20439_vm8, %v17498_v52, %v12649_v25  ;;  %v12653_v4 = vrot.slane %v20192_v57, 5  ;;  %v17488_v53 = vld [vmem:[%s27109_s0 + $0x240] sm:$0xe]  ;;  %19042 = vmatmul.mubr.msk.bf16.gmra.mrb[12].mxu0 %vm89_vm2, %v17467_v14  ;;  %v17500_v5 = vrot.slane %v24416_v35, 9  ;;  %v20193_v20 = vld [vmem:[%s27109_s0 + $0x224] sm:$0x1]  ;;  %v27150_v42 = vcombine.low %v24408_v27, %v24425_v8 }
 0x29f   :  { %v12657_v34 = vrot.slane %v20193_v20, 5  ;;  %v17501_v48 = vrot.slane %v17485_v21, 9  ;;  %v20194_v52 = vld [vmem:[%s27109_s0 + $0x22c] sm:$0x1]  ;;  %v17489_v50 = vld [vmem:[%s27109_s0 + $0x248] sm:$0xe]  ;;  %19047 = vmatprep.mubr.msk.bf16.mxu0 %vm89_vm2, %v17509_v2  ;;  %18631 = vmatprep.subr.bf16.mxu1 %v24447_v31 }
 0x2a0   :  { %v12661_v44 = vrot.slane %v20194_v52, 5  ;;  %v24466_v47 = vsel %vm20439_vm8, %v17499_v37, %v12653_v4  ;;  %v17502_v25 = vrot.slane %v17486_v18, 9  ;;  %v20195_v21 = vld [vmem:[%s27109_s0 + $0x234] sm:$0x1]  ;;  %v17503_v57 = vrot.slane %v17487_v10, 9  ;;  %18610 = vmatmul.mubr.msk.bf16.gmra.mrb[12].mxu1 %vm89_vm2, %v20070_v59 }
 0x2a1   :  { %v12665_v14 = vrot.slane %v20195_v21, 5  ;;  %v17490_v20 = vld [vmem:[%s27109_s0 + $0x250] sm:$0xe]  ;;  %v24480_v37 = vsel %vm20439_vm8, %v17500_v5, %v12657_v34  ;;  %v20196_v10 = vld [vmem:[%s27109_s0 + $0x23c] sm:$0x1]  ;;  %18615 = vmatprep.mubr.msk.bf16.mxu1 %vm89_vm2, %v20071_v22  ;;  %v17504_v34 = vrot.slane %v17488_v53, 9 }
 0x2a2   :  { %v24484_v18 = vsel %vm20439_vm8, %v17501_v48, %v12661_v44  ;;  %v12669_v4 = vrot.slane %v20196_v10, 5  ;;  %v17491_v59 = vld [vmem:[%s27109_s0 + $0x258] sm:$0xe]  ;;  %v12673_v48 = vrot.slane %v23973_v49, 5  ;;  %v17505_v10 = vrot.slane %v17489_v50, 9 }
 0x2a3   :  { %v24497_v5 = vsel %vm20439_vm8, %v17502_v25, %v12665_v14  ;;  %v17525_v44 = vld [vmem:[%s27109_s0 + $0x118] sm:$0xe]  ;;  %v12677_v52 = vrot.slane %v23984_v28, 5  ;;  %v17506_v25 = vrot.slane %v17490_v20, 9  ;;  %v17526_v49 = vld [vmem:[%s27109_s0 + $0x120] sm:$0xe] }
 0x2a4   :  { %v20072_v21 = vld [vmem:[%s27109_s0 + $0x70] ss:$8 sps:$4 sm:$0xff]   ;;  %v24508_v22 = vsel %vm20439_vm8, %v17503_v57, %v12669_v4  ;;  %v24518_v14 = vsel %vm20439_vm8, %v17504_v34, %v12673_v48  ;;  %v12681_v2 = vrot.slane %v23994_v54, 5  ;;  %v17507_v15 = vrot.slane %v17491_v59, 9  ;;  %v17527_v28 = vld [vmem:[%s27109_s0 + $0x128] sm:$0xe] }
 0x2a5   :  { %v17514_v53 = vcombine.low %v24497_v5, %v24508_v22  ;;  %v17590_v50 = vld [vmem:[%s27110_s1 + $0x52] sm:$0x3]  ;;  %v24529_v57 = vsel %vm20439_vm8, %v17505_v10, %v12677_v52  ;;  %v12685_v20 = vrot.slane %v24007_v0, 5  ;;  %v17541_v4 = vrot.slane %v17525_v44, 9  ;;  %v20073_v59 = vld [vmem:[%s27109_s0 + $0x80] ss:$8 sps:$4 sm:$0xff]  }
 0x2a6   :  { %v12903_v34 = vrot.slane %v24056_v19, 5  ;;  %v17528_v54 = vld [vmem:[%s27109_s0 + $0x130] sm:$0xe]  ;;  %v17515_v48 = vcombine.low %v24518_v14, %v24529_v57  ;;  %v24543_v52 = vsel %vm20439_vm8, %v17506_v25, %v12681_v2  ;;  %v17542_v10 = vrot.slane %v17526_v49, 9  ;;  %v17529_v19 = vld [vmem:[%s27109_s0 + $0x138] sm:$0xe]  ;;  %19048 = vmatmul.mubr.msk.bf16.vlgmr.msra.gmra.mrb[0].mxu0 %vm89_vm2, %v17510_v58 }
 0x2a7   :  { %v12907_v0 = vrot.slane %v24067_v17, 5  ;;  %v24555_v44 = vsel %vm20439_vm8, %v17507_v15, %v12685_v20  ;;  %v24562_v25 = vand.u32 %v17590_v50, %v20305_v3  ;;  %v17543_v17 = vrot.slane %v17527_v28, 9  ;;  %v17530_v49 = vld [vmem:[%s27109_s0 + $0x140] sm:$0xe]  ;;  %v17531_v9 = vld [vmem:[%s27109_s0 + $0x148] sm:$0xe]  ;;  %19064 = vmatpush3.bf16.msra.mxu0 %v24342_v23  ;;  %19051 = vmatprep.mubr.msk.bf16.mxu0 %vm89_vm2, %v27150_v42 }
 0x2a8   :  { %v24559_v2 = vsel %vm20439_vm8, %v17541_v4, %v12903_v34  ;;  %v12911_v50 = vrot.slane %v24079_v33, 5  ;;  %v17544_v28 = vrot.slane %v17528_v54, 9  ;;  %v17532_v20 = vld [vmem:[%s27109_s0 + $0x150] sm:$0xe]  ;;  %18616 = vmatmul.mubr.msk.bf16.vlgmr.msra.gmra.mrb[0].mxu1 %vm89_vm2, %v20072_v21  ;;  %v12915_v27 = vrot.slane %v24093_v41, 5 }
 0x2a9   :  { %v24579_v15 = vsel %vm20439_vm8, %v17542_v10, %v12907_v0  ;;  %19081 = vmatprep.subr.bf16.mxu0 %v24562_v25  ;;  %v17545_v8 = vrot.slane %v17529_v19, 9  ;;  %v12919_v4 = vrot.slane %v24141_v6, 5  ;;  %v16493_v33 = vld [vmem:[%s27109_s0 + $0x8] sm:$0xf]  ;;  %18632 = vmatpush3.bf16.msra.mxu1 %v24447_v31  ;;  %v17546_v34 = vrot.slane %v17530_v49, 9 }
 0x2aa   :  { %18619 = vmatprep.mubr.msk.bf16.mxu1 %vm89_vm2, %v20073_v59  ;;  %v24598_v21 = vsel %vm20439_vm8, %v17543_v17, %v12911_v50  ;;  %v12923_v54 = vrot.slane %v24152_v62, 5  ;;  %v17547_v10 = vrot.slane %v17531_v9, 9  ;;  %v16494_v41 = vld [vmem:[%s27109_s0 + $0xc] sm:$0x1]  ;;  %v20074_v6 = vld [vmem:[%s27109_s0 + $0x90] ss:$8 sps:$4 sm:$0xff]   ;;  %v24609_v31 = vsel %vm20439_vm8, %v17544_v28, %v12915_v27 }
 0x2ab   :  { %v24613_v59 = vsel %vm20439_vm8, %v17545_v8, %v12919_v4  ;;  %v12927_v0 = vrot.slane %v24160_v29, 5  ;;  %v17548_v62 = vrot.slane %v17532_v20, 9  ;;  %v16495_v19 = vld [vmem:[%s27109_s0 + $0x10] sm:$0xf]  ;;  %v20075_v17 = vld [vmem:[%s27109_s0 + $0x1c0] ss:$8 sps:$4 sm:$0xff]  }
 0x2ac   :  { %v24626_v9 = vsel %vm20439_vm8, %v17546_v34, %v12923_v54  ;;  %v12931_v42 = vrot.slane %v24173_v46, 5  ;;  %v16496_v29 = vld [vmem:[%s27109_s0 + $0x14] sm:$0x1]  ;;  %v4960_v50 = vshrl.u32 %v16493_v33, 16  ;;  %v4963_v27 = vshll.u32 %v16493_v33, 16 }
 0x2ad   :  { %v24636_v20 = vsel %vm20439_vm8, %v17547_v10, %v12927_v0  ;;  %v4969_v8 = vshll.u32 %v16494_v41, 16  ;;  %v16497_v4 = vld [vmem:[%s27109_s0 + $0x18] sm:$0xf]  ;;  %v16499_v46 = vld [vmem:[%s27109_s0 + $0x20] sm:$0xf]  ;;  %v4974_v28 = vshrl.u32 %v16495_v19, 16  ;;  %v27151_v10 = vcombine.low %v24438_v30, %v24466_v47 }
 0x2ae   :  { %v24646_v34 = vsel %vm20439_vm8, %v17548_v62, %v12931_v42  ;;  %v4962_v54 = vrot.slane %v4960_v50, 4  ;;  %v4977_v49 = vshll.u32 %v16495_v19, 16  ;;  %v16498_v33 = vld [vmem:[%s27109_s0 + $0x1c] sm:$0x1]  ;;  %v4965_v0 = vrot.slane %v4963_v27, 5 }
 0x2af   :  { %19052 = vmatmul.mubr.msk.bf16.gmra.mrb[4].mxu0 %vm89_vm2, %v27151_v10  ;;  %v4971_v23 = vrot.slane %v4969_v8, 5  ;;  %v4983_v58 = vshll.u32 %v16496_v29, 16  ;;  %v27152_v62 = vcombine.low %v24480_v37, %v24484_v18  ;;  %v4976_v19 = vrot.slane %v4974_v28, 4  ;;  %v16500_v50 = vld [vmem:[%s27109_s0 + $0x24] sm:$0x1] }
 0x2b0   :  { %v4979_v42 = vrot.slane %v4977_v49, 5  ;;  %v4988_v30 = vshrl.u32 %v16497_v4, 16  ;;  %v4991_v47 = vshll.u32 %v16497_v4, 16  ;;  %18620 = vmatmul.mubr.msk.bf16.gmra.mrb[4].mxu1 %vm89_vm2, %v20074_v6  ;;  %v4966_v10 = vor.u32 %v4965_v0, %v4962_v54  ;;  %v16574_v37 = vld [vmem:[%s27110_s1 + $0x22] sm:$0x3] }
 0x2b1   :  { %19055 = vmatprep.mubr.msk.bf16.mxu0 %vm89_vm2, %v27152_v62  ;;  %v4985_v41 = vrot.slane %v4983_v58, 5  ;;  %v4997_v27 = vshll.u32 %v16498_v33, 16  ;;  %v5002_v8 = vshrl.u32 %v16499_v46, 16  ;;  %18623 = vmatprep.mubr.msk.bf16.mxu1 %vm89_vm2, %v20075_v17  ;;  %v5005_v28 = vshll.u32 %v16499_v46, 16  ;;  %v17533_v4 = vld [vmem:[%s27109_s0 + $0x278] sm:$0xe] }
 0x2b2   :  { %v4980_v18 = vor.u32 %v4979_v42, %v4976_v19  ;;  %v4990_v49 = vrot.slane %v4988_v30, 4  ;;  %v4993_v29 = vrot.slane %v4991_v47, 5  ;;  %v4967_v62 = vrot.slane %v4966_v10, 4  ;;  %v17534_v33 = vld [vmem:[%s27109_s0 + $0x280] sm:$0xe] }
 0x2b3   :  { %v4999_v6 = vrot.slane %v4997_v27, 5  ;;  %v5004_v54 = vrot.slane %v5002_v8, 4  ;;  %v5011_v58 = vshll.u32 %v16500_v50, 16  ;;  %v20076_v17 = vld [vmem:[%s27109_s0 + $0x1d0] ss:$8 sps:$4 sm:$0xff]   ;;  %v5007_v42 = vrot.slane %v5005_v28, 5 }
 0x2b4   :  { %v4981_v0 = vrot.slane %v4980_v18, 4  ;;  %v4994_v19 = vor.u32 %v4993_v29, %v4990_v49  ;;  %v24679_v46 = vand.u32 %v16574_v37, %v20305_v3  ;;  %v17535_v30 = vld [vmem:[%s27109_s0 + $0x288] sm:$0xe]  ;;  %v4972_v50 = vsel %vm20370_vm5, %v4967_v62, %v4971_v23  ;;  %v17536_v8 = vld [vmem:[%s27109_s0 + $0x290] sm:$0xe] }
 0x2b5   :  { %v5013_v47 = vrot.slane %v5011_v58, 5  ;;  %v17549_v10 = vrot.slane %v17533_v4, 9  ;;  %v12935_v27 = vrot.slane %v24193_v60, 5  ;;  %v20077_v37 = vld [vmem:[%s27109_s0 + $0x1e0] ss:$8 sps:$4 sm:$0xff]   ;;  %v5008_v29 = vor.u32 %v5007_v42, %v5004_v54 }
 0x2b6   :  { %v4986_v18 = vsel %vm20370_vm5, %v4981_v0, %v4985_v41  ;;  %v4995_v49 = vrot.slane %v4994_v19, 4  ;;  %18649 = vmatprep.subr.bf16.mxu1 %v24679_v46  ;;  %v17550_v23 = vrot.slane %v17534_v33, 9  ;;  %v16501_v60 = vld [vmem:[%s27109_s0 + $0x28] sm:$0xf]  ;;  %v12939_v41 = vrot.slane %v24209_v38, 5 }
 0x2b7   :  { %19056 = vmatmul.mubr.msk.bf16.gmra.mrb[8].mxu0 %vm89_vm2, %v17514_v53  ;;  %v16526_v28 = vcombine.low %v4972_v50, %v4986_v18  ;;  %v24705_v4 = vsel %vm20439_vm8, %v17549_v10, %v12935_v27  ;;  %v17551_v62 = vrot.slane %v17535_v30, 9  ;;  %v16502_v54 = vld [vmem:[%s27109_s0 + $0x2c] sm:$0x1]  ;;  %v5009_v22 = vrot.slane %v5008_v29, 4  ;;  %v16503_v14 = vld [vmem:[%s27109_s0 + $0x30] sm:$0xf] }
 0x2b8   :  { %19059 = vmatprep.mubr.msk.bf16.mxu0 %vm89_vm2, %v17515_v48  ;;  %v5000_v5 = vsel %vm20370_vm5, %v4995_v49, %v4999_v6  ;;  %v12943_v53 = vrot.slane %v24220_v40, 5  ;;  %v17552_v58 = vrot.slane %v17536_v8, 9  ;;  %18624 = vmatmul.mubr.msk.bf16.gmra.mrb[8].mxu1 %vm89_vm2, %v20076_v17  ;;  %v24721_v38 = vsel %vm20439_vm8, %v17550_v23, %v12939_v41  ;;  %v16505_v19 = vld [vmem:[%s27109_s0 + $0x38] sm:$0xf]  ;;  %v16506_v10 = vld [vmem:[%s27109_s0 + $0x3c] sm:$0x1] }
 0x2b9   :  { %v12947_v33 = vrot.slane %v24233_v56, 5  ;;  %v5016_v57 = vshrl.u32 %v16501_v60, 16  ;;  %v5019_v48 = vshll.u32 %v16501_v60, 16  ;;  %18627 = vmatprep.mubr.msk.bf16.mxu1 %vm89_vm2, %v20077_v37  ;;  %v5014_v40 = vsel %vm20370_vm5, %v5009_v22, %v5013_v47  ;;  %v16504_v56 = vld [vmem:[%s27109_s0 + $0x34] sm:$0x1] }
 0x2ba   :  { %v17562_v6 = vcombine.low %v24705_v4, %v24721_v38  ;;  %v24734_v17 = vsel %vm20439_vm8, %v17551_v62, %v12943_v53  ;;  %v5025_v0 = vshll.u32 %v16502_v54, 16  ;;  %v24742_v42 = vcombine.low %v5000_v5, %v5014_v40  ;;  %v16507_v27 = vld [vmem:[%s27109_s0 + $0x40] sm:$0xf]  ;;  %v20078_v8 = vld [vmem:[%s27109_s0 + $0x1f0] ss:$8 sps:$4 sm:$0xff]  }
 0x2bb   :  { %v24746_v30 = vsel %vm20439_vm8, %v17552_v58, %v12947_v33  ;;  %v5018_v50 = vrot.slane %v5016_v57, 4  ;;  %v5021_v47 = vrot.slane %v5019_v48, 5  ;;  %v5030_v49 = vshrl.u32 %v16503_v14, 16  ;;  %v16508_v41 = vld [vmem:[%s27109_s0 + $0x44] sm:$0x1] }
 0x2bc   :  { %v17563_v37 = vcombine.low %v24734_v17, %v24746_v30  ;;  %v5027_v18 = vrot.slane %v5025_v0, 5  ;;  %v5033_v29 = vshll.u32 %v16503_v14, 16  ;;  %v5039_v60 = vshll.u32 %v16504_v56, 16  ;;  %v17537_v33 = vld [vmem:[%s27109_s0 + $0x298] sm:$0xe] }
 0x2bd   :  { %v5022_v23 = vor.u32 %v5021_v47, %v5018_v50  ;;  %v5044_v62 = vshrl.u32 %v16505_v19, 16  ;;  %v5047_v54 = vshll.u32 %v16505_v19, 16  ;;  %v5032_v5 = vrot.slane %v5030_v49, 4  ;;  %v17538_v0 = vld [vmem:[%s27109_s0 + $0x2a0] sm:$0xe] }
 0x2be   :  { %v5035_v22 = vrot.slane %v5033_v29, 5  ;;  %v5053_v53 = vshll.u32 %v16506_v10, 16  ;;  %v5058_v58 = vshrl.u32 %v16507_v27, 16  ;;  %v27153_v57 = vcombine.low %v24543_v52, %v24555_v44  ;;  %v17539_v52 = vld [vmem:[%s27109_s0 + $0x2a8] sm:$0xe] }
 0x2bf   :  { %v5023_v14 = vrot.slane %v5022_v23, 4  ;;  %v5041_v48 = vrot.slane %v5039_v60, 5  ;;  %v5046_v40 = vrot.slane %v5044_v62, 4  ;;  %v5049_v56 = vrot.slane %v5047_v54, 5 }
 0x2c0   :  { %19060 = vmatmul.mubr.msk.bf16.gmra.mrb[12].mxu0 %vm89_vm2, %v27153_v57  ;;  %v27154_v19 = vcombine.low %v24559_v2, %v24579_v15  ;;  %v5036_v50 = vor.u32 %v5035_v22, %v5032_v5  ;;  %v5055_v47 = vrot.slane %v5053_v53, 5  ;;  %v5060_v10 = vrot.slane %v5058_v58, 4  ;;  %18628 = vmatmul.mubr.msk.bf16.gmra.mrb[12].mxu1 %vm89_vm2, %v20078_v8 }
 0x2c1   :  { %v5061_v49 = vshll.u32 %v16507_v27, 16  ;;  %v5028_v44 = vsel %vm20370_vm5, %v5023_v14, %v5027_v18  ;;  %v5050_v29 = vor.u32 %v5049_v56, %v5046_v40  ;;  %v5067_v23 = vshll.u32 %v16508_v41, 16  ;;  %18633 = vmatprep.mubr.msk.bf16.mxu1 %vm89_vm2, %v16526_v28  ;;  %v17540_v27 = vld [vmem:[%s27109_s0 + $0x2b0] sm:$0xe]  ;;  %v16509_v18 = vld [vmem:[%s27109_s0 + $0x168] sm:$0xf] }
 0x2c2   :  { %19065 = vmatprep.mubr.msk.bf16.mxu0 %vm89_vm2, %v27154_v19  ;;  %v17553_v60 = vrot.slane %v17537_v33, 9  ;;  %v5037_v2 = vrot.slane %v5036_v50, 4  ;;  %v12951_v62 = vrot.slane %v24247_v26, 5  ;;  %v17554_v54 = vrot.slane %v17538_v0, 9  ;;  %v16510_v33 = vld [vmem:[%s27109_s0 + $0x16c] sm:$0x1] }
 0x2c3   :  { %v5063_v15 = vrot.slane %v5061_v49, 5  ;;  %v5051_v5 = vrot.slane %v5050_v29, 4  ;;  %v5069_v22 = vrot.slane %v5067_v23, 5  ;;  %v12955_v8 = vrot.slane %v24261_v43, 5  ;;  %v16511_v43 = vld [vmem:[%s27109_s0 + $0x170] sm:$0xf] }
 0x2c4   :  { %v17555_v53 = vrot.slane %v17539_v52, 9  ;;  %v5042_v28 = vsel %vm20370_vm5, %v5037_v2, %v5041_v48  ;;  %v24795_v26 = vsel %vm20439_vm8, %v17553_v60, %v12951_v62  ;;  %v12959_v58 = vrot.slane %v24272_v13, 5  ;;  %v16512_v13 = vld [vmem:[%s27109_s0 + $0x174] sm:$0x1]  ;;  %v16513_v60 = vld [vmem:[%s27109_s0 + $0x178] sm:$0xf] }
 0x2c5   :  { %v5064_v41 = vor.u32 %v5063_v15, %v5060_v10  ;;  %v16528_v57 = vcombine.low %v5028_v44, %v5042_v28  ;;  %v5056_v14 = vsel %vm20370_vm5, %v5051_v5, %v5055_v47  ;;  %v24808_v48 = vsel %vm20439_vm8, %v17554_v54, %v12955_v8  ;;  %v16515_v62 = vld [vmem:[%s27109_s0 + $0x180] sm:$0xf]  ;;  %v16516_v54 = vld [vmem:[%s27109_s0 + $0x184] sm:$0x1] }
 0x2c6   :  { %v17556_v40 = vrot.slane %v17540_v27, 9  ;;  %v17564_v0 = vcombine.low %v24795_v26, %v24808_v48  ;;  %v24817_v19 = vsel %vm20439_vm8, %v17555_v53, %v12959_v58  ;;  %v12963_v50 = vrot.slane %v24288_v51, 5 }
 0x2c7   :  { %v5065_v56 = vrot.slane %v5064_v41, 4  ;;  %v27155_v47 = vcombine.low %v24598_v21, %v24609_v31  ;;  %v5072_v10 = vshrl.u32 %v16509_v18, 16  ;;  %v5075_v49 = vshll.u32 %v16509_v18, 16 }
 0x2c8   :  { %v5081_v52 = vshll.u32 %v16510_v33, 16  ;;  %v5086_v44 = vshrl.u32 %v16511_v43, 16  ;;  %v27156_v29 = vcombine.low %v24613_v59, %v24626_v9  ;;  %v24833_v51 = vsel %vm20439_vm8, %v17556_v40, %v12963_v50  ;;  %18634 = vmatmul.mubr.msk.bf16.vlgmr.msra.gmra.mrb[0].mxu1 %vm89_vm2, %v24742_v42 }
 0x2c9   :  { %19066 = vmatmul.mubr.msk.bf16.vlgmr.msra.gmra.mrb[0].mxu0 %vm89_vm2, %v27155_v47  ;;  %v5070_v23 = vsel %vm20370_vm5, %v5065_v56, %v5069_v22  ;;  %v5089_v21 = vshll.u32 %v16511_v43, 16  ;;  %v5095_v31 = vshll.u32 %v16512_v13, 16  ;;  %v17565_v9 = vcombine.low %v24817_v19, %v24833_v51  ;;  %18650 = vmatpush3.bf16.msra.mxu1 %v24679_v46  ;;  %v17574_v46 = vld [vmem:[%s27109_s0 + $0xc4] sm:$0x3] }
 0x2ca   :  { %19082 = vmatpush3.bf16.msra.mxu0 %v24562_v25  ;;  %19069 = vmatprep.mubr.msk.bf16.mxu0 %vm89_vm2, %v27156_v29  ;;  %v16514_v25 = vld [vmem:[%s27109_s0 + $0x17c] sm:$0x1]  ;;  %v16529_v59 = vcombine.low %v5056_v14, %v5070_v23  ;;  %v5074_v2 = vrot.slane %v5072_v10, 4  ;;  %v5077_v15 = vrot.slane %v5075_v49, 5  ;;  %v5083_v27 = vrot.slane %v5081_v52, 5 }
 0x2cb   :  { %18637 = vmatprep.mubr.msk.bf16.mxu1 %vm89_vm2, %v16528_v57  ;;  %v5088_v42 = vrot.slane %v5086_v44, 4  ;;  %v5091_v5 = vrot.slane %v5089_v21, 5  ;;  %v5097_v22 = vrot.slane %v5095_v31, 5  ;;  %v5100_v53 = vshrl.u32 %v16513_v60, 16 }
 0x2cc   :  { %v5078_v8 = vor.u32 %v5077_v15, %v5074_v2  ;;  %v5103_v18 = vshll.u32 %v16513_v60, 16  ;;  %v5109_v28 = vshll.u32 %v16514_v25, 16  ;;  %v5114_v58 = vshrl.u32 %v16515_v62, 16 }
 0x2cd   :  { %v5092_v41 = vor.u32 %v5091_v5, %v5088_v42  ;;  %v5117_v33 = vshll.u32 %v16515_v62, 16  ;;  %v5123_v43 = vshll.u32 %v16516_v54, 16  ;;  %v5102_v40 = vrot.slane %v5100_v53, 4 }
 0x2ce   :  { %v5079_v14 = vrot.slane %v5078_v8, 4  ;;  %v5105_v13 = vrot.slane %v5103_v18, 5  ;;  %v5111_v56 = vrot.slane %v5109_v28, 5  ;;  %v5116_v50 = vrot.slane %v5114_v58, 4  ;;  %v17576_v28 = vld [vmem:[%s27109_s0 + $0xd4] sm:$0x3] }
 0x2cf   :  { %v5093_v57 = vrot.slane %v5092_v41, 4  ;;  %v5119_v47 = vrot.slane %v5117_v33, 5  ;;  %v5125_v10 = vrot.slane %v5123_v43, 5  ;;  %v27157_v49 = vcombine.low %v24636_v20, %v24646_v34  ;;  %v17575_v20 = vld [vmem:[%s27109_s0 + $0xcc] sm:$0x3] }
 0x2d0   :  { %v5084_v52 = vsel %vm20370_vm5, %v5079_v14, %v5083_v27  ;;  %v5106_v44 = vor.u32 %v5105_v13, %v5102_v40  ;;  %v13148_v29 = vshrl.u32 %v24297_v12, 16  ;;  %v13151_v23 = vshll.u32 %v24297_v12, 16  ;;  %18638 = vmatmul.mubr.msk.bf16.gmra.mrb[4].mxu1 %vm89_vm2, %v16529_v59  ;;  %v17623_v59 = vld [vmem:[%s27110_s1 + $0x54] sm:$0x3] }
 0x2d1   :  { %19070 = vmatmul.mubr.msk.bf16.gmra.mrb[4].mxu0 %vm89_vm2, %v27157_v49  ;;  %v5098_v21 = vsel %vm20370_vm5, %v5093_v57, %v5097_v22  ;;  %v5120_v31 = vor.u32 %v5119_v47, %v5116_v50  ;;  %v13157_v34 = vshrl.u32 %v17574_v46, 16  ;;  %v13160_v60 = vshll.u32 %v17574_v46, 16  ;;  %v17577_v57 = vld [vmem:[%s27109_s0 + $0xdc] sm:$0x3] }
 0x2d2   :  { %19073 = vmatprep.mubr.msk.bf16.mxu0 %vm89_vm2, %v17562_v6  ;;  %v16530_v25 = vcombine.low %v5084_v52, %v5098_v21  ;;  %v5107_v2 = vrot.slane %v5106_v44, 4  ;;  %v13150_v12 = vrot.slane %v13148_v29, 5  ;;  %v13153_v15 = vrot.slane %v13151_v23, 6  ;;  %v24915_v21 = vld [vmem:[%s27109_s0 + $0x18c] sm:$0x1] }
 0x2d3   :  { %v5121_v62 = vrot.slane %v5120_v31, 4  ;;  %v13159_v4 = vrot.slane %v13157_v34, 5  ;;  %v13162_v38 = vrot.slane %v13160_v60, 6  ;;  %v13166_v6 = vshrl.u32 %v24307_v11, 16  ;;  %v16519_v60 = vld [vmem:[%s27109_s0 + $0x190] sm:$0xf] }
 0x2d4   :  { %18641 = vmatprep.mubr.msk.bf16.mxu1 %vm89_vm2, %v16530_v25  ;;  %v5112_v54 = vsel %vm20370_vm5, %v5107_v2, %v5111_v56  ;;  %v13154_v27 = vor.u32 %v13153_v15, %v13150_v12  ;;  %v13169_v42 = vshll.u32 %v24307_v11, 16  ;;  %v13175_v5 = vshrl.u32 %v17575_v20, 16 }
 0x2d5   :  { %v5126_v22 = vsel %vm20370_vm5, %v5121_v62, %v5125_v10  ;;  %v13163_v8 = vor.u32 %v13162_v38, %v13159_v4  ;;  %v13168_v53 = vrot.slane %v13166_v6, 5  ;;  %v13178_v18 = vshll.u32 %v17575_v20, 16  ;;  %v16517_v10 = vld [vmem:[%s27109_s0 + $0x188] sm:$0xf]  ;;  %v24925_v62 = vld [vmem:[%s27109_s0 + $0x194] sm:$0x1] }
 0x2d6   :  { %v16531_v41 = vcombine.low %v5112_v54, %v5126_v22  ;;  %v13155_v58 = vrot.slane %v13154_v27, 4  ;;  %v13171_v33 = vrot.slane %v13169_v42, 6  ;;  %v13177_v43 = vrot.slane %v13175_v5, 5  ;;  %v16521_v27 = vld [vmem:[%s27109_s0 + $0x198] sm:$0xf] }
 0x2d7   :  { %v13180_v11 = vrot.slane %v13178_v18, 6  ;;  %v24888_v14 = vand.u32 %v17623_v59, %v20305_v3  ;;  %v13184_v40 = vshrl.u32 %v24318_v39, 16  ;;  %v13187_v13 = vshll.u32 %v24318_v39, 16 }
 0x2d8   :  { %v13164_v56 = vsel %vm20976_vm11, %v13155_v58, %v13163_v8  ;;  %v13172_v46 = vor.u32 %v13171_v33, %v13168_v53  ;;  %v13193_v50 = vshrl.u32 %v17576_v28, 16  ;;  %v13196_v47 = vshll.u32 %v17576_v28, 16  ;;  %18642 = vmatmul.mubr.msk.bf16.gmra.mrb[8].mxu1 %vm89_vm2, %v16531_v41  ;;  %v24936_v8 = vld [vmem:[%s27109_s0 + $0x19c] sm:$0x1] }
 0x2d9   :  { %19074 = vmatmul.mubr.msk.bf16.gmra.mrb[8].mxu0 %vm89_vm2, %v17563_v37  ;;  %v13181_v39 = vor.u32 %v13180_v11, %v13177_v43  ;;  %19099 = vmatprep.subr.bf16.mxu0 %v24888_v14  ;;  %v13186_v17 = vrot.slane %v13184_v40, 5  ;;  %v13189_v30 = vrot.slane %v13187_v13, 6  ;;  %v13202_v37 = vshrl.u32 %v24328_v61, 16  ;;  %v16523_v43 = vld [vmem:[%s27109_s0 + $0x1a0] sm:$0xf] }
 0x2da   :  { %19077 = vmatprep.mubr.msk.bf16.mxu0 %vm89_vm2, %v17564_v0  ;;  %v13173_v49 = vrot.slane %v13172_v46, 4  ;;  %v13195_v52 = vrot.slane %v13193_v50, 5  ;;  %v13198_v44 = vrot.slane %v13196_v47, 6  ;;  %v13205_v26 = vshll.u32 %v24328_v61, 16  ;;  %v24952_v13 = vld [vmem:[%s27109_s0 + $0x1a4] sm:$0x1] }
 0x2db   :  { %v13190_v48 = vor.u32 %v13189_v30, %v13186_v17  ;;  %v13204_v0 = vrot.slane %v13202_v37, 5  ;;  %v13211_v29 = vshrl.u32 %v17577_v57, 16  ;;  %v13214_v23 = vshll.u32 %v17577_v57, 16 }
 0x2dc   :  { %v13182_v31 = vsel %vm20976_vm11, %v13173_v49, %v13181_v39  ;;  %v13199_v20 = vor.u32 %v13198_v44, %v13195_v52  ;;  %v13207_v34 = vrot.slane %v13205_v26, 6  ;;  %v5128_v25 = vshrl.u32 %v16517_v10, 16  ;;  %v17578_v44 = vld [vmem:[%s27109_s0 + $0xe4] sm:$0x3] }
 0x2dd   :  { %v17591_v61 = vcombine.low %v13164_v56, %v13182_v31  ;;  %v13191_v2 = vrot.slane %v13190_v48, 4  ;;  %v13213_v12 = vrot.slane %v13211_v29, 5  ;;  %v13216_v15 = vrot.slane %v13214_v23, 6 }
 0x2de   :  { %v13208_v4 = vor.u32 %v13207_v34, %v13204_v0  ;;  %v5130_v38 = vrot.slane %v5128_v25, 4  ;;  %v5131_v6 = vshll.u32 %v16517_v10, 16  ;;  %v5137_v54 = vshll.u32 %v24915_v21, 16 }
 0x2df   :  { %v13200_v42 = vsel %vm20976_vm11, %v13191_v2, %v13199_v20  ;;  %v13217_v5 = vor.u32 %v13216_v15, %v13213_v12  ;;  %v5142_v59 = vshrl.u32 %v16519_v60, 16  ;;  %v5145_v22 = vshll.u32 %v16519_v60, 16  ;;  %v17579_v60 = vld [vmem:[%s27109_s0 + $0xec] sm:$0x3] }
 0x2e0   :  { %v13209_v53 = vrot.slane %v13208_v4, 4  ;;  %v5133_v18 = vrot.slane %v5131_v6, 5  ;;  %v5139_v28 = vrot.slane %v5137_v54, 5  ;;  %v5151_v41 = vshll.u32 %v24925_v62, 16 }
 0x2e1   :  { %19078 = vmatmul.mubr.msk.bf16.gmra.mrb[12].mxu0 %vm89_vm2, %v17565_v9  ;;  %v5144_v58 = vrot.slane %v5142_v59, 4  ;;  %v5147_v33 = vrot.slane %v5145_v22, 5  ;;  %v5156_v11 = vshrl.u32 %v16521_v27, 16  ;;  %v5159_v40 = vshll.u32 %v16521_v27, 16 }
 0x2e2   :  { %19083 = vmatprep.mubr.msk.bf16.mxu0 %vm89_vm2, %v17591_v61  ;;  %v13218_v19 = vsel %vm20976_vm11, %v13209_v53, %v13217_v5  ;;  %v5134_v51 = vor.u32 %v5133_v18, %v5130_v38  ;;  %v5153_v9 = vrot.slane %v5151_v41, 5  ;;  %v5165_v56 = vshll.u32 %v24936_v8, 16 }
 0x2e3   :  { %v17592_v46 = vcombine.low %v13200_v42, %v13218_v19  ;;  %v5148_v57 = vor.u32 %v5147_v33, %v5144_v58  ;;  %v5158_v50 = vrot.slane %v5156_v11, 4  ;;  %v5161_v47 = vrot.slane %v5159_v40, 5  ;;  %v17581_v19 = vld [vmem:[%s27109_s0 + $0xfc] sm:$0x3] }
 0x2e4   :  { %v5135_v39 = vrot.slane %v5134_v51, 4  ;;  %v5167_v17 = vrot.slane %v5165_v56, 5  ;;  %v5170_v30 = vshrl.u32 %v16523_v43, 16  ;;  %v5173_v37 = vshll.u32 %v16523_v43, 16 }
 0x2e5   :  { %v5149_v10 = vrot.slane %v5148_v57, 4  ;;  %v5162_v49 = vor.u32 %v5161_v47, %v5158_v50  ;;  %v5179_v52 = vshll.u32 %v24952_v13, 16  ;;  %v13220_v26 = vshrl.u32 %v24347_v1, 16 }
 0x2e6   :  { %v5140_v48 = vsel %vm20370_vm5, %v5135_v39, %v5139_v28  ;;  %v5172_v0 = vrot.slane %v5170_v30, 4  ;;  %v5175_v29 = vrot.slane %v5173_v37, 5  ;;  %v13223_v23 = vshll.u32 %v24347_v1, 16 }
 0x2e7   :  { %v5154_v31 = vsel %vm20370_vm5, %v5149_v10, %v5153_v9  ;;  %v5163_v20 = vrot.slane %v5162_v49, 4  ;;  %v5181_v34 = vrot.slane %v5179_v52, 5  ;;  %v13222_v25 = vrot.slane %v13220_v26, 5  ;;  %v16544_v49 = vld [vmem:[%s27109_s0 + $0x68] sm:$0xf] }
 0x2e8   :  { %v16532_v61 = vcombine.low %v5140_v48, %v5154_v31  ;;  %v5176_v2 = vor.u32 %v5175_v29, %v5172_v0  ;;  %v13225_v12 = vrot.slane %v13223_v23, 6  ;;  %v13229_v15 = vshrl.u32 %v17578_v44, 16  ;;  %v25001_v0 = vld [vmem:[%s27109_s0 + $0x64] sm:$0x1] }
 0x2e9   :  { %19084 = vmatmul.mubr.msk.bf16.vlgmr.msra.gmra.mrb[0].mxu0 %vm89_vm2, %v17592_v46  ;;  %v5168_v1 = vsel %vm20370_vm5, %v5163_v20, %v5167_v17  ;;  %v13232_v4 = vshll.u32 %v17578_v44, 16  ;;  %v13238_v38 = vshrl.u32 %v24355_v63, 16  ;;  %v13241_v6 = vshll.u32 %v24355_v63, 16  ;;  %v16542_v17 = vld [vmem:[%s27109_s0 + $0x60] sm:$0xf] }
 0x2ea   :  { %19100 = vmatpush3.bf16.msra.mxu0 %v24888_v14  ;;  %18645 = vmatprep.mubr.msk.bf16.mxu1 %vm89_vm2, %v16532_v61  ;;  %v5177_v54 = vrot.slane %v5176_v2, 4  ;;  %v13226_v27 = vor.u32 %v13225_v12, %v13222_v25  ;;  %v13231_v42 = vrot.slane %v13229_v15, 5  ;;  %v13247_v5 = vshrl.u32 %v17579_v60, 16  ;;  %v17580_v14 = vld [vmem:[%s27109_s0 + $0xf4] sm:$0x3] }
 0x2eb   :  { %v13234_v59 = vrot.slane %v13232_v4, 6  ;;  %v13240_v22 = vrot.slane %v13238_v38, 5  ;;  %v13243_v53 = vrot.slane %v13241_v6, 6  ;;  %v13250_v18 = vshll.u32 %v17579_v60, 16  ;;  %v16548_v2 = vld [vmem:[%s27109_s0 + $0x78] sm:$0xf] }
 0x2ec   :  { %v5182_v28 = vsel %vm20370_vm5, %v5177_v54, %v5181_v34  ;;  %v13227_v41 = vrot.slane %v13226_v27, 4  ;;  %v13249_v58 = vrot.slane %v13247_v5, 5  ;;  %v13256_v63 = vshrl.u32 %v24360_v32, 16  ;;  %v25019_v5 = vld [vmem:[%s27109_s0 + $0x74] sm:$0x1] }
 0x2ed   :  { %v16533_v33 = vcombine.low %v5168_v1, %v5182_v28  ;;  %v13235_v43 = vor.u32 %v13234_v59, %v13231_v42  ;;  %v13244_v11 = vor.u32 %v13243_v53, %v13240_v22  ;;  %v13252_v40 = vrot.slane %v13250_v18, 6  ;;  %v25013_v1 = vld [vmem:[%s27109_s0 + $0x6c] sm:$0x1] }
 0x2ee   :  { %v13258_v51 = vrot.slane %v13256_v63, 5  ;;  %v13259_v9 = vshll.u32 %v24360_v32, 16  ;;  %v13265_v56 = vshrl.u32 %v17580_v14, 16  ;;  %v13268_v46 = vshll.u32 %v17580_v14, 16 }
 0x2ef   :  { %18646 = vmatmul.mubr.msk.bf16.gmra.mrb[12].mxu1 %vm89_vm2, %v16533_v33  ;;  %v13236_v57 = vsel %vm20976_vm11, %v13227_v41, %v13235_v43  ;;  %v13245_v50 = vrot.slane %v13244_v11, 4  ;;  %v13253_v47 = vor.u32 %v13252_v40, %v13249_v58  ;;  %v13274_v39 = vshrl.u32 %v24383_v55, 16  ;;  %v25029_v33 = vld [vmem:[%s27109_s0 + $0x7c] sm:$0x1] }
 0x2f0   :  { %v13261_v30 = vrot.slane %v13259_v9, 6  ;;  %v13267_v37 = vrot.slane %v13265_v56, 5  ;;  %v13270_v10 = vrot.slane %v13268_v46, 6  ;;  %v13277_v32 = vshll.u32 %v24383_v55, 16  ;;  %v16546_v55 = vld [vmem:[%s27109_s0 + $0x70] sm:$0xf] }
 0x2f1   :  { %v13254_v52 = vsel %vm20976_vm11, %v13245_v50, %v13253_v47  ;;  %v13276_v44 = vrot.slane %v13274_v39, 5  ;;  %v13283_v26 = vshrl.u32 %v17581_v19, 16  ;;  %v13286_v48 = vshll.u32 %v17581_v19, 16  ;;  %v16623_v46 = vld [vmem:[%s27110_s1 + $0x24] sm:$0x3] }
 0x2f2   :  { %v17593_v29 = vcombine.low %v13236_v57, %v13254_v52  ;;  %v13262_v23 = vor.u32 %v13261_v30, %v13258_v51  ;;  %v13271_v31 = vor.u32 %v13270_v10, %v13267_v37  ;;  %v13279_v20 = vrot.slane %v13277_v32, 6 }
 0x2f3   :  { %v13285_v34 = vrot.slane %v13283_v26, 5  ;;  %v13288_v60 = vrot.slane %v13286_v48, 6  ;;  %v5382_v25 = vshrl.u32 %v16542_v17, 16  ;;  %v5385_v61 = vshll.u32 %v16542_v17, 16  ;;  %v17582_v17 = vld [vmem:[%s27109_s0 + $0x224] sm:$0x3] }
 0x2f4   :  { %19087 = vmatprep.mubr.msk.bf16.mxu0 %vm89_vm2, %v17593_v29  ;;  %v13263_v12 = vrot.slane %v13262_v23, 4  ;;  %v13280_v15 = vor.u32 %v13279_v20, %v13276_v44  ;;  %v5391_v4 = vshll.u32 %v25001_v0, 16  ;;  %v5396_v38 = vshrl.u32 %v16544_v49, 16 }
 0x2f5   :  { %v13289_v6 = vor.u32 %v13288_v60, %v13285_v34  ;;  %v5384_v54 = vrot.slane %v5382_v25, 4  ;;  %v5387_v27 = vrot.slane %v5385_v61, 5  ;;  %v5399_v42 = vshll.u32 %v16544_v49, 16 }
 0x2f6   :  { %v13272_v59 = vsel %vm20976_vm11, %v13263_v12, %v13271_v31  ;;  %v13281_v22 = vrot.slane %v13280_v15, 4  ;;  %v5393_v53 = vrot.slane %v5391_v4, 5  ;;  %v5398_v18 = vrot.slane %v5396_v38, 4  ;;  %v17583_v31 = vld [vmem:[%s27109_s0 + $0x22c] sm:$0x3] }
 0x2f7   :  { %v5388_v14 = vor.u32 %v5387_v27, %v5384_v54  ;;  %v5401_v28 = vrot.slane %v5399_v42, 5  ;;  %v5405_v41 = vshll.u32 %v25013_v1, 16  ;;  %v5410_v58 = vshrl.u32 %v16546_v55, 16 }
 0x2f8   :  { %v13290_v63 = vsel %vm20976_vm11, %v13281_v22, %v13289_v6  ;;  %v5413_v43 = vshll.u32 %v16546_v55, 16  ;;  %v5419_v11 = vshll.u32 %v25019_v5, 16  ;;  %v5424_v40 = vshrl.u32 %v16548_v2, 16 }
 0x2f9   :  { %v17594_v19 = vcombine.low %v13272_v59, %v13290_v63  ;;  %v5389_v51 = vrot.slane %v5388_v14, 4  ;;  %v5402_v9 = vor.u32 %v5401_v28, %v5398_v18  ;;  %v5407_v56 = vrot.slane %v5405_v41, 5  ;;  %v20198_v41 = vld [vmem:[%s27109_s0 + $0x230] sm:$0xe] }
 0x2fa   :  { %v5412_v57 = vrot.slane %v5410_v58, 4  ;;  %v5415_v50 = vrot.slane %v5413_v43, 5  ;;  %v5421_v47 = vrot.slane %v5419_v11, 5  ;;  %v5426_v39 = vrot.slane %v5424_v40, 4 }
 0x2fb   :  { %19088 = vmatmul.mubr.msk.bf16.gmra.mrb[4].mxu0 %vm89_vm2, %v17594_v19  ;;  %v5394_v30 = vsel %vm20370_vm5, %v5389_v51, %v5393_v53  ;;  %v5403_v37 = vrot.slane %v5402_v9, 4  ;;  %v5427_v10 = vshll.u32 %v16548_v2, 16  ;;  %v5433_v32 = vshll.u32 %v25029_v33, 16  ;;  %v17584_v53 = vld [vmem:[%s27109_s0 + $0x234] sm:$0x3] }
 0x2fc   :  { %v5416_v49 = vor.u32 %v5415_v50, %v5412_v57  ;;  %v5934_v52 = vand.u32 %v16623_v46, %v20305_v3  ;;  %v13292_v44 = vshrl.u32 %v24416_v35, 16  ;;  %v13295_v26 = vshll.u32 %v24416_v35, 16  ;;  %v20197_v35 = vld [vmem:[%s27109_s0 + $0x228] sm:$0xe]  ;;  %v17585_v9 = vld [vmem:[%s27109_s0 + $0x23c] sm:$0x3] }
 0x2fd   :  { %v5408_v48 = vsel %vm20370_vm5, %v5403_v37, %v5407_v56  ;;  %v5429_v29 = vrot.slane %v5427_v10, 5  ;;  %v5435_v23 = vrot.slane %v5433_v32, 5  ;;  %v13301_v20 = vshrl.u32 %v17582_v17, 16  ;;  %v20199_v10 = vld [vmem:[%s27109_s0 + $0x238] sm:$0xe] }
 0x2fe   :  { %v16575_v55 = vcombine.low %v5394_v30, %v5408_v48  ;;  %v5417_v34 = vrot.slane %v5416_v49, 4  ;;  %18667 = vmatprep.subr.bf16.mxu1 %v5934_v52  ;;  %v13294_v60 = vrot.slane %v13292_v44, 5  ;;  %v13297_v25 = vrot.slane %v13295_v26, 6 }
 0x2ff   :  { %v5430_v61 = vor.u32 %v5429_v29, %v5426_v39  ;;  %v13303_v2 = vrot.slane %v13301_v20, 5  ;;  %v13304_v12 = vshll.u32 %v17582_v17, 16  ;;  %v13310_v15 = vshrl.u32 %v20197_v35, 16  ;;  %v16550_v17 = vld [vmem:[%s27109_s0 + $0x80] sm:$0xf] }
 0x300   :  { %18651 = vmatprep.mubr.msk.bf16.mxu1 %vm89_vm2, %v16575_v55  ;;  %v5422_v4 = vsel %vm20370_vm5, %v5417_v34, %v5421_v47  ;;  %v13298_v38 = vor.u32 %v13297_v25, %v13294_v60  ;;  %v13313_v6 = vshll.u32 %v20197_v35, 16  ;;  %v13319_v54 = vshrl.u32 %v17583_v31, 16  ;;  %v25084_v34 = vld [vmem:[%s27109_s0 + $0x84] sm:$0x1] }
 0x301   :  { %v5431_v27 = vrot.slane %v5430_v61, 4  ;;  %v13306_v42 = vrot.slane %v13304_v12, 6  ;;  %v13312_v59 = vrot.slane %v13310_v15, 5  ;;  %v13322_v22 = vshll.u32 %v17583_v31, 16  ;;  %v25089_v12 = vld [vmem:[%s27109_s0 + $0x8c] sm:$0x1] }
 0x302   :  { %v13299_v18 = vrot.slane %v13298_v38, 4  ;;  %v13315_v14 = vrot.slane %v13313_v6, 6  ;;  %v13321_v28 = vrot.slane %v13319_v54, 5  ;;  %v13328_v58 = vshrl.u32 %v20198_v41, 16  ;;  %v16554_v6 = vld [vmem:[%s27109_s0 + $0x90] sm:$0xf] }
 0x303   :  { %v5436_v63 = vsel %vm20370_vm5, %v5431_v27, %v5435_v23  ;;  %v13307_v43 = vor.u32 %v13306_v42, %v13303_v2  ;;  %v13324_v11 = vrot.slane %v13322_v22, 6  ;;  %v13331_v40 = vshll.u32 %v20198_v41, 16  ;;  %v16552_v23 = vld [vmem:[%s27109_s0 + $0x88] sm:$0xf] }
 0x304   :  { %v16576_v19 = vcombine.low %v5422_v4, %v5436_v63  ;;  %v13316_v51 = vor.u32 %v13315_v14, %v13312_v59  ;;  %v13330_v56 = vrot.slane %v13328_v58, 5  ;;  %v13337_v46 = vshrl.u32 %v17584_v53, 16 }
 0x305   :  { %v13308_v57 = vsel %vm20976_vm11, %v13299_v18, %v13307_v43  ;;  %v13325_v50 = vor.u32 %v13324_v11, %v13321_v28  ;;  %v13333_v47 = vrot.slane %v13331_v40, 6  ;;  %v13340_v39 = vshll.u32 %v17584_v53, 16  ;;  %v25102_v28 = vld [vmem:[%s27109_s0 + $0x94] sm:$0x1]  ;;  %v16556_v43 = vld [vmem:[%s27109_s0 + $0x98] sm:$0xf] }
 0x306   :  { %18652 = vmatmul.mubr.msk.bf16.vlgmr.msra.gmra.mrb[0].mxu1 %vm89_vm2, %v16576_v19  ;;  %v13317_v30 = vrot.slane %v13316_v51, 4  ;;  %v13339_v37 = vrot.slane %v13337_v46, 5  ;;  %v13346_v32 = vshrl.u32 %v20199_v10, 16  ;;  %v13349_v49 = vshll.u32 %v20199_v10, 16 }
 0x307   :  { %18668 = vmatpush3.bf16.msra.mxu1 %v5934_v52  ;;  %v13334_v44 = vor.u32 %v13333_v47, %v13330_v56  ;;  %v13342_v26 = vrot.slane %v13340_v39, 6  ;;  %v13355_v48 = vshrl.u32 %v17585_v9, 16  ;;  %v13358_v29 = vshll.u32 %v17585_v9, 16  ;;  %v25112_v9 = vld [vmem:[%s27109_s0 + $0x9c] sm:$0x1] }
 0x308   :  { %v13326_v31 = vsel %vm20976_vm11, %v13317_v30, %v13325_v50  ;;  %v13348_v20 = vrot.slane %v13346_v32, 5  ;;  %v13351_v55 = vrot.slane %v13349_v49, 6  ;;  %v5438_v60 = vshrl.u32 %v16550_v17, 16 }
 0x309   :  { %v17595_v52 = vcombine.low %v13308_v57, %v13326_v31  ;;  %v13335_v25 = vrot.slane %v13334_v44, 4  ;;  %v13343_v61 = vor.u32 %v13342_v26, %v13339_v37  ;;  %v13357_v2 = vrot.slane %v13355_v48, 5  ;;  %v17586_v44 = vld [vmem:[%s27109_s0 + $0x244] sm:$0x3]  ;;  %v20200_v26 = vld [vmem:[%s27109_s0 + $0x240] sm:$0xe] }
 0x30a   :  { %v13352_v35 = vor.u32 %v13351_v55, %v13348_v20  ;;  %v13360_v15 = vrot.slane %v13358_v29, 6  ;;  %v5440_v4 = vrot.slane %v5438_v60, 4  ;;  %v5441_v38 = vshll.u32 %v16550_v17, 16 }
 0x30b   :  { %19091 = vmatprep.mubr.msk.bf16.mxu0 %vm89_vm2, %v17595_v52  ;;  %v13344_v54 = vsel %vm20976_vm11, %v13335_v25, %v13343_v61  ;;  %v5447_v27 = vshll.u32 %v25084_v34, 16  ;;  %v5452_v42 = vshrl.u32 %v16552_v23, 16  ;;  %v5455_v59 = vshll.u32 %v16552_v23, 16  ;;  %v17587_v52 = vld [vmem:[%s27109_s0 + $0x24c] sm:$0x3] }
 0x30c   :  { %v13353_v22 = vrot.slane %v13352_v35, 4  ;;  %v13361_v53 = vor.u32 %v13360_v15, %v13357_v2  ;;  %v5443_v18 = vrot.slane %v5441_v38, 5  ;;  %v5461_v14 = vshll.u32 %v25089_v12, 16 }
 0x30d   :  { %v5449_v41 = vrot.slane %v5447_v27, 5  ;;  %v5454_v58 = vrot.slane %v5452_v42, 4  ;;  %v5457_v63 = vrot.slane %v5455_v59, 5  ;;  %v5466_v11 = vshrl.u32 %v16554_v6, 16 }
 0x30e   :  { %v13362_v40 = vsel %vm20976_vm11, %v13353_v22, %v13361_v53  ;;  %v5444_v19 = vor.u32 %v5443_v18, %v5440_v4  ;;  %v5463_v51 = vrot.slane %v5461_v14, 5  ;;  %v5469_v56 = vshll.u32 %v16554_v6, 16 }
 0x30f   :  { %v17596_v46 = vcombine.low %v13344_v54, %v13362_v40  ;;  %v5458_v57 = vor.u32 %v5457_v63, %v5454_v58  ;;  %v5468_v50 = vrot.slane %v5466_v11, 4  ;;  %v5475_v47 = vshll.u32 %v25102_v28, 16  ;;  %v20201_v54 = vld [vmem:[%s27109_s0 + $0x248] sm:$0xe] }
 0x310   :  { %v5445_v39 = vrot.slane %v5444_v19, 4  ;;  %v5471_v17 = vrot.slane %v5469_v56, 5  ;;  %v5480_v30 = vshrl.u32 %v16556_v43, 16  ;;  %v5483_v37 = vshll.u32 %v16556_v43, 16  ;;  %v17588_v43 = vld [vmem:[%s27109_s0 + $0x254] sm:$0x3] }
 0x311   :  { %19092 = vmatmul.mubr.msk.bf16.gmra.mrb[8].mxu0 %vm89_vm2, %v17596_v46  ;;  %v5459_v10 = vrot.slane %v5458_v57, 4  ;;  %v5477_v32 = vrot.slane %v5475_v47, 5  ;;  %v5489_v49 = vshll.u32 %v25112_v9, 16  ;;  %v13364_v48 = vshrl.u32 %v20200_v26, 16 }
 0x312   :  { %v5450_v29 = vsel %vm20370_vm5, %v5445_v39, %v5449_v41  ;;  %v5472_v23 = vor.u32 %v5471_v17, %v5468_v50  ;;  %v5482_v31 = vrot.slane %v5480_v30, 4  ;;  %v5485_v20 = vrot.slane %v5483_v37, 5  ;;  %v17589_v17 = vld [vmem:[%s27109_s0 + $0x25c] sm:$0x3] }
 0x313   :  { %v5464_v55 = vsel %vm20370_vm5, %v5459_v10, %v5463_v51  ;;  %v5491_v60 = vrot.slane %v5489_v49, 5  ;;  %v13366_v25 = vrot.slane %v13364_v48, 5  ;;  %v13367_v61 = vshll.u32 %v20200_v26, 16  ;;  %v20202_v51 = vld [vmem:[%s27109_s0 + $0x250] sm:$0xe] }
 0x314   :  { %v16577_v2 = vcombine.low %v5450_v29, %v5464_v55  ;;  %v5473_v35 = vrot.slane %v5472_v23, 4  ;;  %v5486_v15 = vor.u32 %v5485_v20, %v5482_v31  ;;  %v13373_v4 = vshrl.u32 %v17586_v44, 16  ;;  %v20203_v26 = vld [vmem:[%s27109_s0 + $0x258] sm:$0xe]  ;;  %v16558_v29 = vld [vmem:[%s27109_s0 + $0x1c0] sm:$0xf] }
 0x315   :  { %v13369_v38 = vrot.slane %v13367_v61, 6  ;;  %v13376_v6 = vshll.u32 %v17586_v44, 16  ;;  %v13382_v27 = vshrl.u32 %v20201_v54, 16  ;;  %v13385_v42 = vshll.u32 %v20201_v54, 16 }
 0x316   :  { %18655 = vmatprep.mubr.msk.bf16.mxu1 %vm89_vm2, %v16577_v2  ;;  %v5478_v59 = vsel %vm20370_vm5, %v5473_v35, %v5477_v32  ;;  %v5487_v22 = vrot.slane %v5486_v15, 4  ;;  %v13375_v53 = vrot.slane %v13373_v4, 5  ;;  %v13391_v18 = vshrl.u32 %v17587_v52, 16  ;;  %v25161_v4 = vld [vmem:[%s27109_s0 + $0x1c4] sm:$0x1] }
 0x317   :  { %v13370_v14 = vor.u32 %v13369_v38, %v13366_v25  ;;  %v13378_v41 = vrot.slane %v13376_v6, 6  ;;  %v13384_v58 = vrot.slane %v13382_v27, 5  ;;  %v13387_v63 = vrot.slane %v13385_v42, 6  ;;  %v16560_v38 = vld [vmem:[%s27109_s0 + $0x1c8] sm:$0xf] }
 0x318   :  { %v5492_v11 = vsel %vm20370_vm5, %v5487_v22, %v5491_v60  ;;  %v13393_v40 = vrot.slane %v13391_v18, 5  ;;  %v13394_v19 = vshll.u32 %v17587_v52, 16  ;;  %v13400_v56 = vshrl.u32 %v20202_v51, 16  ;;  %v25169_v22 = vld [vmem:[%s27109_s0 + $0x1cc] sm:$0x1] }
 0x319   :  { %v16578_v46 = vcombine.low %v5478_v59, %v5492_v11  ;;  %v13371_v57 = vrot.slane %v13370_v14, 4  ;;  %v13379_v50 = vor.u32 %v13378_v41, %v13375_v53  ;;  %v13388_v47 = vor.u32 %v13387_v63, %v13384_v58  ;;  %v16562_v58 = vld [vmem:[%s27109_s0 + $0x1d0] sm:$0xf] }
 0x31a   :  { %v13396_v39 = vrot.slane %v13394_v19, 6  ;;  %v13402_v30 = vrot.slane %v13400_v56, 5  ;;  %v13403_v37 = vshll.u32 %v20202_v51, 16  ;;  %v13409_v10 = vshrl.u32 %v17588_v43, 16  ;;  %v16564_v19 = vld [vmem:[%s27109_s0 + $0x1d8] sm:$0xf] }
 0x31b   :  { %18656 = vmatmul.mubr.msk.bf16.gmra.mrb[4].mxu1 %vm89_vm2, %v16578_v46  ;;  %v13380_v32 = vsel %vm20976_vm11, %v13371_v57, %v13379_v50  ;;  %v13389_v49 = vrot.slane %v13388_v47, 4  ;;  %v13412_v44 = vshll.u32 %v17588_v43, 16  ;;  %v13418_v48 = vshrl.u32 %v20203_v26, 16  ;;  %v25185_v50 = vld [vmem:[%s27109_s0 + $0x1d4] sm:$0x1] }
 0x31c   :  { %v13397_v23 = vor.u32 %v13396_v39, %v13393_v40  ;;  %v13405_v31 = vrot.slane %v13403_v37, 6  ;;  %v13411_v20 = vrot.slane %v13409_v10, 5  ;;  %v13421_v55 = vshll.u32 %v20203_v26, 16  ;;  %v20079_v26 = vld [vmem:[%s27109_s0 + $0x18] ss:$8 sps:$4 sm:$0xff]  }
 0x31d   :  { %v13414_v60 = vrot.slane %v13412_v44, 6  ;;  %v13420_v52 = vrot.slane %v13418_v48, 5  ;;  %v13427_v25 = vshrl.u32 %v17589_v17, 16  ;;  %v13430_v61 = vshll.u32 %v17589_v17, 16  ;;  %v17656_v48 = vld [vmem:[%s27110_s1 + $0x56] sm:$0x3] }
 0x31e   :  { %v13398_v2 = vsel %vm20976_vm11, %v13389_v49, %v13397_v23  ;;  %v13406_v35 = vor.u32 %v13405_v31, %v13402_v30  ;;  %v13423_v15 = vrot.slane %v13421_v55, 6  ;;  %v5494_v6 = vshrl.u32 %v16558_v29, 16  ;;  %v25190_v30 = vld [vmem:[%s27109_s0 + $0x1dc] sm:$0x1] }
 0x31f   :  { %v17597_v54 = vcombine.low %v13380_v32, %v13398_v2  ;;  %v13415_v27 = vor.u32 %v13414_v60, %v13411_v20  ;;  %v13429_v42 = vrot.slane %v13427_v25, 5  ;;  %v13432_v59 = vrot.slane %v13430_v61, 6  ;;  %v16566_v61 = vld [vmem:[%s27109_s0 + $0x1e0] sm:$0xf] }
 0x320   :  { %v13407_v53 = vrot.slane %v13406_v35, 4  ;;  %v13424_v18 = vor.u32 %v13423_v15, %v13420_v52  ;;  %v5496_v14 = vrot.slane %v5494_v6, 4  ;;  %v5497_v41 = vshll.u32 %v16558_v29, 16  ;;  %v25210_v6 = vld [vmem:[%s27109_s0 + $0x1e4] sm:$0x1] }
 0x321   :  { %19095 = vmatprep.mubr.msk.bf16.mxu0 %vm89_vm2, %v17597_v54  ;;  %v13433_v63 = vor.u32 %v13432_v59, %v13429_v42  ;;  %v5503_v43 = vshll.u32 %v25161_v4, 16  ;;  %v5508_v11 = vshrl.u32 %v16560_v38, 16  ;;  %v5511_v40 = vshll.u32 %v16560_v38, 16 }
 0x322   :  { %v13416_v51 = vsel %vm20976_vm11, %v13407_v53, %v13415_v27  ;;  %v13425_v56 = vrot.slane %v13424_v18, 4  ;;  %v5499_v46 = vrot.slane %v5497_v41, 5  ;;  %v5517_v57 = vshll.u32 %v25169_v22, 16  ;;  %v16568_v53 = vld [vmem:[%s27109_s0 + $0x1e8] sm:$0xf] }
 0x323   :  { %v5505_v47 = vrot.slane %v5503_v43, 5  ;;  %v5510_v39 = vrot.slane %v5508_v11, 4  ;;  %v5513_v17 = vrot.slane %v5511_v40, 5  ;;  %v5522_v37 = vshrl.u32 %v16562_v58, 16  ;;  %v25223_v41 = vld [vmem:[%s27109_s0 + $0x1ec] sm:$0x1] }
 0x324   :  { %v13434_v10 = vsel %vm20976_vm11, %v13425_v56, %v13433_v63  ;;  %v5500_v32 = vor.u32 %v5499_v46, %v5496_v14  ;;  %v5519_v49 = vrot.slane %v5517_v57, 5  ;;  %v5525_v44 = vshll.u32 %v16562_v58, 16  ;;  %v16570_v56 = vld [vmem:[%s27109_s0 + $0x1f0] sm:$0xf] }
 0x325   :  { %v17598_v29 = vcombine.low %v13416_v51, %v13434_v10  ;;  %v5514_v23 = vor.u32 %v5513_v17, %v5510_v39  ;;  %v5524_v31 = vrot.slane %v5522_v37, 4  ;;  %v5531_v20 = vshll.u32 %v25185_v50, 16  ;;  %v25235_v17 = vld [vmem:[%s27109_s0 + $0x1f4] sm:$0x1]  ;;  %v16572_v37 = vld [vmem:[%s27109_s0 + $0x1f8] sm:$0xf] }
 0x326   :  { %v5501_v55 = vrot.slane %v5500_v32, 4  ;;  %v5527_v60 = vrot.slane %v5525_v44, 5  ;;  %v5536_v52 = vshrl.u32 %v16564_v19, 16  ;;  %v5539_v25 = vshll.u32 %v16564_v19, 16  ;;  %v20080_v19 = vld [vmem:[%s27109_s0 + $0x28] ss:$8 sps:$4 sm:$0xff]  }
 0x327   :  { %19096 = vmatmul.mubr.msk.bf16.gmra.mrb[12].mxu0 %vm89_vm2, %v17598_v29  ;;  %v5515_v2 = vrot.slane %v5514_v23, 4  ;;  %v5533_v35 = vrot.slane %v5531_v20, 5  ;;  %v5545_v15 = vshll.u32 %v25190_v30, 16  ;;  %v13884_v38 = vand.u32 %v17656_v48, %v20305_v3 }
 0x328   :  { %v5506_v54 = vsel %vm20370_vm5, %v5501_v55, %v5505_v47  ;;  %v5528_v27 = vor.u32 %v5527_v60, %v5524_v31  ;;  %v5538_v42 = vrot.slane %v5536_v52, 4  ;;  %v5541_v59 = vrot.slane %v5539_v25, 5  ;;  %19101 = vmatprep.mubr.msk.bf16.mxu0 %vm89_vm2, %v20079_v26  ;;  %v20081_v26 = vld [vmem:[%s27109_s0 + $0x38] ss:$8 sps:$4 sm:$0xff]   ;;  %v25250_v31 = vld [vmem:[%s27109_s0 + $0x1fc] sm:$0x1] }
 0x329   :  { %v5520_v18 = vsel %vm20370_vm5, %v5515_v2, %v5519_v49  ;;  %v5547_v14 = vrot.slane %v5545_v15, 5  ;;  %19117 = vmatprep.subr.bf16.mxu0 %v13884_v38  ;;  %v5550_v58 = vshrl.u32 %v16566_v61, 16  ;;  %v5553_v63 = vshll.u32 %v16566_v61, 16  ;;  %v25258_v61 = vld [vmem:[%s27109_s0 + $0x8] sm:$0xe] }
 0x32a   :  { %v16579_v43 = vcombine.low %v5506_v54, %v5520_v18  ;;  %v5529_v11 = vrot.slane %v5528_v27, 4  ;;  %v5542_v40 = vor.u32 %v5541_v59, %v5538_v42  ;;  %v5559_v51 = vshll.u32 %v25210_v6, 16  ;;  %v25265_v18 = vld [vmem:[%s27109_s0 + $0x10] sm:$0xe] }
 0x32b   :  { %v5552_v46 = vrot.slane %v5550_v58, 4  ;;  %v5555_v57 = vrot.slane %v5553_v63, 5  ;;  %v5564_v47 = vshrl.u32 %v16568_v53, 16  ;;  %v5567_v39 = vshll.u32 %v16568_v53, 16 }
 0x32c   :  { %18659 = vmatprep.mubr.msk.bf16.mxu1 %vm89_vm2, %v16579_v43  ;;  %v5534_v10 = vsel %vm20370_vm5, %v5529_v11, %v5533_v35  ;;  %v5543_v32 = vrot.slane %v5542_v40, 4  ;;  %v5561_v49 = vrot.slane %v5559_v51, 5  ;;  %v5573_v44 = vshll.u32 %v25223_v41, 16  ;;  %v25278_v11 = vld [vmem:[%s27109_s0 + $0x18] sm:$0xe] }
 0x32d   :  { %v5556_v48 = vor.u32 %v5555_v57, %v5552_v46  ;;  %v5566_v29 = vrot.slane %v5564_v47, 4  ;;  %v5569_v23 = vrot.slane %v5567_v39, 5  ;;  %v5578_v20 = vshrl.u32 %v16570_v56, 16  ;;  %v25286_v57 = vld [vmem:[%s27109_s0 + $0x20] sm:$0xe] }
 0x32e   :  { %v5548_v55 = vsel %vm20370_vm5, %v5543_v32, %v5547_v14  ;;  %v5575_v60 = vrot.slane %v5573_v44, 5  ;;  %v5581_v52 = vshll.u32 %v16570_v56, 16  ;;  %v5587_v25 = vshll.u32 %v25235_v17, 16  ;;  %v20204_v56 = vld [vmem:[%s27109_s0 + $0xc] sm:$0x1] }
 0x32f   :  { %v16580_v2 = vcombine.low %v5534_v10, %v5548_v55  ;;  %19102 = vmatmul.mubr.msk.bf16.vlgmr.msra.gmra.mrb[0].mxu0 %vm89_vm2, %v20080_v19  ;;  %v5557_v35 = vrot.slane %v5556_v48, 4  ;;  %v5570_v15 = vor.u32 %v5569_v23, %v5566_v29  ;;  %v5580_v54 = vrot.slane %v5578_v20, 4  ;;  %v20205_v10 = vld [vmem:[%s27109_s0 + $0x14] sm:$0x1]  ;;  %v20083_v23 = vld [vmem:[%s27109_s0 + $0x178] ss:$8 sps:$4 sm:$0xff]  }
 0x330   :  { %19118 = vmatpush3.bf16.msra.mxu0 %v13884_v38  ;;  %v5583_v27 = vrot.slane %v5581_v52, 5  ;;  %v5589_v42 = vrot.slane %v5587_v25, 5  ;;  %v5592_v59 = vshrl.u32 %v16572_v37, 16  ;;  %v5595_v53 = vshll.u32 %v16572_v37, 16  ;;  %19105 = vmatprep.mubr.msk.bf16.mxu0 %vm89_vm2, %v20081_v26  ;;  %v20082_v38 = vld [vmem:[%s27109_s0 + $0x48] ss:$8 sps:$4 sm:$0xff]  }
 0x331   :  { %18660 = vmatmul.mubr.msk.bf16.gmra.mrb[8].mxu1 %vm89_vm2, %v16580_v2  ;;  %v5562_v14 = vsel %vm20370_vm5, %v5557_v35, %v5561_v49  ;;  %v5571_v58 = vrot.slane %v5570_v15, 4  ;;  %v5601_v63 = vshll.u32 %v25250_v31, 16  ;;  %v16607_v43 = vrot.slane %v25258_v61, 9  ;;  %v16672_v49 = vld [vmem:[%s27110_s1 + $0x26] sm:$0x3] }
 0x332   :  { %v5584_v40 = vor.u32 %v5583_v27, %v5580_v54  ;;  %v5594_v19 = vrot.slane %v5592_v59, 4  ;;  %v5597_v51 = vrot.slane %v5595_v53, 5  ;;  %v5821_v46 = vrot.slane %v20204_v56, 5  ;;  %v25305_v20 = vld [vmem:[%s27109_s0 + $0x28] sm:$0xe] }
 0x333   :  { %v5576_v47 = vsel %vm20370_vm5, %v5571_v58, %v5575_v60  ;;  %v5603_v39 = vrot.slane %v5601_v63, 5  ;;  %v16608_v37 = vrot.slane %v25265_v18, 9  ;;  %v5825_v32 = vrot.slane %v20205_v10, 5  ;;  %v20206_v52 = vld [vmem:[%s27109_s0 + $0x1c] sm:$0x1] }
 0x334   :  { %v16581_v44 = vcombine.low %v5562_v14, %v5576_v47  ;;  %v5585_v26 = vrot.slane %v5584_v40, 4  ;;  %v5598_v48 = vor.u32 %v5597_v51, %v5594_v19  ;;  %v5822_v29 = vsel %vm20439_vm8, %v16607_v43, %v5821_v46  ;;  %v25317_v35 = vld [vmem:[%s27109_s0 + $0x30] sm:$0xe]  ;;  %v20207_v59 = vld [vmem:[%s27109_s0 + $0x24] sm:$0x1] }
 0x335   :  { %v5826_v55 = vsel %vm20439_vm8, %v16608_v37, %v5825_v32  ;;  %v16609_v60 = vrot.slane %v25278_v11, 9  ;;  %v5829_v25 = vrot.slane %v20206_v52, 5  ;;  %v16610_v2 = vrot.slane %v25286_v57, 9  ;;  %v25328_v14 = vld [vmem:[%s27109_s0 + $0x38] sm:$0xe] }
 0x336   :  { %18663 = vmatprep.mubr.msk.bf16.mxu1 %vm89_vm2, %v16581_v44  ;;  %v5590_v15 = vsel %vm20370_vm5, %v5585_v26, %v5589_v42  ;;  %v5599_v54 = vrot.slane %v5598_v48, 4  ;;  %v16624_v27 = vcombine.low %v5822_v29, %v5826_v55  ;;  %v5833_v53 = vrot.slane %v20207_v59, 5  ;;  %v20208_v43 = vld [vmem:[%s27109_s0 + $0x2c] sm:$0x1]  ;;  %v25345_v19 = vld [vmem:[%s27109_s0 + $0x40] sm:$0xe] }
 0x337   :  { %19106 = vmatmul.mubr.msk.bf16.gmra.mrb[4].mxu0 %vm89_vm2, %v20082_v38  ;;  %v25333_v58 = vsel %vm20439_vm8, %v16609_v60, %v5829_v25  ;;  %v25336_v42 = vand.u32 %v16672_v49, %v20305_v3  ;;  %v16611_v63 = vrot.slane %v25305_v20, 9  ;;  %v5837_v40 = vrot.slane %v20208_v43, 5  ;;  %v20209_v46 = vld [vmem:[%s27109_s0 + $0x34] sm:$0x1]  ;;  %v25361_v37 = vld [vmem:[%s27109_s0 + $0x168] sm:$0xe] }
 0x338   :  { %v5604_v38 = vsel %vm20370_vm5, %v5599_v54, %v5603_v39  ;;  %v25351_v51 = vsel %vm20439_vm8, %v16610_v2, %v5833_v53  ;;  %19109 = vmatprep.mubr.msk.bf16.mxu0 %vm89_vm2, %v20083_v23  ;;  %v16612_v56 = vrot.slane %v25317_v35, 9  ;;  %v5841_v47 = vrot.slane %v20209_v46, 5  ;;  %v25366_v39 = vld [vmem:[%s27109_s0 + $0x170] sm:$0xe]  ;;  %v25382_v48 = vld [vmem:[%s27109_s0 + $0x178] sm:$0xe] }
 0x339   :  { %v16582_v10 = vcombine.low %v5590_v15, %v5604_v38  ;;  %18685 = vmatprep.subr.bf16.mxu1 %v25336_v42  ;;  %v20084_v49 = vld [vmem:[%s27109_s0 + $0x188] ss:$8 sps:$4 sm:$0xff]   ;;  %v25376_v44 = vsel %vm20439_vm8, %v16611_v63, %v5837_v40  ;;  %v16613_v26 = vrot.slane %v25328_v14, 9  ;;  %v25387_v29 = vld [vmem:[%s27109_s0 + $0x180] sm:$0xe]  ;;  %v16614_v52 = vrot.slane %v25345_v19, 9 }
 0x33a   :  { %v25391_v23 = vsel %vm20439_vm8, %v16612_v56, %v5841_v47  ;;  %v20210_v55 = vld [vmem:[%s27109_s0 + $0x3c] sm:$0x1]  ;;  %v20211_v25 = vld [vmem:[%s27109_s0 + $0x44] sm:$0x1]  ;;  %v17705_v15 = vld [vmem:[%s27110_s1 + $0x58] sm:$0x3] }
 0x33b   :  { %v5845_v60 = vrot.slane %v20210_v55, 5  ;;  %v5849_v2 = vrot.slane %v20211_v25, 5  ;;  %18664 = vmatmul.mubr.msk.bf16.gmra.mrb[12].mxu1 %vm89_vm2, %v16582_v10  ;;  %v16626_v54 = vcombine.low %v25376_v44, %v25391_v23  ;;  %v16615_v59 = vrot.slane %v25361_v37, 9  ;;  %v20212_v53 = vld [vmem:[%s27109_s0 + $0x16c] sm:$0x1] }
 0x33c   :  { %v5853_v63 = vrot.slane %v20212_v53, 5  ;;  %v16616_v43 = vrot.slane %v25366_v39, 9  ;;  %v16603_v40 = vld [vmem:[%s27109_s0 + $0x188] sm:$0xe]  ;;  %18669 = vmatprep.mubr.msk.bf16.mxu1 %vm89_vm2, %v16624_v27  ;;  %v20085_v46 = vld [vmem:[%s27109_s0 + $0x198] ss:$8 sps:$4 sm:$0xff]  }
 0x33d   :  { %v25417_v38 = vsel %vm20439_vm8, %v16613_v26, %v5845_v60  ;;  %v25421_v56 = vsel %vm20439_vm8, %v16614_v52, %v5849_v2  ;;  %v20213_v47 = vld [vmem:[%s27109_s0 + $0x174] sm:$0x1]  ;;  %v16617_v44 = vrot.slane %v25382_v48, 9  ;;  %v16604_v27 = vld [vmem:[%s27109_s0 + $0x190] sm:$0xe]  ;;  %v16618_v52 = vrot.slane %v25387_v29, 9 }
 0x33e   :  { %v5857_v10 = vrot.slane %v20213_v47, 5  ;;  %v25437_v23 = vsel %vm20439_vm8, %v16615_v59, %v5853_v63  ;;  %v20214_v55 = vld [vmem:[%s27109_s0 + $0x17c] sm:$0x1]  ;;  %v16605_v25 = vld [vmem:[%s27109_s0 + $0x198] sm:$0xe]  ;;  %v25454_v63 = vand.u32 %v17705_v15, %v20305_v3  ;;  %v16619_v47 = vrot.slane %v16603_v40, 9 }
 0x33f   :  { %v5861_v60 = vrot.slane %v20214_v55, 5  ;;  %v20215_v59 = vld [vmem:[%s27109_s0 + $0x184] sm:$0x1]  ;;  %v16606_v55 = vld [vmem:[%s27109_s0 + $0x1a0] sm:$0xe]  ;;  %19110 = vmatmul.mubr.msk.bf16.gmra.mrb[8].mxu0 %vm89_vm2, %v20084_v49  ;;  %v5873_v49 = vrot.slane %v24925_v62, 5 }
 0x340   :  { %v25448_v2 = vsel %vm20439_vm8, %v16616_v43, %v5857_v10  ;;  %v5865_v53 = vrot.slane %v20215_v59, 5  ;;  %v5869_v10 = vrot.slane %v24915_v21, 5  ;;  %v16620_v59 = vrot.slane %v16604_v27, 9  ;;  %v16640_v15 = vld [vmem:[%s27109_s0 + $0x60] sm:$0xe]  ;;  %19113 = vmatprep.mubr.msk.bf16.mxu0 %vm89_vm2, %v20085_v46  ;;  %19135 = vmatprep.subr.bf16.mxu0 %v25454_v63 }
 0x341   :  { %v25464_v43 = vsel %vm20439_vm8, %v16617_v44, %v5861_v60  ;;  %v16621_v26 = vrot.slane %v16605_v25, 9  ;;  %v5877_v44 = vrot.slane %v24936_v8, 5  ;;  %v16641_v21 = vld [vmem:[%s27109_s0 + $0x68] sm:$0xe]  ;;  %v5881_v62 = vrot.slane %v24952_v13, 5 }
 0x342   :  { %v25473_v40 = vsel %vm20439_vm8, %v16618_v52, %v5865_v53  ;;  %v20086_v27 = vld [vmem:[%s27109_s0 + $0x1a8] ss:$8 sps:$4 sm:$0xff]   ;;  %v25488_v60 = vsel %vm20439_vm8, %v16619_v47, %v5869_v10  ;;  %v16622_v52 = vrot.slane %v16606_v55, 9  ;;  %v25496_v25 = vsel %vm20439_vm8, %v16620_v59, %v5873_v49  ;;  %v16643_v47 = vld [vmem:[%s27109_s0 + $0x78] sm:$0xe] }
 0x343   :  { %v16642_v8 = vld [vmem:[%s27109_s0 + $0x70] sm:$0xe]  ;;  %v25500_v53 = vsel %vm20439_vm8, %v16621_v26, %v5877_v44  ;;  %v16656_v46 = vrot.slane %v16640_v15, 9  ;;  %v6099_v32 = vrot.slane %v25001_v0, 5  ;;  %v16705_v13 = vld [vmem:[%s27110_s1 + $0x28] sm:$0x3]  ;;  %v27158_v55 = vcombine.low %v25333_v58, %v25351_v51 }
 0x344   :  { %v20087_v26 = vld [vmem:[%s27109_s0 + $0x70] ss:$8 sps:$4 sm:$0xff]   ;;  %v25520_v10 = vsel %vm20439_vm8, %v16622_v52, %v5881_v62  ;;  %v16657_v59 = vrot.slane %v16641_v21, 9  ;;  %v6103_v15 = vrot.slane %v25013_v1, 5  ;;  %v16644_v58 = vld [vmem:[%s27109_s0 + $0x80] sm:$0xe] }
 0x345   :  { %18670 = vmatmul.mubr.msk.bf16.vlgmr.msra.gmra.mrb[0].mxu1 %vm89_vm2, %v27158_v55  ;;  %v25532_v49 = vsel %vm20439_vm8, %v16656_v46, %v6099_v32  ;;  %v16658_v44 = vrot.slane %v16642_v8, 9  ;;  %v6107_v21 = vrot.slane %v25019_v5, 5  ;;  %v16645_v1 = vld [vmem:[%s27109_s0 + $0x88] sm:$0xe]  ;;  %v16659_v52 = vrot.slane %v16643_v47, 9 }
 0x346   :  { %18686 = vmatpush3.bf16.msra.mxu1 %v25336_v42  ;;  %18673 = vmatprep.mubr.msk.bf16.mxu1 %vm89_vm2, %v16626_v54  ;;  %v16646_v42 = vld [vmem:[%s27109_s0 + $0x90] sm:$0xe]  ;;  %v25543_v54 = vsel %vm20439_vm8, %v16657_v59, %v6103_v15  ;;  %v6111_v62 = vrot.slane %v25029_v33, 5  ;;  %v25547_v32 = vand.u32 %v16705_v13, %v20305_v3  ;;  %v16647_v5 = vld [vmem:[%s27109_s0 + $0x98] sm:$0xe]  ;;  %v16660_v55 = vrot.slane %v16644_v58, 9 }
 0x347   :  { %v25556_v8 = vsel %vm20439_vm8, %v16658_v44, %v6107_v21  ;;  %v6115_v59 = vrot.slane %v25084_v34, 5  ;;  %v16648_v33 = vld [vmem:[%s27109_s0 + $0x1c0] sm:$0xe]  ;;  %19114 = vmatmul.mubr.msk.bf16.gmra.mrb[12].mxu0 %vm89_vm2, %v20086_v27  ;;  %v16661_v13 = vrot.slane %v16645_v1, 9  ;;  %v6119_v15 = vrot.slane %v25089_v12, 5 }
 0x348   :  { %v25565_v47 = vsel %vm20439_vm8, %v16659_v52, %v6111_v62  ;;  %18703 = vmatprep.subr.bf16.mxu1 %v25547_v32  ;;  %v16662_v44 = vrot.slane %v16646_v42, 9  ;;  %v16649_v34 = vld [vmem:[%s27109_s0 + $0x1c8] sm:$0xe]  ;;  %19119 = vmatprep.mubr.msk.bf16.mxu0 %vm89_vm2, %v20087_v26  ;;  %v6123_v21 = vrot.slane %v25102_v28, 5  ;;  %v16663_v52 = vrot.slane %v16647_v5, 9 }
 0x349   :  { %v25577_v27 = vsel %vm20439_vm8, %v16660_v55, %v6115_v59  ;;  %v16650_v12 = vld [vmem:[%s27109_s0 + $0x1d0] sm:$0xe]  ;;  %v25585_v1 = vsel %vm20439_vm8, %v16661_v13, %v6119_v15  ;;  %v6127_v26 = vrot.slane %v25112_v9, 5  ;;  %v16664_v42 = vrot.slane %v16648_v33, 9  ;;  %v16651_v55 = vld [vmem:[%s27109_s0 + $0x1d8] sm:$0xe] }
 0x34a   :  { %v6131_v62 = vrot.slane %v25161_v4, 5  ;;  %v20088_v28 = vld [vmem:[%s27109_s0 + $0x80] ss:$8 sps:$4 sm:$0xff]   ;;  %v25599_v59 = vsel %vm20439_vm8, %v16662_v44, %v6123_v21  ;;  %v16665_v13 = vrot.slane %v16649_v34, 9  ;;  %v6135_v9 = vrot.slane %v25169_v22, 5 }
 0x34b   :  { %v17673_v4 = vld [vmem:[%s27109_s0 + $0x18] sm:$0xf]  ;;  %v27159_v33 = vcombine.low %v25417_v38, %v25421_v56  ;;  %v25611_v15 = vsel %vm20439_vm8, %v16663_v52, %v6127_v26  ;;  %v16666_v34 = vrot.slane %v16650_v12, 9  ;;  %v6139_v22 = vrot.slane %v25185_v50, 5  ;;  %v17674_v21 = vld [vmem:[%s27109_s0 + $0x1c] sm:$0x1] }
 0x34c   :  { %v25615_v44 = vsel %vm20439_vm8, %v16664_v42, %v6131_v62  ;;  %v17675_v38 = vld [vmem:[%s27109_s0 + $0x20] sm:$0xf]  ;;  %v27160_v56 = vcombine.low %v25437_v23, %v25448_v2  ;;  %v20089_v52 = vld [vmem:[%s27109_s0 + $0x90] ss:$8 sps:$4 sm:$0xff]   ;;  %v25635_v12 = vsel %vm20439_vm8, %v16665_v13, %v6135_v9  ;;  %v16667_v26 = vrot.slane %v16651_v55, 9 }
 0x34d   :  { %18674 = vmatmul.mubr.msk.bf16.gmra.mrb[4].mxu1 %vm89_vm2, %v27159_v33  ;;  %v6143_v42 = vrot.slane %v25190_v30, 5  ;;  %v17676_v23 = vld [vmem:[%s27109_s0 + $0x24] sm:$0x1]  ;;  %v25645_v62 = vsel %vm20439_vm8, %v16666_v34, %v6139_v22  ;;  %v14032_v33 = vshrl.u32 %v17673_v4, 16  ;;  %v17754_v13 = vld [vmem:[%s27110_s1 + $0x5a] sm:$0x3] }
 0x34e   :  { %18677 = vmatprep.mubr.msk.bf16.mxu1 %vm89_vm2, %v27160_v56  ;;  %v14035_v56 = vshll.u32 %v17673_v4, 16  ;;  %v17677_v30 = vld [vmem:[%s27109_s0 + $0x28] sm:$0xf]  ;;  %v14041_v9 = vshll.u32 %v17674_v21, 16  ;;  %v14046_v2 = vshrl.u32 %v17675_v38, 16  ;;  %v14049_v50 = vshll.u32 %v17675_v38, 16 }
 0x34f   :  { %v25655_v55 = vsel %vm20439_vm8, %v16667_v26, %v6143_v42  ;;  %v17678_v34 = vld [vmem:[%s27109_s0 + $0x2c] sm:$0x1]  ;;  %19120 = vmatmul.mubr.msk.bf16.vlgmr.msra.gmra.mrb[0].mxu0 %vm89_vm2, %v20088_v28  ;;  %v14034_v22 = vrot.slane %v14032_v33, 4  ;;  %v14055_v58 = vshll.u32 %v17676_v23, 16  ;;  %v17679_v26 = vld [vmem:[%s27109_s0 + $0x30] sm:$0xf]  ;;  %v25669_v46 = vand.u32 %v17754_v13, %v20305_v3 }
 0x350   :  { %v14037_v5 = vrot.slane %v14035_v56, 5  ;;  %19136 = vmatpush3.bf16.msra.mxu0 %v25454_v63  ;;  %19123 = vmatprep.mubr.msk.bf16.mxu0 %vm89_vm2, %v20089_v52  ;;  %v14043_v21 = vrot.slane %v14041_v9, 5  ;;  %v14048_v38 = vrot.slane %v14046_v2, 4  ;;  %v14051_v42 = vrot.slane %v14049_v50, 5  ;;  %v17680_v28 = vld [vmem:[%s27109_s0 + $0x34] sm:$0x1] }
 0x351   :  { %v20090_v23 = vld [vmem:[%s27109_s0 + $0xa0] ss:$8 sps:$4 sm:$0xff]   ;;  %v14057_v56 = vrot.slane %v14055_v58, 5  ;;  %v14060_v4 = vshrl.u32 %v17677_v30, 16  ;;  %v14063_v63 = vshll.u32 %v17677_v30, 16  ;;  %19153 = vmatprep.subr.bf16.mxu0 %v25669_v46  ;;  %v14069_v2 = vshll.u32 %v17678_v34, 16 }
 0x352   :  { %v14038_v33 = vor.u32 %v14037_v5, %v14034_v22  ;;  %v20091_v52 = vld [vmem:[%s27109_s0 + $0x1d0] ss:$8 sps:$4 sm:$0xff]   ;;  %v14052_v50 = vor.u32 %v14051_v42, %v14048_v38  ;;  %v14074_v13 = vshrl.u32 %v17679_v26, 16  ;;  %v14077_v9 = vshll.u32 %v17679_v26, 16  ;;  %v16652_v51 = vld [vmem:[%s27109_s0 + $0x1e0] sm:$0xe] }
 0x353   :  { %v27161_v5 = vcombine.low %v25464_v43, %v25473_v40  ;;  %v14062_v30 = vrot.slane %v14060_v4, 4  ;;  %v14065_v22 = vrot.slane %v14063_v63, 5  ;;  %v14083_v0 = vshll.u32 %v17680_v28, 16  ;;  %v16653_v38 = vld [vmem:[%s27109_s0 + $0x1e8] sm:$0xe] }
 0x354   :  { %v14039_v58 = vrot.slane %v14038_v33, 4  ;;  %v27162_v34 = vcombine.low %v25488_v60, %v25496_v25  ;;  %v14053_v26 = vrot.slane %v14052_v50, 4  ;;  %v14071_v42 = vrot.slane %v14069_v2, 5  ;;  %v16654_v43 = vld [vmem:[%s27109_s0 + $0x1f0] sm:$0xe] }
 0x355   :  { %18678 = vmatmul.mubr.msk.bf16.gmra.mrb[8].mxu1 %vm89_vm2, %v27161_v5  ;;  %v14076_v24 = vrot.slane %v14074_v13, 4  ;;  %v14079_v7 = vrot.slane %v14077_v9, 5  ;;  %v14066_v4 = vor.u32 %v14065_v22, %v14062_v30  ;;  %v14085_v28 = vrot.slane %v14083_v0, 5  ;;  %v16655_v60 = vld [vmem:[%s27109_s0 + $0x1f8] sm:$0xe] }
 0x356   :  { %18681 = vmatprep.mubr.msk.bf16.mxu1 %vm89_vm2, %v27162_v34  ;;  %v14044_v40 = vsel %vm20370_vm5, %v14039_v58, %v14043_v21  ;;  %v16668_v33 = vrot.slane %v16652_v51, 9  ;;  %v14058_v25 = vsel %vm20370_vm5, %v14053_v26, %v14057_v56  ;;  %v6147_v50 = vrot.slane %v25210_v6, 5  ;;  %v17681_v13 = vld [vmem:[%s27109_s0 + $0x38] sm:$0xf]  ;;  %v20092_v56 = vld [vmem:[%s27109_s0 + $0x1e0] ss:$8 sps:$4 sm:$0xff]  }
 0x357   :  { %v14080_v63 = vor.u32 %v14079_v7, %v14076_v24  ;;  %v16669_v2 = vrot.slane %v16653_v38, 9  ;;  %19124 = vmatmul.mubr.msk.bf16.gmra.mrb[4].mxu0 %vm89_vm2, %v20090_v23  ;;  %v25710_v21 = vcombine.low %v14044_v40, %v14058_v25  ;;  %v14067_v0 = vrot.slane %v14066_v4, 4  ;;  %v17682_v23 = vld [vmem:[%s27109_s0 + $0x3c] sm:$0x1]  ;;  %v17684_v26 = vld [vmem:[%s27109_s0 + $0x44] sm:$0x1] }
 0x358   :  { %v6151_v51 = vrot.slane %v25223_v41, 5  ;;  %v16670_v9 = vrot.slane %v16654_v43, 9  ;;  %19127 = vmatprep.mubr.msk.bf16.mxu0 %vm89_vm2, %v20091_v52  ;;  %v25716_v7 = vsel %vm20439_vm8, %v16668_v33, %v6147_v50  ;;  %v6155_v24 = vrot.slane %v25235_v17, 5  ;;  %v17683_v17 = vld [vmem:[%s27109_s0 + $0x40] sm:$0xf] }
 0x359   :  { %v14081_v5 = vrot.slane %v14080_v63, 4  ;;  %v16671_v6 = vrot.slane %v16655_v60, 9  ;;  %v14072_v41 = vsel %vm20370_vm5, %v14067_v0, %v14071_v42  ;;  %v6159_v58 = vrot.slane %v25250_v31, 5  ;;  %v17685_v42 = vld [vmem:[%s27109_s0 + $0x48] sm:$0xf] }
 0x35a   :  { %v25729_v52 = vsel %vm20439_vm8, %v16669_v2, %v6151_v51  ;;  %v14088_v30 = vshrl.u32 %v17681_v13, 16  ;;  %v25741_v34 = vsel %vm20439_vm8, %v16670_v9, %v6155_v24  ;;  %v14091_v31 = vshll.u32 %v17681_v13, 16  ;;  %v20093_v40 = vld [vmem:[%s27109_s0 + $0x1f0] ss:$8 sps:$4 sm:$0xff]   ;;  %v17686_v25 = vld [vmem:[%s27109_s0 + $0x4c] sm:$0x1] }
 0x35b   :  { %v14086_v22 = vsel %vm20370_vm5, %v14081_v5, %v14085_v28  ;;  %v16679_v38 = vcombine.low %v25716_v7, %v25729_v52  ;;  %v27163_v43 = vcombine.low %v25500_v53, %v25520_v10  ;;  %v25760_v28 = vsel %vm20439_vm8, %v16671_v6, %v6159_v58  ;;  %v17687_v13 = vld [vmem:[%s27109_s0 + $0x50] sm:$0xf]  ;;  %v16693_v52 = vld [vmem:[%s27109_s0 + $0x2c] sm:$0x3] }
 0x35c   :  { %v25756_v4 = vcombine.low %v14072_v41, %v14086_v22  ;;  %v14090_v33 = vrot.slane %v14088_v30, 4  ;;  %v14097_v60 = vshll.u32 %v17682_v23, 16  ;;  %v27164_v53 = vcombine.low %v25532_v49, %v25543_v54  ;;  %v17688_v49 = vld [vmem:[%s27109_s0 + $0x54] sm:$0x1] }
 0x35d   :  { %18682 = vmatmul.mubr.msk.bf16.gmra.mrb[12].mxu1 %vm89_vm2, %v27163_v43  ;;  %v16680_v10 = vcombine.low %v25741_v34, %v25760_v28  ;;  %v14093_v63 = vrot.slane %v14091_v31, 5  ;;  %v14102_v50 = vshrl.u32 %v17683_v17, 16  ;;  %v14105_v2 = vshll.u32 %v17683_v17, 16  ;;  %v16689_v43 = vld [vmem:[%s27109_s0 + $0xc] sm:$0x3] }
 0x35e   :  { %18687 = vmatprep.mubr.msk.bf16.mxu1 %vm89_vm2, %v27164_v53  ;;  %v14099_v0 = vrot.slane %v14097_v60, 5  ;;  %v14111_v51 = vshll.u32 %v17684_v26, 16  ;;  %v14116_v9 = vshrl.u32 %v17685_v42, 16  ;;  %v14119_v5 = vshll.u32 %v17685_v42, 16 }
 0x35f   :  { %v14094_v24 = vor.u32 %v14093_v63, %v14090_v33  ;;  %v14104_v6 = vrot.slane %v14102_v50, 4  ;;  %v14107_v23 = vrot.slane %v14105_v2, 5  ;;  %v14125_v54 = vshll.u32 %v17686_v25, 16  ;;  %19128 = vmatmul.mubr.msk.bf16.gmra.mrb[8].mxu0 %vm89_vm2, %v20092_v56 }
 0x360   :  { %v14113_v41 = vrot.slane %v14111_v51, 5  ;;  %v14118_v58 = vrot.slane %v14116_v9, 4  ;;  %v14121_v17 = vrot.slane %v14119_v5, 5  ;;  %v14130_v30 = vshrl.u32 %v17687_v13, 16  ;;  %19131 = vmatprep.mubr.msk.bf16.mxu0 %vm89_vm2, %v20093_v40 }
 0x361   :  { %v14095_v22 = vrot.slane %v14094_v24, 4  ;;  %v14108_v26 = vor.u32 %v14107_v23, %v14104_v6  ;;  %v14127_v31 = vrot.slane %v14125_v54, 5  ;;  %v14133_v42 = vshll.u32 %v17687_v13, 16  ;;  %v20094_v13 = vld [vmem:[%s27109_s0 + $0x200] ss:$8 sps:$4 sm:$0xff]  }
 0x362   :  { %v14122_v33 = vor.u32 %v14121_v17, %v14118_v58  ;;  %v14132_v60 = vrot.slane %v14130_v30, 4  ;;  %v14139_v53 = vshll.u32 %v17688_v49, 16  ;;  %v6344_v25 = vshrl.u32 %v25258_v61, 16 }
 0x363   :  { %v14100_v56 = vsel %vm20370_vm5, %v14095_v22, %v14099_v0  ;;  %v14109_v63 = vrot.slane %v14108_v26, 4  ;;  %v14135_v50 = vrot.slane %v14133_v42, 5  ;;  %v6347_v40 = vshll.u32 %v25258_v61, 16  ;;  %v16691_v42 = vld [vmem:[%s27109_s0 + $0x1c] sm:$0x3] }
 0x364   :  { %v27165_v2 = vcombine.low %v25556_v8, %v25565_v47  ;;  %v14123_v51 = vrot.slane %v14122_v33, 4  ;;  %v14141_v9 = vrot.slane %v14139_v53, 5  ;;  %v6346_v5 = vrot.slane %v6344_v25, 5  ;;  %v16690_v47 = vld [vmem:[%s27109_s0 + $0x14] sm:$0x3] }
 0x365   :  { %v6353_v24 = vshrl.u32 %v16689_v43, 16  ;;  %v27166_v0 = vcombine.low %v25577_v27, %v25585_v1  ;;  %v14114_v61 = vsel %vm20370_vm5, %v14109_v63, %v14113_v41  ;;  %v14136_v8 = vor.u32 %v14135_v50, %v14132_v60  ;;  %v16692_v63 = vld [vmem:[%s27109_s0 + $0x24] sm:$0x3] }
 0x366   :  { %18688 = vmatmul.mubr.msk.bf16.vlgmr.msra.gmra.mrb[0].mxu1 %vm89_vm2, %v27165_v2  ;;  %v6349_v6 = vrot.slane %v6347_v40, 6  ;;  %v6356_v23 = vshll.u32 %v16689_v43, 16  ;;  %v17708_v49 = vcombine.low %v14100_v56, %v14114_v61  ;;  %v14128_v54 = vsel %vm20370_vm5, %v14123_v51, %v14127_v31  ;;  %v16738_v61 = vld [vmem:[%s27110_s1 + $0x2a] sm:$0x3] }
 0x367   :  { %18704 = vmatpush3.bf16.msra.mxu1 %v25547_v32  ;;  %18691 = vmatprep.mubr.msk.bf16.mxu1 %vm89_vm2, %v27166_v0  ;;  %v6355_v32 = vrot.slane %v6353_v24, 5  ;;  %v6362_v58 = vshrl.u32 %v25265_v18, 16  ;;  %v14137_v27 = vrot.slane %v14136_v8, 4  ;;  %v6365_v30 = vshll.u32 %v25265_v18, 16 }
 0x368   :  { %v6350_v1 = vor.u32 %v6349_v6, %v6346_v5  ;;  %v6358_v17 = vrot.slane %v6356_v23, 6  ;;  %19132 = vmatmul.mubr.msk.bf16.gmra.mrb[12].mxu0 %vm89_vm2, %v20094_v13  ;;  %v6371_v22 = vshrl.u32 %v16690_v47, 16  ;;  %v6374_v26 = vshll.u32 %v16690_v47, 16  ;;  %v17689_v6 = vld [vmem:[%s27109_s0 + $0x178] sm:$0xf] }
 0x369   :  { %v6364_v41 = vrot.slane %v6362_v58, 5  ;;  %v6380_v43 = vshrl.u32 %v25278_v11, 16  ;;  %19137 = vmatprep.mubr.msk.bf16.mxu0 %vm89_vm2, %v25710_v21  ;;  %v14142_v31 = vsel %vm20370_vm5, %v14137_v27, %v14141_v9  ;;  %v6367_v18 = vrot.slane %v6365_v30, 6  ;;  %v17690_v58 = vld [vmem:[%s27109_s0 + $0x17c] sm:$0x1] }
 0x36a   :  { %v6351_v33 = vrot.slane %v6350_v1, 4  ;;  %v6359_v60 = vor.u32 %v6358_v17, %v6355_v32  ;;  %v25816_v53 = vcombine.low %v14128_v54, %v14142_v31  ;;  %v6373_v25 = vrot.slane %v6371_v22, 5  ;;  %v17691_v17 = vld [vmem:[%s27109_s0 + $0x180] sm:$0xf] }
 0x36b   :  { %v6376_v56 = vrot.slane %v6374_v26, 6  ;;  %v6382_v50 = vrot.slane %v6380_v43, 5  ;;  %v6368_v21 = vor.u32 %v6367_v18, %v6364_v41  ;;  %v6383_v2 = vshll.u32 %v25278_v11, 16 }
 0x36c   :  { %v25823_v40 = vsel %vm20976_vm11, %v6351_v33, %v6359_v60  ;;  %v6389_v13 = vshrl.u32 %v16691_v42, 16  ;;  %v27167_v51 = vcombine.low %v25599_v59, %v25611_v15  ;;  %v6392_v5 = vshll.u32 %v16691_v42, 16  ;;  %v17692_v42 = vld [vmem:[%s27109_s0 + $0x184] sm:$0x1] }
 0x36d   :  { %v6377_v9 = vor.u32 %v6376_v56, %v6373_v25  ;;  %v6398_v24 = vshrl.u32 %v25286_v57, 16  ;;  %v6401_v0 = vshll.u32 %v25286_v57, 16  ;;  %v27168_v8 = vcombine.low %v25615_v44, %v25635_v12 }
 0x36e   :  { %18692 = vmatmul.mubr.msk.bf16.gmra.mrb[4].mxu1 %vm89_vm2, %v27167_v51  ;;  %v6369_v11 = vrot.slane %v6368_v21, 4  ;;  %v6385_v47 = vrot.slane %v6383_v2, 6  ;;  %v6391_v59 = vrot.slane %v6389_v13, 5  ;;  %v6407_v15 = vshrl.u32 %v16692_v63, 16  ;;  %v17695_v13 = vld [vmem:[%s27109_s0 + $0x190] sm:$0xf] }
 0x36f   :  { %18695 = vmatprep.mubr.msk.bf16.mxu1 %vm89_vm2, %v27168_v8  ;;  %v6394_v23 = vrot.slane %v6392_v5, 6  ;;  %v6400_v54 = vrot.slane %v6398_v24, 5  ;;  %v6403_v57 = vrot.slane %v6401_v0, 6  ;;  %v6410_v32 = vshll.u32 %v16692_v63, 16 }
 0x370   :  { %v25847_v44 = vsel %vm20976_vm11, %v6369_v11, %v6377_v9  ;;  %v6386_v12 = vor.u32 %v6385_v47, %v6382_v50  ;;  %v6409_v27 = vrot.slane %v6407_v15, 5  ;;  %v25850_v1 = vand.u32 %v16738_v61, %v20305_v3  ;;  %19138 = vmatmul.mubr.msk.bf16.vlgmr.msra.gmra.mrb[0].mxu0 %vm89_vm2, %v25756_v4  ;;  %v17693_v4 = vld [vmem:[%s27109_s0 + $0x188] sm:$0xf] }
 0x371   :  { %v16706_v30 = vcombine.low %v25823_v40, %v25847_v44  ;;  %v6395_v41 = vor.u32 %v6394_v23, %v6391_v59  ;;  %v6404_v22 = vor.u32 %v6403_v57, %v6400_v54  ;;  %v6412_v26 = vrot.slane %v6410_v32, 6  ;;  %19154 = vmatpush3.bf16.msra.mxu0 %v25669_v46  ;;  %19141 = vmatprep.mubr.msk.bf16.mxu0 %vm89_vm2, %v17708_v49  ;;  %v17694_v46 = vld [vmem:[%s27109_s0 + $0x18c] sm:$0x1] }
 0x372   :  { %v6387_v43 = vrot.slane %v6386_v12, 4  ;;  %v14144_v31 = vshrl.u32 %v17689_v6, 16  ;;  %v14147_v33 = vshll.u32 %v17689_v6, 16  ;;  %v14153_v60 = vshll.u32 %v17690_v58, 16  ;;  %18721 = vmatprep.subr.bf16.mxu1 %v25850_v1 }
 0x373   :  { %v6405_v18 = vrot.slane %v6404_v22, 4  ;;  %v6413_v25 = vor.u32 %v6412_v26, %v6409_v27  ;;  %v14158_v56 = vshrl.u32 %v17691_v17, 16  ;;  %v14161_v63 = vshll.u32 %v17691_v17, 16 }
 0x374   :  { %v25873_v49 = vsel %vm20976_vm11, %v6387_v43, %v6395_v41  ;;  %v14146_v50 = vrot.slane %v14144_v31, 4  ;;  %v14149_v21 = vrot.slane %v14147_v33, 5  ;;  %v14155_v2 = vrot.slane %v14153_v60, 5  ;;  %v16694_v43 = vld [vmem:[%s27109_s0 + $0x34] sm:$0x3] }
 0x375   :  { %v27169_v51 = vcombine.low %v25645_v62, %v25655_v55  ;;  %v25884_v9 = vsel %vm20976_vm11, %v6405_v18, %v6413_v25  ;;  %v14160_v5 = vrot.slane %v14158_v56, 4  ;;  %v14163_v24 = vrot.slane %v14161_v63, 5  ;;  %v17696_v62 = vld [vmem:[%s27109_s0 + $0x194] sm:$0x1] }
 0x376   :  { %v14167_v0 = vshll.u32 %v17692_v42, 16  ;;  %v16707_v61 = vcombine.low %v25873_v49, %v25884_v9  ;;  %v14150_v8 = vor.u32 %v14149_v21, %v14146_v50  ;;  %v14172_v55 = vshrl.u32 %v17693_v4, 16  ;;  %v17699_v49 = vld [vmem:[%s27109_s0 + $0x1a0] sm:$0xf] }
 0x377   :  { %18696 = vmatmul.mubr.msk.bf16.gmra.mrb[8].mxu1 %vm89_vm2, %v27169_v51  ;;  %v14175_v11 = vshll.u32 %v17693_v4, 16  ;;  %v14164_v47 = vor.u32 %v14163_v24, %v14160_v5  ;;  %v14181_v15 = vshll.u32 %v17694_v46, 16  ;;  %v14186_v6 = vshrl.u32 %v17695_v13, 16  ;;  %v16695_v51 = vld [vmem:[%s27109_s0 + $0x3c] sm:$0x3] }
 0x378   :  { %18699 = vmatprep.mubr.msk.bf16.mxu1 %vm89_vm2, %v16679_v38  ;;  %v14169_v59 = vrot.slane %v14167_v0, 5  ;;  %v14151_v23 = vrot.slane %v14150_v8, 4  ;;  %v14174_v54 = vrot.slane %v14172_v55, 4  ;;  %v14189_v7 = vshll.u32 %v17695_v13, 16  ;;  %19142 = vmatmul.mubr.msk.bf16.gmra.mrb[4].mxu0 %vm89_vm2, %v25816_v53  ;;  %v16696_v55 = vld [vmem:[%s27109_s0 + $0x44] sm:$0x3] }
 0x379   :  { %v14177_v57 = vrot.slane %v14175_v11, 5  ;;  %v14165_v38 = vrot.slane %v14164_v47, 4  ;;  %v14183_v32 = vrot.slane %v14181_v15, 5  ;;  %v14188_v58 = vrot.slane %v14186_v6, 4 }
 0x37a   :  { %v14195_v12 = vshll.u32 %v17696_v62, 16  ;;  %v14156_v27 = vsel %vm20370_vm5, %v14151_v23, %v14155_v2  ;;  %v14191_v41 = vrot.slane %v14189_v7, 5  ;;  %v6416_v22 = vshrl.u32 %v25305_v20, 16 }
 0x37b   :  { %v14178_v17 = vor.u32 %v14177_v57, %v14174_v54  ;;  %v14170_v26 = vsel %vm20370_vm5, %v14165_v38, %v14169_v59  ;;  %v6419_v53 = vshll.u32 %v25305_v20, 16  ;;  %v6425_v31 = vshrl.u32 %v16693_v52, 16  ;;  %v17697_v57 = vld [vmem:[%s27109_s0 + $0x198] sm:$0xf] }
 0x37c   :  { %v14197_v42 = vrot.slane %v14195_v12, 5  ;;  %v17710_v33 = vcombine.low %v14156_v27, %v14170_v26  ;;  %v14192_v4 = vor.u32 %v14191_v41, %v14188_v58  ;;  %v6418_v18 = vrot.slane %v6416_v22, 5 }
 0x37d   :  { %v14179_v60 = vrot.slane %v14178_v17, 4  ;;  %v6421_v25 = vrot.slane %v6419_v53, 6  ;;  %v6427_v56 = vrot.slane %v6425_v31, 5  ;;  %v6428_v63 = vshll.u32 %v16693_v52, 16 }
 0x37e   :  { %v6434_v46 = vshrl.u32 %v25317_v35, 16  ;;  %19145 = vmatprep.mubr.msk.bf16.mxu0 %vm89_vm2, %v17710_v33  ;;  %v14193_v50 = vrot.slane %v14192_v4, 4  ;;  %v6437_v34 = vshll.u32 %v25317_v35, 16  ;;  %v6443_v28 = vshrl.u32 %v16694_v43, 16  ;;  %v17701_v4 = vld [vmem:[%s27109_s0 + $0x1a8] sm:$0xf] }
 0x37f   :  { %18700 = vmatmul.mubr.msk.bf16.gmra.mrb[12].mxu1 %vm89_vm2, %v16680_v10  ;;  %v14184_v20 = vsel %vm20370_vm5, %v14179_v60, %v14183_v32  ;;  %v6422_v10 = vor.u32 %v6421_v25, %v6418_v18  ;;  %v6430_v21 = vrot.slane %v6428_v63, 6  ;;  %v6446_v13 = vshll.u32 %v16694_v43, 16 }
 0x380   :  { %18705 = vmatprep.mubr.msk.bf16.mxu1 %vm89_vm2, %v16706_v30  ;;  %v6436_v2 = vrot.slane %v6434_v46, 5  ;;  %v14198_v40 = vsel %vm20370_vm5, %v14193_v50, %v14197_v42  ;;  %v6439_v44 = vrot.slane %v6437_v34, 6  ;;  %v6445_v30 = vrot.slane %v6443_v28, 5  ;;  %v25971_v28 = vld [vmem:[%s27109_s0 + $0x1ac] sm:$0x1] }
 0x381   :  { %v6452_v5 = vshrl.u32 %v25328_v14, 16  ;;  %v17711_v24 = vcombine.low %v14184_v20, %v14198_v40  ;;  %v6423_v0 = vrot.slane %v6422_v10, 4  ;;  %v6431_v8 = vor.u32 %v6430_v21, %v6427_v56 }
 0x382   :  { %v6448_v35 = vrot.slane %v6446_v13, 6  ;;  %v6440_v62 = vor.u32 %v6439_v44, %v6436_v2  ;;  %v6455_v47 = vshll.u32 %v25328_v14, 16  ;;  %v6461_v59 = vshrl.u32 %v16695_v51, 16  ;;  %v17703_v13 = vld [vmem:[%s27109_s0 + $0x1b0] sm:$0xf] }
 0x383   :  { %v6454_v11 = vrot.slane %v6452_v5, 5  ;;  %19146 = vmatmul.mubr.msk.bf16.gmra.mrb[8].mxu0 %vm89_vm2, %v17711_v24  ;;  %v6432_v15 = vsel %vm20976_vm11, %v6423_v0, %v6431_v8  ;;  %v6464_v23 = vshll.u32 %v16695_v51, 16  ;;  %v6470_v54 = vshrl.u32 %v25345_v19, 16  ;;  %v25981_v5 = vld [vmem:[%s27109_s0 + $0x1b4] sm:$0x1] }
 0x384   :  { %v6449_v6 = vor.u32 %v6448_v35, %v6445_v30  ;;  %v6441_v7 = vrot.slane %v6440_v62, 4  ;;  %v6457_v52 = vrot.slane %v6455_v47, 6  ;;  %v6463_v38 = vrot.slane %v6461_v59, 5 }
 0x385   :  { %v6473_v32 = vshll.u32 %v25345_v19, 16  ;;  %v6466_v14 = vrot.slane %v6464_v23, 6  ;;  %v6472_v58 = vrot.slane %v6470_v54, 5  ;;  %v6479_v12 = vshrl.u32 %v16696_v55, 16  ;;  %v25950_v19 = vld [vmem:[%s27109_s0 + $0x19c] sm:$0x1] }
 0x386   :  { %v6482_v27 = vshll.u32 %v16696_v55, 16  ;;  %v6450_v17 = vsel %vm20976_vm11, %v6441_v7, %v6449_v6  ;;  %v6458_v41 = vor.u32 %v6457_v52, %v6454_v11  ;;  %v14200_v9 = vshrl.u32 %v17697_v57, 16  ;;  %v16697_v54 = vld [vmem:[%s27109_s0 + $0x16c] sm:$0x3] }
 0x387   :  { %18706 = vmatmul.mubr.msk.bf16.vlgmr.msra.gmra.mrb[0].mxu1 %vm89_vm2, %v16707_v61  ;;  %v6475_v22 = vrot.slane %v6473_v32, 6  ;;  %v16708_v61 = vcombine.low %v6432_v15, %v6450_v17  ;;  %v6467_v26 = vor.u32 %v6466_v14, %v6463_v38  ;;  %v6481_v42 = vrot.slane %v6479_v12, 5  ;;  %v16698_v12 = vld [vmem:[%s27109_s0 + $0x174] sm:$0x3] }
 0x388   :  { %18722 = vmatpush3.bf16.msra.mxu1 %v25850_v1  ;;  %v6484_v43 = vrot.slane %v6482_v27, 6  ;;  %v25958_v1 = vld [vmem:[%s27109_s0 + $0x1a4] sm:$0x1]  ;;  %v6459_v53 = vrot.slane %v6458_v41, 4  ;;  %v14202_v33 = vrot.slane %v14200_v9, 4  ;;  %v14203_v60 = vshll.u32 %v17697_v57, 16 }
 0x389   :  { %v6476_v31 = vor.u32 %v6475_v22, %v6472_v58  ;;  %18709 = vmatprep.mubr.msk.bf16.mxu1 %vm89_vm2, %v16708_v61  ;;  %v14209_v25 = vshll.u32 %v25950_v19, 16  ;;  %v14214_v56 = vshrl.u32 %v17699_v49, 16  ;;  %v14217_v63 = vshll.u32 %v17699_v49, 16 }
 0x38a   :  { %v6485_v18 = vor.u32 %v6484_v43, %v6481_v42  ;;  %v6468_v46 = vsel %vm20976_vm11, %v6459_v53, %v6467_v26  ;;  %v14205_v50 = vrot.slane %v14203_v60, 5  ;;  %v14223_v34 = vshll.u32 %v25958_v1, 16 }
 0x38b   :  { %v6477_v20 = vrot.slane %v6476_v31, 4  ;;  %v14211_v10 = vrot.slane %v14209_v25, 5  ;;  %v14216_v21 = vrot.slane %v14214_v56, 4  ;;  %v14219_v2 = vrot.slane %v14217_v63, 5  ;;  %v16699_v56 = vld [vmem:[%s27109_s0 + $0x17c] sm:$0x3] }
 0x38c   :  { %v14228_v51 = vshrl.u32 %v17701_v4, 16  ;;  %v14206_v44 = vor.u32 %v14205_v50, %v14202_v33  ;;  %v14225_v30 = vrot.slane %v14223_v34, 5  ;;  %v14231_v24 = vshll.u32 %v17701_v4, 16 }
 0x38d   :  { %v6486_v40 = vsel %vm20976_vm11, %v6477_v20, %v6485_v18  ;;  %v14220_v8 = vor.u32 %v14219_v2, %v14216_v21  ;;  %v14237_v62 = vshll.u32 %v25971_v28, 16  ;;  %v14242_v47 = vshrl.u32 %v17703_v13, 16 }
 0x38e   :  { %v16709_v0 = vcombine.low %v6468_v46, %v6486_v40  ;;  %v14230_v35 = vrot.slane %v14228_v51, 4  ;;  %v14207_v55 = vrot.slane %v14206_v44, 4  ;;  %v14233_v11 = vrot.slane %v14231_v24, 5 }
 0x38f   :  { %v14245_v59 = vshll.u32 %v17703_v13, 16  ;;  %v14221_v15 = vrot.slane %v14220_v8, 4  ;;  %v14239_v6 = vrot.slane %v14237_v62, 5  ;;  %v14251_v23 = vshll.u32 %v25981_v5, 16  ;;  %v16700_v13 = vld [vmem:[%s27109_s0 + $0x184] sm:$0x3] }
 0x390   :  { %18710 = vmatmul.mubr.msk.bf16.gmra.mrb[4].mxu1 %vm89_vm2, %v16709_v0  ;;  %v6488_v57 = vshrl.u32 %v25361_v37, 16  ;;  %v14212_v7 = vsel %vm20370_vm5, %v14207_v55, %v14211_v10  ;;  %v14234_v52 = vor.u32 %v14233_v11, %v14230_v35  ;;  %v14244_v38 = vrot.slane %v14242_v47, 4  ;;  %v17722_v35 = vld [vmem:[%s27109_s0 + $0x70] sm:$0xf] }
 0x391   :  { %v14247_v32 = vrot.slane %v14245_v59, 5  ;;  %v14226_v14 = vsel %vm20370_vm5, %v14221_v15, %v14225_v30  ;;  %v14253_v58 = vrot.slane %v14251_v23, 5  ;;  %v6491_v17 = vshll.u32 %v25361_v37, 16 }
 0x392   :  { %v6490_v27 = vrot.slane %v6488_v57, 5  ;;  %v17712_v41 = vcombine.low %v14212_v7, %v14226_v14  ;;  %v14235_v22 = vrot.slane %v14234_v52, 4  ;;  %v6497_v9 = vshrl.u32 %v16697_v54, 16  ;;  %v26026_v7 = vld [vmem:[%s27109_s0 + $0x74] sm:$0x1] }
 0x393   :  { %v14248_v49 = vor.u32 %v14247_v32, %v14244_v38  ;;  %v6493_v61 = vrot.slane %v6491_v17, 6  ;;  %v6500_v26 = vshll.u32 %v16697_v54, 16  ;;  %v6506_v42 = vshrl.u32 %v25366_v39, 16  ;;  %v17724_v52 = vld [vmem:[%s27109_s0 + $0x78] sm:$0xf] }
 0x394   :  { %v6509_v43 = vshll.u32 %v25366_v39, 16  ;;  %19149 = vmatprep.mubr.msk.bf16.mxu0 %vm89_vm2, %v17712_v41  ;;  %v14240_v53 = vsel %vm20370_vm5, %v14235_v22, %v14239_v6  ;;  %v6499_v33 = vrot.slane %v6497_v9, 5  ;;  %v6515_v60 = vshrl.u32 %v16698_v12, 16 }
 0x395   :  { %v14249_v31 = vrot.slane %v14248_v49, 4  ;;  %v6494_v4 = vor.u32 %v6493_v61, %v6490_v27  ;;  %v6502_v37 = vrot.slane %v6500_v26, 6  ;;  %v6508_v18 = vrot.slane %v6506_v42, 5  ;;  %v17803_v49 = vld [vmem:[%s27110_s1 + $0x5c] sm:$0x3] }
 0x396   :  { %v6511_v25 = vrot.slane %v6509_v43, 6  ;;  %v6517_v39 = vrot.slane %v6515_v60, 5  ;;  %v6518_v46 = vshll.u32 %v16698_v12, 16  ;;  %v6524_v20 = vshrl.u32 %v25382_v48, 16  ;;  %v26034_v12 = vld [vmem:[%s27109_s0 + $0x7c] sm:$0x1] }
 0x397   :  { %v14254_v63 = vsel %vm20370_vm5, %v14249_v31, %v14253_v58  ;;  %v6495_v34 = vrot.slane %v6494_v4, 4  ;;  %v6503_v10 = vor.u32 %v6502_v37, %v6499_v33  ;;  %v6527_v40 = vshll.u32 %v25382_v48, 16  ;;  %v17726_v43 = vld [vmem:[%s27109_s0 + $0x80] sm:$0xf]  ;;  %v26050_v4 = vld [vmem:[%s27109_s0 + $0x84] sm:$0x1] }
 0x398   :  { %v17713_v50 = vcombine.low %v14240_v53, %v14254_v63  ;;  %v6512_v21 = vor.u32 %v6511_v25, %v6508_v18  ;;  %v6520_v2 = vrot.slane %v6518_v46, 6  ;;  %v6526_v51 = vrot.slane %v6524_v20, 5  ;;  %v17728_v63 = vld [vmem:[%s27109_s0 + $0x88] sm:$0xf] }
 0x399   :  { %v6533_v44 = vshrl.u32 %v16699_v56, 16  ;;  %v6504_v30 = vsel %vm20976_vm11, %v6495_v34, %v6503_v10  ;;  %v6536_v0 = vshll.u32 %v16699_v56, 16  ;;  %v6542_v8 = vshrl.u32 %v25387_v29, 16 }
 0x39a   :  { %19150 = vmatmul.mubr.msk.bf16.gmra.mrb[12].mxu0 %vm89_vm2, %v17713_v50  ;;  %v6513_v24 = vrot.slane %v6512_v21, 4  ;;  %v6521_v62 = vor.u32 %v6520_v2, %v6517_v39  ;;  %v6529_v55 = vrot.slane %v6527_v40, 6  ;;  %v6545_v47 = vshll.u32 %v25387_v29, 16  ;;  %v26063_v50 = vld [vmem:[%s27109_s0 + $0x8c] sm:$0x1] }
 0x39b   :  { %v6535_v11 = vrot.slane %v6533_v44, 5  ;;  %v6538_v48 = vrot.slane %v6536_v0, 6  ;;  %v6544_v59 = vrot.slane %v6542_v8, 5  ;;  %v6551_v15 = vshrl.u32 %v16700_v13, 16 }
 0x39c   :  { %v6554_v6 = vshll.u32 %v16700_v13, 16  ;;  %v6522_v23 = vsel %vm20976_vm11, %v6513_v24, %v6521_v62  ;;  %v6530_v54 = vor.u32 %v6529_v55, %v6526_v51  ;;  %v6547_v57 = vrot.slane %v6545_v47, 6  ;;  %v16701_v62 = vld [vmem:[%s27109_s0 + $0x18c] sm:$0x3] }
 0x39d   :  { %v14454_v38 = vshrl.u32 %v17722_v35, 16  ;;  %v16710_v29 = vcombine.low %v6504_v30, %v6522_v23  ;;  %v6539_v32 = vor.u32 %v6538_v48, %v6535_v11  ;;  %v6553_v14 = vrot.slane %v6551_v15, 5  ;;  %v20216_v48 = vld [vmem:[%s27109_s0 + $0x188] sm:$0xe] }
 0x39e   :  { %v6556_v58 = vrot.slane %v6554_v6, 6  ;;  %v6531_v27 = vrot.slane %v6530_v54, 4  ;;  %v6548_v17 = vor.u32 %v6547_v57, %v6544_v59  ;;  %v14457_v22 = vshll.u32 %v17722_v35, 16  ;;  %v16702_v54 = vld [vmem:[%s27109_s0 + $0x194] sm:$0x3] }
 0x39f   :  { %v14456_v41 = vrot.slane %v14454_v38, 4  ;;  %18713 = vmatprep.mubr.msk.bf16.mxu1 %vm89_vm2, %v16710_v29  ;;  %v14463_v61 = vshll.u32 %v26026_v7, 16  ;;  %v14468_v26 = vshrl.u32 %v17724_v52, 16  ;;  %v14471_v42 = vshll.u32 %v17724_v52, 16 }
 0x3a0   :  { %v6557_v9 = vor.u32 %v6556_v58, %v6553_v14  ;;  %v6540_v53 = vsel %vm20976_vm11, %v6531_v27, %v6539_v32  ;;  %v6549_v31 = vrot.slane %v6548_v17, 4  ;;  %v14459_v33 = vrot.slane %v14457_v22, 5  ;;  %v20217_v17 = vld [vmem:[%s27109_s0 + $0x190] sm:$0xe] }
 0x3a1   :  { %v14477_v60 = vshll.u32 %v26034_v12, 16  ;;  %v14465_v37 = vrot.slane %v14463_v61, 5  ;;  %v14470_v18 = vrot.slane %v14468_v26, 4  ;;  %v14473_v25 = vrot.slane %v14471_v42, 5 }
 0x3a2   :  { %v26053_v56 = vand.u32 %v17803_v49, %v20305_v3  ;;  %v6558_v39 = vsel %vm20976_vm11, %v6549_v31, %v6557_v9  ;;  %v14460_v46 = vor.u32 %v14459_v33, %v14456_v41  ;;  %v14482_v34 = vshrl.u32 %v17726_v43, 16  ;;  %v16703_v31 = vld [vmem:[%s27109_s0 + $0x19c] sm:$0x3] }
 0x3a3   :  { %v14479_v20 = vrot.slane %v14477_v60, 5  ;;  %v16711_v10 = vcombine.low %v6540_v53, %v6558_v39  ;;  %v14474_v21 = vor.u32 %v14473_v25, %v14470_v18  ;;  %v14485_v2 = vshll.u32 %v17726_v43, 16 }
 0x3a4   :  { %19171 = vmatprep.subr.bf16.mxu0 %v26053_v56  ;;  %v14491_v13 = vshll.u32 %v26050_v4, 16  ;;  %v14461_v51 = vrot.slane %v14460_v46, 4  ;;  %v14484_v40 = vrot.slane %v14482_v34, 4  ;;  %v14496_v44 = vshrl.u32 %v17728_v63, 16  ;;  %v20218_v46 = vld [vmem:[%s27109_s0 + $0x198] sm:$0xe] }
 0x3a5   :  { %v14499_v30 = vshll.u32 %v17728_v63, 16  ;;  %18714 = vmatmul.mubr.msk.bf16.gmra.mrb[8].mxu1 %vm89_vm2, %v16711_v10  ;;  %v14475_v24 = vrot.slane %v14474_v21, 4  ;;  %v14487_v0 = vrot.slane %v14485_v2, 5  ;;  %v14505_v35 = vshll.u32 %v26063_v50, 16  ;;  %v16704_v21 = vld [vmem:[%s27109_s0 + $0x1a4] sm:$0x3] }
 0x3a6   :  { %v14493_v8 = vrot.slane %v14491_v13, 5  ;;  %v14466_v55 = vsel %vm20370_vm5, %v14461_v51, %v14465_v37  ;;  %v14498_v11 = vrot.slane %v14496_v44, 4  ;;  %v6560_v59 = vshrl.u32 %v20216_v48, 16 }
 0x3a7   :  { %v14501_v47 = vrot.slane %v14499_v30, 5  ;;  %v14480_v15 = vsel %vm20370_vm5, %v14475_v24, %v14479_v20  ;;  %v14488_v6 = vor.u32 %v14487_v0, %v14484_v40  ;;  %v14507_v23 = vrot.slane %v14505_v35, 5  ;;  %v20219_v30 = vld [vmem:[%s27109_s0 + $0x1a0] sm:$0xe]  ;;  %v17730_v0 = vld [vmem:[%s27109_s0 + $0x90] sm:$0xf] }
 0x3a8   :  { %v6563_v57 = vshll.u32 %v20216_v48, 16  ;;  %v17755_v52 = vcombine.low %v14466_v55, %v14480_v15  ;;  %v6562_v29 = vrot.slane %v6560_v59, 5  ;;  %v6569_v32 = vshrl.u32 %v16701_v62, 16 }
 0x3a9   :  { %v14502_v38 = vor.u32 %v14501_v47, %v14498_v11  ;;  %v14489_v14 = vrot.slane %v14488_v6, 4  ;;  %v6572_v27 = vshll.u32 %v16701_v62, 16  ;;  %v6578_v41 = vshrl.u32 %v20217_v17, 16 }
 0x3aa   :  { %v6565_v58 = vrot.slane %v6563_v57, 6  ;;  %19155 = vmatprep.mubr.msk.bf16.mxu0 %vm89_vm2, %v17755_v52  ;;  %v6571_v49 = vrot.slane %v6569_v32, 5  ;;  %v6581_v9 = vshll.u32 %v20217_v17, 16  ;;  %v6587_v61 = vshrl.u32 %v16702_v54, 16 }
 0x3ab   :  { %v14503_v22 = vrot.slane %v14502_v38, 4  ;;  %v14494_v26 = vsel %vm20370_vm5, %v14489_v14, %v14493_v8  ;;  %v6574_v43 = vrot.slane %v6572_v27, 6  ;;  %v6580_v53 = vrot.slane %v6578_v41, 5  ;;  %v26122_v14 = vld [vmem:[%s27109_s0 + $0x9c] sm:$0x1] }
 0x3ac   :  { %v6566_v42 = vor.u32 %v6565_v58, %v6562_v29  ;;  %v6583_v60 = vrot.slane %v6581_v9, 6  ;;  %v6589_v37 = vrot.slane %v6587_v61, 5  ;;  %v6590_v18 = vshll.u32 %v16702_v54, 16  ;;  %v26114_v54 = vld [vmem:[%s27109_s0 + $0x94] sm:$0x1] }
 0x3ad   :  { %v14508_v33 = vsel %vm20370_vm5, %v14503_v22, %v14507_v23  ;;  %v6575_v39 = vor.u32 %v6574_v43, %v6571_v49  ;;  %v6596_v20 = vshrl.u32 %v20218_v46, 16  ;;  %v6599_v2 = vshll.u32 %v20218_v46, 16 }
 0x3ae   :  { %v17756_v25 = vcombine.low %v14494_v26, %v14508_v33  ;;  %v6567_v63 = vrot.slane %v6566_v42, 4  ;;  %v6584_v34 = vor.u32 %v6583_v60, %v6580_v53  ;;  %v6592_v10 = vrot.slane %v6590_v18, 6  ;;  %v17734_v26 = vld [vmem:[%s27109_s0 + $0xa0] sm:$0xf]  ;;  %v26135_v33 = vld [vmem:[%s27109_s0 + $0xa4] sm:$0x1] }
 0x3af   :  { %v6605_v13 = vshrl.u32 %v16703_v31, 16  ;;  %v6598_v40 = vrot.slane %v6596_v20, 5  ;;  %v6608_v44 = vshll.u32 %v16703_v31, 16  ;;  %v6614_v24 = vshrl.u32 %v20219_v30, 16  ;;  %v17736_v60 = vld [vmem:[%s27109_s0 + $0xa8] sm:$0xf] }
 0x3b0   :  { %19156 = vmatmul.mubr.msk.bf16.vlgmr.msra.gmra.mrb[0].mxu0 %vm89_vm2, %v17756_v25  ;;  %v6576_v51 = vsel %vm20976_vm11, %v6567_v63, %v6575_v39  ;;  %v6585_v8 = vrot.slane %v6584_v34, 4  ;;  %v6593_v35 = vor.u32 %v6592_v10, %v6589_v37  ;;  %v6601_v62 = vrot.slane %v6599_v2, 6  ;;  %v26143_v20 = vld [vmem:[%s27109_s0 + $0xac] sm:$0x1] }
 0x3b1   :  { %19172 = vmatpush3.bf16.msra.mxu0 %v26053_v56  ;;  %v6607_v55 = vrot.slane %v6605_v13, 5  ;;  %v6610_v11 = vrot.slane %v6608_v44, 6  ;;  %v6616_v47 = vrot.slane %v6614_v24, 5  ;;  %v6617_v48 = vshll.u32 %v20219_v30, 16  ;;  %v17732_v56 = vld [vmem:[%s27109_s0 + $0x98] sm:$0xf] }
 0x3b2   :  { %v6623_v59 = vshrl.u32 %v16704_v21, 16  ;;  %v6594_v15 = vsel %vm20976_vm11, %v6585_v8, %v6593_v35  ;;  %v6602_v6 = vor.u32 %v6601_v62, %v6598_v40  ;;  %v6626_v23 = vshll.u32 %v16704_v21, 16  ;;  %v20095_v40 = vld [vmem:[%s27109_s0 + $0xb8] ss:$8 sps:$4 sm:$0xff]   ;;  %v16771_v44 = vld [vmem:[%s27110_s1 + $0x2c] sm:$0x3] }
 0x3b3   :  { %v14510_v57 = vshrl.u32 %v17730_v0, 16  ;;  %v16712_v52 = vcombine.low %v6576_v51, %v6594_v15  ;;  %v6611_v38 = vor.u32 %v6610_v11, %v6607_v55  ;;  %v6619_v29 = vrot.slane %v6617_v48, 6  ;;  %v17738_v35 = vld [vmem:[%s27109_s0 + $0x1d0] sm:$0xf]  ;;  %v26160_v48 = vld [vmem:[%s27109_s0 + $0x1d4] sm:$0x1] }
 0x3b4   :  { %v6625_v32 = vrot.slane %v6623_v59, 5  ;;  %v6603_v58 = vrot.slane %v6602_v6, 4  ;;  %v6628_v27 = vrot.slane %v6626_v23, 6  ;;  %v14513_v41 = vshll.u32 %v17730_v0, 16 }
 0x3b5   :  { %v14512_v17 = vrot.slane %v14510_v57, 4  ;;  %18717 = vmatprep.mubr.msk.bf16.mxu1 %vm89_vm2, %v16712_v52  ;;  %v6620_v22 = vor.u32 %v6619_v29, %v6616_v47  ;;  %v14519_v49 = vshll.u32 %v26114_v54, 16  ;;  %v14524_v9 = vshrl.u32 %v17732_v56, 16  ;;  %v17742_v57 = vld [vmem:[%s27109_s0 + $0x1e0] sm:$0xf] }
 0x3b6   :  { %v14527_v61 = vshll.u32 %v17732_v56, 16  ;;  %v6612_v42 = vsel %vm20976_vm11, %v6603_v58, %v6611_v38  ;;  %v6629_v43 = vor.u32 %v6628_v27, %v6625_v32  ;;  %v14515_v53 = vrot.slane %v14513_v41, 5  ;;  %v17740_v56 = vld [vmem:[%s27109_s0 + $0x1d8] sm:$0xf]  ;;  %v26179_v29 = vld [vmem:[%s27109_s0 + $0x1dc] sm:$0x1] }
 0x3b7   :  { %v14533_v31 = vshll.u32 %v26122_v14, 16  ;;  %v6621_v37 = vrot.slane %v6620_v22, 4  ;;  %v14521_v18 = vrot.slane %v14519_v49, 5  ;;  %v14526_v25 = vrot.slane %v14524_v9, 4  ;;  %v17744_v49 = vld [vmem:[%s27109_s0 + $0x1e8] sm:$0xf] }
 0x3b8   :  { %v14529_v63 = vrot.slane %v14527_v61, 5  ;;  %v14516_v39 = vor.u32 %v14515_v53, %v14512_v17  ;;  %v14538_v34 = vshrl.u32 %v17734_v26, 16  ;;  %v14541_v10 = vshll.u32 %v17734_v26, 16 }
 0x3b9   :  { %v14535_v46 = vrot.slane %v14533_v31, 5  ;;  %v6630_v21 = vsel %vm20976_vm11, %v6621_v37, %v6629_v43  ;;  %v14547_v13 = vshll.u32 %v26135_v33, 16  ;;  %v14552_v51 = vshrl.u32 %v17736_v60, 16  ;;  %v26188_v43 = vld [vmem:[%s27109_s0 + $0x1e4] sm:$0x1] }
 0x3ba   :  { %v14530_v2 = vor.u32 %v14529_v63, %v14526_v25  ;;  %v16713_v30 = vcombine.low %v6612_v42, %v6630_v21  ;;  %v14517_v24 = vrot.slane %v14516_v39, 4  ;;  %v14540_v0 = vrot.slane %v14538_v34, 4  ;;  %v20096_v31 = vld [vmem:[%s27109_s0 + $0xc8] ss:$8 sps:$4 sm:$0xff]   ;;  %v20097_v34 = vld [vmem:[%s27109_s0 + $0xd8] ss:$8 sps:$4 sm:$0xff]  }
 0x3bb   :  { %v14543_v8 = vrot.slane %v14541_v10, 5  ;;  %v14549_v55 = vrot.slane %v14547_v13, 5  ;;  %v14554_v11 = vrot.slane %v14552_v51, 4  ;;  %v14555_v47 = vshll.u32 %v17736_v60, 16 }
 0x3bc   :  { %v14531_v62 = vrot.slane %v14530_v2, 4  ;;  %18718 = vmatmul.mubr.msk.bf16.gmra.mrb[12].mxu1 %vm89_vm2, %v16713_v30  ;;  %v14522_v59 = vsel %vm20370_vm5, %v14517_v24, %v14521_v18  ;;  %v14561_v6 = vshll.u32 %v26143_v20, 16  ;;  %v7080_v23 = vand.u32 %v16771_v44, %v20305_v3  ;;  %v26203_v2 = vld [vmem:[%s27109_s0 + $0x1ec] sm:$0x1] }
 0x3bd   :  { %v14544_v15 = vor.u32 %v14543_v8, %v14540_v0  ;;  %v14557_v38 = vrot.slane %v14555_v47, 5  ;;  %18723 = vmatprep.mubr.msk.bf16.mxu1 %vm89_vm2, %v20095_v40  ;;  %v14566_v32 = vshrl.u32 %v17738_v35, 16  ;;  %v14569_v58 = vshll.u32 %v17738_v35, 16  ;;  %v17746_v0 = vld [vmem:[%s27109_s0 + $0x1f0] sm:$0xf] }
 0x3be   :  { %v14536_v52 = vsel %vm20370_vm5, %v14531_v62, %v14535_v46  ;;  %v14563_v41 = vrot.slane %v14561_v6, 5  ;;  %18739 = vmatprep.subr.bf16.mxu1 %v7080_v23  ;;  %v14575_v22 = vshll.u32 %v26160_v48, 16  ;;  %v14580_v42 = vshrl.u32 %v17740_v56, 16  ;;  %v17748_v47 = vld [vmem:[%s27109_s0 + $0x1f8] sm:$0xf] }
 0x3bf   :  { %v17757_v27 = vcombine.low %v14522_v59, %v14536_v52  ;;  %v14545_v17 = vrot.slane %v14544_v15, 4  ;;  %v14558_v9 = vor.u32 %v14557_v38, %v14554_v11  ;;  %v14568_v61 = vrot.slane %v14566_v32, 4  ;;  %v26215_v11 = vld [vmem:[%s27109_s0 + $0x1f4] sm:$0x1]  ;;  %v26228_v38 = vld [vmem:[%s27109_s0 + $0x1fc] sm:$0x1] }
 0x3c0   :  { %v14571_v26 = vrot.slane %v14569_v58, 5  ;;  %v14577_v60 = vrot.slane %v14575_v22, 5  ;;  %v14583_v37 = vshll.u32 %v17740_v56, 16  ;;  %v14589_v18 = vshll.u32 %v26179_v29, 16 }
 0x3c1   :  { %19159 = vmatprep.mubr.msk.bf16.mxu0 %vm89_vm2, %v17757_v27  ;;  %v14550_v53 = vsel %vm20370_vm5, %v14545_v17, %v14549_v55  ;;  %v14559_v25 = vrot.slane %v14558_v9, 4  ;;  %v14582_v39 = vrot.slane %v14580_v42, 4  ;;  %v14594_v46 = vshrl.u32 %v17742_v57, 16 }
 0x3c2   :  { %v14572_v63 = vor.u32 %v14571_v26, %v14568_v61  ;;  %v14585_v10 = vrot.slane %v14583_v37, 5  ;;  %v14591_v21 = vrot.slane %v14589_v18, 5  ;;  %v14597_v13 = vshll.u32 %v17742_v57, 16 }
 0x3c3   :  { %v14603_v51 = vshll.u32 %v26188_v43, 16  ;;  %v14564_v40 = vsel %vm20370_vm5, %v14559_v25, %v14563_v41  ;;  %v14596_v30 = vrot.slane %v14594_v46, 4  ;;  %v14608_v24 = vshrl.u32 %v17744_v49, 16  ;;  %v20098_v41 = vld [vmem:[%s27109_s0 + $0xe8] ss:$8 sps:$4 sm:$0xff]  }
 0x3c4   :  { %v14573_v44 = vrot.slane %v14572_v63, 4  ;;  %v17758_v8 = vcombine.low %v14550_v53, %v14564_v40  ;;  %18724 = vmatmul.mubr.msk.bf16.vlgmr.msra.gmra.mrb[0].mxu1 %vm89_vm2, %v20096_v31  ;;  %v14586_v35 = vor.u32 %v14585_v10, %v14582_v39  ;;  %v14599_v62 = vrot.slane %v14597_v13, 5  ;;  %v26242_v53 = vld [vmem:[%s27109_s0 + $0x204] sm:$0x1]  ;;  %v17752_v25 = vld [vmem:[%s27109_s0 + $0x208] sm:$0xf] }
 0x3c5   :  { %v14605_v55 = vrot.slane %v14603_v51, 5  ;;  %18740 = vmatpush3.bf16.msra.mxu1 %v7080_v23  ;;  %v14610_v15 = vrot.slane %v14608_v24, 4  ;;  %v14611_v6 = vshll.u32 %v17744_v49, 16  ;;  %v14617_v56 = vshll.u32 %v26203_v2, 16  ;;  %18727 = vmatprep.mubr.msk.bf16.mxu1 %vm89_vm2, %v20097_v34  ;;  %v17750_v23 = vld [vmem:[%s27109_s0 + $0x200] sm:$0xf] }
 0x3c6   :  { %v14578_v59 = vsel %vm20370_vm5, %v14573_v44, %v14577_v60  ;;  %19160 = vmatmul.mubr.msk.bf16.gmra.mrb[4].mxu0 %vm89_vm2, %v17758_v8  ;;  %v14587_v57 = vrot.slane %v14586_v35, 4  ;;  %v14600_v52 = vor.u32 %v14599_v62, %v14596_v30  ;;  %v14622_v32 = vshrl.u32 %v17746_v0, 16  ;;  %v20099_v63 = vld [vmem:[%s27109_s0 + $0x218] ss:$8 sps:$4 sm:$0xff]   ;;  %v26257_v13 = vld [vmem:[%s27109_s0 + $0x20c] sm:$0x1] }
 0x3c7   :  { %v14625_v58 = vshll.u32 %v17746_v0, 16  ;;  %v14613_v27 = vrot.slane %v14611_v6, 5  ;;  %v14619_v17 = vrot.slane %v14617_v56, 5  ;;  %v14631_v22 = vshll.u32 %v26215_v11, 16  ;;  %v26264_v35 = vld [vmem:[%s27109_s0 + $0x18] sm:$0xe] }
 0x3c8   :  { %v14636_v49 = vshrl.u32 %v17748_v47, 16  ;;  %v14592_v9 = vsel %vm20370_vm5, %v14587_v57, %v14591_v21  ;;  %v14601_v61 = vrot.slane %v14600_v52, 4  ;;  %v14624_v26 = vrot.slane %v14622_v32, 4  ;;  %v20100_v32 = vld [vmem:[%s27109_s0 + $0x228] ss:$8 sps:$4 sm:$0xff]  }
 0x3c9   :  { %v14627_v42 = vrot.slane %v14625_v58, 5  ;;  %v17759_v31 = vcombine.low %v14578_v59, %v14592_v9  ;;  %v14614_v60 = vor.u32 %v14613_v27, %v14610_v15  ;;  %v14633_v37 = vrot.slane %v14631_v22, 5  ;;  %v26274_v15 = vld [vmem:[%s27109_s0 + $0x20] sm:$0xe]  ;;  %v17852_v58 = vld [vmem:[%s27110_s1 + $0x5e] sm:$0x3] }
 0x3ca   :  { %v14638_v18 = vrot.slane %v14636_v49, 4  ;;  %v14606_v39 = vsel %vm20370_vm5, %v14601_v61, %v14605_v55  ;;  %v14639_v34 = vshll.u32 %v17748_v47, 16  ;;  %v14645_v10 = vshll.u32 %v26228_v38, 16  ;;  %v26294_v49 = vld [vmem:[%s27109_s0 + $0x30] sm:$0xe] }
 0x3cb   :  { %v14628_v46 = vor.u32 %v14627_v42, %v14624_v26  ;;  %19163 = vmatprep.mubr.msk.bf16.mxu0 %vm89_vm2, %v17759_v31  ;;  %v14615_v21 = vrot.slane %v14614_v60, 4  ;;  %v14650_v51 = vshrl.u32 %v17750_v23, 16  ;;  %v14653_v40 = vshll.u32 %v17750_v23, 16  ;;  %v26287_v23 = vld [vmem:[%s27109_s0 + $0x28] sm:$0xe] }
 0x3cc   :  { %v14659_v44 = vshll.u32 %v26242_v53, 16  ;;  %18728 = vmatmul.mubr.msk.bf16.gmra.mrb[4].mxu1 %vm89_vm2, %v20098_v41  ;;  %v14641_v24 = vrot.slane %v14639_v34, 5  ;;  %v14647_v0 = vrot.slane %v14645_v10, 5  ;;  %v14664_v8 = vshrl.u32 %v17752_v25, 16  ;;  %v20220_v61 = vld [vmem:[%s27109_s0 + $0x1c] sm:$0x1] }
 0x3cd   :  { %v14629_v30 = vrot.slane %v14628_v46, 4  ;;  %v14620_v62 = vsel %vm20370_vm5, %v14615_v21, %v14619_v17  ;;  %v14652_v55 = vrot.slane %v14650_v51, 4  ;;  %v14655_v47 = vrot.slane %v14653_v40, 5  ;;  %18731 = vmatprep.mubr.msk.bf16.mxu1 %vm89_vm2, %v20099_v63  ;;  %v20221_v31 = vld [vmem:[%s27109_s0 + $0x24] sm:$0x1] }
 0x3ce   :  { %v26268_v59 = vrot.slane %v14659_v44, 5  ;;  %v17760_v6 = vcombine.low %v14606_v39, %v14620_v62  ;;  %v14642_v57 = vor.u32 %v14641_v24, %v14638_v18  ;;  %v14666_v52 = vrot.slane %v14664_v8, 4  ;;  %v26313_v46 = vld [vmem:[%s27109_s0 + $0x38] sm:$0xe]  ;;  %v26325_v40 = vld [vmem:[%s27109_s0 + $0x40] sm:$0xe] }
 0x3cf   :  { %v14634_v56 = vsel %vm20370_vm5, %v14629_v30, %v14633_v37  ;;  %v14656_v27 = vor.u32 %v14655_v47, %v14652_v55  ;;  %v14667_v17 = vshll.u32 %v17752_v25, 16  ;;  %v14673_v41 = vshll.u32 %v26257_v13, 16  ;;  %v20101_v37 = vld [vmem:[%s27109_s0 + $0x238] ss:$8 sps:$4 sm:$0xff]   ;;  %v26334_v8 = vld [vmem:[%s27109_s0 + $0x48] sm:$0xe] }
 0x3d0   :  { %v17787_v22 = vrot.slane %v26264_v35, 9  ;;  %19164 = vmatmul.mubr.msk.bf16.gmra.mrb[8].mxu0 %vm89_vm2, %v17760_v6  ;;  %v14643_v9 = vrot.slane %v14642_v57, 4  ;;  %v14893_v26 = vrot.slane %v20220_v61, 5  ;;  %v17788_v42 = vrot.slane %v26274_v15, 9  ;;  %v20222_v62 = vld [vmem:[%s27109_s0 + $0x2c] sm:$0x1] }
 0x3d1   :  { %v14897_v60 = vrot.slane %v20221_v31, 5  ;;  %v14657_v18 = vrot.slane %v14656_v27, 4  ;;  %v14669_v25 = vrot.slane %v14667_v17, 5  ;;  %v14675_v63 = vrot.slane %v14673_v41, 5  ;;  %v20225_v27 = vld [vmem:[%s27109_s0 + $0x44] sm:$0x1] }
 0x3d2   :  { %v26308_v39 = vand.u32 %v17852_v58, %v20305_v3  ;;  %v14648_v34 = vsel %vm20370_vm5, %v14643_v9, %v14647_v0  ;;  %v14894_v10 = vsel %vm20439_vm8, %v17787_v22, %v14893_v26  ;;  %v17789_v51 = vrot.slane %v26287_v23, 9  ;;  %v26357_v41 = vld [vmem:[%s27109_s0 + $0x50] sm:$0xe]  ;;  %v20226_v26 = vld [vmem:[%s27109_s0 + $0x4c] sm:$0x1] }
 0x3d3   :  { %v14898_v21 = vsel %vm20439_vm8, %v17788_v42, %v14897_v60  ;;  %v17761_v44 = vcombine.low %v14634_v56, %v14648_v34  ;;  %v14662_v30 = vsel %vm20370_vm5, %v14657_v18, %v26268_v59  ;;  %v14670_v24 = vor.u32 %v14669_v25, %v14666_v52  ;;  %v20223_v59 = vld [vmem:[%s27109_s0 + $0x34] sm:$0x1]  ;;  %v20224_v52 = vld [vmem:[%s27109_s0 + $0x3c] sm:$0x1]  ;;  %v16820_v31 = vld [vmem:[%s27110_s1 + $0x2e] sm:$0x3] }
 0x3d4   :  { %v17804_v0 = vcombine.low %v14894_v10, %v14898_v21  ;;  %19189 = vmatprep.subr.bf16.mxu0 %v26308_v39  ;;  %18732 = vmatmul.mubr.msk.bf16.gmra.mrb[8].mxu1 %vm89_vm2, %v20100_v32  ;;  %v14901_v55 = vrot.slane %v20222_v62, 5  ;;  %v17790_v47 = vrot.slane %v26294_v49, 9  ;;  %v14905_v6 = vrot.slane %v20223_v59, 5  ;;  %v26377_v60 = vld [vmem:[%s27109_s0 + $0x178] sm:$0xe] }
 0x3d5   :  { %v17791_v56 = vrot.slane %v26313_v46, 9  ;;  %19167 = vmatprep.mubr.msk.bf16.mxu0 %vm89_vm2, %v17761_v44  ;;  %v14671_v57 = vrot.slane %v14670_v24, 4  ;;  %18735 = vmatprep.mubr.msk.bf16.mxu1 %vm89_vm2, %v20101_v37  ;;  %v14909_v32 = vrot.slane %v20224_v52, 5  ;;  %v17792_v58 = vrot.slane %v26325_v40, 9  ;;  %v20102_v25 = vld [vmem:[%s27109_s0 + $0x248] ss:$8 sps:$4 sm:$0xff]  }
 0x3d6   :  { %v14913_v17 = vrot.slane %v20225_v27, 5  ;;  %v26361_v22 = vsel %vm20439_vm8, %v17789_v51, %v14901_v55  ;;  %v26365_v9 = vsel %vm20439_vm8, %v17790_v47, %v14905_v6  ;;  %v17793_v61 = vrot.slane %v26334_v8, 9  ;;  %v26397_v21 = vld [vmem:[%s27109_s0 + $0x180] sm:$0xe]  ;;  %v20103_v55 = vld [vmem:[%s27109_s0 + $0x110] ss:$8 sps:$4 sm:$0xff]  }
 0x3d7   :  { %v14917_v42 = vrot.slane %v20226_v26, 5  ;;  %v14676_v37 = vsel %vm20370_vm5, %v14671_v57, %v14675_v63  ;;  %v26388_v34 = vsel %vm20439_vm8, %v17791_v56, %v14909_v32  ;;  %v26402_v63 = vld [vmem:[%s27109_s0 + $0x188] sm:$0xe]  ;;  %v17794_v62 = vrot.slane %v26357_v41, 9  ;;  %v26417_v47 = vld [vmem:[%s27109_s0 + $0x190] sm:$0xe] }
 0x3d8   :  { %v26392_v10 = vsel %vm20439_vm8, %v17792_v58, %v14913_v17  ;;  %v17762_v51 = vcombine.low %v14662_v30, %v14676_v37  ;;  %v20227_v30 = vld [vmem:[%s27109_s0 + $0x54] sm:$0x1]  ;;  %v26423_v6 = vand.u32 %v16820_v31, %v20305_v3  ;;  %v17795_v56 = vrot.slane %v26377_v60, 9  ;;  %v20228_v57 = vld [vmem:[%s27109_s0 + $0x17c] sm:$0x1] }
 0x3d9   :  { %v26408_v24 = vsel %vm20439_vm8, %v17793_v61, %v14917_v42  ;;  %v14921_v59 = vrot.slane %v20227_v30, 5  ;;  %v14925_v52 = vrot.slane %v20228_v57, 5  ;;  %v17783_v32 = vld [vmem:[%s27109_s0 + $0x198] sm:$0xe]  ;;  %v17796_v58 = vrot.slane %v26397_v21, 9 }
 0x3da   :  { %19168 = vmatmul.mubr.msk.bf16.gmra.mrb[12].mxu0 %vm89_vm2, %v17762_v51  ;;  %v20229_v27 = vld [vmem:[%s27109_s0 + $0x184] sm:$0x1]  ;;  %v17797_v61 = vrot.slane %v26402_v63, 9  ;;  %v20230_v26 = vld [vmem:[%s27109_s0 + $0x18c] sm:$0x1]  ;;  %18757 = vmatprep.subr.bf16.mxu1 %v26423_v6  ;;  %v17798_v30 = vrot.slane %v26417_v47, 9 }
 0x3db   :  { %v14929_v17 = vrot.slane %v20229_v27, 5  ;;  %v14933_v42 = vrot.slane %v20230_v26, 5  ;;  %v17784_v31 = vld [vmem:[%s27109_s0 + $0x1a0] sm:$0xe]  ;;  %19173 = vmatprep.mubr.msk.bf16.mxu0 %vm89_vm2, %v17804_v0  ;;  %v26447_v37 = vsel %vm20439_vm8, %v17794_v62, %v14921_v59  ;;  %v26452_v51 = vsel %vm20439_vm8, %v17795_v56, %v14925_v52  ;;  %v20231_v57 = vld [vmem:[%s27109_s0 + $0x194] sm:$0x1] }
 0x3dc   :  { %v14937_v27 = vrot.slane %v20231_v57, 5  ;;  %v17785_v0 = vld [vmem:[%s27109_s0 + $0x1a8] sm:$0xe]  ;;  %18736 = vmatmul.mubr.msk.bf16.gmra.mrb[12].mxu1 %vm89_vm2, %v20102_v25  ;;  %v17799_v52 = vrot.slane %v17783_v32, 9  ;;  %v17786_v26 = vld [vmem:[%s27109_s0 + $0x1b0] sm:$0xe] }
 0x3dd   :  { %v26466_v59 = vsel %vm20439_vm8, %v17796_v58, %v14929_v17  ;;  %v26470_v56 = vsel %vm20439_vm8, %v17797_v61, %v14933_v42  ;;  %v17820_v25 = vld [vmem:[%s27109_s0 + $0x70] sm:$0xe]  ;;  %18741 = vmatprep.mubr.msk.bf16.mxu1 %vm89_vm2, %v20103_v55  ;;  %v14941_v17 = vrot.slane %v25950_v19, 5  ;;  %v17800_v32 = vrot.slane %v17784_v31, 9  ;;  %v17821_v61 = vld [vmem:[%s27109_s0 + $0x78] sm:$0xe] }
 0x3de   :  { %v26483_v58 = vsel %vm20439_vm8, %v17798_v30, %v14937_v27  ;;  %v20104_v42 = vld [vmem:[%s27109_s0 + $0x120] ss:$8 sps:$4 sm:$0xff]   ;;  %v14945_v57 = vrot.slane %v25958_v1, 5  ;;  %v17801_v62 = vrot.slane %v17785_v0, 9  ;;  %v14949_v30 = vrot.slane %v25971_v28, 5 }
 0x3df   :  { %v17885_v19 = vld [vmem:[%s27110_s1 + $0x60] sm:$0x3]  ;;  %v26501_v31 = vsel %vm20439_vm8, %v17799_v52, %v14941_v17  ;;  %v17802_v27 = vrot.slane %v17786_v26, 9  ;;  %v14953_v44 = vrot.slane %v25981_v5, 5  ;;  %v17836_v18 = vrot.slane %v17820_v25, 9 }
 0x3e0   :  { %v17822_v55 = vld [vmem:[%s27109_s0 + $0x80] sm:$0xe]  ;;  %v26509_v1 = vsel %vm20439_vm8, %v17800_v32, %v14945_v57  ;;  %v26513_v28 = vsel %vm20439_vm8, %v17801_v62, %v14949_v30  ;;  %v15171_v0 = vrot.slane %v26026_v7, 5  ;;  %v17837_v52 = vrot.slane %v17821_v61, 9  ;;  %v17823_v5 = vld [vmem:[%s27109_s0 + $0x88] sm:$0xe] }
 0x3e1   :  { %v17824_v26 = vld [vmem:[%s27109_s0 + $0x90] sm:$0xe]  ;;  %v17810_v57 = vcombine.low %v26501_v31, %v26509_v1  ;;  %v26529_v62 = vsel %vm20439_vm8, %v17802_v27, %v14953_v44  ;;  %v15175_v7 = vrot.slane %v26034_v12, 5  ;;  %v26533_v17 = vand.u32 %v17885_v19, %v20305_v3  ;;  %v17825_v32 = vld [vmem:[%s27109_s0 + $0x98] sm:$0xe] }
 0x3e2   :  { %v20105_v25 = vld [vmem:[%s27109_s0 + $0x130] ss:$8 sps:$4 sm:$0xff]   ;;  %v27170_v61 = vcombine.low %v26361_v22, %v26365_v9  ;;  %v26546_v44 = vsel %vm20439_vm8, %v17836_v18, %v15171_v0  ;;  %v17838_v12 = vrot.slane %v17822_v55, 9  ;;  %v15179_v3 = vrot.slane %v26050_v4, 5  ;;  %v17826_v19 = vld [vmem:[%s27109_s0 + $0xa0] sm:$0xe] }
 0x3e3   :  { %v27171_v22 = vcombine.low %v26388_v34, %v26392_v10  ;;  %v26559_v9 = vsel %vm20439_vm8, %v17837_v52, %v15175_v7  ;;  %v17839_v18 = vrot.slane %v17823_v5, 9  ;;  %v15183_v55 = vrot.slane %v26063_v50, 5  ;;  %v17827_v4 = vld [vmem:[%s27109_s0 + $0xa8] sm:$0xe]  ;;  %v16788_v50 = vld [vmem:[%s27109_s0 + $0xb8] sm:$0xf] }
 0x3e4   :  { %19174 = vmatmul.mubr.msk.bf16.vlgmr.msra.gmra.mrb[0].mxu0 %vm89_vm2, %v27170_v61  ;;  %v17840_v27 = vrot.slane %v17824_v26, 9  ;;  %18742 = vmatmul.mubr.msk.bf16.vlgmr.msra.gmra.mrb[0].mxu1 %vm89_vm2, %v20104_v42  ;;  %v26571_v34 = vsel %vm20439_vm8, %v17838_v12, %v15179_v3  ;;  %v15187_v10 = vrot.slane %v26114_v54, 5  ;;  %v17841_v0 = vrot.slane %v17825_v32, 9  ;;  %v16790_v54 = vld [vmem:[%s27109_s0 + $0xc0] sm:$0xf] }
 0x3e5   :  { %19190 = vmatpush3.bf16.msra.mxu0 %v26308_v39  ;;  %19177 = vmatprep.mubr.msk.bf16.mxu0 %vm89_vm2, %v27171_v22  ;;  %v26581_v42 = vsel %vm20439_vm8, %v17839_v18, %v15183_v55  ;;  %v15191_v52 = vrot.slane %v26122_v14, 5  ;;  %v17842_v5 = vrot.slane %v17826_v19, 9  ;;  %v15195_v26 = vrot.slane %v26135_v33, 5  ;;  %v27172_v61 = vld [vmem:[#allocation5_spill] sm:$0xff]  ;;  %v16792_v19 = vld [vmem:[%s27109_s0 + $0xc8] sm:$0xf] }
 0x3e6   :  { %19207 = vmatprep.subr.bf16.mxu0 %v26533_v17  ;;  %18758 = vmatpush3.bf16.msra.mxu1 %v26423_v6  ;;  %v26592_v6 = vsel %vm20439_vm8, %v17840_v27, %v15187_v10  ;;  %v15199_v32 = vrot.slane %v26143_v20, 5  ;;  %v7228_v12 = vshrl.u32 %v16788_v50, 16  ;;  %v7231_v3 = vshll.u32 %v16788_v50, 16  ;;  %v20106_v20 = vld [vmem:[%s27109_s0 + $0x140] ss:$8 sps:$4 sm:$0xff]  }
 0x3e7   :  { %18745 = vmatprep.mubr.msk.bf16.mxu1 %vm89_vm2, %v20105_v25  ;;  %v17843_v25 = vrot.slane %v17827_v4, 9  ;;  %19225 = vmatprep.subr.bf16.mxu1 %v27172_v61  ;;  %v26598_v14 = vsel %vm20439_vm8, %v17841_v0, %v15191_v52  ;;  %v26602_v33 = vsel %vm20439_vm8, %v17842_v5, %v15195_v26  ;;  %v20107_v22 = vld [vmem:[%s27109_s0 + $0x270] ss:$8 sps:$4 sm:$0xff]   ;;  %v20232_v27 = vld [vmem:[%s27109_s0 + $0xbc] sm:$0x1]  ;;  %v7242_v10 = vshrl.u32 %v16790_v54, 16 }
 0x3e8   :  { %v7237_v4 = vshll.u32 %v20232_v27, 16  ;;  %v7230_v50 = vrot.slane %v7228_v12, 4  ;;  %v7233_v52 = vrot.slane %v7231_v3, 5  ;;  %v7245_v5 = vshll.u32 %v16790_v54, 16  ;;  %v16794_v26 = vld [vmem:[%s27109_s0 + $0xd0] sm:$0xf] }
 0x3e9   :  { %v26617_v55 = vsel %vm20439_vm8, %v17843_v25, %v15199_v32  ;;  %v27173_v25 = vcombine.low %v26408_v24, %v26447_v37  ;;  %v7244_v18 = vrot.slane %v7242_v10, 4  ;;  %v20233_v27 = vld [vmem:[%s27109_s0 + $0xc4] sm:$0x1]  ;;  %v7256_v0 = vshrl.u32 %v16792_v19, 16  ;;  %v20234_v24 = vld [vmem:[%s27109_s0 + $0xcc] sm:$0x1] }
 0x3ea   :  { %v7239_v32 = vrot.slane %v7237_v4, 5  ;;  %v7251_v7 = vshll.u32 %v20233_v27, 16  ;;  %v27174_v54 = vcombine.low %v26452_v51, %v26466_v59  ;;  %v7234_v12 = vor.u32 %v7233_v52, %v7230_v50  ;;  %v17828_v4 = vld [vmem:[%s27109_s0 + $0x1d0] sm:$0xe] }
 0x3eb   :  { %v7247_v3 = vrot.slane %v7245_v5, 5  ;;  %v7259_v39 = vshll.u32 %v16792_v19, 16  ;;  %v7265_v37 = vshll.u32 %v20234_v24, 16  ;;  %v7270_v27 = vshrl.u32 %v16794_v26, 16  ;;  %v17829_v5 = vld [vmem:[%s27109_s0 + $0x1d8] sm:$0xe] }
 0x3ec   :  { %19178 = vmatmul.mubr.msk.bf16.gmra.mrb[4].mxu0 %vm89_vm2, %v27173_v25  ;;  %18746 = vmatmul.mubr.msk.bf16.gmra.mrb[4].mxu1 %vm89_vm2, %v20106_v20  ;;  %v7253_v10 = vrot.slane %v7251_v7, 5  ;;  %v7258_v25 = vrot.slane %v7256_v0, 4  ;;  %v7273_v51 = vshll.u32 %v16794_v26, 16  ;;  %v7235_v59 = vrot.slane %v7234_v12, 4  ;;  %v20235_v20 = vld [vmem:[%s27109_s0 + $0xd4] sm:$0x1] }
 0x3ed   :  { %19181 = vmatprep.mubr.msk.bf16.mxu0 %vm89_vm2, %v27174_v54  ;;  %18749 = vmatprep.mubr.msk.bf16.mxu1 %vm89_vm2, %v20107_v22  ;;  %v7248_v50 = vor.u32 %v7247_v3, %v7244_v18  ;;  %v7261_v19 = vrot.slane %v7259_v39, 5  ;;  %v7267_v52 = vrot.slane %v7265_v37, 5  ;;  %v7272_v54 = vrot.slane %v7270_v27, 4  ;;  %v17830_v22 = vld [vmem:[%s27109_s0 + $0x1e0] sm:$0xe] }
 0x3ee   :  { %v7275_v24 = vrot.slane %v7273_v51, 5  ;;  %v7279_v7 = vshll.u32 %v20235_v20, 16  ;;  %v17844_v0 = vrot.slane %v17828_v4, 9  ;;  %v20108_v39 = vld [vmem:[%s27109_s0 + $0x280] ss:$8 sps:$4 sm:$0xff]   ;;  %v7240_v18 = vsel %vm20370_vm5, %v7235_v59, %v7239_v32 }
 0x3ef   :  { %v7249_v26 = vrot.slane %v7248_v50, 4  ;;  %v7262_v12 = vor.u32 %v7261_v19, %v7258_v25  ;;  %v15203_v3 = vrot.slane %v26160_v48, 5  ;;  %v17845_v51 = vrot.slane %v17829_v5, 9  ;;  %v17831_v20 = vld [vmem:[%s27109_s0 + $0x1e8] sm:$0xe] }
 0x3f0   :  { %v7276_v37 = vor.u32 %v7275_v24, %v7272_v54  ;;  %v7281_v27 = vrot.slane %v7279_v7, 5  ;;  %v15207_v4 = vrot.slane %v26179_v29, 5  ;;  %v20109_v30 = vld [vmem:[%s27109_s0 + $0x290] ss:$8 sps:$4 sm:$0xff]   ;;  %v17846_v25 = vrot.slane %v17830_v22, 9 }
 0x3f1   :  { %v7254_v32 = vsel %vm20370_vm5, %v7249_v26, %v7253_v10  ;;  %v7263_v59 = vrot.slane %v7262_v12, 4  ;;  %v26672_v48 = vsel %vm20439_vm8, %v17844_v0, %v15203_v3  ;;  %v16796_v29 = vld [vmem:[%s27109_s0 + $0xd8] sm:$0xf]  ;;  %v27175_v50 = vcombine.low %v26470_v56, %v26483_v58  ;;  %v16798_v24 = vld [vmem:[%s27109_s0 + $0xe0] sm:$0xf] }
 0x3f2   :  { %v16821_v19 = vcombine.low %v7240_v18, %v7254_v32  ;;  %v7277_v5 = vrot.slane %v7276_v37, 4  ;;  %v26683_v10 = vsel %vm20439_vm8, %v17845_v51, %v15207_v4  ;;  %v15211_v54 = vrot.slane %v26188_v43, 5  ;;  %v20110_v51 = vld [vmem:[%s27109_s0 + $0x2a0] ss:$8 sps:$4 sm:$0xff]   ;;  %v20237_v32 = vld [vmem:[%s27109_s0 + $0xe4] sm:$0x1] }
 0x3f3   :  { %v7268_v56 = vsel %vm20370_vm5, %v7263_v59, %v7267_v52  ;;  %v17857_v58 = vcombine.low %v26672_v48, %v26683_v10  ;;  %v17847_v7 = vrot.slane %v17831_v20, 9  ;;  %v15215_v0 = vrot.slane %v26203_v2, 5 }
 0x3f4   :  { %19182 = vmatmul.mubr.msk.bf16.gmra.mrb[8].mxu0 %vm89_vm2, %v27175_v50  ;;  %18750 = vmatmul.mubr.msk.bf16.gmra.mrb[8].mxu1 %vm89_vm2, %v20108_v39  ;;  %v7282_v43 = vsel %vm20370_vm5, %v7277_v5, %v7281_v27  ;;  %v26703_v22 = vsel %vm20439_vm8, %v17846_v25, %v15211_v54  ;;  %v7284_v31 = vshrl.u32 %v16796_v29, 16  ;;  %v7287_v1 = vshll.u32 %v16796_v29, 16  ;;  %v20236_v39 = vld [vmem:[%s27109_s0 + $0xdc] sm:$0x1]  ;;  %v20238_v54 = vld [vmem:[%s27109_s0 + $0xec] sm:$0x1] }
 0x3f5   :  { %19185 = vmatprep.mubr.msk.bf16.mxu0 %vm89_vm2, %v17810_v57  ;;  %v16800_v57 = vld [vmem:[%s27109_s0 + $0xe8] sm:$0xf]  ;;  %18753 = vmatprep.mubr.msk.bf16.mxu1 %vm89_vm2, %v20109_v30  ;;  %v26709_v52 = vcombine.low %v7268_v56, %v7282_v43  ;;  %v26713_v2 = vsel %vm20439_vm8, %v17847_v7, %v15215_v0  ;;  %v7293_v18 = vshll.u32 %v20236_v39, 16  ;;  %v7298_v26 = vshrl.u32 %v16798_v24, 16  ;;  %v16802_v30 = vld [vmem:[%s27109_s0 + $0xf0] sm:$0xf] }
 0x3f6   :  { %v17858_v12 = vcombine.low %v26703_v22, %v26713_v2  ;;  %v7286_v3 = vrot.slane %v7284_v31, 4  ;;  %v7289_v37 = vrot.slane %v7287_v1, 5  ;;  %v7301_v27 = vshll.u32 %v16798_v24, 16  ;;  %v17832_v56 = vld [vmem:[%s27109_s0 + $0x1f0] sm:$0xe] }
 0x3f7   :  { %v7295_v4 = vrot.slane %v7293_v18, 5  ;;  %v7300_v20 = vrot.slane %v7298_v26, 4  ;;  %v7307_v59 = vshll.u32 %v20237_v32, 16  ;;  %v7312_v25 = vshrl.u32 %v16800_v57, 16 }
 0x3f8   :  { %v7290_v29 = vor.u32 %v7289_v37, %v7286_v3  ;;  %v7303_v50 = vrot.slane %v7301_v27, 5  ;;  %v7315_v5 = vshll.u32 %v16800_v57, 16  ;;  %v7321_v24 = vshll.u32 %v20238_v54, 16  ;;  %v17833_v3 = vld [vmem:[%s27109_s0 + $0x1f8] sm:$0xe] }
 0x3f9   :  { %v7309_v7 = vrot.slane %v7307_v59, 5  ;;  %v7314_v0 = vrot.slane %v7312_v25, 4  ;;  %v7326_v43 = vshrl.u32 %v16802_v30, 16  ;;  %v7329_v31 = vshll.u32 %v16802_v30, 16 }
 0x3fa   :  { %v27176_v1 = vcombine.low %v26513_v28, %v26529_v62  ;;  %v7291_v39 = vrot.slane %v7290_v29, 4  ;;  %v7304_v57 = vor.u32 %v7303_v50, %v7300_v20  ;;  %v7317_v18 = vrot.slane %v7315_v5, 5  ;;  %v20239_v28 = vld [vmem:[%s27109_s0 + $0xf4] sm:$0x1]  ;;  %v17834_v20 = vld [vmem:[%s27109_s0 + $0x200] sm:$0xe] }
 0x3fb   :  { %v7323_v26 = vrot.slane %v7321_v24, 5  ;;  %v27177_v37 = vcombine.low %v26546_v44, %v26559_v9  ;;  %v7328_v27 = vrot.slane %v7326_v43, 4  ;;  %v7331_v30 = vrot.slane %v7329_v31, 5  ;;  %v17835_v24 = vld [vmem:[%s27109_s0 + $0x208] sm:$0xe] }
 0x3fc   :  { %19186 = vmatmul.mubr.msk.bf16.gmra.mrb[12].mxu0 %vm89_vm2, %v27176_v1  ;;  %v7335_v62 = vshll.u32 %v20239_v28, 16  ;;  %v17848_v32 = vrot.slane %v17832_v56, 9  ;;  %18754 = vmatmul.mubr.msk.bf16.gmra.mrb[12].mxu1 %vm89_vm2, %v20110_v51  ;;  %v7296_v59 = vsel %vm20370_vm5, %v7291_v39, %v7295_v4  ;;  %v7305_v44 = vrot.slane %v7304_v57, 4 }
 0x3fd   :  { %19191 = vmatprep.mubr.msk.bf16.mxu0 %vm89_vm2, %v27177_v37  ;;  %v7318_v9 = vor.u32 %v7317_v18, %v7314_v0  ;;  %v15219_v25 = vrot.slane %v26215_v11, 5  ;;  %18759 = vmatprep.mubr.msk.bf16.mxu1 %vm89_vm2, %v16821_v19  ;;  %v7332_v29 = vor.u32 %v7331_v30, %v7328_v27  ;;  %v17849_v5 = vrot.slane %v17833_v3, 9  ;;  %v16804_v19 = vld [vmem:[%s27109_s0 + $0x218] sm:$0xf]  ;;  %v16808_v30 = vld [vmem:[%s27109_s0 + $0x228] sm:$0xf] }
 0x3fe   :  { %v7337_v50 = vrot.slane %v7335_v62, 5  ;;  %v15223_v54 = vrot.slane %v26228_v38, 5  ;;  %v7310_v51 = vsel %vm20370_vm5, %v7305_v44, %v7309_v7  ;;  %v17850_v11 = vrot.slane %v17834_v20, 9  ;;  %v16806_v7 = vld [vmem:[%s27109_s0 + $0x220] sm:$0xf] }
 0x3ff   :  { %v7319_v56 = vrot.slane %v7318_v9, 4  ;;  %v26765_v4 = vsel %vm20439_vm8, %v17848_v32, %v15219_v25  ;;  %v16823_v0 = vcombine.low %v7296_v59, %v7310_v51  ;;  %v7333_v43 = vrot.slane %v7332_v29, 4  ;;  %v20240_v62 = vld [vmem:[%s27109_s0 + $0x21c] sm:$0x1]  ;;  %v16810_v9 = vld [vmem:[%s27109_s0 + $0x230] sm:$0xf] }
 0x400   :  { %v26772_v38 = vsel %vm20439_vm8, %v17849_v5, %v15223_v54  ;;  %v15227_v31 = vrot.slane %v26242_v53, 5  ;;  %v17851_v57 = vrot.slane %v17835_v24, 9  ;;  %v15231_v18 = vrot.slane %v26257_v13, 5  ;;  %v20242_v24 = vld [vmem:[%s27109_s0 + $0x22c] sm:$0x1] }
 0x401   :  { %v7324_v1 = vsel %vm20370_vm5, %v7319_v56, %v7323_v26  ;;  %v17859_v39 = vcombine.low %v26765_v4, %v26772_v38  ;;  %v7338_v3 = vsel %vm20370_vm5, %v7333_v43, %v7337_v50  ;;  %v7340_v53 = vshrl.u32 %v16804_v19, 16  ;;  %v16814_v4 = vld [vmem:[%s27109_s0 + $0x240] sm:$0xf] }
 0x402   :  { %v26787_v37 = vsel %vm20439_vm8, %v17850_v11, %v15227_v31  ;;  %v7343_v27 = vshll.u32 %v16804_v19, 16  ;;  %v27178_v26 = vcombine.low %v26571_v34, %v26581_v42  ;;  %v16824_v28 = vcombine.low %v7324_v1, %v7338_v3 }
 0x403   :  { %v26798_v13 = vsel %vm20439_vm8, %v17851_v57, %v15231_v18  ;;  %v7349_v32 = vshll.u32 %v20240_v62, 16  ;;  %v7354_v20 = vshrl.u32 %v16806_v7, 16  ;;  %v27179_v59 = vcombine.low %v26592_v6, %v26598_v14  ;;  %v20241_v6 = vld [vmem:[%s27109_s0 + $0x224] sm:$0x1]  ;;  %v20243_v18 = vld [vmem:[%s27109_s0 + $0x234] sm:$0x1] }
 0x404   :  { %19192 = vmatmul.mubr.msk.bf16.vlgmr.msra.gmra.mrb[0].mxu0 %vm89_vm2, %v27178_v26  ;;  %v17860_v34 = vcombine.low %v26787_v37, %v26798_v13  ;;  %v7342_v42 = vrot.slane %v7340_v53, 4  ;;  %v7345_v45 = vrot.slane %v7343_v27, 5  ;;  %v7357_v44 = vshll.u32 %v16806_v7, 16  ;;  %18760 = vmatmul.mubr.msk.bf16.vlgmr.msra.gmra.mrb[0].mxu1 %vm89_vm2, %v26709_v52  ;;  %v20246_v37 = vld [vmem:[%s27109_s0 + $0x24c] sm:$0x1] }
 0x405   :  { %19208 = vmatpush3.bf16.msra.mxu0 %v26533_v17  ;;  %19195 = vmatprep.mubr.msk.bf16.mxu0 %vm89_vm2, %v27179_v59  ;;  %v7351_v25 = vrot.slane %v7349_v32, 5  ;;  %v7356_v17 = vrot.slane %v7354_v20, 4  ;;  %v7363_v14 = vshll.u32 %v20241_v6, 16  ;;  %v7368_v29 = vshrl.u32 %v16808_v30, 16 }
 0x406   :  { %19226 = vmatpush3.bf16.msra.mxu1 %v27172_v61  ;;  %18763 = vmatprep.mubr.msk.bf16.mxu1 %vm89_vm2, %v16823_v0  ;;  %v7346_v50 = vor.u32 %v7345_v45, %v7342_v42  ;;  %v7359_v5 = vrot.slane %v7357_v44, 5  ;;  %v7371_v54 = vshll.u32 %v16808_v30, 16  ;;  %v7377_v52 = vshll.u32 %v20242_v24, 16  ;;  %v17869_v61 = vld [vmem:[%s27109_s0 + $0x1c] sm:$0x3] }
 0x407   :  { %v7365_v51 = vrot.slane %v7363_v14, 5  ;;  %v7370_v56 = vrot.slane %v7368_v29, 4  ;;  %v7382_v11 = vshrl.u32 %v16810_v9, 16  ;;  %v7385_v19 = vshll.u32 %v16810_v9, 16  ;;  %v17871_v24 = vld [vmem:[%s27109_s0 + $0x2c] sm:$0x3] }
 0x408   :  { %v7347_v43 = vrot.slane %v7346_v50, 4  ;;  %v7360_v31 = vor.u32 %v7359_v5, %v7356_v17  ;;  %v7373_v7 = vrot.slane %v7371_v54, 5  ;;  %v7379_v1 = vrot.slane %v7377_v52, 5 }
 0x409   :  { %v7384_v0 = vrot.slane %v7382_v11, 4  ;;  %v7387_v57 = vrot.slane %v7385_v19, 5  ;;  %v7391_v3 = vshll.u32 %v20243_v18, 16  ;;  %v15416_v53 = vshrl.u32 %v26264_v35, 16 }
 0x40a   :  { %v7352_v27 = vsel %vm20370_vm5, %v7347_v43, %v7351_v25  ;;  %v7361_v30 = vrot.slane %v7360_v31, 4  ;;  %v7374_v26 = vor.u32 %v7373_v7, %v7370_v56  ;;  %v15419_v62 = vshll.u32 %v26264_v35, 16  ;;  %v17870_v35 = vld [vmem:[%s27109_s0 + $0x24] sm:$0x3] }
 0x40b   :  { %v27180_v32 = vcombine.low %v26602_v33, %v26617_v55  ;;  %v7388_v20 = vor.u32 %v7387_v57, %v7384_v0  ;;  %v7393_v59 = vrot.slane %v7391_v3, 5  ;;  %v15418_v42 = vrot.slane %v15416_v53, 5 }
 0x40c   :  { %v15425_v45 = vshrl.u32 %v17869_v61, 16  ;;  %v7366_v44 = vsel %vm20370_vm5, %v7361_v30, %v7365_v51  ;;  %v7375_v9 = vrot.slane %v7374_v26, 4  ;;  %v15421_v33 = vrot.slane %v15419_v62, 6  ;;  %18764 = vmatmul.mubr.msk.bf16.gmra.mrb[4].mxu1 %vm89_vm2, %v16824_v28 }
 0x40d   :  { %19196 = vmatmul.mubr.msk.bf16.gmra.mrb[4].mxu0 %vm89_vm2, %v27180_v32  ;;  %v15428_v55 = vshll.u32 %v17869_v61, 16  ;;  %v16825_v25 = vcombine.low %v7352_v27, %v7366_v44  ;;  %v7389_v17 = vrot.slane %v7388_v20, 4  ;;  %v15434_v14 = vshrl.u32 %v26274_v15, 16  ;;  %v17872_v61 = vld [vmem:[%s27109_s0 + $0x34] sm:$0x3] }
 0x40e   :  { %19199 = vmatprep.mubr.msk.bf16.mxu0 %vm89_vm2, %v17857_v58  ;;  %v15427_v6 = vrot.slane %v15425_v45, 5  ;;  %v7380_v48 = vsel %vm20370_vm5, %v7375_v9, %v7379_v1  ;;  %v15422_v10 = vor.u32 %v15421_v33, %v15418_v42  ;;  %v15437_v29 = vshll.u32 %v26274_v15, 16  ;;  %v16812_v27 = vld [vmem:[%s27109_s0 + $0x238] sm:$0xf] }
 0x40f   :  { %v15430_v58 = vrot.slane %v15428_v55, 6  ;;  %18767 = vmatprep.mubr.msk.bf16.mxu1 %vm89_vm2, %v16825_v25  ;;  %v7394_v50 = vsel %vm20370_vm5, %v7389_v17, %v7393_v59  ;;  %v15436_v5 = vrot.slane %v15434_v14, 5  ;;  %v15443_v54 = vshrl.u32 %v17870_v35, 16  ;;  %v20244_v25 = vld [vmem:[%s27109_s0 + $0x23c] sm:$0x1] }
 0x410   :  { %v15446_v28 = vshll.u32 %v17870_v35, 16  ;;  %v16826_v52 = vcombine.low %v7380_v48, %v7394_v50  ;;  %v15423_v51 = vrot.slane %v15422_v10, 4  ;;  %v15439_v11 = vrot.slane %v15437_v29, 6 }
 0x411   :  { %v15431_v56 = vor.u32 %v15430_v58, %v15427_v6  ;;  %v15445_v19 = vrot.slane %v15443_v54, 5  ;;  %v15452_v15 = vshrl.u32 %v26287_v23, 16  ;;  %v15455_v31 = vshll.u32 %v26287_v23, 16  ;;  %v16816_v6 = vld [vmem:[%s27109_s0 + $0x248] sm:$0xf] }
 0x412   :  { %v15448_v43 = vrot.slane %v15446_v28, 6  ;;  %v15440_v1 = vor.u32 %v15439_v11, %v15436_v5  ;;  %v15461_v0 = vshrl.u32 %v17871_v24, 16  ;;  %v15464_v57 = vshll.u32 %v17871_v24, 16  ;;  %v20245_v54 = vld [vmem:[%s27109_s0 + $0x244] sm:$0x1] }
 0x413   :  { %v15432_v7 = vsel %vm20976_vm11, %v15423_v51, %v15431_v56  ;;  %v15454_v3 = vrot.slane %v15452_v15, 5  ;;  %v15457_v53 = vrot.slane %v15455_v31, 6  ;;  %v15470_v23 = vshrl.u32 %v26294_v49, 16  ;;  %v16818_v51 = vld [vmem:[%s27109_s0 + $0x250] sm:$0xf] }
 0x414   :  { %v15449_v18 = vor.u32 %v15448_v43, %v15445_v19  ;;  %v15441_v30 = vrot.slane %v15440_v1, 4  ;;  %v15463_v26 = vrot.slane %v15461_v0, 5  ;;  %v15466_v62 = vrot.slane %v15464_v57, 6  ;;  %18768 = vmatmul.mubr.msk.bf16.gmra.mrb[8].mxu1 %vm89_vm2, %v16826_v52 }
 0x415   :  { %19200 = vmatmul.mubr.msk.bf16.gmra.mrb[8].mxu0 %vm89_vm2, %v17858_v12  ;;  %v15473_v22 = vshll.u32 %v26294_v49, 16  ;;  %v15458_v2 = vor.u32 %v15457_v53, %v15454_v3  ;;  %v15472_v12 = vrot.slane %v15470_v23, 5  ;;  %v15479_v32 = vshrl.u32 %v17872_v61, 16  ;;  %v20247_v23 = vld [vmem:[%s27109_s0 + $0x254] sm:$0x1] }
 0x416   :  { %19203 = vmatprep.mubr.msk.bf16.mxu0 %vm89_vm2, %v17859_v39  ;;  %v15482_v20 = vshll.u32 %v17872_v61, 16  ;;  %v15450_v59 = vsel %vm20976_vm11, %v15441_v30, %v15449_v18  ;;  %v15467_v42 = vor.u32 %v15466_v62, %v15463_v26  ;;  %v7396_v38 = vshrl.u32 %v16812_v27, 16  ;;  %v17873_v30 = vld [vmem:[%s27109_s0 + $0x3c] sm:$0x3] }
 0x417   :  { %v15475_v45 = vrot.slane %v15473_v22, 6  ;;  %v17886_v39 = vcombine.low %v15432_v7, %v15450_v59  ;;  %v15459_v44 = vrot.slane %v15458_v2, 4  ;;  %v15481_v9 = vrot.slane %v15479_v32, 5 }
 0x418   :  { %v15484_v49 = vrot.slane %v15482_v20, 6  ;;  %v7398_v33 = vrot.slane %v7396_v38, 4  ;;  %v7399_v55 = vshll.u32 %v16812_v27, 16  ;;  %v7405_v17 = vshll.u32 %v20244_v25, 16 }
 0x419   :  { %v15476_v35 = vor.u32 %v15475_v45, %v15472_v12  ;;  %v15468_v14 = vsel %vm20976_vm11, %v15459_v44, %v15467_v42  ;;  %v7410_v10 = vshrl.u32 %v16814_v4, 16  ;;  %v7413_v58 = vshll.u32 %v16814_v4, 16  ;;  %v17874_v42 = vld [vmem:[%s27109_s0 + $0x44] sm:$0x3] }
 0x41a   :  { %v15485_v48 = vor.u32 %v15484_v49, %v15481_v9  ;;  %v7401_v50 = vrot.slane %v7399_v55, 5  ;;  %v7407_v5 = vrot.slane %v7405_v17, 5  ;;  %v7419_v28 = vshll.u32 %v20245_v54, 16 }
 0x41b   :  { %v15477_v29 = vrot.slane %v15476_v35, 4  ;;  %v7412_v24 = vrot.slane %v7410_v10, 4  ;;  %v7415_v52 = vrot.slane %v7413_v58, 5  ;;  %v7424_v56 = vshrl.u32 %v16816_v6, 16  ;;  %v17875_v58 = vld [vmem:[%s27109_s0 + $0x4c] sm:$0x3] }
 0x41c   :  { %v7427_v11 = vshll.u32 %v16816_v6, 16  ;;  %v7402_v43 = vor.u32 %v7401_v50, %v7398_v33  ;;  %v7421_v15 = vrot.slane %v7419_v28, 5  ;;  %v7433_v13 = vshll.u32 %v20246_v37, 16 }
 0x41d   :  { %19204 = vmatmul.mubr.msk.bf16.gmra.mrb[12].mxu0 %vm89_vm2, %v17860_v34  ;;  %v15486_v19 = vsel %vm20976_vm11, %v15477_v29, %v15485_v48  ;;  %v7416_v31 = vor.u32 %v7415_v52, %v7412_v24  ;;  %v7426_v7 = vrot.slane %v7424_v56, 4  ;;  %v7438_v57 = vshrl.u32 %v16818_v51, 16 }
 0x41e   :  { %19209 = vmatprep.mubr.msk.bf16.mxu0 %vm89_vm2, %v17886_v39  ;;  %v17887_v34 = vcombine.low %v15468_v14, %v15486_v19  ;;  %v7429_v1 = vrot.slane %v7427_v11, 5  ;;  %v7403_v61 = vrot.slane %v7402_v43, 4  ;;  %v7435_v0 = vrot.slane %v7433_v13, 5 }
 0x41f   :  { %v7441_v18 = vshll.u32 %v16818_v51, 16  ;;  %v7417_v3 = vrot.slane %v7416_v31, 4  ;;  %v7447_v27 = vshll.u32 %v20247_v23, 16  ;;  %v15488_v26 = vshrl.u32 %v26313_v46, 16  ;;  %v17876_v51 = vld [vmem:[%s27109_s0 + $0x54] sm:$0x3] }
 0x420   :  { %v7430_v53 = vor.u32 %v7429_v1, %v7426_v7  ;;  %v7408_v62 = vsel %vm20370_vm5, %v7403_v61, %v7407_v5  ;;  %v7440_v22 = vrot.slane %v7438_v57, 4  ;;  %v15491_v12 = vshll.u32 %v26313_v46, 16 }
 0x421   :  { %v7443_v2 = vrot.slane %v7441_v18, 5  ;;  %v7422_v32 = vsel %vm20370_vm5, %v7417_v3, %v7421_v15  ;;  %v7449_v59 = vrot.slane %v7447_v27, 5  ;;  %v15490_v45 = vrot.slane %v15488_v26, 5 }
 0x422   :  { %v7431_v20 = vrot.slane %v7430_v53, 4  ;;  %v16827_v4 = vcombine.low %v7408_v62, %v7422_v32  ;;  %v15493_v39 = vrot.slane %v15491_v12, 6  ;;  %v15497_v44 = vshrl.u32 %v17873_v30, 16  ;;  %v16855_v53 = vld [vmem:[%s27109_s0 + $0x278] sm:$0xf] }
 0x423   :  { %v7444_v38 = vor.u32 %v7443_v2, %v7440_v22  ;;  %v15500_v46 = vshll.u32 %v17873_v30, 16  ;;  %v15506_v49 = vshrl.u32 %v26325_v40, 16  ;;  %v15509_v35 = vshll.u32 %v26325_v40, 16 }
 0x424   :  { %v7436_v9 = vsel %vm20370_vm5, %v7431_v20, %v7435_v0  ;;  %18771 = vmatprep.mubr.msk.bf16.mxu1 %vm89_vm2, %v16827_v4  ;;  %v15494_v55 = vor.u32 %v15493_v39, %v15490_v45  ;;  %v15499_v25 = vrot.slane %v15497_v44, 5  ;;  %v15515_v17 = vshrl.u32 %v17874_v42, 16  ;;  %v20248_v20 = vld [vmem:[%s27109_s0 + $0x274] sm:$0x1]  ;;  %v16857_v45 = vld [vmem:[%s27109_s0 + $0x280] sm:$0xf] }
 0x425   :  { %19210 = vmatmul.mubr.msk.bf16.vlgmr.msra.gmra.mrb[0].mxu0 %vm89_vm2, %v17887_v34  ;;  %v7445_v33 = vrot.slane %v7444_v38, 4  ;;  %v15502_v6 = vrot.slane %v15500_v46, 6  ;;  %v15508_v14 = vrot.slane %v15506_v49, 5  ;;  %v15511_v48 = vrot.slane %v15509_v35, 6 }
 0x426   :  { %v15518_v10 = vshll.u32 %v17874_v42, 16  ;;  %v15495_v50 = vrot.slane %v15494_v55, 4  ;;  %v15517_v5 = vrot.slane %v15515_v17, 5  ;;  %v15524_v40 = vshrl.u32 %v26334_v8, 16  ;;  %v20249_v17 = vld [vmem:[%s27109_s0 + $0x27c] sm:$0x1] }
 0x427   :  { %v7450_v29 = vsel %vm20370_vm5, %v7445_v33, %v7449_v59  ;;  %v15503_v28 = vor.u32 %v15502_v6, %v15499_v25  ;;  %v15512_v24 = vor.u32 %v15511_v48, %v15508_v14  ;;  %v15527_v11 = vshll.u32 %v26334_v8, 16  ;;  %v16853_v8 = vld [vmem:[%s27109_s0 + $0x270] sm:$0xf] }
 0x428   :  { %v16828_v54 = vcombine.low %v7436_v9, %v7450_v29  ;;  %v15520_v52 = vrot.slane %v15518_v10, 6  ;;  %v15526_v56 = vrot.slane %v15524_v40, 5  ;;  %v15533_v19 = vshrl.u32 %v17875_v58, 16  ;;  %v16859_v9 = vld [vmem:[%s27109_s0 + $0x288] sm:$0xf] }
 0x429   :  { %v15536_v43 = vshll.u32 %v17875_v58, 16  ;;  %v15504_v15 = vsel %vm20976_vm11, %v15495_v50, %v15503_v28  ;;  %v15513_v37 = vrot.slane %v15512_v24, 4  ;;  %v15542_v34 = vshrl.u32 %v26357_v41, 16  ;;  %v17877_v28 = vld [vmem:[%s27109_s0 + $0x17c] sm:$0x3] }
 0x42a   :  { %18772 = vmatmul.mubr.msk.bf16.gmra.mrb[12].mxu1 %vm89_vm2, %v16828_v54  ;;  %v15521_v13 = vor.u32 %v15520_v52, %v15517_v5  ;;  %v15529_v31 = vrot.slane %v15527_v11, 6  ;;  %v15535_v7 = vrot.slane %v15533_v19, 5  ;;  %v15545_v61 = vshll.u32 %v26357_v41, 16 }
 0x42b   :  { %v15538_v1 = vrot.slane %v15536_v43, 6  ;;  %v15544_v57 = vrot.slane %v15542_v34, 5  ;;  %v15551_v18 = vshrl.u32 %v17876_v51, 16  ;;  %v15554_v3 = vshll.u32 %v17876_v51, 16 }
 0x42c   :  { %v15522_v0 = vsel %vm20976_vm11, %v15513_v37, %v15521_v13  ;;  %v15530_v27 = vor.u32 %v15529_v31, %v15526_v56  ;;  %v15547_v26 = vrot.slane %v15545_v61, 6  ;;  %v7762_v22 = vshrl.u32 %v16853_v8, 16 }
 0x42d   :  { %v17888_v23 = vcombine.low %v15504_v15, %v15522_v0  ;;  %v15539_v30 = vor.u32 %v15538_v1, %v15535_v7  ;;  %v15553_v62 = vrot.slane %v15551_v18, 5  ;;  %v15556_v41 = vrot.slane %v15554_v3, 6  ;;  %v17878_v1 = vld [vmem:[%s27109_s0 + $0x184] sm:$0x3] }
 0x42e   :  { %v7765_v2 = vshll.u32 %v16853_v8, 16  ;;  %v15531_v12 = vrot.slane %v15530_v27, 4  ;;  %v15548_v32 = vor.u32 %v15547_v26, %v15544_v57  ;;  %v7771_v59 = vshll.u32 %v20248_v20, 16  ;;  %v27181_v26 = vld [vmem:[#allocation6_spill] sm:$0xff] }
 0x42f   :  { %19213 = vmatprep.mubr.msk.bf16.mxu0 %vm89_vm2, %v17888_v23  ;;  %v7776_v42 = vshrl.u32 %v16855_v53, 16  ;;  %v15557_v4 = vor.u32 %v15556_v41, %v15553_v62  ;;  %v7764_v38 = vrot.slane %v7762_v22, 4  ;;  %v7779_v44 = vshll.u32 %v16855_v53, 16  ;;  %v27182_v41 = vld [vmem:[#allocation7_spill] sm:$0xff] }
 0x430   :  { %v7767_v39 = vrot.slane %v7765_v2, 5  ;;  %v15540_v46 = vsel %vm20976_vm11, %v15531_v12, %v15539_v30  ;;  %v15549_v49 = vrot.slane %v15548_v32, 4  ;;  %v7773_v35 = vrot.slane %v7771_v59, 5  ;;  %v17879_v32 = vld [vmem:[%s27109_s0 + $0x18c] sm:$0x3] }
 0x431   :  { %v7778_v33 = vrot.slane %v7776_v42, 4  ;;  %v7781_v25 = vrot.slane %v7779_v44, 5  ;;  %v7785_v6 = vshll.u32 %v20249_v17, 16  ;;  %v7790_v14 = vshrl.u32 %v16857_v45, 16 }
 0x432   :  { %v7768_v55 = vor.u32 %v7767_v39, %v7764_v38  ;;  %v15558_v48 = vsel %vm20976_vm11, %v15549_v49, %v15557_v4  ;;  %v7793_v10 = vshll.u32 %v16857_v45, 16  ;;  %v7804_v58 = vshrl.u32 %v16859_v9, 16 }
 0x433   :  { %v7807_v29 = vshll.u32 %v16859_v9, 16  ;;  %v17889_v50 = vcombine.low %v15540_v46, %v15558_v48  ;;  %v7782_v40 = vor.u32 %v7781_v25, %v7778_v33  ;;  %v7787_v54 = vrot.slane %v7785_v6, 5  ;;  %v17880_v46 = vld [vmem:[%s27109_s0 + $0x194] sm:$0x3] }
 0x434   :  { %v7769_v5 = vrot.slane %v7768_v55, 4  ;;  %v7792_v24 = vrot.slane %v7790_v14, 4  ;;  %v7795_v52 = vrot.slane %v7793_v10, 5  ;;  %v7806_v51 = vrot.slane %v7804_v58, 4  ;;  %v20250_v10 = vld [vmem:[%s27109_s0 + $0x190] sm:$0xe] }
 0x435   :  { %v7809_v56 = vrot.slane %v7807_v29, 5  ;;  %19214 = vmatmul.mubr.msk.bf16.gmra.mrb[4].mxu0 %vm89_vm2, %v17889_v50  ;;  %v7783_v19 = vrot.slane %v7782_v40, 4  ;;  %v15560_v43 = vshrl.u32 %v26377_v60, 16  ;;  %v15563_v15 = vshll.u32 %v26377_v60, 16 }
 0x436   :  { %v7774_v11 = vsel %vm20370_vm5, %v7769_v5, %v7773_v35  ;;  %v7796_v37 = vor.u32 %v7795_v52, %v7792_v24  ;;  %v15569_v34 = vshrl.u32 %v17877_v28, 16  ;;  %v15572_v31 = vshll.u32 %v17877_v28, 16  ;;  %v16863_v24 = vld [vmem:[%s27109_s0 + $0x298] sm:$0xf] }
 0x437   :  { %v7810_v13 = vor.u32 %v7809_v56, %v7806_v51  ;;  %v7788_v7 = vsel %vm20370_vm5, %v7783_v19, %v7787_v54  ;;  %v15562_v61 = vrot.slane %v15560_v43, 5  ;;  %v15565_v8 = vrot.slane %v15563_v15, 6 }
 0x438   :  { %v15578_v0 = vshrl.u32 %v26397_v21, 16  ;;  %v16874_v57 = vcombine.low %v7774_v11, %v7788_v7  ;;  %v7797_v18 = vrot.slane %v7796_v37, 4  ;;  %v15571_v53 = vrot.slane %v15569_v34, 5 }
 0x439   :  { %v7811_v3 = vrot.slane %v7810_v13, 4  ;;  %v15566_v60 = vor.u32 %v15565_v8, %v15562_v61  ;;  %v15574_v23 = vrot.slane %v15572_v31, 6  ;;  %v15581_v30 = vshll.u32 %v26397_v21, 16  ;;  %v20251_v13 = vld [vmem:[%s27109_s0 + $0x294] sm:$0x1] }
 0x43a   :  { %v15580_v27 = vrot.slane %v15578_v0, 5  ;;  %18785 = vmatprep.mubr.msk.bf16.mxu1 %vm89_vm2, %v16874_v57  ;;  %v7802_v62 = vsel %vm20370_vm5, %v7797_v18, %v27181_v26  ;;  %v15587_v2 = vshrl.u32 %v17878_v1, 16  ;;  %v15590_v12 = vshll.u32 %v17878_v1, 16  ;;  %v16865_v31 = vld [vmem:[%s27109_s0 + $0x2a0] sm:$0xf] }
 0x43b   :  { %v7816_v22 = vsel %vm20370_vm5, %v7811_v3, %v27182_v41  ;;  %v15567_v59 = vrot.slane %v15566_v60, 4  ;;  %v15575_v42 = vor.u32 %v15574_v23, %v15571_v53  ;;  %v15583_v21 = vrot.slane %v15581_v30, 6  ;;  %v20252_v3 = vld [vmem:[%s27109_s0 + $0x29c] sm:$0x1] }
 0x43c   :  { %v16875_v20 = vcombine.low %v7802_v62, %v7816_v22  ;;  %v15589_v45 = vrot.slane %v15587_v2, 5  ;;  %v15592_v4 = vrot.slane %v15590_v12, 6  ;;  %v15596_v38 = vshrl.u32 %v26402_v63, 16  ;;  %v20253_v2 = vld [vmem:[%s27109_s0 + $0x2a4] sm:$0x1] }
 0x43d   :  { %v15599_v39 = vshll.u32 %v26402_v63, 16  ;;  %v15576_v44 = vsel %vm20976_vm11, %v15567_v59, %v15575_v42  ;;  %v15584_v9 = vor.u32 %v15583_v21, %v15580_v27  ;;  %v15605_v49 = vshrl.u32 %v17879_v32, 16  ;;  %v16861_v63 = vld [vmem:[%s27109_s0 + $0x290] sm:$0xf]  ;;  %v16867_v27 = vld [vmem:[%s27109_s0 + $0x2a8] sm:$0xf] }
 0x43e   :  { %18786 = vmatmul.mubr.msk.bf16.vlgmr.msra.gmra.mrb[8].mxu1 %vm89_vm2, %v16875_v20  ;;  %v15608_v35 = vshll.u32 %v17879_v32, 16  ;;  %v15593_v33 = vor.u32 %v15592_v4, %v15589_v45  ;;  %v15598_v55 = vrot.slane %v15596_v38, 5  ;;  %v15614_v17 = vshrl.u32 %v26417_v47, 16 }
 0x43f   :  { %v15601_v25 = vrot.slane %v15599_v39, 6  ;;  %v15585_v6 = vrot.slane %v15584_v9, 4  ;;  %v15607_v14 = vrot.slane %v15605_v49, 5  ;;  %v15617_v58 = vshll.u32 %v20250_v10, 16  ;;  %v20254_v9 = vld [vmem:[%s27109_s0 + $0x2ac] sm:$0x1] }
 0x440   :  { %v15610_v48 = vrot.slane %v15608_v35, 6  ;;  %v15616_v50 = vrot.slane %v15614_v17, 5  ;;  %v15623_v5 = vshrl.u32 %v17880_v46, 16  ;;  %v15626_v40 = vshll.u32 %v17880_v46, 16  ;;  %v17881_v49 = vld [vmem:[%s27109_s0 + $0x19c] sm:$0x3] }
 0x441   :  { %v15602_v29 = vor.u32 %v15601_v25, %v15598_v55  ;;  %v15594_v54 = vsel %vm20976_vm11, %v15585_v6, %v15593_v33  ;;  %v15619_v28 = vrot.slane %v15617_v58, 6  ;;  %v7818_v52 = vshrl.u32 %v16861_v63, 16  ;;  %v20255_v35 = vld [vmem:[%s27109_s0 + $0x198] sm:$0xe]  ;;  %v17882_v10 = vld [vmem:[%s27109_s0 + $0x1a4] sm:$0x3] }
 0x442   :  { %v15611_v47 = vor.u32 %v15610_v48, %v15607_v14  ;;  %v17890_v51 = vcombine.low %v15576_v44, %v15594_v54  ;;  %v15625_v11 = vrot.slane %v15623_v5, 5  ;;  %v15628_v19 = vrot.slane %v15626_v40, 6 }
 0x443   :  { %v15603_v56 = vrot.slane %v15602_v29, 4  ;;  %v15620_v43 = vor.u32 %v15619_v28, %v15616_v50  ;;  %v7820_v15 = vrot.slane %v7818_v52, 4  ;;  %v7821_v37 = vshll.u32 %v16861_v63, 16  ;;  %v20256_v28 = vld [vmem:[%s27109_s0 + $0x1a0] sm:$0xe] }
 0x444   :  { %v7827_v34 = vshll.u32 %v20251_v13, 16  ;;  %19217 = vmatprep.mubr.msk.bf16.mxu0 %vm89_vm2, %v17890_v51  ;;  %v15629_v1 = vor.u32 %v15628_v19, %v15625_v11  ;;  %v7832_v61 = vshrl.u32 %v16863_v24, 16  ;;  %v7835_v8 = vshll.u32 %v16863_v24, 16 }
 0x445   :  { %v15612_v7 = vsel %vm20976_vm11, %v15603_v56, %v15611_v47  ;;  %v15621_v0 = vrot.slane %v15620_v43, 4  ;;  %v7823_v57 = vrot.slane %v7821_v37, 5  ;;  %v7841_v53 = vshll.u32 %v20252_v3, 16 }
 0x446   :  { %v7829_v18 = vrot.slane %v7827_v34, 5  ;;  %v7834_v60 = vrot.slane %v7832_v61, 4  ;;  %v7837_v23 = vrot.slane %v7835_v8, 5  ;;  %v7846_v30 = vshrl.u32 %v16865_v31, 16  ;;  %v17883_v34 = vld [vmem:[%s27109_s0 + $0x1ac] sm:$0x3] }
 0x447   :  { %v7849_v26 = vshll.u32 %v16865_v31, 16  ;;  %v15630_v62 = vsel %vm20976_vm11, %v15621_v0, %v15629_v1  ;;  %v7824_v41 = vor.u32 %v7823_v57, %v7820_v15  ;;  %v7843_v22 = vrot.slane %v7841_v53, 5  ;;  %v20257_v61 = vld [vmem:[%s27109_s0 + $0x1a8] sm:$0xe]  ;;  %v17884_v53 = vld [vmem:[%s27109_s0 + $0x1b4] sm:$0x3] }
 0x448   :  { %v7855_v12 = vshll.u32 %v20253_v2, 16  ;;  %v17891_v32 = vcombine.low %v15612_v7, %v15630_v62  ;;  %v7838_v20 = vor.u32 %v7837_v23, %v7834_v60  ;;  %v7848_v59 = vrot.slane %v7846_v30, 4 }
 0x449   :  { %v7851_v42 = vrot.slane %v7849_v26, 5  ;;  %v7825_v21 = vrot.slane %v7824_v41, 4  ;;  %v7860_v4 = vshrl.u32 %v16867_v27, 16  ;;  %v7863_v38 = vshll.u32 %v16867_v27, 16  ;;  %v20258_v41 = vld [vmem:[%s27109_s0 + $0x1b0] sm:$0xe] }
 0x44a   :  { %v7857_v45 = vrot.slane %v7855_v12, 5  ;;  %19218 = vmatmul.mubr.msk.bf16.gmra.mrb[8].mxu0 %vm89_vm2, %v17891_v32  ;;  %v7839_v39 = vrot.slane %v7838_v20, 4  ;;  %v7869_v46 = vshll.u32 %v20254_v9, 16  ;;  %v15632_v33 = vshrl.u32 %v20255_v35, 16  ;;  %s20284_s0 = smov [#allocation2]  }
 0x44b   :  { %v7852_v44 = vor.u32 %v7851_v42, %v7848_v59  ;;  %v7830_v55 = vsel %vm20370_vm5, %v7825_v21, %v7829_v18  ;;  %v7862_v25 = vrot.slane %v7860_v4, 4  ;;  %v7865_v17 = vrot.slane %v7863_v38, 5  ;;  %s15907_s5 = sshll.u32 %s20284_s0, 4  ;;  %s15908_s5 = int_to_ptr.vmem [resolvable:$true] %s15907_s5 }
 0x44c   :  { %v15635_v63 = vshll.u32 %v20255_v35, 16  ;;  %v7844_v6 = vsel %vm20370_vm5, %v7839_v39, %v7843_v22  ;;  %v7871_v48 = vrot.slane %v7869_v46, 5  ;;  %v15634_v58 = vrot.slane %v15632_v33, 5  ;;  %s20259_s6 = scalar_lea.vmem %s15908_s5, 1024  ;;  %p20264_p1 = scmp.lt.s32.totalorder %s15908_s5, %s15908_s5 }
 0x44d   :  { %v7853_v14 = vrot.slane %v7852_v44, 4  ;;  %v16876_v29 = vcombine.low %v7830_v55, %v7844_v6  ;;  %v7866_v50 = vor.u32 %v7865_v17, %v7862_v25  ;;  %v15641_v40 = vshrl.u32 %v17881_v49, 16  ;;  %p20260_p0 = scmp.ne.s32.totalorder %s15908_s5, %s20259_s6  ;;  %p20265_p2 = scmp.lt.s32.totalorder %s20259_s6, %s20259_s6 }
 0x44e   :  { %v15637_v5 = vrot.slane %v15635_v63, 6  ;;  %v15644_v47 = vshll.u32 %v17881_v49, 16  ;;  %v15650_v24 = vshrl.u32 %v20256_v28, 16  ;;  %v15653_v52 = vshll.u32 %v20256_v28, 16 }
 0x44f   :  { %v7858_v54 = vsel %vm20370_vm5, %v7853_v14, %v7857_v45  ;;  %18789 = vmatprep.mubr.msk.bf16.mxu1 %vm89_vm2, %v16876_v29  ;;  %v7867_v51 = vrot.slane %v7866_v50, 4  ;;  %v15643_v11 = vrot.slane %v15641_v40, 5  ;;  %v15659_v19 = vshrl.u32 %v17882_v10, 16  ;;  %p20266_p3 = por %p20265_p2, %p20264_p1 }
 0x450   :  { %v15638_v56 = vor.u32 %v15637_v5, %v15634_v58  ;;  %v15646_v43 = vrot.slane %v15644_v47, 6  ;;  %v15652_v15 = vrot.slane %v15650_v24, 5  ;;  %v15655_v37 = vrot.slane %v15653_v52, 6 }
 0x451   :  { %v15662_v13 = vshll.u32 %v17882_v10, 16  ;;  %v7872_v31 = vsel %vm20370_vm5, %v7867_v51, %v7871_v48  ;;  %v15661_v1 = vrot.slane %v15659_v19, 5  ;;  %v15668_v8 = vshrl.u32 %v20257_v61, 16  ;;  %p20267_p4 = pnand %p20266_p3, %p20260_p0 }
 0x452   :  { %v15639_v7 = vrot.slane %v15638_v56, 4  ;;  %v16877_v0 = vcombine.low %v7858_v54, %v7872_v31  ;;  %v15647_v57 = vor.u32 %v15646_v43, %v15643_v11  ;;  %v15656_v18 = vor.u32 %v15655_v37, %v15652_v15 }
 0x453   :  { %v15664_v3 = vrot.slane %v15662_v13, 6  ;;  %v15670_v60 = vrot.slane %v15668_v8, 5  ;;  %v15671_v23 = vshll.u32 %v20257_v61, 16  ;;  %v15677_v27 = vshrl.u32 %v17883_v34, 16 }
 0x454   :  { %v15680_v36 = vshll.u32 %v17883_v34, 16  ;;  %18790 = vmatmul.mubr.msk.bf16.gmra.mrb[12].mxu1 %vm89_vm2, %v16877_v0  ;;  %v15648_v30 = vsel %vm20976_vm11, %v15639_v7, %v15647_v57  ;;  %v15657_v26 = vrot.slane %v15656_v18, 4  ;;  %v15686_v22 = vshrl.u32 %v20258_v41, 16 }
 0x455   :  { %v15665_v62 = vor.u32 %v15664_v3, %v15661_v1  ;;  %v15673_v2 = vrot.slane %v15671_v23, 6  ;;  %v15679_v12 = vrot.slane %v15677_v27, 5  ;;  %v15689_v20 = vshll.u32 %v20258_v41, 16 }
 0x456   :  { %v15682_v32 = vrot.slane %v15680_v36, 6  ;;  %v15688_v42 = vrot.slane %v15686_v22, 5  ;;  %v15695_v21 = vshrl.u32 %v17884_v53, 16  ;;  %v15698_v45 = vshll.u32 %v17884_v53, 16 }
 0x457   :  { %v15666_v59 = vsel %vm20976_vm11, %v15657_v26, %v15665_v62  ;;  %v15674_v38 = vor.u32 %v15673_v2, %v15670_v60  ;;  %v15691_v44 = vrot.slane %v15689_v20, 6  ;;  %vm15885_vm12 = vcmask 519168  }
 0x458   :  { %v17892_v4 = vcombine.low %v15648_v30, %v15666_v59  ;;  %v15683_v39 = vor.u32 %v15682_v32, %v15679_v12  ;;  %v15697_v9 = vrot.slane %v15695_v21, 5  ;;  %v15700_v46 = vrot.slane %v15698_v45, 6 }
 0x459   :  { %v15675_v49 = vrot.slane %v15674_v38, 4  ;;  %v15692_v35 = vor.u32 %v15691_v44, %v15688_v42 }
 0x45a   :  { %19221 = vmatprep.mubr.msk.bf16.mxu0 %vm89_vm2, %v17892_v4  ;;  %v15701_v33 = vor.u32 %v15700_v46, %v15697_v9 }
 0x45b   :  { %v15684_v55 = vsel %vm20976_vm11, %v15675_v49, %v15683_v39  ;;  %v15693_v25 = vrot.slane %v15692_v35, 4 }
 0x45d   :  { %v15702_v17 = vsel %vm20976_vm11, %v15693_v25, %v15701_v33 }
 0x45e   :  { %v17893_v63 = vcombine.low %v15684_v55, %v15702_v17 }
 0x460   :  { %19222 = vmatmul.mubr.msk.bf16.gmra.mrb[12].mxu0 %vm89_vm2, %v17893_v63 }
 0x4d7   :  { %v18761_v6 = vpop.f32.mrb[0].mxu1 }
 0x4d8   :  { %v7538_v14 = vpop.f32.mrb[1].mxu1 }
 0x4d9   :  { %v18762_v48 = vpop.f32.mrb[2].mxu1 }
 0x4da   :  { %v7541_v10 = vpop.f32.mrb[3].mxu1 }
 0x4df   :  { %v18765_v58 = vpop.f32.mrb[4].mxu1 }
 0x4e0   :  { %v7554_v29 = vpop.f32.mrb[5].mxu1 }
 0x4e1   :  { %v18766_v50 = vpop.f32.mrb[6].mxu1 }
 0x4e2   :  { %v7557_v5 = vpop.f32.mrb[7].mxu1 }
 0x4f8   :  { %v19211_v40 = vpop.f32.mrb[0].mxu0 }
 0x4f9   :  { %v19227_v54 = vadd.f32 %v19211_v40, %v18761_v6  ;;  %v15790_v47 = vpop.f32.mrb[1].mxu0 }
 0x4fa   :  { %v19228_v28 = vadd.f32 %v15790_v47, %v7538_v14  ;;  %v19212_v24 = vpop.f32.mrb[2].mxu0 }
 0x4fb   :  { %v15871_v52 = vpack.c.bf16 %v19227_v54, %v19227_v54  ;;  %v19229_v16 = vadd.f32 %v19212_v24, %v18762_v48  ;;  %v15793_v51 = vpop.f32.mrb[3].mxu0 }
 0x4fc   :  { %v15869_v56 = vpack.c.bf16 %v19228_v28, %v19228_v28  ;;  %v19230_v11 = vadd.f32 %v15793_v51, %v7541_v10 }
 0x4fd   :  { %15888 = vst.msk [vmem:[#allocation2 + $0x8] sm:$0xf] %vm15885_vm12, %v15871_v52  ;;  %v15872_v19 = vpack.c.bf16 %v19229_v16, %v19229_v16 }
 0x4fe   :  { %15886 = vst.msk [vmem:[#allocation2] sm:$0xf] %vm15885_vm12, %v15869_v56  ;;  %v15870_v43 = vpack.c.bf16 %v19230_v11, %v19230_v11 }
 0x4ff   :  { %15889 = vst.msk [vmem:[#allocation2 + $0xc] sm:$0xf] %vm15885_vm12, %v15872_v19 }
 0x500   :  { %15887 = vst.msk [vmem:[#allocation2 + $0x4] sm:$0xf] %vm15885_vm12, %v15870_v43 }
 0x508   :  { %v19215_v15 = vpop.f32.mrb[4].mxu0 }
 0x509   :  { %v19231_v37 = vadd.f32 %v19215_v15, %v18765_v58  ;;  %v15806_v13 = vpop.f32.mrb[5].mxu0 }
 0x50a   :  { %v19232_v34 = vadd.f32 %v15806_v13, %v7554_v29  ;;  %v19216_v31 = vpop.f32.mrb[6].mxu0 }
 0x50b   :  { %v15875_v7 = vpack.c.bf16 %v19231_v37, %v19231_v37  ;;  %v19233_v1 = vadd.f32 %v19216_v31, %v18766_v50  ;;  %v15809_v61 = vpop.f32.mrb[7].mxu0 }
 0x50c   :  { %v15873_v8 = vpack.c.bf16 %v19232_v34, %v19232_v34  ;;  %v19234_v0 = vadd.f32 %v15809_v61, %v7557_v5 }
 0x50d   :  { %15892 = vst.msk [vmem:[#allocation2 + $0x18] sm:$0xf] %vm15885_vm12, %v15875_v7  ;;  %v15876_v57 = vpack.c.bf16 %v19233_v1, %v19233_v1 }
 0x50e   :  { %15890 = vst.msk [vmem:[#allocation2 + $0x10] sm:$0xf] %vm15885_vm12, %v15873_v8  ;;  %v15874_v18 = vpack.c.bf16 %v19234_v0, %v19234_v0 }
 0x50f   :  { %15893 = vst.msk [vmem:[#allocation2 + $0x1c] sm:$0xf] %vm15885_vm12, %v15876_v57 }
 0x510   :  { %15891 = vst.msk [vmem:[#allocation2 + $0x14] sm:$0xf] %vm15885_vm12, %v15874_v18 }
 0x511   :  { %v18787_v3 = vpop.f32.mrb[8].mxu1 }
 0x512   :  { %v7992_v53 = vpop.f32.mrb[9].mxu1 }
 0x513   :  { %v18788_v60 = vpop.f32.mrb[10].mxu1 }
 0x514   :  { %v7995_v23 = vpop.f32.mrb[11].mxu1 }
 0x51d   :  { %v19219_v27 = vpop.f32.mrb[8].mxu0 }
 0x51e   :  { %v19235_v36 = vadd.f32 %v19219_v27, %v18787_v3  ;;  %v15822_v30 = vpop.f32.mrb[9].mxu0 }
 0x51f   :  { %v19236_v26 = vadd.f32 %v15822_v30, %v7992_v53  ;;  %v19220_v62 = vpop.f32.mrb[10].mxu0 }
 0x520   :  { %v15879_v41 = vpack.c.bf16 %v19235_v36, %v19235_v36  ;;  %v19237_v22 = vadd.f32 %v19220_v62, %v18788_v60  ;;  %v15825_v2 = vpop.f32.mrb[11].mxu0 }
 0x521   :  { %v15877_v12 = vpack.c.bf16 %v19236_v26, %v19236_v26  ;;  %v19238_v32 = vadd.f32 %v15825_v2, %v7995_v23 }
 0x522   :  { %15896 = vst.msk [vmem:[#allocation2 + $0x28] sm:$0xf] %vm15885_vm12, %v15879_v41  ;;  %v15880_v20 = vpack.c.bf16 %v19237_v22, %v19237_v22 }
 0x523   :  { %15894 = vst.msk [vmem:[#allocation2 + $0x20] sm:$0xf] %vm15885_vm12, %v15877_v12  ;;  %v15878_v59 = vpack.c.bf16 %v19238_v32, %v19238_v32 }
 0x524   :  { %15897 = vst.msk [vmem:[#allocation2 + $0x2c] sm:$0xf] %vm15885_vm12, %v15880_v20 }
 0x525   :  { %15895 = vst.msk [vmem:[#allocation2 + $0x24] sm:$0xf] %vm15885_vm12, %v15878_v59 }
 0x527   :  { %v18791_v42 = vpop.f32.mrb[12].mxu1 }
 0x528   :  { %v8008_v21 = vpop.f32.mrb[13].mxu1 }
 0x529   :  { %v18792_v45 = vpop.f32.mrb[14].mxu1 }
 0x52a   :  { %v8011_v4 = vpop.f32.mrb[15].mxu1 }
 0x533   :  { %v19223_v38 = vpop.f32.mrb[12].mxu0 }
 0x534   :  { %v19239_v39 = vadd.f32 %v19223_v38, %v18791_v42  ;;  %v15838_v44 = vpop.f32.mrb[13].mxu0 }
 0x535   :  { %v19240_v9 = vadd.f32 %v15838_v44, %v8008_v21  ;;  %v19224_v46 = vpop.f32.mrb[14].mxu0 }
 0x536   :  { %v15883_v49 = vpack.c.bf16 %v19239_v39, %v19239_v39  ;;  %v19241_v35 = vadd.f32 %v19224_v46, %v18792_v45  ;;  %v15841_v33 = vpop.f32.mrb[15].mxu0 }
 0x537   :  { %v15881_v55 = vpack.c.bf16 %v19240_v9, %v19240_v9  ;;  %v19242_v25 = vadd.f32 %v15841_v33, %v8011_v4 }
 0x538   :  { %15900 = vst.msk [vmem:[#allocation2 + $0x38] sm:$0xf] %vm15885_vm12, %v15883_v49  ;;  %v15884_v17 = vpack.c.bf16 %v19241_v35, %v19241_v35 }
 0x539   :  { %15898 = vst.msk [vmem:[#allocation2 + $0x30] sm:$0xf] %vm15885_vm12, %v15881_v55  ;;  %v15882_v63 = vpack.c.bf16 %v19242_v25, %v19242_v25 }
 0x53a   :  { %15901 = vst.msk [vmem:[#allocation2 + $0x3c] sm:$0xf] %vm15885_vm12, %v15884_v17 }
 0x53b   :  { %15899 = vst.msk [vmem:[#allocation2 + $0x34] sm:$0xf] %vm15885_vm12, %v15882_v63 }
 0x53c   :  { %20270 = shalt.err (!%p20267_p4)
}
 0x53d   :  { %s20271_s8 = scalar_lea.hbm %s27111_s2, 1024 }
 0x53e   :  { %p20272_p5 = scmp.ne.s32.totalorder %s27111_s2, %s20271_s8  ;;  %p20275_p6 = scmp.lt.u32.totalorder %s20271_s8, %s27111_s2 }
 0x540   :  { %p20277_p7 = pnand %p20275_p6, %p20272_p5 }
 0x542   :  { %20280 = shalt.err (!%p20277_p7)
}
 0x543   :  { %s20285_s13 = smov 64   ;;  %s20286_s14 = smov 4  }
 0x544   :  { %15913 = dma.vmem_to_hbm [thread:$0]  %s15908_s5, 1024, %s27111_s2, [#allocation3], %s20285_s13, %s20285_s13, %s20286_s14  }
 0x545   :  { %20281 = dma.done.wait [#allocation3], 1024  }
 0x546   :  { %20282 = vsyncadd [#allocation3], 4294966272 }
 0x547   :  { %15917 = vsyncpa [#allocation3], 1 }

</bundles_post_ra>
